<compile_context>
chip_gen: v7x
topology: tpu7x:2x2x1
jax: 0.10.0
libtpu: 0.0.40
codegen_flags: <defaults>
</compile_context>

<pallas_src>
import math
import functools

import jax
import jax.numpy as jnp
from jax.experimental import pallas as pl
from jax.experimental.pallas import tpu as pltpu


def _round_up(x, m):
    return ((x + m - 1) // m) * m


# ---------------------------------------------------------------------------
# Packed-parameter layouts (single source of truth for packer and kernel)
# ---------------------------------------------------------------------------

def _build_layouts(num_layers, D, in_dim_p, tgt_dim_p, target_dim):
    # Small vector params (biases, LayerNorm gains/biases): one row each in a (P, 3D) slab.
    sb_entries = [
        ("enc_inproj_b", D), ("dec_inproj_b", D),
        ("enc_norm_g", D), ("enc_norm_b", D),
        ("dec_norm_g", D), ("dec_norm_b", D),
        ("out_b", target_dim),
    ]
    for l in range(num_layers):
        sb_entries += [
            (f"enc{l}_qkv_b", 3 * D), (f"enc{l}_out_b", D), (f"enc{l}_ff2_b", D),
            (f"enc{l}_n1_g", D), (f"enc{l}_n1_b", D),
            (f"enc{l}_n2_g", D), (f"enc{l}_n2_b", D),
        ]
    for l in range(num_layers):
        sb_entries += [
            (f"dec{l}_sa_qkv_b", 3 * D), (f"dec{l}_sa_o_b", D),
            (f"dec{l}_ca_q_b", D), (f"dec{l}_ca_kv_b", 2 * D), (f"dec{l}_ca_o_b", D),
            (f"dec{l}_ff2_b", D),
            (f"dec{l}_n1_g", D), (f"dec{l}_n1_b", D),
            (f"dec{l}_n2_g", D), (f"dec{l}_n2_b", D),
            (f"dec{l}_n3_g", D), (f"dec{l}_n3_b", D),
        ]
    sb_rows = {name: (i, w) for i, (name, w) in enumerate(sb_entries)}

    # Attention / IO projection weights: row-blocked sections in a (R, 3D) slab.
    # All section row counts are multiples of 8 so offsets stay sublane-aligned.
    aw_entries = [
        ("enc_inproj_w", in_dim_p, D),
        ("dec_inproj_w", tgt_dim_p, D),
        ("out_w", D, target_dim),
    ]
    for l in range(num_layers):
        aw_entries += [(f"enc{l}_qkv_w", D, 3 * D), (f"enc{l}_out_w", D, D)]
    for l in range(num_layers):
        aw_entries += [(f"dec{l}_sa_qkv_w", D, 3 * D), (f"dec{l}_sa_o_w", D, D),
                       (f"dec{l}_ca_q_w", D, D), (f"dec{l}_ca_kv_w", D, 2 * D),
                       (f"dec{l}_ca_o_w", D, D)]
    aw_rows, off = {}, 0
    for name, nr, nc in aw_entries:
        aw_rows[name] = (off, nr, nc)
        off += nr
    return sb_rows, len(sb_entries), aw_rows, off


# ---------------------------------------------------------------------------
# The single fused kernel (one grid step per batch element)
# ---------------------------------------------------------------------------

def _transformer_kernel(*refs, S, T, D, F, nhead, num_layers, target_dim,
                        has_dec_in, eps, sb_rows, aw_rows):
    it = iter(refs)
    enc_in_ref = next(it)
    dec_in_ref = next(it) if has_dec_in else None
    pe_ref = next(it)
    small_b_ref = next(it)
    ff1_b_ref = next(it)
    attn_w_ref = next(it)
    ffn1_w_ref = next(it)
    ffn2_w_ref = next(it)
    o_ref = next(it)

    f32, bf16 = jnp.float32, jnp.bfloat16
    dh = D // nhead
    scale = 1.0 / math.sqrt(dh)

    # ---- packed-parameter accessors (static slices on VMEM refs) ----
    def sb(name):
        r, w = sb_rows[name]
        return small_b_ref[r:r + 1, :w]                      # (1, w) f32

    def aw(name):
        r, nr, nc = aw_rows[name]
        return attn_w_ref[r:r + nr, :nc]                     # (nr, nc) f32

    # ---- fused building blocks ----
    def linear(x, w, b):
        return jnp.dot(x, w, preferred_element_type=f32) + b

    def layernorm(x, g, b):
        mean = jnp.mean(x, axis=-1, keepdims=True)
        xc = x - mean
        var = jnp.mean(xc * xc, axis=-1, keepdims=True)
        return xc * jax.lax.rsqrt(var + eps) * g + b

    def add_ln(res, sub, gname, bname):                      # fused residual + LayerNorm
        return layernorm(res + sub, sb(gname), sb(bname))

    lane = jax.lax.broadcasted_iota(jnp.int32, (1, 1, D), 2)

    def softmax_rows(s):
        m = jnp.max(s, axis=-1, keepdims=True)
        p = jnp.exp(s - m)
        return p * pl.reciprocal(jnp.sum(p, axis=-1, keepdims=True), approx=True)

    def attention(q3, k3, v3, nq):
        # q3: (1, nq, D) pre-scaled; k3, v3: (1, nk, D).
        # Per-head lane masks on q/v avoid 16-wide lane slices and the lane-dim concat:
        # masked-q gives exact per-head scores over a full-D contraction; masked-v writes
        # each head's output into its own lanes, accumulated across heads.
        out = jnp.zeros((1, nq, D), f32)
        for h in range(nhead):
            m = ((lane >= h * dh) & (lane < (h + 1) * dh)).astype(f32)
            s = jnp.einsum("bqd,bkd->bqk", q3 * m, k3, preferred_element_type=f32)
            p = softmax_rows(s)
            out = out + jnp.einsum("bqk,bkd->bqd", p, v3 * m,
                                   preferred_element_type=f32)
        return out.reshape(nq, D)

    def mha_self(x, n, wqkv, bqkv, wo, bo):
        qkv = linear(x, aw(wqkv), sb(bqkv))                  # fused (n, 3D) projection
        q = (qkv[:, :D] * scale).reshape(1, n, D)
        k = qkv[:, D:2 * D].reshape(1, n, D)
        v = qkv[:, 2 * D:].reshape(1, n, D)
        return linear(attention(q, k, v, n), aw(wo), sb(bo))

    def mha_cross(xq, nq, xkv, nkv, wq, bq, wkv, bkv, wo, bo):
        q = (linear(xq, aw(wq), sb(bq)) * scale).reshape(1, nq, D)
        kv = linear(xkv, aw(wkv), sb(bkv))                   # fused (nkv, 2D) K/V projection
        k = kv[:, :D].reshape(1, nkv, D)
        v = kv[:, D:].reshape(1, nkv, D)
        return linear(attention(q, k, v, nq), aw(wo), sb(bo))

    def ffn(x, stage, l):                                    # bf16 weights, f32 accumulate
        idx = stage * num_layers + l
        w1 = ffn1_w_ref[idx * D:(idx + 1) * D, :]            # (D, F) bf16
        w2 = ffn2_w_ref[idx * F:(idx + 1) * F, :]            # (F, D) bf16
        b1 = ff1_b_ref[idx:idx + 1, :]                       # (1, F) f32
        b2 = sb(("enc" if stage == 0 else "dec") + f"{l}_ff2_b")
        h = jnp.dot(x.astype(bf16), w1, preferred_element_type=f32) + b1
        h = jnp.maximum(h, 0.0)                              # hidden never leaves VMEM
        return jnp.dot(h.astype(bf16), w2, preferred_element_type=f32) + b2

    pe = pe_ref[0]                                           # (max(S,T), D)

    # ----------------------------- encoder -----------------------------
    x = enc_in_ref[0]                                        # (S, in_dim_p) f32
    x = linear(x, aw("enc_inproj_w"), sb("enc_inproj_b")) + pe[:S]
    for l in range(num_layers):
        sa = mha_self(x, S, f"enc{l}_qkv_w", f"enc{l}_qkv_b",
                      f"enc{l}_out_w", f"enc{l}_out_b")
        x = add_ln(x, sa, f"enc{l}_n1_g", f"enc{l}_n1_b")
        x = add_ln(x, ffn(x, 0, l), f"enc{l}_n2_g", f"enc{l}_n2_b")
    memory = layernorm(x, sb("enc_norm_g"), sb("enc_norm_b"))

    # ----------------------------- decoder -----------------------------
    if has_dec_in:
        y = dec_in_ref[0]                                    # (T, tgt_dim_p) f32
        y = linear(y, aw("dec_inproj_w"), sb("dec_inproj_b")) + pe[:T]
    else:
        y = jnp.zeros((T, D), f32) + pe[:T]                  # zeros + positional encoding
    for l in range(num_layers):
        sa = mha_self(y, T, f"dec{l}_sa_qkv_w", f"dec{l}_sa_qkv_b",
                      f"dec{l}_sa_o_w", f"dec{l}_sa_o_b")
        y = add_ln(y, sa, f"dec{l}_n1_g", f"dec{l}_n1_b")
        ca = mha_cross(y, T, memory, S,
                       f"dec{l}_ca_q_w", f"dec{l}_ca_q_b",
                       f"dec{l}_ca_kv_w", f"dec{l}_ca_kv_b",
                       f"dec{l}_ca_o_w", f"dec{l}_ca_o_b")
        y = add_ln(y, ca, f"dec{l}_n2_g", f"dec{l}_n2_b")
        y = add_ln(y, ffn(y, 1, l), f"dec{l}_n3_g", f"dec{l}_n3_b")

    y = layernorm(y, sb("dec_norm_g"), sb("dec_norm_b"))
    out = linear(y, aw("out_w"), sb("out_b"))                # (T, target_dim)
    o_ref[...] = out.reshape(1, T, target_dim).astype(o_ref.dtype)


# ---------------------------------------------------------------------------
# Wrapper
# ---------------------------------------------------------------------------

def transformer_inflow_forward(packed, encoder_input, decoder_target=None, *, cfg):
    """Forward pass matching TransformerInflowReconstruction (eval mode)."""
    B, S, in_dim = encoder_input.shape
    D, L, F = cfg["D"], cfg["L"], cfg["F"]
    nhead, target_dim = cfg["nhead"], cfg["target_dim"]
    in_dim_p, tgt_dim_p = cfg["in_dim_p"], cfg["tgt_dim_p"]
    assert in_dim == cfg["in_dim"]
    assert D % nhead == 0

    has_dec = decoder_target is not None
    if has_dec:
        assert decoder_target.shape[-1] == target_dim
        T = decoder_target.shape[1]
    else:
        T = S
    max_st = max(S, T)

    def const_spec(shape):                                   # weight stays VMEM-resident
        n = len(shape)
        return pl.BlockSpec(shape, lambda b, _n=n: (0,) * _n)

    enc_in = jnp.pad(encoder_input.astype(jnp.float32),
                     ((0, 0), (0, 0), (0, in_dim_p - in_dim)))
    pe = packed["pe"][:, :max_st]                            # (1, max(S,T), D)

    args = [enc_in]
    in_specs = [pl.BlockSpec((1, S, in_dim_p), lambda b: (b, 0, 0))]
    if has_dec:
        dec_in = jnp.pad(decoder_target.astype(jnp.float32),
                         ((0, 0), (0, 0), (0, tgt_dim_p - target_dim)))
        args.append(dec_in)
        in_specs.append(pl.BlockSpec((1, T, tgt_dim_p), lambda b: (b, 0, 0)))
    for arr in (pe, packed["small_b"], packed["ff1_b"], packed["attn_w"],
                packed["ffn1_w"], packed["ffn2_w"]):
        args.append(arr)
        in_specs.append(const_spec(arr.shape))

    kernel = functools.partial(
        _transformer_kernel, S=S, T=T, D=D, F=F, nhead=nhead, num_layers=L,
        target_dim=target_dim, has_dec_in=has_dec, eps=1e-5,
        sb_rows=cfg["sb_rows"], aw_rows=cfg["aw_rows"])

    return pl.pallas_call(
        kernel,
        out_shape=jax.ShapeDtypeStruct((B, T, target_dim), jnp.float32),
        grid=(B,),
        in_specs=in_specs,
        out_specs=pl.BlockSpec((1, T, target_dim), lambda b: (b, 0, 0)),
        compiler_params=pltpu.CompilerParams(
            dimension_semantics=("parallel",),               # v7x: shard batch over 2 TCs
            vmem_limit_bytes=16 * 1024 * 1024,               # actual footprint ~7 MiB
        ),
    )(*args)


# ---------------------------------------------------------------------------
# Parameter init (raw, per-tensor) and packing into kernel slabs
# ---------------------------------------------------------------------------

def make_positional_encoding(max_len, d_model):
    position = jnp.arange(max_len, dtype=jnp.float32)[:, None]
    div_term = jnp.exp(-math.log(10000.0)
                       * jnp.arange(0, d_model, 2, dtype=jnp.float32) / d_model)
    pe = jnp.zeros((max_len, d_model), dtype=jnp.float32)
    pe = pe.at[:, 0::2].set(jnp.sin(position * div_term))
    pe = pe.at[:, 1::2].set(jnp.cos(position * div_term))
    return pe[None]  # (1, max_len, d_model)


def init_params(key, input_dim, target_dim, model_dim=64, nhead=4, num_layers=2,
                dim_feedforward=2048, max_len=5000):
    """Raw per-tensor params; matmul weights stored (in, out); FFN weights bf16-rounded so
    the kernel's bf16 slabs carry exactly the same values as the f32 reference."""
    keys = iter(jax.random.split(key, 1024))

    def w(*shape):
        return 0.02 * jax.random.normal(next(keys), shape, jnp.float32)

    def b(*shape):
        return 0.1 * jax.random.normal(next(keys), shape, jnp.float32)

    def g(*shape):
        return 1.0 + 0.1 * jax.random.normal(next(keys), shape, jnp.float32)

    def stack(fn, *shape):
        return jnp.stack([fn(*shape) for _ in range(num_layers)])

    def bf16_round(x):
        return x.astype(jnp.bfloat16).astype(jnp.float32)

    D, Fd = model_dim, dim_feedforward
    return {
        "pe": make_positional_encoding(max_len, model_dim),
        "enc_inproj_w": w(input_dim, D), "enc_inproj_b": b(1, D),
        "dec_inproj_w": w(target_dim, D), "dec_inproj_b": b(1, D),
        "out_w": w(D, target_dim), "out_b": b(1, target_dim),
        "enc_norm_g": g(1, D), "enc_norm_b": b(1, D),
        "dec_norm_g": g(1, D), "dec_norm_b": b(1, D),
        "enc_qkv_w": stack(w, D, 3 * D), "enc_qkv_b": stack(b, 1, 3 * D),
        "enc_out_w": stack(w, D, D), "enc_out_b": stack(b, 1, D),
        "enc_ff1_w": bf16_round(stack(w, D, Fd)), "enc_ff1_b": stack(b, 1, Fd),
        "enc_ff2_w": bf16_round(stack(w, Fd, D)), "enc_ff2_b": stack(b, 1, D),
        "enc_n1_g": stack(g, 1, D), "enc_n1_b": stack(b, 1, D),
        "enc_n2_g": stack(g, 1, D), "enc_n2_b": stack(b, 1, D),
        "dec_sa_qkv_w": stack(w, D, 3 * D), "dec_sa_qkv_b": stack(b, 1, 3 * D),
        "dec_sa_o_w": stack(w, D, D), "dec_sa_o_b": stack(b, 1, D),
        "dec_ca_q_w": stack(w, D, D), "dec_ca_q_b": stack(b, 1, D),
        "dec_ca_kv_w": stack(w, D, 2 * D), "dec_ca_kv_b": stack(b, 1, 2 * D),
        "dec_ca_o_w": stack(w, D, D), "dec_ca_o_b": stack(b, 1, D),
        "dec_ff1_w": bf16_round(stack(w, D, Fd)), "dec_ff1_b": stack(b, 1, Fd),
        "dec_ff2_w": bf16_round(stack(w, Fd, D)), "dec_ff2_b": stack(b, 1, D),
        "dec_n1_g": stack(g, 1, D), "dec_n1_b": stack(b, 1, D),
        "dec_n2_g": stack(g, 1, D), "dec_n2_b": stack(b, 1, D),
        "dec_n3_g": stack(g, 1, D), "dec_n3_b": stack(b, 1, D),
    }


def pack_params(raw, *, nhead=4):
    """Pack raw params into a few large slabs for the kernel; returns (packed, cfg)."""
    D = raw["enc_inproj_w"].shape[1]
    L = raw["enc_qkv_w"].shape[0]
    F = raw["enc_ff1_w"].shape[-1]
    in_dim = raw["enc_inproj_w"].shape[0]
    target_dim = raw["dec_inproj_w"].shape[0]
    in_dim_p = _round_up(in_dim, 8)
    tgt_dim_p = _round_up(target_dim, 8)
    sb_rows, n_sb, aw_rows, n_aw = _build_layouts(L, D, in_dim_p, tgt_dim_p, target_dim)

    vecs = {
        "enc_inproj_b": raw["enc_inproj_b"], "dec_inproj_b": raw["dec_inproj_b"],
        "enc_norm_g": raw["enc_norm_g"], "enc_norm_b": raw["enc_norm_b"],
        "dec_norm_g": raw["dec_norm_g"], "dec_norm_b": raw["dec_norm_b"],
        "out_b": raw["out_b"],
    }
    mats = {
        "enc_inproj_w": jnp.pad(raw["enc_inproj_w"], ((0, in_dim_p - in_dim), (0, 0))),
        "dec_inproj_w": jnp.pad(raw["dec_inproj_w"], ((0, tgt_dim_p - target_dim), (0, 0))),
        "out_w": raw["out_w"],
    }
    for l in range(L):
        vecs[f"enc{l}_qkv_b"] = raw["enc_qkv_b"][l]; vecs[f"enc{l}_out_b"] = raw["enc_out_b"][l]
        vecs[f"enc{l}_ff2_b"] = raw["enc_ff2_b"][l]
        vecs[f"enc{l}_n1_g"] = raw["enc_n1_g"][l]; vecs[f"enc{l}_n1_b"] = raw["enc_n1_b"][l]
        vecs[f"enc{l}_n2_g"] = raw["enc_n2_g"][l]; vecs[f"enc{l}_n2_b"] = raw["enc_n2_b"][l]
        mats[f"enc{l}_qkv_w"] = raw["enc_qkv_w"][l]; mats[f"enc{l}_out_w"] = raw["enc_out_w"][l]

        vecs[f"dec{l}_sa_qkv_b"] = raw["dec_sa_qkv_b"][l]; vecs[f"dec{l}_sa_o_b"] = raw["dec_sa_o_b"][l]
        vecs[f"dec{l}_ca_q_b"] = raw["dec_ca_q_b"][l]; vecs[f"dec{l}_ca_kv_b"] = raw["dec_ca_kv_b"][l]
        vecs[f"dec{l}_ca_o_b"] = raw["dec_ca_o_b"][l]; vecs[f"dec{l}_ff2_b"] = raw["dec_ff2_b"][l]
        vecs[f"dec{l}_n1_g"] = raw["dec_n1_g"][l]; vecs[f"dec{l}_n1_b"] = raw["dec_n1_b"][l]
        vecs[f"dec{l}_n2_g"] = raw["dec_n2_g"][l]; vecs[f"dec{l}_n2_b"] = raw["dec_n2_b"][l]
        vecs[f"dec{l}_n3_g"] = raw["dec_n3_g"][l]; vecs[f"dec{l}_n3_b"] = raw["dec_n3_b"][l]
        mats[f"dec{l}_sa_qkv_w"] = raw["dec_sa_qkv_w"][l]; mats[f"dec{l}_sa_o_w"] = raw["dec_sa_o_w"][l]
        mats[f"dec{l}_ca_q_w"] = raw["dec_ca_q_w"][l]; mats[f"dec{l}_ca_kv_w"] = raw["dec_ca_kv_w"][l]
        mats[f"dec{l}_ca_o_w"] = raw["dec_ca_o_w"][l]

    small_b = jnp.zeros((n_sb, 3 * D), jnp.float32)
    for name, (r, w_) in sb_rows.items():
        v = vecs[name].reshape(1, -1)
        assert v.shape[1] == w_, (name, v.shape, w_)
        small_b = small_b.at[r:r + 1, :w_].set(v)

    attn_w = jnp.zeros((n_aw, 3 * D), jnp.float32)
    for name, (r, nr, nc) in aw_rows.items():
        m = mats[name]
        assert m.shape == (nr, nc), (name, m.shape, (nr, nc))
        attn_w = attn_w.at[r:r + nr, :nc].set(m)

    bf16 = jnp.bfloat16
    ffn1_w = jnp.concatenate([raw["enc_ff1_w"].reshape(L * D, F),
                              raw["dec_ff1_w"].reshape(L * D, F)], 0).astype(bf16)
    ffn2_w = jnp.concatenate([raw["enc_ff2_w"].reshape(L * F, D),
                              raw["dec_ff2_w"].reshape(L * F, D)], 0).astype(bf16)
    ff1_b = jnp.concatenate([raw["enc_ff1_b"].reshape(L, F),
                             raw["dec_ff1_b"].reshape(L, F)], 0)

    packed = {"pe": raw["pe"], "small_b": small_b, "ff1_b": ff1_b,
              "attn_w": attn_w, "ffn1_w": ffn1_w, "ffn2_w": ffn2_w}
    cfg = {"D": D, "L": L, "F": F, "nhead": nhead,
           "in_dim": in_dim, "target_dim": target_dim,
           "in_dim_p": in_dim_p, "tgt_dim_p": tgt_dim_p,
           "sb_rows": sb_rows, "aw_rows": aw_rows}
    return packed, cfg


# ---------------------------------------------------------------------------
# Independent pure-JAX reference (no Pallas) — correctness check only
# ---------------------------------------------------------------------------

def reference_forward(params, encoder_input, decoder_target=None, *, nhead=4):
    HI = jax.lax.Precision.HIGHEST
    D = params["enc_inproj_w"].shape[1]
    L = params["enc_qkv_w"].shape[0]
    B, S, _ = encoder_input.shape
    dh = D // nhead
    eps = 1e-5

    def lin(x, w, b):
        return jnp.dot(x, w, precision=HI) + b

    def lnorm(x, g, b):
        m = jnp.mean(x, -1, keepdims=True)
        v = jnp.mean((x - m) ** 2, -1, keepdims=True)
        return (x - m) / jnp.sqrt(v + eps) * g + b

    def split_heads(t):
        b, n, _ = t.shape
        return t.reshape(b, n, nhead, dh).transpose(0, 2, 1, 3)

    def merge_heads(t):
        b, h, n, _ = t.shape
        return t.transpose(0, 2, 1, 3).reshape(b, n, D)

    def attn(q, k, v):
        s = jnp.einsum("bhqd,bhkd->bhqk", q, k, precision=HI) / math.sqrt(dh)
        p = jax.nn.softmax(s, axis=-1)
        return jnp.einsum("bhqk,bhkd->bhqd", p, v, precision=HI)

    def mha(xq, xkv, wqkv, bqkv, wo, bo):
        q = lin(xq, wqkv[:, :D], bqkv[:, :D])
        k = lin(xkv, wqkv[:, D:2 * D], bqkv[:, D:2 * D])
        v = lin(xkv, wqkv[:, 2 * D:], bqkv[:, 2 * D:])
        return lin(merge_heads(attn(split_heads(q), split_heads(k), split_heads(v))), wo, bo)

    def mha_cross(xq, xkv, wq, bq, wkv, bkv, wo, bo):
        q = lin(xq, wq, bq)
        k = lin(xkv, wkv[:, :D], bkv[:, :D])
        v = lin(xkv, wkv[:, D:], bkv[:, D:])
        return lin(merge_heads(attn(split_heads(q), split_heads(k), split_heads(v))), wo, bo)

    def ffn(x, w1, b1, w2, b2):
        return lin(jax.nn.relu(lin(x, w1, b1)), w2, b2)

    x = lin(encoder_input, params["enc_inproj_w"], params["enc_inproj_b"]) + params["pe"][:, :S]
    for l in range(L):
        x = lnorm(x + mha(x, x, params["enc_qkv_w"][l], params["enc_qkv_b"][l],
                          params["enc_out_w"][l], params["enc_out_b"][l]),
                  params["enc_n1_g"][l], params["enc_n1_b"][l])
        x = lnorm(x + ffn(x, params["enc_ff1_w"][l], params["enc_ff1_b"][l],
                          params["enc_ff2_w"][l], params["enc_ff2_b"][l]),
                  params["enc_n2_g"][l], params["enc_n2_b"][l])
    memory = lnorm(x, params["enc_norm_g"], params["enc_norm_b"])

    if decoder_target is not None:
        T = decoder_target.shape[1]
        y = lin(decoder_target, params["dec_inproj_w"], params["dec_inproj_b"]) + params["pe"][:, :T]
    else:
        T = S
        y = jnp.zeros((B, T, D), jnp.float32) + params["pe"][:, :T]

    for l in range(L):
        y = lnorm(y + mha(y, y, params["dec_sa_qkv_w"][l], params["dec_sa_qkv_b"][l],
                          params["dec_sa_o_w"][l], params["dec_sa_o_b"][l]),
                  params["dec_n1_g"][l], params["dec_n1_b"][l])
        y = lnorm(y + mha_cross(y, memory,
                                params["dec_ca_q_w"][l], params["dec_ca_q_b"][l],
                                params["dec_ca_kv_w"][l], params["dec_ca_kv_b"][l],
                                params["dec_ca_o_w"][l], params["dec_ca_o_b"][l]),
                  params["dec_n2_g"][l], params["dec_n2_b"][l])
        y = lnorm(y + ffn(y, params["dec_ff1_w"][l], params["dec_ff1_b"][l],
                          params["dec_ff2_w"][l], params["dec_ff2_b"][l]),
                  params["dec_n3_g"][l], params["dec_n3_b"][l])
    y = lnorm(y, params["dec_norm_g"], params["dec_norm_b"])
    return lin(y, params["out_w"], params["out_b"])


# ---------------------------------------------------------------------------
# Main
# ---------------------------------------------------------------------------

if __name__ == "__main__":
    B, S = 2, 8            # batch, sequence length
    input_dim = 6          # num sensors
    target_dim = 5         # num modes
    model_dim, nhead, num_layers = 64, 4, 2

    key = jax.random.PRNGKey(0)
    k_p, k_x, k_y = jax.random.split(key, 3)

    raw = init_params(k_p, input_dim, target_dim, model_dim=model_dim,
                      nhead=nhead, num_layers=num_layers)
    packed, cfg = pack_params(raw, nhead=nhead)

    encoder_input = jax.random.normal(k_x, (B, S, input_dim), jnp.float32)
    decoder_target = jax.random.normal(k_y, (B, S, target_dim), jnp.float32)

    fwd = jax.jit(functools.partial(transformer_inflow_forward, cfg=cfg))
    ref_fn = jax.jit(functools.partial(reference_forward, nhead=nhead))

    # Training/validation path (decoder_target provided).
    out = jax.block_until_ready(fwd(packed, encoder_input, decoder_target))
    assert out.shape == (B, S, target_dim), out.shape
    assert bool(jnp.all(jnp.isfinite(out)))
    ref = ref_fn(raw, encoder_input, decoder_target)
    assert bool(jnp.allclose(out, ref, rtol=2e-2, atol=2e-2)), \
        float(jnp.max(jnp.abs(out - ref)))

    # Testing path (decoder_target=None -> zeros + positional encoding).
    out_none = jax.block_until_ready(fwd(packed, encoder_input, None))
    assert out_none.shape == (B, S, target_dim)
    assert bool(jnp.all(jnp.isfinite(out_none)))
    ref_none = ref_fn(raw, encoder_input, None)
    assert bool(jnp.allclose(out_none, ref_none, rtol=2e-2, atol=2e-2)), \
        float(jnp.max(jnp.abs(out_none - ref_none)))

    print("KERNEL_OK")
</pallas_src>

<mosaic_0001>
module attributes {stable_mosaic.version = 11 : i64} {
  func.func @_transformer_kernel(%arg0: i32, %arg1: memref<1x8x8xf32, #tpu.memory_space<vmem>>, %arg2: memref<1x8x8xf32, #tpu.memory_space<vmem>>, %arg3: memref<1x8x64xf32, #tpu.memory_space<vmem>>, %arg4: memref<45x192xf32, #tpu.memory_space<vmem>>, %arg5: memref<4x2048xf32, #tpu.memory_space<vmem>>, %arg6: memref<976x192xf32, #tpu.memory_space<vmem>>, %arg7: memref<256x2048xbf16, #tpu.memory_space<vmem>>, %arg8: memref<8192x64xbf16, #tpu.memory_space<vmem>>, %arg9: memref<1x8x5xf32, #tpu.memory_space<vmem>>) attributes {dimension_semantics = [#tpu.dimension_semantics<parallel>], iteration_bounds = array<i64: 2>, scalar_prefetch = 0 : i64, scratch_operands = 0 : i64, tpu.core_type = #tpu.core_type<tc>, window_params = [{transform_indices = @transform_0, window_bounds = array<i64: 1, 8, 8>}, {transform_indices = @transform_1, window_bounds = array<i64: 1, 8, 8>}, {pipeline_mode = #tpu.pipeline_mode<synchronous>, transform_indices = @transform_2, window_bounds = array<i64: 1, 8, 64>}, {pipeline_mode = #tpu.pipeline_mode<synchronous>, transform_indices = @transform_3, window_bounds = array<i64: 45, 192>}, {pipeline_mode = #tpu.pipeline_mode<synchronous>, transform_indices = @transform_4, window_bounds = array<i64: 4, 2048>}, {pipeline_mode = #tpu.pipeline_mode<synchronous>, transform_indices = @transform_5, window_bounds = array<i64: 976, 192>}, {pipeline_mode = #tpu.pipeline_mode<synchronous>, transform_indices = @transform_6, window_bounds = array<i64: 256, 2048>}, {pipeline_mode = #tpu.pipeline_mode<synchronous>, transform_indices = @transform_7, window_bounds = array<i64: 8192, 64>}, {transform_indices = @transform_8, window_bounds = array<i64: 1, 8, 5>}]} {
    %0 = tpu.iota {dimensions = array<i32: 2>} : vector<1x1x64xi32>
    %c0 = arith.constant 0 : index
    %c0_0 = arith.constant 0 : index
    %c0_1 = arith.constant 0 : index
    %1 = vector.load %arg3[%c0, %c0_0, %c0_1] : memref<1x8x64xf32, #tpu.memory_space<vmem>>, vector<1x8x64xf32>
    %2 = vector.shape_cast %1 : vector<1x8x64xf32> to vector<8x64xf32>
    %c0_2 = arith.constant 0 : index
    %c0_3 = arith.constant 0 : index
    %c0_4 = arith.constant 0 : index
    %3 = vector.load %arg1[%c0_2, %c0_3, %c0_4] : memref<1x8x8xf32, #tpu.memory_space<vmem>>, vector<1x8x8xf32>
    %4 = vector.shape_cast %3 : vector<1x8x8xf32> to vector<8x8xf32>
    %c0_5 = arith.constant 0 : index
    %c0_6 = arith.constant 0 : index
    %5 = vector.load %arg6[%c0_5, %c0_6] : memref<976x192xf32, #tpu.memory_space<vmem>>, vector<8x64xf32>
    %c0_7 = arith.constant 0 : index
    %c0_8 = arith.constant 0 : index
    %6 = vector.load %arg4[%c0_7, %c0_8] : memref<45x192xf32, #tpu.memory_space<vmem>>, vector<1x64xf32>
    %cst = arith.constant dense<0.000000e+00> : vector<8x64xf32>
    %7 = tpu.matmul %4, %5, %cst {dimension_numbers = #tpu.dot_dimension_numbers<[1], [0], [0], [1], [0, 0, 1, 1], [], []>} : vector<8x8xf32>, vector<8x64xf32>, vector<8x64xf32> -> vector<8x64xf32>
    %8 = vector.broadcast %6 : vector<1x64xf32> to vector<8x64xf32>
    %9 = arith.addf %7, %8 : vector<8x64xf32>
    %10 = arith.addf %9, %2 : vector<8x64xf32>
    %c80 = arith.constant 80 : index
    %c0_9 = arith.constant 0 : index
    %11 = vector.load %arg6[%c80, %c0_9] : memref<976x192xf32, #tpu.memory_space<vmem>>, vector<64x192xf32>
    %c7 = arith.constant 7 : index
    %c0_10 = arith.constant 0 : index
    %12 = vector.load %arg4[%c7, %c0_10] : memref<45x192xf32, #tpu.memory_space<vmem>>, vector<1x192xf32>
    %cst_11 = arith.constant dense<0.000000e+00> : vector<8x192xf32>
    %13 = tpu.matmul %10, %11, %cst_11 {dimension_numbers = #tpu.dot_dimension_numbers<[1], [0], [0], [1], [0, 0, 1, 1], [], []>} : vector<8x64xf32>, vector<64x192xf32>, vector<8x192xf32> -> vector<8x192xf32>
    %14 = vector.broadcast %12 : vector<1x192xf32> to vector<8x192xf32>
    %15 = arith.addf %13, %14 : vector<8x192xf32>
    %16 = vector.extract_strided_slice %15 {offsets = [0, 0], sizes = [8, 64], strides = [1, 1]} : vector<8x192xf32> to vector<8x64xf32>
    %cst_12 = arith.constant 2.500000e-01 : f32
    %17 = vector.broadcast %cst_12 : f32 to vector<8x64xf32>
    %18 = arith.mulf %16, %17 : vector<8x64xf32>
    %19 = vector.shape_cast %18 : vector<8x64xf32> to vector<1x8x64xf32>
    %20 = vector.extract_strided_slice %15 {offsets = [0, 64], sizes = [8, 64], strides = [1, 1]} : vector<8x192xf32> to vector<8x64xf32>
    %21 = vector.shape_cast %20 : vector<8x64xf32> to vector<1x8x64xf32>
    %22 = vector.extract_strided_slice %15 {offsets = [0, 128], sizes = [8, 64], strides = [1, 1]} : vector<8x192xf32> to vector<8x64xf32>
    %23 = vector.shape_cast %22 : vector<8x64xf32> to vector<1x8x64xf32>
    %cst_13 = arith.constant 0.000000e+00 : f32
    %24 = vector.broadcast %cst_13 : f32 to vector<1x8x64xf32>
    %c0_i32 = arith.constant 0 : i32
    %25 = vector.broadcast %c0_i32 : i32 to vector<1x1x64xi32>
    %26 = arith.cmpi sge, %0, %25 : vector<1x1x64xi32>
    %c16_i32 = arith.constant 16 : i32
    %27 = vector.broadcast %c16_i32 : i32 to vector<1x1x64xi32>
    %28 = arith.cmpi slt, %0, %27 : vector<1x1x64xi32>
    %29 = arith.andi %26, %28 : vector<1x1x64xi1>
    %30 = arith.extui %29 : vector<1x1x64xi1> to vector<1x1x64xi32>
    %31 = arith.sitofp %30 : vector<1x1x64xi32> to vector<1x1x64xf32>
    %32 = vector.broadcast %31 : vector<1x1x64xf32> to vector<1x8x64xf32>
    %33 = arith.mulf %19, %32 : vector<1x8x64xf32>
    "tpu.trace_start"() <{level = 10 : i32, message = "bqd,bkd->bqk"}> : () -> ()
    %cst_14 = arith.constant dense<0.000000e+00> : vector<1x8x8xf32>
    %34 = tpu.matmul %33, %21, %cst_14 {dimension_numbers = #tpu.dot_dimension_numbers<[2], [2], [1], [1], [0, 0, 0, 1, 1, 1], [0], [0]>} : vector<1x8x64xf32>, vector<1x8x64xf32>, vector<1x8x8xf32> -> vector<1x8x8xf32>
    "tpu.trace_stop"() : () -> ()
    %cst_15 = arith.constant dense<0xFF800000> : vector<1x8xf32>
    %35 = vector.multi_reduction <maximumf>, %34, %cst_15 [2] : vector<1x8x8xf32> to vector<1x8xf32>
    %36 = vector.shape_cast %35 : vector<1x8xf32> to vector<1x8x1xf32>
    %37 = vector.broadcast %36 : vector<1x8x1xf32> to vector<1x8x8xf32>
    %38 = arith.subf %34, %37 : vector<1x8x8xf32>
    %39 = math.exp %38 : vector<1x8x8xf32>
    %cst_16 = arith.constant dense<0.000000e+00> : vector<1x8xf32>
    %40 = vector.multi_reduction <add>, %39, %cst_16 [2] : vector<1x8x8xf32> to vector<1x8xf32>
    %41 = vector.shape_cast %40 : vector<1x8xf32> to vector<1x8x1xf32>
    %42 = tpu.reciprocal %41 {approx = true} : vector<1x8x1xf32> -> vector<1x8x1xf32>
    %43 = vector.broadcast %42 : vector<1x8x1xf32> to vector<1x8x8xf32>
    %44 = arith.mulf %39, %43 : vector<1x8x8xf32>
    %45 = vector.broadcast %31 : vector<1x1x64xf32> to vector<1x8x64xf32>
    %46 = arith.mulf %23, %45 : vector<1x8x64xf32>
    "tpu.trace_start"() <{level = 10 : i32, message = "bqk,bkd->bqd"}> : () -> ()
    %cst_17 = arith.constant dense<0.000000e+00> : vector<1x8x64xf32>
    %47 = tpu.matmul %44, %46, %cst_17 {dimension_numbers = #tpu.dot_dimension_numbers<[2], [1], [1], [2], [0, 0, 0, 1, 1, 2], [0], [0]>} : vector<1x8x8xf32>, vector<1x8x64xf32>, vector<1x8x64xf32> -> vector<1x8x64xf32>
    "tpu.trace_stop"() : () -> ()
    %48 = arith.addf %24, %47 : vector<1x8x64xf32>
    %c16_i32_18 = arith.constant 16 : i32
    %49 = vector.broadcast %c16_i32_18 : i32 to vector<1x1x64xi32>
    %50 = arith.cmpi sge, %0, %49 : vector<1x1x64xi32>
    %c32_i32 = arith.constant 32 : i32
    %51 = vector.broadcast %c32_i32 : i32 to vector<1x1x64xi32>
    %52 = arith.cmpi slt, %0, %51 : vector<1x1x64xi32>
    %53 = arith.andi %50, %52 : vector<1x1x64xi1>
    %54 = arith.extui %53 : vector<1x1x64xi1> to vector<1x1x64xi32>
    %55 = arith.sitofp %54 : vector<1x1x64xi32> to vector<1x1x64xf32>
    %56 = vector.broadcast %55 : vector<1x1x64xf32> to vector<1x8x64xf32>
    %57 = arith.mulf %19, %56 : vector<1x8x64xf32>
    "tpu.trace_start"() <{level = 10 : i32, message = "bqd,bkd->bqk"}> : () -> ()
    %cst_19 = arith.constant dense<0.000000e+00> : vector<1x8x8xf32>
    %58 = tpu.matmul %57, %21, %cst_19 {dimension_numbers = #tpu.dot_dimension_numbers<[2], [2], [1], [1], [0, 0, 0, 1, 1, 1], [0], [0]>} : vector<1x8x64xf32>, vector<1x8x64xf32>, vector<1x8x8xf32> -> vector<1x8x8xf32>
    "tpu.trace_stop"() : () -> ()
    %cst_20 = arith.constant dense<0xFF800000> : vector<1x8xf32>
    %59 = vector.multi_reduction <maximumf>, %58, %cst_20 [2] : vector<1x8x8xf32> to vector<1x8xf32>
    %60 = vector.shape_cast %59 : vector<1x8xf32> to vector<1x8x1xf32>
    %61 = vector.broadcast %60 : vector<1x8x1xf32> to vector<1x8x8xf32>
    %62 = arith.subf %58, %61 : vector<1x8x8xf32>
    %63 = math.exp %62 : vector<1x8x8xf32>
    %cst_21 = arith.constant dense<0.000000e+00> : vector<1x8xf32>
    %64 = vector.multi_reduction <add>, %63, %cst_21 [2] : vector<1x8x8xf32> to vector<1x8xf32>
    %65 = vector.shape_cast %64 : vector<1x8xf32> to vector<1x8x1xf32>
    %66 = tpu.reciprocal %65 {approx = true} : vector<1x8x1xf32> -> vector<1x8x1xf32>
    %67 = vector.broadcast %66 : vector<1x8x1xf32> to vector<1x8x8xf32>
    %68 = arith.mulf %63, %67 : vector<1x8x8xf32>
    %69 = vector.broadcast %55 : vector<1x1x64xf32> to vector<1x8x64xf32>
    %70 = arith.mulf %23, %69 : vector<1x8x64xf32>
    "tpu.trace_start"() <{level = 10 : i32, message = "bqk,bkd->bqd"}> : () -> ()
    %cst_22 = arith.constant dense<0.000000e+00> : vector<1x8x64xf32>
    %71 = tpu.matmul %68, %70, %cst_22 {dimension_numbers = #tpu.dot_dimension_numbers<[2], [1], [1], [2], [0, 0, 0, 1, 1, 2], [0], [0]>} : vector<1x8x8xf32>, vector<1x8x64xf32>, vector<1x8x64xf32> -> vector<1x8x64xf32>
    "tpu.trace_stop"() : () -> ()
    %72 = arith.addf %48, %71 : vector<1x8x64xf32>
    %c32_i32_23 = arith.constant 32 : i32
    %73 = vector.broadcast %c32_i32_23 : i32 to vector<1x1x64xi32>
    %74 = arith.cmpi sge, %0, %73 : vector<1x1x64xi32>
    %c48_i32 = arith.constant 48 : i32
    %75 = vector.broadcast %c48_i32 : i32 to vector<1x1x64xi32>
    %76 = arith.cmpi slt, %0, %75 : vector<1x1x64xi32>
    %77 = arith.andi %74, %76 : vector<1x1x64xi1>
    %78 = arith.extui %77 : vector<1x1x64xi1> to vector<1x1x64xi32>
    %79 = arith.sitofp %78 : vector<1x1x64xi32> to vector<1x1x64xf32>
    %80 = vector.broadcast %79 : vector<1x1x64xf32> to vector<1x8x64xf32>
    %81 = arith.mulf %19, %80 : vector<1x8x64xf32>
    "tpu.trace_start"() <{level = 10 : i32, message = "bqd,bkd->bqk"}> : () -> ()
    %cst_24 = arith.constant dense<0.000000e+00> : vector<1x8x8xf32>
    %82 = tpu.matmul %81, %21, %cst_24 {dimension_numbers = #tpu.dot_dimension_numbers<[2], [2], [1], [1], [0, 0, 0, 1, 1, 1], [0], [0]>} : vector<1x8x64xf32>, vector<1x8x64xf32>, vector<1x8x8xf32> -> vector<1x8x8xf32>
    "tpu.trace_stop"() : () -> ()
    %cst_25 = arith.constant dense<0xFF800000> : vector<1x8xf32>
    %83 = vector.multi_reduction <maximumf>, %82, %cst_25 [2] : vector<1x8x8xf32> to vector<1x8xf32>
    %84 = vector.shape_cast %83 : vector<1x8xf32> to vector<1x8x1xf32>
    %85 = vector.broadcast %84 : vector<1x8x1xf32> to vector<1x8x8xf32>
    %86 = arith.subf %82, %85 : vector<1x8x8xf32>
    %87 = math.exp %86 : vector<1x8x8xf32>
    %cst_26 = arith.constant dense<0.000000e+00> : vector<1x8xf32>
    %88 = vector.multi_reduction <add>, %87, %cst_26 [2] : vector<1x8x8xf32> to vector<1x8xf32>
    %89 = vector.shape_cast %88 : vector<1x8xf32> to vector<1x8x1xf32>
    %90 = tpu.reciprocal %89 {approx = true} : vector<1x8x1xf32> -> vector<1x8x1xf32>
    %91 = vector.broadcast %90 : vector<1x8x1xf32> to vector<1x8x8xf32>
    %92 = arith.mulf %87, %91 : vector<1x8x8xf32>
    %93 = vector.broadcast %79 : vector<1x1x64xf32> to vector<1x8x64xf32>
    %94 = arith.mulf %23, %93 : vector<1x8x64xf32>
    "tpu.trace_start"() <{level = 10 : i32, message = "bqk,bkd->bqd"}> : () -> ()
    %cst_27 = arith.constant dense<0.000000e+00> : vector<1x8x64xf32>
    %95 = tpu.matmul %92, %94, %cst_27 {dimension_numbers = #tpu.dot_dimension_numbers<[2], [1], [1], [2], [0, 0, 0, 1, 1, 2], [0], [0]>} : vector<1x8x8xf32>, vector<1x8x64xf32>, vector<1x8x64xf32> -> vector<1x8x64xf32>
    "tpu.trace_stop"() : () -> ()
    %96 = arith.addf %72, %95 : vector<1x8x64xf32>
    %c48_i32_28 = arith.constant 48 : i32
    %97 = vector.broadcast %c48_i32_28 : i32 to vector<1x1x64xi32>
    %98 = arith.cmpi sge, %0, %97 : vector<1x1x64xi32>
    %c64_i32 = arith.constant 64 : i32
    %99 = vector.broadcast %c64_i32 : i32 to vector<1x1x64xi32>
    %100 = arith.cmpi slt, %0, %99 : vector<1x1x64xi32>
    %101 = arith.andi %98, %100 : vector<1x1x64xi1>
    %102 = arith.extui %101 : vector<1x1x64xi1> to vector<1x1x64xi32>
    %103 = arith.sitofp %102 : vector<1x1x64xi32> to vector<1x1x64xf32>
    %104 = vector.broadcast %103 : vector<1x1x64xf32> to vector<1x8x64xf32>
    %105 = arith.mulf %19, %104 : vector<1x8x64xf32>
    "tpu.trace_start"() <{level = 10 : i32, message = "bqd,bkd->bqk"}> : () -> ()
    %cst_29 = arith.constant dense<0.000000e+00> : vector<1x8x8xf32>
    %106 = tpu.matmul %105, %21, %cst_29 {dimension_numbers = #tpu.dot_dimension_numbers<[2], [2], [1], [1], [0, 0, 0, 1, 1, 1], [0], [0]>} : vector<1x8x64xf32>, vector<1x8x64xf32>, vector<1x8x8xf32> -> vector<1x8x8xf32>
    "tpu.trace_stop"() : () -> ()
    %cst_30 = arith.constant dense<0xFF800000> : vector<1x8xf32>
    %107 = vector.multi_reduction <maximumf>, %106, %cst_30 [2] : vector<1x8x8xf32> to vector<1x8xf32>
    %108 = vector.shape_cast %107 : vector<1x8xf32> to vector<1x8x1xf32>
    %109 = vector.broadcast %108 : vector<1x8x1xf32> to vector<1x8x8xf32>
    %110 = arith.subf %106, %109 : vector<1x8x8xf32>
    %111 = math.exp %110 : vector<1x8x8xf32>
    %cst_31 = arith.constant dense<0.000000e+00> : vector<1x8xf32>
    %112 = vector.multi_reduction <add>, %111, %cst_31 [2] : vector<1x8x8xf32> to vector<1x8xf32>
    %113 = vector.shape_cast %112 : vector<1x8xf32> to vector<1x8x1xf32>
    %114 = tpu.reciprocal %113 {approx = true} : vector<1x8x1xf32> -> vector<1x8x1xf32>
    %115 = vector.broadcast %114 : vector<1x8x1xf32> to vector<1x8x8xf32>
    %116 = arith.mulf %111, %115 : vector<1x8x8xf32>
    %117 = vector.broadcast %103 : vector<1x1x64xf32> to vector<1x8x64xf32>
    %118 = arith.mulf %23, %117 : vector<1x8x64xf32>
    "tpu.trace_start"() <{level = 10 : i32, message = "bqk,bkd->bqd"}> : () -> ()
    %cst_32 = arith.constant dense<0.000000e+00> : vector<1x8x64xf32>
    %119 = tpu.matmul %116, %118, %cst_32 {dimension_numbers = #tpu.dot_dimension_numbers<[2], [1], [1], [2], [0, 0, 0, 1, 1, 2], [0], [0]>} : vector<1x8x8xf32>, vector<1x8x64xf32>, vector<1x8x64xf32> -> vector<1x8x64xf32>
    "tpu.trace_stop"() : () -> ()
    %120 = arith.addf %96, %119 : vector<1x8x64xf32>
    %121 = vector.shape_cast %120 : vector<1x8x64xf32> to vector<8x64xf32>
    %c144 = arith.constant 144 : index
    %c0_33 = arith.constant 0 : index
    %122 = vector.load %arg6[%c144, %c0_33] : memref<976x192xf32, #tpu.memory_space<vmem>>, vector<64x64xf32>
    %c8 = arith.constant 8 : index
    %c0_34 = arith.constant 0 : index
    %123 = vector.load %arg4[%c8, %c0_34] : memref<45x192xf32, #tpu.memory_space<vmem>>, vector<1x64xf32>
    %cst_35 = arith.constant dense<0.000000e+00> : vector<8x64xf32>
    %124 = tpu.matmul %121, %122, %cst_35 {dimension_numbers = #tpu.dot_dimension_numbers<[1], [0], [0], [1], [0, 0, 1, 1], [], []>} : vector<8x64xf32>, vector<64x64xf32>, vector<8x64xf32> -> vector<8x64xf32>
    %125 = vector.broadcast %123 : vector<1x64xf32> to vector<8x64xf32>
    %126 = arith.addf %124, %125 : vector<8x64xf32>
    %127 = arith.addf %10, %126 : vector<8x64xf32>
    %c10 = arith.constant 10 : index
    %c0_36 = arith.constant 0 : index
    %128 = vector.load %arg4[%c10, %c0_36] : memref<45x192xf32, #tpu.memory_space<vmem>>, vector<1x64xf32>
    %c11 = arith.constant 11 : index
    %c0_37 = arith.constant 0 : index
    %129 = vector.load %arg4[%c11, %c0_37] : memref<45x192xf32, #tpu.memory_space<vmem>>, vector<1x64xf32>
    %cst_38 = arith.constant dense<0.000000e+00> : vector<8xf32>
    %130 = vector.multi_reduction <add>, %127, %cst_38 [1] : vector<8x64xf32> to vector<8xf32>
    %131 = vector.shape_cast %130 : vector<8xf32> to vector<8x1xf32>
    %cst_39 = arith.constant 6.400000e+01 : f32
    %132 = vector.broadcast %cst_39 : f32 to vector<8x1xf32>
    %133 = arith.divf %131, %132 : vector<8x1xf32>
    %134 = vector.broadcast %133 : vector<8x1xf32> to vector<8x64xf32>
    %135 = arith.subf %127, %134 : vector<8x64xf32>
    %136 = arith.mulf %135, %135 : vector<8x64xf32>
    %cst_40 = arith.constant dense<0.000000e+00> : vector<8xf32>
    %137 = vector.multi_reduction <add>, %136, %cst_40 [1] : vector<8x64xf32> to vector<8xf32>
    %138 = vector.shape_cast %137 : vector<8xf32> to vector<8x1xf32>
    %cst_41 = arith.constant 6.400000e+01 : f32
    %139 = vector.broadcast %cst_41 : f32 to vector<8x1xf32>
    %140 = arith.divf %138, %139 : vector<8x1xf32>
    %cst_42 = arith.constant 9.99999974E-6 : f32
    %141 = vector.broadcast %cst_42 : f32 to vector<8x1xf32>
    %142 = arith.addf %140, %141 : vector<8x1xf32>
    %143 = math.rsqrt %142 : vector<8x1xf32>
    %144 = vector.broadcast %143 : vector<8x1xf32> to vector<8x64xf32>
    %145 = arith.mulf %135, %144 : vector<8x64xf32>
    %146 = vector.broadcast %128 : vector<1x64xf32> to vector<8x64xf32>
    %147 = arith.mulf %145, %146 : vector<8x64xf32>
    %148 = vector.broadcast %129 : vector<1x64xf32> to vector<8x64xf32>
    %149 = arith.addf %147, %148 : vector<8x64xf32>
    %c0_43 = arith.constant 0 : index
    %c0_44 = arith.constant 0 : index
    %150 = vector.load %arg7[%c0_43, %c0_44] : memref<256x2048xbf16, #tpu.memory_space<vmem>>, vector<64x2048xbf16>
    %c0_45 = arith.constant 0 : index
    %c0_46 = arith.constant 0 : index
    %151 = vector.load %arg8[%c0_45, %c0_46] : memref<8192x64xbf16, #tpu.memory_space<vmem>>, vector<2048x64xbf16>
    %c0_47 = arith.constant 0 : index
    %c0_48 = arith.constant 0 : index
    %152 = vector.load %arg5[%c0_47, %c0_48] : memref<4x2048xf32, #tpu.memory_space<vmem>>, vector<1x2048xf32>
    %c9 = arith.constant 9 : index
    %c0_49 = arith.constant 0 : index
    %153 = vector.load %arg4[%c9, %c0_49] : memref<45x192xf32, #tpu.memory_space<vmem>>, vector<1x64xf32>
    %154 = arith.truncf %149 : vector<8x64xf32> to vector<8x64xbf16>
    %cst_50 = arith.constant dense<0.000000e+00> : vector<8x2048xf32>
    %155 = tpu.matmul %154, %150, %cst_50 {dimension_numbers = #tpu.dot_dimension_numbers<[1], [0], [0], [1], [0, 0, 1, 1], [], []>} : vector<8x64xbf16>, vector<64x2048xbf16>, vector<8x2048xf32> -> vector<8x2048xf32>
    %156 = vector.broadcast %152 : vector<1x2048xf32> to vector<8x2048xf32>
    %157 = arith.addf %155, %156 : vector<8x2048xf32>
    %cst_51 = arith.constant 0.000000e+00 : f32
    %158 = vector.broadcast %cst_51 : f32 to vector<8x2048xf32>
    %159 = arith.maximumf %157, %158 : vector<8x2048xf32>
    %160 = arith.truncf %159 : vector<8x2048xf32> to vector<8x2048xbf16>
    %cst_52 = arith.constant dense<0.000000e+00> : vector<8x64xf32>
    %161 = tpu.matmul %160, %151, %cst_52 {dimension_numbers = #tpu.dot_dimension_numbers<[1], [0], [0], [1], [0, 0, 1, 1], [], []>} : vector<8x2048xbf16>, vector<2048x64xbf16>, vector<8x64xf32> -> vector<8x64xf32>
    %162 = vector.broadcast %153 : vector<1x64xf32> to vector<8x64xf32>
    %163 = arith.addf %161, %162 : vector<8x64xf32>
    %164 = arith.addf %149, %163 : vector<8x64xf32>
    %c12 = arith.constant 12 : index
    %c0_53 = arith.constant 0 : index
    %165 = vector.load %arg4[%c12, %c0_53] : memref<45x192xf32, #tpu.memory_space<vmem>>, vector<1x64xf32>
    %c13 = arith.constant 13 : index
    %c0_54 = arith.constant 0 : index
    %166 = vector.load %arg4[%c13, %c0_54] : memref<45x192xf32, #tpu.memory_space<vmem>>, vector<1x64xf32>
    %cst_55 = arith.constant dense<0.000000e+00> : vector<8xf32>
    %167 = vector.multi_reduction <add>, %164, %cst_55 [1] : vector<8x64xf32> to vector<8xf32>
    %168 = vector.shape_cast %167 : vector<8xf32> to vector<8x1xf32>
    %cst_56 = arith.constant 6.400000e+01 : f32
    %169 = vector.broadcast %cst_56 : f32 to vector<8x1xf32>
    %170 = arith.divf %168, %169 : vector<8x1xf32>
    %171 = vector.broadcast %170 : vector<8x1xf32> to vector<8x64xf32>
    %172 = arith.subf %164, %171 : vector<8x64xf32>
    %173 = arith.mulf %172, %172 : vector<8x64xf32>
    %cst_57 = arith.constant dense<0.000000e+00> : vector<8xf32>
    %174 = vector.multi_reduction <add>, %173, %cst_57 [1] : vector<8x64xf32> to vector<8xf32>
    %175 = vector.shape_cast %174 : vector<8xf32> to vector<8x1xf32>
    %cst_58 = arith.constant 6.400000e+01 : f32
    %176 = vector.broadcast %cst_58 : f32 to vector<8x1xf32>
    %177 = arith.divf %175, %176 : vector<8x1xf32>
    %cst_59 = arith.constant 9.99999974E-6 : f32
    %178 = vector.broadcast %cst_59 : f32 to vector<8x1xf32>
    %179 = arith.addf %177, %178 : vector<8x1xf32>
    %180 = math.rsqrt %179 : vector<8x1xf32>
    %181 = vector.broadcast %180 : vector<8x1xf32> to vector<8x64xf32>
    %182 = arith.mulf %172, %181 : vector<8x64xf32>
    %183 = vector.broadcast %165 : vector<1x64xf32> to vector<8x64xf32>
    %184 = arith.mulf %182, %183 : vector<8x64xf32>
    %185 = vector.broadcast %166 : vector<1x64xf32> to vector<8x64xf32>
    %186 = arith.addf %184, %185 : vector<8x64xf32>
    %c208 = arith.constant 208 : index
    %c0_60 = arith.constant 0 : index
    %187 = vector.load %arg6[%c208, %c0_60] : memref<976x192xf32, #tpu.memory_space<vmem>>, vector<64x192xf32>
    %c14 = arith.constant 14 : index
    %c0_61 = arith.constant 0 : index
    %188 = vector.load %arg4[%c14, %c0_61] : memref<45x192xf32, #tpu.memory_space<vmem>>, vector<1x192xf32>
    %cst_62 = arith.constant dense<0.000000e+00> : vector<8x192xf32>
    %189 = tpu.matmul %186, %187, %cst_62 {dimension_numbers = #tpu.dot_dimension_numbers<[1], [0], [0], [1], [0, 0, 1, 1], [], []>} : vector<8x64xf32>, vector<64x192xf32>, vector<8x192xf32> -> vector<8x192xf32>
    %190 = vector.broadcast %188 : vector<1x192xf32> to vector<8x192xf32>
    %191 = arith.addf %189, %190 : vector<8x192xf32>
    %192 = vector.extract_strided_slice %191 {offsets = [0, 0], sizes = [8, 64], strides = [1, 1]} : vector<8x192xf32> to vector<8x64xf32>
    %cst_63 = arith.constant 2.500000e-01 : f32
    %193 = vector.broadcast %cst_63 : f32 to vector<8x64xf32>
    %194 = arith.mulf %192, %193 : vector<8x64xf32>
    %195 = vector.shape_cast %194 : vector<8x64xf32> to vector<1x8x64xf32>
    %196 = vector.extract_strided_slice %191 {offsets = [0, 64], sizes = [8, 64], strides = [1, 1]} : vector<8x192xf32> to vector<8x64xf32>
    %197 = vector.shape_cast %196 : vector<8x64xf32> to vector<1x8x64xf32>
    %198 = vector.extract_strided_slice %191 {offsets = [0, 128], sizes = [8, 64], strides = [1, 1]} : vector<8x192xf32> to vector<8x64xf32>
    %199 = vector.shape_cast %198 : vector<8x64xf32> to vector<1x8x64xf32>
    %cst_64 = arith.constant 0.000000e+00 : f32
    %200 = vector.broadcast %cst_64 : f32 to vector<1x8x64xf32>
    %c0_i32_65 = arith.constant 0 : i32
    %201 = vector.broadcast %c0_i32_65 : i32 to vector<1x1x64xi32>
    %202 = arith.cmpi sge, %0, %201 : vector<1x1x64xi32>
    %c16_i32_66 = arith.constant 16 : i32
    %203 = vector.broadcast %c16_i32_66 : i32 to vector<1x1x64xi32>
    %204 = arith.cmpi slt, %0, %203 : vector<1x1x64xi32>
    %205 = arith.andi %202, %204 : vector<1x1x64xi1>
    %206 = arith.extui %205 : vector<1x1x64xi1> to vector<1x1x64xi32>
    %207 = arith.sitofp %206 : vector<1x1x64xi32> to vector<1x1x64xf32>
    %208 = vector.broadcast %207 : vector<1x1x64xf32> to vector<1x8x64xf32>
    %209 = arith.mulf %195, %208 : vector<1x8x64xf32>
    "tpu.trace_start"() <{level = 10 : i32, message = "bqd,bkd->bqk"}> : () -> ()
    %cst_67 = arith.constant dense<0.000000e+00> : vector<1x8x8xf32>
    %210 = tpu.matmul %209, %197, %cst_67 {dimension_numbers = #tpu.dot_dimension_numbers<[2], [2], [1], [1], [0, 0, 0, 1, 1, 1], [0], [0]>} : vector<1x8x64xf32>, vector<1x8x64xf32>, vector<1x8x8xf32> -> vector<1x8x8xf32>
    "tpu.trace_stop"() : () -> ()
    %cst_68 = arith.constant dense<0xFF800000> : vector<1x8xf32>
    %211 = vector.multi_reduction <maximumf>, %210, %cst_68 [2] : vector<1x8x8xf32> to vector<1x8xf32>
    %212 = vector.shape_cast %211 : vector<1x8xf32> to vector<1x8x1xf32>
    %213 = vector.broadcast %212 : vector<1x8x1xf32> to vector<1x8x8xf32>
    %214 = arith.subf %210, %213 : vector<1x8x8xf32>
    %215 = math.exp %214 : vector<1x8x8xf32>
    %cst_69 = arith.constant dense<0.000000e+00> : vector<1x8xf32>
    %216 = vector.multi_reduction <add>, %215, %cst_69 [2] : vector<1x8x8xf32> to vector<1x8xf32>
    %217 = vector.shape_cast %216 : vector<1x8xf32> to vector<1x8x1xf32>
    %218 = tpu.reciprocal %217 {approx = true} : vector<1x8x1xf32> -> vector<1x8x1xf32>
    %219 = vector.broadcast %218 : vector<1x8x1xf32> to vector<1x8x8xf32>
    %220 = arith.mulf %215, %219 : vector<1x8x8xf32>
    %221 = vector.broadcast %207 : vector<1x1x64xf32> to vector<1x8x64xf32>
    %222 = arith.mulf %199, %221 : vector<1x8x64xf32>
    "tpu.trace_start"() <{level = 10 : i32, message = "bqk,bkd->bqd"}> : () -> ()
    %cst_70 = arith.constant dense<0.000000e+00> : vector<1x8x64xf32>
    %223 = tpu.matmul %220, %222, %cst_70 {dimension_numbers = #tpu.dot_dimension_numbers<[2], [1], [1], [2], [0, 0, 0, 1, 1, 2], [0], [0]>} : vector<1x8x8xf32>, vector<1x8x64xf32>, vector<1x8x64xf32> -> vector<1x8x64xf32>
    "tpu.trace_stop"() : () -> ()
    %224 = arith.addf %200, %223 : vector<1x8x64xf32>
    %c16_i32_71 = arith.constant 16 : i32
    %225 = vector.broadcast %c16_i32_71 : i32 to vector<1x1x64xi32>
    %226 = arith.cmpi sge, %0, %225 : vector<1x1x64xi32>
    %c32_i32_72 = arith.constant 32 : i32
    %227 = vector.broadcast %c32_i32_72 : i32 to vector<1x1x64xi32>
    %228 = arith.cmpi slt, %0, %227 : vector<1x1x64xi32>
    %229 = arith.andi %226, %228 : vector<1x1x64xi1>
    %230 = arith.extui %229 : vector<1x1x64xi1> to vector<1x1x64xi32>
    %231 = arith.sitofp %230 : vector<1x1x64xi32> to vector<1x1x64xf32>
    %232 = vector.broadcast %231 : vector<1x1x64xf32> to vector<1x8x64xf32>
    %233 = arith.mulf %195, %232 : vector<1x8x64xf32>
    "tpu.trace_start"() <{level = 10 : i32, message = "bqd,bkd->bqk"}> : () -> ()
    %cst_73 = arith.constant dense<0.000000e+00> : vector<1x8x8xf32>
    %234 = tpu.matmul %233, %197, %cst_73 {dimension_numbers = #tpu.dot_dimension_numbers<[2], [2], [1], [1], [0, 0, 0, 1, 1, 1], [0], [0]>} : vector<1x8x64xf32>, vector<1x8x64xf32>, vector<1x8x8xf32> -> vector<1x8x8xf32>
    "tpu.trace_stop"() : () -> ()
    %cst_74 = arith.constant dense<0xFF800000> : vector<1x8xf32>
    %235 = vector.multi_reduction <maximumf>, %234, %cst_74 [2] : vector<1x8x8xf32> to vector<1x8xf32>
    %236 = vector.shape_cast %235 : vector<1x8xf32> to vector<1x8x1xf32>
    %237 = vector.broadcast %236 : vector<1x8x1xf32> to vector<1x8x8xf32>
    %238 = arith.subf %234, %237 : vector<1x8x8xf32>
    %239 = math.exp %238 : vector<1x8x8xf32>
    %cst_75 = arith.constant dense<0.000000e+00> : vector<1x8xf32>
    %240 = vector.multi_reduction <add>, %239, %cst_75 [2] : vector<1x8x8xf32> to vector<1x8xf32>
    %241 = vector.shape_cast %240 : vector<1x8xf32> to vector<1x8x1xf32>
    %242 = tpu.reciprocal %241 {approx = true} : vector<1x8x1xf32> -> vector<1x8x1xf32>
    %243 = vector.broadcast %242 : vector<1x8x1xf32> to vector<1x8x8xf32>
    %244 = arith.mulf %239, %243 : vector<1x8x8xf32>
    %245 = vector.broadcast %231 : vector<1x1x64xf32> to vector<1x8x64xf32>
    %246 = arith.mulf %199, %245 : vector<1x8x64xf32>
    "tpu.trace_start"() <{level = 10 : i32, message = "bqk,bkd->bqd"}> : () -> ()
    %cst_76 = arith.constant dense<0.000000e+00> : vector<1x8x64xf32>
    %247 = tpu.matmul %244, %246, %cst_76 {dimension_numbers = #tpu.dot_dimension_numbers<[2], [1], [1], [2], [0, 0, 0, 1, 1, 2], [0], [0]>} : vector<1x8x8xf32>, vector<1x8x64xf32>, vector<1x8x64xf32> -> vector<1x8x64xf32>
    "tpu.trace_stop"() : () -> ()
    %248 = arith.addf %224, %247 : vector<1x8x64xf32>
    %c32_i32_77 = arith.constant 32 : i32
    %249 = vector.broadcast %c32_i32_77 : i32 to vector<1x1x64xi32>
    %250 = arith.cmpi sge, %0, %249 : vector<1x1x64xi32>
    %c48_i32_78 = arith.constant 48 : i32
    %251 = vector.broadcast %c48_i32_78 : i32 to vector<1x1x64xi32>
    %252 = arith.cmpi slt, %0, %251 : vector<1x1x64xi32>
    %253 = arith.andi %250, %252 : vector<1x1x64xi1>
    %254 = arith.extui %253 : vector<1x1x64xi1> to vector<1x1x64xi32>
    %255 = arith.sitofp %254 : vector<1x1x64xi32> to vector<1x1x64xf32>
    %256 = vector.broadcast %255 : vector<1x1x64xf32> to vector<1x8x64xf32>
    %257 = arith.mulf %195, %256 : vector<1x8x64xf32>
    "tpu.trace_start"() <{level = 10 : i32, message = "bqd,bkd->bqk"}> : () -> ()
    %cst_79 = arith.constant dense<0.000000e+00> : vector<1x8x8xf32>
    %258 = tpu.matmul %257, %197, %cst_79 {dimension_numbers = #tpu.dot_dimension_numbers<[2], [2], [1], [1], [0, 0, 0, 1, 1, 1], [0], [0]>} : vector<1x8x64xf32>, vector<1x8x64xf32>, vector<1x8x8xf32> -> vector<1x8x8xf32>
    "tpu.trace_stop"() : () -> ()
    %cst_80 = arith.constant dense<0xFF800000> : vector<1x8xf32>
    %259 = vector.multi_reduction <maximumf>, %258, %cst_80 [2] : vector<1x8x8xf32> to vector<1x8xf32>
    %260 = vector.shape_cast %259 : vector<1x8xf32> to vector<1x8x1xf32>
    %261 = vector.broadcast %260 : vector<1x8x1xf32> to vector<1x8x8xf32>
    %262 = arith.subf %258, %261 : vector<1x8x8xf32>
    %263 = math.exp %262 : vector<1x8x8xf32>
    %cst_81 = arith.constant dense<0.000000e+00> : vector<1x8xf32>
    %264 = vector.multi_reduction <add>, %263, %cst_81 [2] : vector<1x8x8xf32> to vector<1x8xf32>
    %265 = vector.shape_cast %264 : vector<1x8xf32> to vector<1x8x1xf32>
    %266 = tpu.reciprocal %265 {approx = true} : vector<1x8x1xf32> -> vector<1x8x1xf32>
    %267 = vector.broadcast %266 : vector<1x8x1xf32> to vector<1x8x8xf32>
    %268 = arith.mulf %263, %267 : vector<1x8x8xf32>
    %269 = vector.broadcast %255 : vector<1x1x64xf32> to vector<1x8x64xf32>
    %270 = arith.mulf %199, %269 : vector<1x8x64xf32>
    "tpu.trace_start"() <{level = 10 : i32, message = "bqk,bkd->bqd"}> : () -> ()
    %cst_82 = arith.constant dense<0.000000e+00> : vector<1x8x64xf32>
    %271 = tpu.matmul %268, %270, %cst_82 {dimension_numbers = #tpu.dot_dimension_numbers<[2], [1], [1], [2], [0, 0, 0, 1, 1, 2], [0], [0]>} : vector<1x8x8xf32>, vector<1x8x64xf32>, vector<1x8x64xf32> -> vector<1x8x64xf32>
    "tpu.trace_stop"() : () -> ()
    %272 = arith.addf %248, %271 : vector<1x8x64xf32>
    %c48_i32_83 = arith.constant 48 : i32
    %273 = vector.broadcast %c48_i32_83 : i32 to vector<1x1x64xi32>
    %274 = arith.cmpi sge, %0, %273 : vector<1x1x64xi32>
    %c64_i32_84 = arith.constant 64 : i32
    %275 = vector.broadcast %c64_i32_84 : i32 to vector<1x1x64xi32>
    %276 = arith.cmpi slt, %0, %275 : vector<1x1x64xi32>
    %277 = arith.andi %274, %276 : vector<1x1x64xi1>
    %278 = arith.extui %277 : vector<1x1x64xi1> to vector<1x1x64xi32>
    %279 = arith.sitofp %278 : vector<1x1x64xi32> to vector<1x1x64xf32>
    %280 = vector.broadcast %279 : vector<1x1x64xf32> to vector<1x8x64xf32>
    %281 = arith.mulf %195, %280 : vector<1x8x64xf32>
    "tpu.trace_start"() <{level = 10 : i32, message = "bqd,bkd->bqk"}> : () -> ()
    %cst_85 = arith.constant dense<0.000000e+00> : vector<1x8x8xf32>
    %282 = tpu.matmul %281, %197, %cst_85 {dimension_numbers = #tpu.dot_dimension_numbers<[2], [2], [1], [1], [0, 0, 0, 1, 1, 1], [0], [0]>} : vector<1x8x64xf32>, vector<1x8x64xf32>, vector<1x8x8xf32> -> vector<1x8x8xf32>
    "tpu.trace_stop"() : () -> ()
    %cst_86 = arith.constant dense<0xFF800000> : vector<1x8xf32>
    %283 = vector.multi_reduction <maximumf>, %282, %cst_86 [2] : vector<1x8x8xf32> to vector<1x8xf32>
    %284 = vector.shape_cast %283 : vector<1x8xf32> to vector<1x8x1xf32>
    %285 = vector.broadcast %284 : vector<1x8x1xf32> to vector<1x8x8xf32>
    %286 = arith.subf %282, %285 : vector<1x8x8xf32>
    %287 = math.exp %286 : vector<1x8x8xf32>
    %cst_87 = arith.constant dense<0.000000e+00> : vector<1x8xf32>
    %288 = vector.multi_reduction <add>, %287, %cst_87 [2] : vector<1x8x8xf32> to vector<1x8xf32>
    %289 = vector.shape_cast %288 : vector<1x8xf32> to vector<1x8x1xf32>
    %290 = tpu.reciprocal %289 {approx = true} : vector<1x8x1xf32> -> vector<1x8x1xf32>
    %291 = vector.broadcast %290 : vector<1x8x1xf32> to vector<1x8x8xf32>
    %292 = arith.mulf %287, %291 : vector<1x8x8xf32>
    %293 = vector.broadcast %279 : vector<1x1x64xf32> to vector<1x8x64xf32>
    %294 = arith.mulf %199, %293 : vector<1x8x64xf32>
    "tpu.trace_start"() <{level = 10 : i32, message = "bqk,bkd->bqd"}> : () -> ()
    %cst_88 = arith.constant dense<0.000000e+00> : vector<1x8x64xf32>
    %295 = tpu.matmul %292, %294, %cst_88 {dimension_numbers = #tpu.dot_dimension_numbers<[2], [1], [1], [2], [0, 0, 0, 1, 1, 2], [0], [0]>} : vector<1x8x8xf32>, vector<1x8x64xf32>, vector<1x8x64xf32> -> vector<1x8x64xf32>
    "tpu.trace_stop"() : () -> ()
    %296 = arith.addf %272, %295 : vector<1x8x64xf32>
    %297 = vector.shape_cast %296 : vector<1x8x64xf32> to vector<8x64xf32>
    %c272 = arith.constant 272 : index
    %c0_89 = arith.constant 0 : index
    %298 = vector.load %arg6[%c272, %c0_89] : memref<976x192xf32, #tpu.memory_space<vmem>>, vector<64x64xf32>
    %c15 = arith.constant 15 : index
    %c0_90 = arith.constant 0 : index
    %299 = vector.load %arg4[%c15, %c0_90] : memref<45x192xf32, #tpu.memory_space<vmem>>, vector<1x64xf32>
    %cst_91 = arith.constant dense<0.000000e+00> : vector<8x64xf32>
    %300 = tpu.matmul %297, %298, %cst_91 {dimension_numbers = #tpu.dot_dimension_numbers<[1], [0], [0], [1], [0, 0, 1, 1], [], []>} : vector<8x64xf32>, vector<64x64xf32>, vector<8x64xf32> -> vector<8x64xf32>
    %301 = vector.broadcast %299 : vector<1x64xf32> to vector<8x64xf32>
    %302 = arith.addf %300, %301 : vector<8x64xf32>
    %303 = arith.addf %186, %302 : vector<8x64xf32>
    %c17 = arith.constant 17 : index
    %c0_92 = arith.constant 0 : index
    %304 = vector.load %arg4[%c17, %c0_92] : memref<45x192xf32, #tpu.memory_space<vmem>>, vector<1x64xf32>
    %c18 = arith.constant 18 : index
    %c0_93 = arith.constant 0 : index
    %305 = vector.load %arg4[%c18, %c0_93] : memref<45x192xf32, #tpu.memory_space<vmem>>, vector<1x64xf32>
    %cst_94 = arith.constant dense<0.000000e+00> : vector<8xf32>
    %306 = vector.multi_reduction <add>, %303, %cst_94 [1] : vector<8x64xf32> to vector<8xf32>
    %307 = vector.shape_cast %306 : vector<8xf32> to vector<8x1xf32>
    %cst_95 = arith.constant 6.400000e+01 : f32
    %308 = vector.broadcast %cst_95 : f32 to vector<8x1xf32>
    %309 = arith.divf %307, %308 : vector<8x1xf32>
    %310 = vector.broadcast %309 : vector<8x1xf32> to vector<8x64xf32>
    %311 = arith.subf %303, %310 : vector<8x64xf32>
    %312 = arith.mulf %311, %311 : vector<8x64xf32>
    %cst_96 = arith.constant dense<0.000000e+00> : vector<8xf32>
    %313 = vector.multi_reduction <add>, %312, %cst_96 [1] : vector<8x64xf32> to vector<8xf32>
    %314 = vector.shape_cast %313 : vector<8xf32> to vector<8x1xf32>
    %cst_97 = arith.constant 6.400000e+01 : f32
    %315 = vector.broadcast %cst_97 : f32 to vector<8x1xf32>
    %316 = arith.divf %314, %315 : vector<8x1xf32>
    %cst_98 = arith.constant 9.99999974E-6 : f32
    %317 = vector.broadcast %cst_98 : f32 to vector<8x1xf32>
    %318 = arith.addf %316, %317 : vector<8x1xf32>
    %319 = math.rsqrt %318 : vector<8x1xf32>
    %320 = vector.broadcast %319 : vector<8x1xf32> to vector<8x64xf32>
    %321 = arith.mulf %311, %320 : vector<8x64xf32>
    %322 = vector.broadcast %304 : vector<1x64xf32> to vector<8x64xf32>
    %323 = arith.mulf %321, %322 : vector<8x64xf32>
    %324 = vector.broadcast %305 : vector<1x64xf32> to vector<8x64xf32>
    %325 = arith.addf %323, %324 : vector<8x64xf32>
    %c64 = arith.constant 64 : index
    %c0_99 = arith.constant 0 : index
    %326 = vector.load %arg7[%c64, %c0_99] : memref<256x2048xbf16, #tpu.memory_space<vmem>>, vector<64x2048xbf16>
    %c2048 = arith.constant 2048 : index
    %c0_100 = arith.constant 0 : index
    %327 = vector.load %arg8[%c2048, %c0_100] : memref<8192x64xbf16, #tpu.memory_space<vmem>>, vector<2048x64xbf16>
    %c1 = arith.constant 1 : index
    %c0_101 = arith.constant 0 : index
    %328 = vector.load %arg5[%c1, %c0_101] : memref<4x2048xf32, #tpu.memory_space<vmem>>, vector<1x2048xf32>
    %c16 = arith.constant 16 : index
    %c0_102 = arith.constant 0 : index
    %329 = vector.load %arg4[%c16, %c0_102] : memref<45x192xf32, #tpu.memory_space<vmem>>, vector<1x64xf32>
    %330 = arith.truncf %325 : vector<8x64xf32> to vector<8x64xbf16>
    %cst_103 = arith.constant dense<0.000000e+00> : vector<8x2048xf32>
    %331 = tpu.matmul %330, %326, %cst_103 {dimension_numbers = #tpu.dot_dimension_numbers<[1], [0], [0], [1], [0, 0, 1, 1], [], []>} : vector<8x64xbf16>, vector<64x2048xbf16>, vector<8x2048xf32> -> vector<8x2048xf32>
    %332 = vector.broadcast %328 : vector<1x2048xf32> to vector<8x2048xf32>
    %333 = arith.addf %331, %332 : vector<8x2048xf32>
    %cst_104 = arith.constant 0.000000e+00 : f32
    %334 = vector.broadcast %cst_104 : f32 to vector<8x2048xf32>
    %335 = arith.maximumf %333, %334 : vector<8x2048xf32>
    %336 = arith.truncf %335 : vector<8x2048xf32> to vector<8x2048xbf16>
    %cst_105 = arith.constant dense<0.000000e+00> : vector<8x64xf32>
    %337 = tpu.matmul %336, %327, %cst_105 {dimension_numbers = #tpu.dot_dimension_numbers<[1], [0], [0], [1], [0, 0, 1, 1], [], []>} : vector<8x2048xbf16>, vector<2048x64xbf16>, vector<8x64xf32> -> vector<8x64xf32>
    %338 = vector.broadcast %329 : vector<1x64xf32> to vector<8x64xf32>
    %339 = arith.addf %337, %338 : vector<8x64xf32>
    %340 = arith.addf %325, %339 : vector<8x64xf32>
    %c19 = arith.constant 19 : index
    %c0_106 = arith.constant 0 : index
    %341 = vector.load %arg4[%c19, %c0_106] : memref<45x192xf32, #tpu.memory_space<vmem>>, vector<1x64xf32>
    %c20 = arith.constant 20 : index
    %c0_107 = arith.constant 0 : index
    %342 = vector.load %arg4[%c20, %c0_107] : memref<45x192xf32, #tpu.memory_space<vmem>>, vector<1x64xf32>
    %cst_108 = arith.constant dense<0.000000e+00> : vector<8xf32>
    %343 = vector.multi_reduction <add>, %340, %cst_108 [1] : vector<8x64xf32> to vector<8xf32>
    %344 = vector.shape_cast %343 : vector<8xf32> to vector<8x1xf32>
    %cst_109 = arith.constant 6.400000e+01 : f32
    %345 = vector.broadcast %cst_109 : f32 to vector<8x1xf32>
    %346 = arith.divf %344, %345 : vector<8x1xf32>
    %347 = vector.broadcast %346 : vector<8x1xf32> to vector<8x64xf32>
    %348 = arith.subf %340, %347 : vector<8x64xf32>
    %349 = arith.mulf %348, %348 : vector<8x64xf32>
    %cst_110 = arith.constant dense<0.000000e+00> : vector<8xf32>
    %350 = vector.multi_reduction <add>, %349, %cst_110 [1] : vector<8x64xf32> to vector<8xf32>
    %351 = vector.shape_cast %350 : vector<8xf32> to vector<8x1xf32>
    %cst_111 = arith.constant 6.400000e+01 : f32
    %352 = vector.broadcast %cst_111 : f32 to vector<8x1xf32>
    %353 = arith.divf %351, %352 : vector<8x1xf32>
    %cst_112 = arith.constant 9.99999974E-6 : f32
    %354 = vector.broadcast %cst_112 : f32 to vector<8x1xf32>
    %355 = arith.addf %353, %354 : vector<8x1xf32>
    %356 = math.rsqrt %355 : vector<8x1xf32>
    %357 = vector.broadcast %356 : vector<8x1xf32> to vector<8x64xf32>
    %358 = arith.mulf %348, %357 : vector<8x64xf32>
    %359 = vector.broadcast %341 : vector<1x64xf32> to vector<8x64xf32>
    %360 = arith.mulf %358, %359 : vector<8x64xf32>
    %361 = vector.broadcast %342 : vector<1x64xf32> to vector<8x64xf32>
    %362 = arith.addf %360, %361 : vector<8x64xf32>
    %c2 = arith.constant 2 : index
    %c0_113 = arith.constant 0 : index
    %363 = vector.load %arg4[%c2, %c0_113] : memref<45x192xf32, #tpu.memory_space<vmem>>, vector<1x64xf32>
    %c3 = arith.constant 3 : index
    %c0_114 = arith.constant 0 : index
    %364 = vector.load %arg4[%c3, %c0_114] : memref<45x192xf32, #tpu.memory_space<vmem>>, vector<1x64xf32>
    %cst_115 = arith.constant dense<0.000000e+00> : vector<8xf32>
    %365 = vector.multi_reduction <add>, %362, %cst_115 [1] : vector<8x64xf32> to vector<8xf32>
    %366 = vector.shape_cast %365 : vector<8xf32> to vector<8x1xf32>
    %cst_116 = arith.constant 6.400000e+01 : f32
    %367 = vector.broadcast %cst_116 : f32 to vector<8x1xf32>
    %368 = arith.divf %366, %367 : vector<8x1xf32>
    %369 = vector.broadcast %368 : vector<8x1xf32> to vector<8x64xf32>
    %370 = arith.subf %362, %369 : vector<8x64xf32>
    %371 = arith.mulf %370, %370 : vector<8x64xf32>
    %cst_117 = arith.constant dense<0.000000e+00> : vector<8xf32>
    %372 = vector.multi_reduction <add>, %371, %cst_117 [1] : vector<8x64xf32> to vector<8xf32>
    %373 = vector.shape_cast %372 : vector<8xf32> to vector<8x1xf32>
    %cst_118 = arith.constant 6.400000e+01 : f32
    %374 = vector.broadcast %cst_118 : f32 to vector<8x1xf32>
    %375 = arith.divf %373, %374 : vector<8x1xf32>
    %cst_119 = arith.constant 9.99999974E-6 : f32
    %376 = vector.broadcast %cst_119 : f32 to vector<8x1xf32>
    %377 = arith.addf %375, %376 : vector<8x1xf32>
    %378 = math.rsqrt %377 : vector<8x1xf32>
    %379 = vector.broadcast %378 : vector<8x1xf32> to vector<8x64xf32>
    %380 = arith.mulf %370, %379 : vector<8x64xf32>
    %381 = vector.broadcast %363 : vector<1x64xf32> to vector<8x64xf32>
    %382 = arith.mulf %380, %381 : vector<8x64xf32>
    %383 = vector.broadcast %364 : vector<1x64xf32> to vector<8x64xf32>
    %384 = arith.addf %382, %383 : vector<8x64xf32>
    %c0_120 = arith.constant 0 : index
    %c0_121 = arith.constant 0 : index
    %c0_122 = arith.constant 0 : index
    %385 = vector.load %arg2[%c0_120, %c0_121, %c0_122] : memref<1x8x8xf32, #tpu.memory_space<vmem>>, vector<1x8x8xf32>
    %386 = vector.shape_cast %385 : vector<1x8x8xf32> to vector<8x8xf32>
    %c8_123 = arith.constant 8 : index
    %c0_124 = arith.constant 0 : index
    %387 = vector.load %arg6[%c8_123, %c0_124] : memref<976x192xf32, #tpu.memory_space<vmem>>, vector<8x64xf32>
    %c1_125 = arith.constant 1 : index
    %c0_126 = arith.constant 0 : index
    %388 = vector.load %arg4[%c1_125, %c0_126] : memref<45x192xf32, #tpu.memory_space<vmem>>, vector<1x64xf32>
    %cst_127 = arith.constant dense<0.000000e+00> : vector<8x64xf32>
    %389 = tpu.matmul %386, %387, %cst_127 {dimension_numbers = #tpu.dot_dimension_numbers<[1], [0], [0], [1], [0, 0, 1, 1], [], []>} : vector<8x8xf32>, vector<8x64xf32>, vector<8x64xf32> -> vector<8x64xf32>
    %390 = vector.broadcast %388 : vector<1x64xf32> to vector<8x64xf32>
    %391 = arith.addf %389, %390 : vector<8x64xf32>
    %392 = arith.addf %391, %2 : vector<8x64xf32>
    %c336 = arith.constant 336 : index
    %c0_128 = arith.constant 0 : index
    %393 = vector.load %arg6[%c336, %c0_128] : memref<976x192xf32, #tpu.memory_space<vmem>>, vector<64x192xf32>
    %c21 = arith.constant 21 : index
    %c0_129 = arith.constant 0 : index
    %394 = vector.load %arg4[%c21, %c0_129] : memref<45x192xf32, #tpu.memory_space<vmem>>, vector<1x192xf32>
    %cst_130 = arith.constant dense<0.000000e+00> : vector<8x192xf32>
    %395 = tpu.matmul %392, %393, %cst_130 {dimension_numbers = #tpu.dot_dimension_numbers<[1], [0], [0], [1], [0, 0, 1, 1], [], []>} : vector<8x64xf32>, vector<64x192xf32>, vector<8x192xf32> -> vector<8x192xf32>
    %396 = vector.broadcast %394 : vector<1x192xf32> to vector<8x192xf32>
    %397 = arith.addf %395, %396 : vector<8x192xf32>
    %398 = vector.extract_strided_slice %397 {offsets = [0, 0], sizes = [8, 64], strides = [1, 1]} : vector<8x192xf32> to vector<8x64xf32>
    %cst_131 = arith.constant 2.500000e-01 : f32
    %399 = vector.broadcast %cst_131 : f32 to vector<8x64xf32>
    %400 = arith.mulf %398, %399 : vector<8x64xf32>
    %401 = vector.shape_cast %400 : vector<8x64xf32> to vector<1x8x64xf32>
    %402 = vector.extract_strided_slice %397 {offsets = [0, 64], sizes = [8, 64], strides = [1, 1]} : vector<8x192xf32> to vector<8x64xf32>
    %403 = vector.shape_cast %402 : vector<8x64xf32> to vector<1x8x64xf32>
    %404 = vector.extract_strided_slice %397 {offsets = [0, 128], sizes = [8, 64], strides = [1, 1]} : vector<8x192xf32> to vector<8x64xf32>
    %405 = vector.shape_cast %404 : vector<8x64xf32> to vector<1x8x64xf32>
    %cst_132 = arith.constant 0.000000e+00 : f32
    %406 = vector.broadcast %cst_132 : f32 to vector<1x8x64xf32>
    %c0_i32_133 = arith.constant 0 : i32
    %407 = vector.broadcast %c0_i32_133 : i32 to vector<1x1x64xi32>
    %408 = arith.cmpi sge, %0, %407 : vector<1x1x64xi32>
    %c16_i32_134 = arith.constant 16 : i32
    %409 = vector.broadcast %c16_i32_134 : i32 to vector<1x1x64xi32>
    %410 = arith.cmpi slt, %0, %409 : vector<1x1x64xi32>
    %411 = arith.andi %408, %410 : vector<1x1x64xi1>
    %412 = arith.extui %411 : vector<1x1x64xi1> to vector<1x1x64xi32>
    %413 = arith.sitofp %412 : vector<1x1x64xi32> to vector<1x1x64xf32>
    %414 = vector.broadcast %413 : vector<1x1x64xf32> to vector<1x8x64xf32>
    %415 = arith.mulf %401, %414 : vector<1x8x64xf32>
    "tpu.trace_start"() <{level = 10 : i32, message = "bqd,bkd->bqk"}> : () -> ()
    %cst_135 = arith.constant dense<0.000000e+00> : vector<1x8x8xf32>
    %416 = tpu.matmul %415, %403, %cst_135 {dimension_numbers = #tpu.dot_dimension_numbers<[2], [2], [1], [1], [0, 0, 0, 1, 1, 1], [0], [0]>} : vector<1x8x64xf32>, vector<1x8x64xf32>, vector<1x8x8xf32> -> vector<1x8x8xf32>
    "tpu.trace_stop"() : () -> ()
    %cst_136 = arith.constant dense<0xFF800000> : vector<1x8xf32>
    %417 = vector.multi_reduction <maximumf>, %416, %cst_136 [2] : vector<1x8x8xf32> to vector<1x8xf32>
    %418 = vector.shape_cast %417 : vector<1x8xf32> to vector<1x8x1xf32>
    %419 = vector.broadcast %418 : vector<1x8x1xf32> to vector<1x8x8xf32>
    %420 = arith.subf %416, %419 : vector<1x8x8xf32>
    %421 = math.exp %420 : vector<1x8x8xf32>
    %cst_137 = arith.constant dense<0.000000e+00> : vector<1x8xf32>
    %422 = vector.multi_reduction <add>, %421, %cst_137 [2] : vector<1x8x8xf32> to vector<1x8xf32>
    %423 = vector.shape_cast %422 : vector<1x8xf32> to vector<1x8x1xf32>
    %424 = tpu.reciprocal %423 {approx = true} : vector<1x8x1xf32> -> vector<1x8x1xf32>
    %425 = vector.broadcast %424 : vector<1x8x1xf32> to vector<1x8x8xf32>
    %426 = arith.mulf %421, %425 : vector<1x8x8xf32>
    %427 = vector.broadcast %413 : vector<1x1x64xf32> to vector<1x8x64xf32>
    %428 = arith.mulf %405, %427 : vector<1x8x64xf32>
    "tpu.trace_start"() <{level = 10 : i32, message = "bqk,bkd->bqd"}> : () -> ()
    %cst_138 = arith.constant dense<0.000000e+00> : vector<1x8x64xf32>
    %429 = tpu.matmul %426, %428, %cst_138 {dimension_numbers = #tpu.dot_dimension_numbers<[2], [1], [1], [2], [0, 0, 0, 1, 1, 2], [0], [0]>} : vector<1x8x8xf32>, vector<1x8x64xf32>, vector<1x8x64xf32> -> vector<1x8x64xf32>
    "tpu.trace_stop"() : () -> ()
    %430 = arith.addf %406, %429 : vector<1x8x64xf32>
    %c16_i32_139 = arith.constant 16 : i32
    %431 = vector.broadcast %c16_i32_139 : i32 to vector<1x1x64xi32>
    %432 = arith.cmpi sge, %0, %431 : vector<1x1x64xi32>
    %c32_i32_140 = arith.constant 32 : i32
    %433 = vector.broadcast %c32_i32_140 : i32 to vector<1x1x64xi32>
    %434 = arith.cmpi slt, %0, %433 : vector<1x1x64xi32>
    %435 = arith.andi %432, %434 : vector<1x1x64xi1>
    %436 = arith.extui %435 : vector<1x1x64xi1> to vector<1x1x64xi32>
    %437 = arith.sitofp %436 : vector<1x1x64xi32> to vector<1x1x64xf32>
    %438 = vector.broadcast %437 : vector<1x1x64xf32> to vector<1x8x64xf32>
    %439 = arith.mulf %401, %438 : vector<1x8x64xf32>
    "tpu.trace_start"() <{level = 10 : i32, message = "bqd,bkd->bqk"}> : () -> ()
    %cst_141 = arith.constant dense<0.000000e+00> : vector<1x8x8xf32>
    %440 = tpu.matmul %439, %403, %cst_141 {dimension_numbers = #tpu.dot_dimension_numbers<[2], [2], [1], [1], [0, 0, 0, 1, 1, 1], [0], [0]>} : vector<1x8x64xf32>, vector<1x8x64xf32>, vector<1x8x8xf32> -> vector<1x8x8xf32>
    "tpu.trace_stop"() : () -> ()
    %cst_142 = arith.constant dense<0xFF800000> : vector<1x8xf32>
    %441 = vector.multi_reduction <maximumf>, %440, %cst_142 [2] : vector<1x8x8xf32> to vector<1x8xf32>
    %442 = vector.shape_cast %441 : vector<1x8xf32> to vector<1x8x1xf32>
    %443 = vector.broadcast %442 : vector<1x8x1xf32> to vector<1x8x8xf32>
    %444 = arith.subf %440, %443 : vector<1x8x8xf32>
    %445 = math.exp %444 : vector<1x8x8xf32>
    %cst_143 = arith.constant dense<0.000000e+00> : vector<1x8xf32>
    %446 = vector.multi_reduction <add>, %445, %cst_143 [2] : vector<1x8x8xf32> to vector<1x8xf32>
    %447 = vector.shape_cast %446 : vector<1x8xf32> to vector<1x8x1xf32>
    %448 = tpu.reciprocal %447 {approx = true} : vector<1x8x1xf32> -> vector<1x8x1xf32>
    %449 = vector.broadcast %448 : vector<1x8x1xf32> to vector<1x8x8xf32>
    %450 = arith.mulf %445, %449 : vector<1x8x8xf32>
    %451 = vector.broadcast %437 : vector<1x1x64xf32> to vector<1x8x64xf32>
    %452 = arith.mulf %405, %451 : vector<1x8x64xf32>
    "tpu.trace_start"() <{level = 10 : i32, message = "bqk,bkd->bqd"}> : () -> ()
    %cst_144 = arith.constant dense<0.000000e+00> : vector<1x8x64xf32>
    %453 = tpu.matmul %450, %452, %cst_144 {dimension_numbers = #tpu.dot_dimension_numbers<[2], [1], [1], [2], [0, 0, 0, 1, 1, 2], [0], [0]>} : vector<1x8x8xf32>, vector<1x8x64xf32>, vector<1x8x64xf32> -> vector<1x8x64xf32>
    "tpu.trace_stop"() : () -> ()
    %454 = arith.addf %430, %453 : vector<1x8x64xf32>
    %c32_i32_145 = arith.constant 32 : i32
    %455 = vector.broadcast %c32_i32_145 : i32 to vector<1x1x64xi32>
    %456 = arith.cmpi sge, %0, %455 : vector<1x1x64xi32>
    %c48_i32_146 = arith.constant 48 : i32
    %457 = vector.broadcast %c48_i32_146 : i32 to vector<1x1x64xi32>
    %458 = arith.cmpi slt, %0, %457 : vector<1x1x64xi32>
    %459 = arith.andi %456, %458 : vector<1x1x64xi1>
    %460 = arith.extui %459 : vector<1x1x64xi1> to vector<1x1x64xi32>
    %461 = arith.sitofp %460 : vector<1x1x64xi32> to vector<1x1x64xf32>
    %462 = vector.broadcast %461 : vector<1x1x64xf32> to vector<1x8x64xf32>
    %463 = arith.mulf %401, %462 : vector<1x8x64xf32>
    "tpu.trace_start"() <{level = 10 : i32, message = "bqd,bkd->bqk"}> : () -> ()
    %cst_147 = arith.constant dense<0.000000e+00> : vector<1x8x8xf32>
    %464 = tpu.matmul %463, %403, %cst_147 {dimension_numbers = #tpu.dot_dimension_numbers<[2], [2], [1], [1], [0, 0, 0, 1, 1, 1], [0], [0]>} : vector<1x8x64xf32>, vector<1x8x64xf32>, vector<1x8x8xf32> -> vector<1x8x8xf32>
    "tpu.trace_stop"() : () -> ()
    %cst_148 = arith.constant dense<0xFF800000> : vector<1x8xf32>
    %465 = vector.multi_reduction <maximumf>, %464, %cst_148 [2] : vector<1x8x8xf32> to vector<1x8xf32>
    %466 = vector.shape_cast %465 : vector<1x8xf32> to vector<1x8x1xf32>
    %467 = vector.broadcast %466 : vector<1x8x1xf32> to vector<1x8x8xf32>
    %468 = arith.subf %464, %467 : vector<1x8x8xf32>
    %469 = math.exp %468 : vector<1x8x8xf32>
    %cst_149 = arith.constant dense<0.000000e+00> : vector<1x8xf32>
    %470 = vector.multi_reduction <add>, %469, %cst_149 [2] : vector<1x8x8xf32> to vector<1x8xf32>
    %471 = vector.shape_cast %470 : vector<1x8xf32> to vector<1x8x1xf32>
    %472 = tpu.reciprocal %471 {approx = true} : vector<1x8x1xf32> -> vector<1x8x1xf32>
    %473 = vector.broadcast %472 : vector<1x8x1xf32> to vector<1x8x8xf32>
    %474 = arith.mulf %469, %473 : vector<1x8x8xf32>
    %475 = vector.broadcast %461 : vector<1x1x64xf32> to vector<1x8x64xf32>
    %476 = arith.mulf %405, %475 : vector<1x8x64xf32>
    "tpu.trace_start"() <{level = 10 : i32, message = "bqk,bkd->bqd"}> : () -> ()
    %cst_150 = arith.constant dense<0.000000e+00> : vector<1x8x64xf32>
    %477 = tpu.matmul %474, %476, %cst_150 {dimension_numbers = #tpu.dot_dimension_numbers<[2], [1], [1], [2], [0, 0, 0, 1, 1, 2], [0], [0]>} : vector<1x8x8xf32>, vector<1x8x64xf32>, vector<1x8x64xf32> -> vector<1x8x64xf32>
    "tpu.trace_stop"() : () -> ()
    %478 = arith.addf %454, %477 : vector<1x8x64xf32>
    %c48_i32_151 = arith.constant 48 : i32
    %479 = vector.broadcast %c48_i32_151 : i32 to vector<1x1x64xi32>
    %480 = arith.cmpi sge, %0, %479 : vector<1x1x64xi32>
    %c64_i32_152 = arith.constant 64 : i32
    %481 = vector.broadcast %c64_i32_152 : i32 to vector<1x1x64xi32>
    %482 = arith.cmpi slt, %0, %481 : vector<1x1x64xi32>
    %483 = arith.andi %480, %482 : vector<1x1x64xi1>
    %484 = arith.extui %483 : vector<1x1x64xi1> to vector<1x1x64xi32>
    %485 = arith.sitofp %484 : vector<1x1x64xi32> to vector<1x1x64xf32>
    %486 = vector.broadcast %485 : vector<1x1x64xf32> to vector<1x8x64xf32>
    %487 = arith.mulf %401, %486 : vector<1x8x64xf32>
    "tpu.trace_start"() <{level = 10 : i32, message = "bqd,bkd->bqk"}> : () -> ()
    %cst_153 = arith.constant dense<0.000000e+00> : vector<1x8x8xf32>
    %488 = tpu.matmul %487, %403, %cst_153 {dimension_numbers = #tpu.dot_dimension_numbers<[2], [2], [1], [1], [0, 0, 0, 1, 1, 1], [0], [0]>} : vector<1x8x64xf32>, vector<1x8x64xf32>, vector<1x8x8xf32> -> vector<1x8x8xf32>
    "tpu.trace_stop"() : () -> ()
    %cst_154 = arith.constant dense<0xFF800000> : vector<1x8xf32>
    %489 = vector.multi_reduction <maximumf>, %488, %cst_154 [2] : vector<1x8x8xf32> to vector<1x8xf32>
    %490 = vector.shape_cast %489 : vector<1x8xf32> to vector<1x8x1xf32>
    %491 = vector.broadcast %490 : vector<1x8x1xf32> to vector<1x8x8xf32>
    %492 = arith.subf %488, %491 : vector<1x8x8xf32>
    %493 = math.exp %492 : vector<1x8x8xf32>
    %cst_155 = arith.constant dense<0.000000e+00> : vector<1x8xf32>
    %494 = vector.multi_reduction <add>, %493, %cst_155 [2] : vector<1x8x8xf32> to vector<1x8xf32>
    %495 = vector.shape_cast %494 : vector<1x8xf32> to vector<1x8x1xf32>
    %496 = tpu.reciprocal %495 {approx = true} : vector<1x8x1xf32> -> vector<1x8x1xf32>
    %497 = vector.broadcast %496 : vector<1x8x1xf32> to vector<1x8x8xf32>
    %498 = arith.mulf %493, %497 : vector<1x8x8xf32>
    %499 = vector.broadcast %485 : vector<1x1x64xf32> to vector<1x8x64xf32>
    %500 = arith.mulf %405, %499 : vector<1x8x64xf32>
    "tpu.trace_start"() <{level = 10 : i32, message = "bqk,bkd->bqd"}> : () -> ()
    %cst_156 = arith.constant dense<0.000000e+00> : vector<1x8x64xf32>
    %501 = tpu.matmul %498, %500, %cst_156 {dimension_numbers = #tpu.dot_dimension_numbers<[2], [1], [1], [2], [0, 0, 0, 1, 1, 2], [0], [0]>} : vector<1x8x8xf32>, vector<1x8x64xf32>, vector<1x8x64xf32> -> vector<1x8x64xf32>
    "tpu.trace_stop"() : () -> ()
    %502 = arith.addf %478, %501 : vector<1x8x64xf32>
    %503 = vector.shape_cast %502 : vector<1x8x64xf32> to vector<8x64xf32>
    %c400 = arith.constant 400 : index
    %c0_157 = arith.constant 0 : index
    %504 = vector.load %arg6[%c400, %c0_157] : memref<976x192xf32, #tpu.memory_space<vmem>>, vector<64x64xf32>
    %c22 = arith.constant 22 : index
    %c0_158 = arith.constant 0 : index
    %505 = vector.load %arg4[%c22, %c0_158] : memref<45x192xf32, #tpu.memory_space<vmem>>, vector<1x64xf32>
    %cst_159 = arith.constant dense<0.000000e+00> : vector<8x64xf32>
    %506 = tpu.matmul %503, %504, %cst_159 {dimension_numbers = #tpu.dot_dimension_numbers<[1], [0], [0], [1], [0, 0, 1, 1], [], []>} : vector<8x64xf32>, vector<64x64xf32>, vector<8x64xf32> -> vector<8x64xf32>
    %507 = vector.broadcast %505 : vector<1x64xf32> to vector<8x64xf32>
    %508 = arith.addf %506, %507 : vector<8x64xf32>
    %509 = arith.addf %392, %508 : vector<8x64xf32>
    %c27 = arith.constant 27 : index
    %c0_160 = arith.constant 0 : index
    %510 = vector.load %arg4[%c27, %c0_160] : memref<45x192xf32, #tpu.memory_space<vmem>>, vector<1x64xf32>
    %c28 = arith.constant 28 : index
    %c0_161 = arith.constant 0 : index
    %511 = vector.load %arg4[%c28, %c0_161] : memref<45x192xf32, #tpu.memory_space<vmem>>, vector<1x64xf32>
    %cst_162 = arith.constant dense<0.000000e+00> : vector<8xf32>
    %512 = vector.multi_reduction <add>, %509, %cst_162 [1] : vector<8x64xf32> to vector<8xf32>
    %513 = vector.shape_cast %512 : vector<8xf32> to vector<8x1xf32>
    %cst_163 = arith.constant 6.400000e+01 : f32
    %514 = vector.broadcast %cst_163 : f32 to vector<8x1xf32>
    %515 = arith.divf %513, %514 : vector<8x1xf32>
    %516 = vector.broadcast %515 : vector<8x1xf32> to vector<8x64xf32>
    %517 = arith.subf %509, %516 : vector<8x64xf32>
    %518 = arith.mulf %517, %517 : vector<8x64xf32>
    %cst_164 = arith.constant dense<0.000000e+00> : vector<8xf32>
    %519 = vector.multi_reduction <add>, %518, %cst_164 [1] : vector<8x64xf32> to vector<8xf32>
    %520 = vector.shape_cast %519 : vector<8xf32> to vector<8x1xf32>
    %cst_165 = arith.constant 6.400000e+01 : f32
    %521 = vector.broadcast %cst_165 : f32 to vector<8x1xf32>
    %522 = arith.divf %520, %521 : vector<8x1xf32>
    %cst_166 = arith.constant 9.99999974E-6 : f32
    %523 = vector.broadcast %cst_166 : f32 to vector<8x1xf32>
    %524 = arith.addf %522, %523 : vector<8x1xf32>
    %525 = math.rsqrt %524 : vector<8x1xf32>
    %526 = vector.broadcast %525 : vector<8x1xf32> to vector<8x64xf32>
    %527 = arith.mulf %517, %526 : vector<8x64xf32>
    %528 = vector.broadcast %510 : vector<1x64xf32> to vector<8x64xf32>
    %529 = arith.mulf %527, %528 : vector<8x64xf32>
    %530 = vector.broadcast %511 : vector<1x64xf32> to vector<8x64xf32>
    %531 = arith.addf %529, %530 : vector<8x64xf32>
    %c464 = arith.constant 464 : index
    %c0_167 = arith.constant 0 : index
    %532 = vector.load %arg6[%c464, %c0_167] : memref<976x192xf32, #tpu.memory_space<vmem>>, vector<64x64xf32>
    %c23 = arith.constant 23 : index
    %c0_168 = arith.constant 0 : index
    %533 = vector.load %arg4[%c23, %c0_168] : memref<45x192xf32, #tpu.memory_space<vmem>>, vector<1x64xf32>
    %cst_169 = arith.constant dense<0.000000e+00> : vector<8x64xf32>
    %534 = tpu.matmul %531, %532, %cst_169 {dimension_numbers = #tpu.dot_dimension_numbers<[1], [0], [0], [1], [0, 0, 1, 1], [], []>} : vector<8x64xf32>, vector<64x64xf32>, vector<8x64xf32> -> vector<8x64xf32>
    %535 = vector.broadcast %533 : vector<1x64xf32> to vector<8x64xf32>
    %536 = arith.addf %534, %535 : vector<8x64xf32>
    %cst_170 = arith.constant 2.500000e-01 : f32
    %537 = vector.broadcast %cst_170 : f32 to vector<8x64xf32>
    %538 = arith.mulf %536, %537 : vector<8x64xf32>
    %539 = vector.shape_cast %538 : vector<8x64xf32> to vector<1x8x64xf32>
    %c528 = arith.constant 528 : index
    %c0_171 = arith.constant 0 : index
    %540 = vector.load %arg6[%c528, %c0_171] : memref<976x192xf32, #tpu.memory_space<vmem>>, vector<64x128xf32>
    %c24 = arith.constant 24 : index
    %c0_172 = arith.constant 0 : index
    %541 = vector.load %arg4[%c24, %c0_172] : memref<45x192xf32, #tpu.memory_space<vmem>>, vector<1x128xf32>
    %cst_173 = arith.constant dense<0.000000e+00> : vector<8x128xf32>
    %542 = tpu.matmul %384, %540, %cst_173 {dimension_numbers = #tpu.dot_dimension_numbers<[1], [0], [0], [1], [0, 0, 1, 1], [], []>} : vector<8x64xf32>, vector<64x128xf32>, vector<8x128xf32> -> vector<8x128xf32>
    %543 = vector.broadcast %541 : vector<1x128xf32> to vector<8x128xf32>
    %544 = arith.addf %542, %543 : vector<8x128xf32>
    %545 = vector.extract_strided_slice %544 {offsets = [0, 0], sizes = [8, 64], strides = [1, 1]} : vector<8x128xf32> to vector<8x64xf32>
    %546 = vector.shape_cast %545 : vector<8x64xf32> to vector<1x8x64xf32>
    %547 = vector.extract_strided_slice %544 {offsets = [0, 64], sizes = [8, 64], strides = [1, 1]} : vector<8x128xf32> to vector<8x64xf32>
    %548 = vector.shape_cast %547 : vector<8x64xf32> to vector<1x8x64xf32>
    %cst_174 = arith.constant 0.000000e+00 : f32
    %549 = vector.broadcast %cst_174 : f32 to vector<1x8x64xf32>
    %c0_i32_175 = arith.constant 0 : i32
    %550 = vector.broadcast %c0_i32_175 : i32 to vector<1x1x64xi32>
    %551 = arith.cmpi sge, %0, %550 : vector<1x1x64xi32>
    %c16_i32_176 = arith.constant 16 : i32
    %552 = vector.broadcast %c16_i32_176 : i32 to vector<1x1x64xi32>
    %553 = arith.cmpi slt, %0, %552 : vector<1x1x64xi32>
    %554 = arith.andi %551, %553 : vector<1x1x64xi1>
    %555 = arith.extui %554 : vector<1x1x64xi1> to vector<1x1x64xi32>
    %556 = arith.sitofp %555 : vector<1x1x64xi32> to vector<1x1x64xf32>
    %557 = vector.broadcast %556 : vector<1x1x64xf32> to vector<1x8x64xf32>
    %558 = arith.mulf %539, %557 : vector<1x8x64xf32>
    "tpu.trace_start"() <{level = 10 : i32, message = "bqd,bkd->bqk"}> : () -> ()
    %cst_177 = arith.constant dense<0.000000e+00> : vector<1x8x8xf32>
    %559 = tpu.matmul %558, %546, %cst_177 {dimension_numbers = #tpu.dot_dimension_numbers<[2], [2], [1], [1], [0, 0, 0, 1, 1, 1], [0], [0]>} : vector<1x8x64xf32>, vector<1x8x64xf32>, vector<1x8x8xf32> -> vector<1x8x8xf32>
    "tpu.trace_stop"() : () -> ()
    %cst_178 = arith.constant dense<0xFF800000> : vector<1x8xf32>
    %560 = vector.multi_reduction <maximumf>, %559, %cst_178 [2] : vector<1x8x8xf32> to vector<1x8xf32>
    %561 = vector.shape_cast %560 : vector<1x8xf32> to vector<1x8x1xf32>
    %562 = vector.broadcast %561 : vector<1x8x1xf32> to vector<1x8x8xf32>
    %563 = arith.subf %559, %562 : vector<1x8x8xf32>
    %564 = math.exp %563 : vector<1x8x8xf32>
    %cst_179 = arith.constant dense<0.000000e+00> : vector<1x8xf32>
    %565 = vector.multi_reduction <add>, %564, %cst_179 [2] : vector<1x8x8xf32> to vector<1x8xf32>
    %566 = vector.shape_cast %565 : vector<1x8xf32> to vector<1x8x1xf32>
    %567 = tpu.reciprocal %566 {approx = true} : vector<1x8x1xf32> -> vector<1x8x1xf32>
    %568 = vector.broadcast %567 : vector<1x8x1xf32> to vector<1x8x8xf32>
    %569 = arith.mulf %564, %568 : vector<1x8x8xf32>
    %570 = vector.broadcast %556 : vector<1x1x64xf32> to vector<1x8x64xf32>
    %571 = arith.mulf %548, %570 : vector<1x8x64xf32>
    "tpu.trace_start"() <{level = 10 : i32, message = "bqk,bkd->bqd"}> : () -> ()
    %cst_180 = arith.constant dense<0.000000e+00> : vector<1x8x64xf32>
    %572 = tpu.matmul %569, %571, %cst_180 {dimension_numbers = #tpu.dot_dimension_numbers<[2], [1], [1], [2], [0, 0, 0, 1, 1, 2], [0], [0]>} : vector<1x8x8xf32>, vector<1x8x64xf32>, vector<1x8x64xf32> -> vector<1x8x64xf32>
    "tpu.trace_stop"() : () -> ()
    %573 = arith.addf %549, %572 : vector<1x8x64xf32>
    %c16_i32_181 = arith.constant 16 : i32
    %574 = vector.broadcast %c16_i32_181 : i32 to vector<1x1x64xi32>
    %575 = arith.cmpi sge, %0, %574 : vector<1x1x64xi32>
    %c32_i32_182 = arith.constant 32 : i32
    %576 = vector.broadcast %c32_i32_182 : i32 to vector<1x1x64xi32>
    %577 = arith.cmpi slt, %0, %576 : vector<1x1x64xi32>
    %578 = arith.andi %575, %577 : vector<1x1x64xi1>
    %579 = arith.extui %578 : vector<1x1x64xi1> to vector<1x1x64xi32>
    %580 = arith.sitofp %579 : vector<1x1x64xi32> to vector<1x1x64xf32>
    %581 = vector.broadcast %580 : vector<1x1x64xf32> to vector<1x8x64xf32>
    %582 = arith.mulf %539, %581 : vector<1x8x64xf32>
    "tpu.trace_start"() <{level = 10 : i32, message = "bqd,bkd->bqk"}> : () -> ()
    %cst_183 = arith.constant dense<0.000000e+00> : vector<1x8x8xf32>
    %583 = tpu.matmul %582, %546, %cst_183 {dimension_numbers = #tpu.dot_dimension_numbers<[2], [2], [1], [1], [0, 0, 0, 1, 1, 1], [0], [0]>} : vector<1x8x64xf32>, vector<1x8x64xf32>, vector<1x8x8xf32> -> vector<1x8x8xf32>
    "tpu.trace_stop"() : () -> ()
    %cst_184 = arith.constant dense<0xFF800000> : vector<1x8xf32>
    %584 = vector.multi_reduction <maximumf>, %583, %cst_184 [2] : vector<1x8x8xf32> to vector<1x8xf32>
    %585 = vector.shape_cast %584 : vector<1x8xf32> to vector<1x8x1xf32>
    %586 = vector.broadcast %585 : vector<1x8x1xf32> to vector<1x8x8xf32>
    %587 = arith.subf %583, %586 : vector<1x8x8xf32>
    %588 = math.exp %587 : vector<1x8x8xf32>
    %cst_185 = arith.constant dense<0.000000e+00> : vector<1x8xf32>
    %589 = vector.multi_reduction <add>, %588, %cst_185 [2] : vector<1x8x8xf32> to vector<1x8xf32>
    %590 = vector.shape_cast %589 : vector<1x8xf32> to vector<1x8x1xf32>
    %591 = tpu.reciprocal %590 {approx = true} : vector<1x8x1xf32> -> vector<1x8x1xf32>
    %592 = vector.broadcast %591 : vector<1x8x1xf32> to vector<1x8x8xf32>
    %593 = arith.mulf %588, %592 : vector<1x8x8xf32>
    %594 = vector.broadcast %580 : vector<1x1x64xf32> to vector<1x8x64xf32>
    %595 = arith.mulf %548, %594 : vector<1x8x64xf32>
    "tpu.trace_start"() <{level = 10 : i32, message = "bqk,bkd->bqd"}> : () -> ()
    %cst_186 = arith.constant dense<0.000000e+00> : vector<1x8x64xf32>
    %596 = tpu.matmul %593, %595, %cst_186 {dimension_numbers = #tpu.dot_dimension_numbers<[2], [1], [1], [2], [0, 0, 0, 1, 1, 2], [0], [0]>} : vector<1x8x8xf32>, vector<1x8x64xf32>, vector<1x8x64xf32> -> vector<1x8x64xf32>
    "tpu.trace_stop"() : () -> ()
    %597 = arith.addf %573, %596 : vector<1x8x64xf32>
    %c32_i32_187 = arith.constant 32 : i32
    %598 = vector.broadcast %c32_i32_187 : i32 to vector<1x1x64xi32>
    %599 = arith.cmpi sge, %0, %598 : vector<1x1x64xi32>
    %c48_i32_188 = arith.constant 48 : i32
    %600 = vector.broadcast %c48_i32_188 : i32 to vector<1x1x64xi32>
    %601 = arith.cmpi slt, %0, %600 : vector<1x1x64xi32>
    %602 = arith.andi %599, %601 : vector<1x1x64xi1>
    %603 = arith.extui %602 : vector<1x1x64xi1> to vector<1x1x64xi32>
    %604 = arith.sitofp %603 : vector<1x1x64xi32> to vector<1x1x64xf32>
    %605 = vector.broadcast %604 : vector<1x1x64xf32> to vector<1x8x64xf32>
    %606 = arith.mulf %539, %605 : vector<1x8x64xf32>
    "tpu.trace_start"() <{level = 10 : i32, message = "bqd,bkd->bqk"}> : () -> ()
    %cst_189 = arith.constant dense<0.000000e+00> : vector<1x8x8xf32>
    %607 = tpu.matmul %606, %546, %cst_189 {dimension_numbers = #tpu.dot_dimension_numbers<[2], [2], [1], [1], [0, 0, 0, 1, 1, 1], [0], [0]>} : vector<1x8x64xf32>, vector<1x8x64xf32>, vector<1x8x8xf32> -> vector<1x8x8xf32>
    "tpu.trace_stop"() : () -> ()
    %cst_190 = arith.constant dense<0xFF800000> : vector<1x8xf32>
    %608 = vector.multi_reduction <maximumf>, %607, %cst_190 [2] : vector<1x8x8xf32> to vector<1x8xf32>
    %609 = vector.shape_cast %608 : vector<1x8xf32> to vector<1x8x1xf32>
    %610 = vector.broadcast %609 : vector<1x8x1xf32> to vector<1x8x8xf32>
    %611 = arith.subf %607, %610 : vector<1x8x8xf32>
    %612 = math.exp %611 : vector<1x8x8xf32>
    %cst_191 = arith.constant dense<0.000000e+00> : vector<1x8xf32>
    %613 = vector.multi_reduction <add>, %612, %cst_191 [2] : vector<1x8x8xf32> to vector<1x8xf32>
    %614 = vector.shape_cast %613 : vector<1x8xf32> to vector<1x8x1xf32>
    %615 = tpu.reciprocal %614 {approx = true} : vector<1x8x1xf32> -> vector<1x8x1xf32>
    %616 = vector.broadcast %615 : vector<1x8x1xf32> to vector<1x8x8xf32>
    %617 = arith.mulf %612, %616 : vector<1x8x8xf32>
    %618 = vector.broadcast %604 : vector<1x1x64xf32> to vector<1x8x64xf32>
    %619 = arith.mulf %548, %618 : vector<1x8x64xf32>
    "tpu.trace_start"() <{level = 10 : i32, message = "bqk,bkd->bqd"}> : () -> ()
    %cst_192 = arith.constant dense<0.000000e+00> : vector<1x8x64xf32>
    %620 = tpu.matmul %617, %619, %cst_192 {dimension_numbers = #tpu.dot_dimension_numbers<[2], [1], [1], [2], [0, 0, 0, 1, 1, 2], [0], [0]>} : vector<1x8x8xf32>, vector<1x8x64xf32>, vector<1x8x64xf32> -> vector<1x8x64xf32>
    "tpu.trace_stop"() : () -> ()
    %621 = arith.addf %597, %620 : vector<1x8x64xf32>
    %c48_i32_193 = arith.constant 48 : i32
    %622 = vector.broadcast %c48_i32_193 : i32 to vector<1x1x64xi32>
    %623 = arith.cmpi sge, %0, %622 : vector<1x1x64xi32>
    %c64_i32_194 = arith.constant 64 : i32
    %624 = vector.broadcast %c64_i32_194 : i32 to vector<1x1x64xi32>
    %625 = arith.cmpi slt, %0, %624 : vector<1x1x64xi32>
    %626 = arith.andi %623, %625 : vector<1x1x64xi1>
    %627 = arith.extui %626 : vector<1x1x64xi1> to vector<1x1x64xi32>
    %628 = arith.sitofp %627 : vector<1x1x64xi32> to vector<1x1x64xf32>
    %629 = vector.broadcast %628 : vector<1x1x64xf32> to vector<1x8x64xf32>
    %630 = arith.mulf %539, %629 : vector<1x8x64xf32>
    "tpu.trace_start"() <{level = 10 : i32, message = "bqd,bkd->bqk"}> : () -> ()
    %cst_195 = arith.constant dense<0.000000e+00> : vector<1x8x8xf32>
    %631 = tpu.matmul %630, %546, %cst_195 {dimension_numbers = #tpu.dot_dimension_numbers<[2], [2], [1], [1], [0, 0, 0, 1, 1, 1], [0], [0]>} : vector<1x8x64xf32>, vector<1x8x64xf32>, vector<1x8x8xf32> -> vector<1x8x8xf32>
    "tpu.trace_stop"() : () -> ()
    %cst_196 = arith.constant dense<0xFF800000> : vector<1x8xf32>
    %632 = vector.multi_reduction <maximumf>, %631, %cst_196 [2] : vector<1x8x8xf32> to vector<1x8xf32>
    %633 = vector.shape_cast %632 : vector<1x8xf32> to vector<1x8x1xf32>
    %634 = vector.broadcast %633 : vector<1x8x1xf32> to vector<1x8x8xf32>
    %635 = arith.subf %631, %634 : vector<1x8x8xf32>
    %636 = math.exp %635 : vector<1x8x8xf32>
    %cst_197 = arith.constant dense<0.000000e+00> : vector<1x8xf32>
    %637 = vector.multi_reduction <add>, %636, %cst_197 [2] : vector<1x8x8xf32> to vector<1x8xf32>
    %638 = vector.shape_cast %637 : vector<1x8xf32> to vector<1x8x1xf32>
    %639 = tpu.reciprocal %638 {approx = true} : vector<1x8x1xf32> -> vector<1x8x1xf32>
    %640 = vector.broadcast %639 : vector<1x8x1xf32> to vector<1x8x8xf32>
    %641 = arith.mulf %636, %640 : vector<1x8x8xf32>
    %642 = vector.broadcast %628 : vector<1x1x64xf32> to vector<1x8x64xf32>
    %643 = arith.mulf %548, %642 : vector<1x8x64xf32>
    "tpu.trace_start"() <{level = 10 : i32, message = "bqk,bkd->bqd"}> : () -> ()
    %cst_198 = arith.constant dense<0.000000e+00> : vector<1x8x64xf32>
    %644 = tpu.matmul %641, %643, %cst_198 {dimension_numbers = #tpu.dot_dimension_numbers<[2], [1], [1], [2], [0, 0, 0, 1, 1, 2], [0], [0]>} : vector<1x8x8xf32>, vector<1x8x64xf32>, vector<1x8x64xf32> -> vector<1x8x64xf32>
    "tpu.trace_stop"() : () -> ()
    %645 = arith.addf %621, %644 : vector<1x8x64xf32>
    %646 = vector.shape_cast %645 : vector<1x8x64xf32> to vector<8x64xf32>
    %c592 = arith.constant 592 : index
    %c0_199 = arith.constant 0 : index
    %647 = vector.load %arg6[%c592, %c0_199] : memref<976x192xf32, #tpu.memory_space<vmem>>, vector<64x64xf32>
    %c25 = arith.constant 25 : index
    %c0_200 = arith.constant 0 : index
    %648 = vector.load %arg4[%c25, %c0_200] : memref<45x192xf32, #tpu.memory_space<vmem>>, vector<1x64xf32>
    %cst_201 = arith.constant dense<0.000000e+00> : vector<8x64xf32>
    %649 = tpu.matmul %646, %647, %cst_201 {dimension_numbers = #tpu.dot_dimension_numbers<[1], [0], [0], [1], [0, 0, 1, 1], [], []>} : vector<8x64xf32>, vector<64x64xf32>, vector<8x64xf32> -> vector<8x64xf32>
    %650 = vector.broadcast %648 : vector<1x64xf32> to vector<8x64xf32>
    %651 = arith.addf %649, %650 : vector<8x64xf32>
    %652 = arith.addf %531, %651 : vector<8x64xf32>
    %c29 = arith.constant 29 : index
    %c0_202 = arith.constant 0 : index
    %653 = vector.load %arg4[%c29, %c0_202] : memref<45x192xf32, #tpu.memory_space<vmem>>, vector<1x64xf32>
    %c30 = arith.constant 30 : index
    %c0_203 = arith.constant 0 : index
    %654 = vector.load %arg4[%c30, %c0_203] : memref<45x192xf32, #tpu.memory_space<vmem>>, vector<1x64xf32>
    %cst_204 = arith.constant dense<0.000000e+00> : vector<8xf32>
    %655 = vector.multi_reduction <add>, %652, %cst_204 [1] : vector<8x64xf32> to vector<8xf32>
    %656 = vector.shape_cast %655 : vector<8xf32> to vector<8x1xf32>
    %cst_205 = arith.constant 6.400000e+01 : f32
    %657 = vector.broadcast %cst_205 : f32 to vector<8x1xf32>
    %658 = arith.divf %656, %657 : vector<8x1xf32>
    %659 = vector.broadcast %658 : vector<8x1xf32> to vector<8x64xf32>
    %660 = arith.subf %652, %659 : vector<8x64xf32>
    %661 = arith.mulf %660, %660 : vector<8x64xf32>
    %cst_206 = arith.constant dense<0.000000e+00> : vector<8xf32>
    %662 = vector.multi_reduction <add>, %661, %cst_206 [1] : vector<8x64xf32> to vector<8xf32>
    %663 = vector.shape_cast %662 : vector<8xf32> to vector<8x1xf32>
    %cst_207 = arith.constant 6.400000e+01 : f32
    %664 = vector.broadcast %cst_207 : f32 to vector<8x1xf32>
    %665 = arith.divf %663, %664 : vector<8x1xf32>
    %cst_208 = arith.constant 9.99999974E-6 : f32
    %666 = vector.broadcast %cst_208 : f32 to vector<8x1xf32>
    %667 = arith.addf %665, %666 : vector<8x1xf32>
    %668 = math.rsqrt %667 : vector<8x1xf32>
    %669 = vector.broadcast %668 : vector<8x1xf32> to vector<8x64xf32>
    %670 = arith.mulf %660, %669 : vector<8x64xf32>
    %671 = vector.broadcast %653 : vector<1x64xf32> to vector<8x64xf32>
    %672 = arith.mulf %670, %671 : vector<8x64xf32>
    %673 = vector.broadcast %654 : vector<1x64xf32> to vector<8x64xf32>
    %674 = arith.addf %672, %673 : vector<8x64xf32>
    %c128 = arith.constant 128 : index
    %c0_209 = arith.constant 0 : index
    %675 = vector.load %arg7[%c128, %c0_209] : memref<256x2048xbf16, #tpu.memory_space<vmem>>, vector<64x2048xbf16>
    %c4096 = arith.constant 4096 : index
    %c0_210 = arith.constant 0 : index
    %676 = vector.load %arg8[%c4096, %c0_210] : memref<8192x64xbf16, #tpu.memory_space<vmem>>, vector<2048x64xbf16>
    %c2_211 = arith.constant 2 : index
    %c0_212 = arith.constant 0 : index
    %677 = vector.load %arg5[%c2_211, %c0_212] : memref<4x2048xf32, #tpu.memory_space<vmem>>, vector<1x2048xf32>
    %c26 = arith.constant 26 : index
    %c0_213 = arith.constant 0 : index
    %678 = vector.load %arg4[%c26, %c0_213] : memref<45x192xf32, #tpu.memory_space<vmem>>, vector<1x64xf32>
    %679 = arith.truncf %674 : vector<8x64xf32> to vector<8x64xbf16>
    %cst_214 = arith.constant dense<0.000000e+00> : vector<8x2048xf32>
    %680 = tpu.matmul %679, %675, %cst_214 {dimension_numbers = #tpu.dot_dimension_numbers<[1], [0], [0], [1], [0, 0, 1, 1], [], []>} : vector<8x64xbf16>, vector<64x2048xbf16>, vector<8x2048xf32> -> vector<8x2048xf32>
    %681 = vector.broadcast %677 : vector<1x2048xf32> to vector<8x2048xf32>
    %682 = arith.addf %680, %681 : vector<8x2048xf32>
    %cst_215 = arith.constant 0.000000e+00 : f32
    %683 = vector.broadcast %cst_215 : f32 to vector<8x2048xf32>
    %684 = arith.maximumf %682, %683 : vector<8x2048xf32>
    %685 = arith.truncf %684 : vector<8x2048xf32> to vector<8x2048xbf16>
    %cst_216 = arith.constant dense<0.000000e+00> : vector<8x64xf32>
    %686 = tpu.matmul %685, %676, %cst_216 {dimension_numbers = #tpu.dot_dimension_numbers<[1], [0], [0], [1], [0, 0, 1, 1], [], []>} : vector<8x2048xbf16>, vector<2048x64xbf16>, vector<8x64xf32> -> vector<8x64xf32>
    %687 = vector.broadcast %678 : vector<1x64xf32> to vector<8x64xf32>
    %688 = arith.addf %686, %687 : vector<8x64xf32>
    %689 = arith.addf %674, %688 : vector<8x64xf32>
    %c31 = arith.constant 31 : index
    %c0_217 = arith.constant 0 : index
    %690 = vector.load %arg4[%c31, %c0_217] : memref<45x192xf32, #tpu.memory_space<vmem>>, vector<1x64xf32>
    %c32 = arith.constant 32 : index
    %c0_218 = arith.constant 0 : index
    %691 = vector.load %arg4[%c32, %c0_218] : memref<45x192xf32, #tpu.memory_space<vmem>>, vector<1x64xf32>
    %cst_219 = arith.constant dense<0.000000e+00> : vector<8xf32>
    %692 = vector.multi_reduction <add>, %689, %cst_219 [1] : vector<8x64xf32> to vector<8xf32>
    %693 = vector.shape_cast %692 : vector<8xf32> to vector<8x1xf32>
    %cst_220 = arith.constant 6.400000e+01 : f32
    %694 = vector.broadcast %cst_220 : f32 to vector<8x1xf32>
    %695 = arith.divf %693, %694 : vector<8x1xf32>
    %696 = vector.broadcast %695 : vector<8x1xf32> to vector<8x64xf32>
    %697 = arith.subf %689, %696 : vector<8x64xf32>
    %698 = arith.mulf %697, %697 : vector<8x64xf32>
    %cst_221 = arith.constant dense<0.000000e+00> : vector<8xf32>
    %699 = vector.multi_reduction <add>, %698, %cst_221 [1] : vector<8x64xf32> to vector<8xf32>
    %700 = vector.shape_cast %699 : vector<8xf32> to vector<8x1xf32>
    %cst_222 = arith.constant 6.400000e+01 : f32
    %701 = vector.broadcast %cst_222 : f32 to vector<8x1xf32>
    %702 = arith.divf %700, %701 : vector<8x1xf32>
    %cst_223 = arith.constant 9.99999974E-6 : f32
    %703 = vector.broadcast %cst_223 : f32 to vector<8x1xf32>
    %704 = arith.addf %702, %703 : vector<8x1xf32>
    %705 = math.rsqrt %704 : vector<8x1xf32>
    %706 = vector.broadcast %705 : vector<8x1xf32> to vector<8x64xf32>
    %707 = arith.mulf %697, %706 : vector<8x64xf32>
    %708 = vector.broadcast %690 : vector<1x64xf32> to vector<8x64xf32>
    %709 = arith.mulf %707, %708 : vector<8x64xf32>
    %710 = vector.broadcast %691 : vector<1x64xf32> to vector<8x64xf32>
    %711 = arith.addf %709, %710 : vector<8x64xf32>
    %c656 = arith.constant 656 : index
    %c0_224 = arith.constant 0 : index
    %712 = vector.load %arg6[%c656, %c0_224] : memref<976x192xf32, #tpu.memory_space<vmem>>, vector<64x192xf32>
    %c33 = arith.constant 33 : index
    %c0_225 = arith.constant 0 : index
    %713 = vector.load %arg4[%c33, %c0_225] : memref<45x192xf32, #tpu.memory_space<vmem>>, vector<1x192xf32>
    %cst_226 = arith.constant dense<0.000000e+00> : vector<8x192xf32>
    %714 = tpu.matmul %711, %712, %cst_226 {dimension_numbers = #tpu.dot_dimension_numbers<[1], [0], [0], [1], [0, 0, 1, 1], [], []>} : vector<8x64xf32>, vector<64x192xf32>, vector<8x192xf32> -> vector<8x192xf32>
    %715 = vector.broadcast %713 : vector<1x192xf32> to vector<8x192xf32>
    %716 = arith.addf %714, %715 : vector<8x192xf32>
    %717 = vector.extract_strided_slice %716 {offsets = [0, 0], sizes = [8, 64], strides = [1, 1]} : vector<8x192xf32> to vector<8x64xf32>
    %cst_227 = arith.constant 2.500000e-01 : f32
    %718 = vector.broadcast %cst_227 : f32 to vector<8x64xf32>
    %719 = arith.mulf %717, %718 : vector<8x64xf32>
    %720 = vector.shape_cast %719 : vector<8x64xf32> to vector<1x8x64xf32>
    %721 = vector.extract_strided_slice %716 {offsets = [0, 64], sizes = [8, 64], strides = [1, 1]} : vector<8x192xf32> to vector<8x64xf32>
    %722 = vector.shape_cast %721 : vector<8x64xf32> to vector<1x8x64xf32>
    %723 = vector.extract_strided_slice %716 {offsets = [0, 128], sizes = [8, 64], strides = [1, 1]} : vector<8x192xf32> to vector<8x64xf32>
    %724 = vector.shape_cast %723 : vector<8x64xf32> to vector<1x8x64xf32>
    %cst_228 = arith.constant 0.000000e+00 : f32
    %725 = vector.broadcast %cst_228 : f32 to vector<1x8x64xf32>
    %c0_i32_229 = arith.constant 0 : i32
    %726 = vector.broadcast %c0_i32_229 : i32 to vector<1x1x64xi32>
    %727 = arith.cmpi sge, %0, %726 : vector<1x1x64xi32>
    %c16_i32_230 = arith.constant 16 : i32
    %728 = vector.broadcast %c16_i32_230 : i32 to vector<1x1x64xi32>
    %729 = arith.cmpi slt, %0, %728 : vector<1x1x64xi32>
    %730 = arith.andi %727, %729 : vector<1x1x64xi1>
    %731 = arith.extui %730 : vector<1x1x64xi1> to vector<1x1x64xi32>
    %732 = arith.sitofp %731 : vector<1x1x64xi32> to vector<1x1x64xf32>
    %733 = vector.broadcast %732 : vector<1x1x64xf32> to vector<1x8x64xf32>
    %734 = arith.mulf %720, %733 : vector<1x8x64xf32>
    "tpu.trace_start"() <{level = 10 : i32, message = "bqd,bkd->bqk"}> : () -> ()
    %cst_231 = arith.constant dense<0.000000e+00> : vector<1x8x8xf32>
    %735 = tpu.matmul %734, %722, %cst_231 {dimension_numbers = #tpu.dot_dimension_numbers<[2], [2], [1], [1], [0, 0, 0, 1, 1, 1], [0], [0]>} : vector<1x8x64xf32>, vector<1x8x64xf32>, vector<1x8x8xf32> -> vector<1x8x8xf32>
    "tpu.trace_stop"() : () -> ()
    %cst_232 = arith.constant dense<0xFF800000> : vector<1x8xf32>
    %736 = vector.multi_reduction <maximumf>, %735, %cst_232 [2] : vector<1x8x8xf32> to vector<1x8xf32>
    %737 = vector.shape_cast %736 : vector<1x8xf32> to vector<1x8x1xf32>
    %738 = vector.broadcast %737 : vector<1x8x1xf32> to vector<1x8x8xf32>
    %739 = arith.subf %735, %738 : vector<1x8x8xf32>
    %740 = math.exp %739 : vector<1x8x8xf32>
    %cst_233 = arith.constant dense<0.000000e+00> : vector<1x8xf32>
    %741 = vector.multi_reduction <add>, %740, %cst_233 [2] : vector<1x8x8xf32> to vector<1x8xf32>
    %742 = vector.shape_cast %741 : vector<1x8xf32> to vector<1x8x1xf32>
    %743 = tpu.reciprocal %742 {approx = true} : vector<1x8x1xf32> -> vector<1x8x1xf32>
    %744 = vector.broadcast %743 : vector<1x8x1xf32> to vector<1x8x8xf32>
    %745 = arith.mulf %740, %744 : vector<1x8x8xf32>
    %746 = vector.broadcast %732 : vector<1x1x64xf32> to vector<1x8x64xf32>
    %747 = arith.mulf %724, %746 : vector<1x8x64xf32>
    "tpu.trace_start"() <{level = 10 : i32, message = "bqk,bkd->bqd"}> : () -> ()
    %cst_234 = arith.constant dense<0.000000e+00> : vector<1x8x64xf32>
    %748 = tpu.matmul %745, %747, %cst_234 {dimension_numbers = #tpu.dot_dimension_numbers<[2], [1], [1], [2], [0, 0, 0, 1, 1, 2], [0], [0]>} : vector<1x8x8xf32>, vector<1x8x64xf32>, vector<1x8x64xf32> -> vector<1x8x64xf32>
    "tpu.trace_stop"() : () -> ()
    %749 = arith.addf %725, %748 : vector<1x8x64xf32>
    %c16_i32_235 = arith.constant 16 : i32
    %750 = vector.broadcast %c16_i32_235 : i32 to vector<1x1x64xi32>
    %751 = arith.cmpi sge, %0, %750 : vector<1x1x64xi32>
    %c32_i32_236 = arith.constant 32 : i32
    %752 = vector.broadcast %c32_i32_236 : i32 to vector<1x1x64xi32>
    %753 = arith.cmpi slt, %0, %752 : vector<1x1x64xi32>
    %754 = arith.andi %751, %753 : vector<1x1x64xi1>
    %755 = arith.extui %754 : vector<1x1x64xi1> to vector<1x1x64xi32>
    %756 = arith.sitofp %755 : vector<1x1x64xi32> to vector<1x1x64xf32>
    %757 = vector.broadcast %756 : vector<1x1x64xf32> to vector<1x8x64xf32>
    %758 = arith.mulf %720, %757 : vector<1x8x64xf32>
    "tpu.trace_start"() <{level = 10 : i32, message = "bqd,bkd->bqk"}> : () -> ()
    %cst_237 = arith.constant dense<0.000000e+00> : vector<1x8x8xf32>
    %759 = tpu.matmul %758, %722, %cst_237 {dimension_numbers = #tpu.dot_dimension_numbers<[2], [2], [1], [1], [0, 0, 0, 1, 1, 1], [0], [0]>} : vector<1x8x64xf32>, vector<1x8x64xf32>, vector<1x8x8xf32> -> vector<1x8x8xf32>
    "tpu.trace_stop"() : () -> ()
    %cst_238 = arith.constant dense<0xFF800000> : vector<1x8xf32>
    %760 = vector.multi_reduction <maximumf>, %759, %cst_238 [2] : vector<1x8x8xf32> to vector<1x8xf32>
    %761 = vector.shape_cast %760 : vector<1x8xf32> to vector<1x8x1xf32>
    %762 = vector.broadcast %761 : vector<1x8x1xf32> to vector<1x8x8xf32>
    %763 = arith.subf %759, %762 : vector<1x8x8xf32>
    %764 = math.exp %763 : vector<1x8x8xf32>
    %cst_239 = arith.constant dense<0.000000e+00> : vector<1x8xf32>
    %765 = vector.multi_reduction <add>, %764, %cst_239 [2] : vector<1x8x8xf32> to vector<1x8xf32>
    %766 = vector.shape_cast %765 : vector<1x8xf32> to vector<1x8x1xf32>
    %767 = tpu.reciprocal %766 {approx = true} : vector<1x8x1xf32> -> vector<1x8x1xf32>
    %768 = vector.broadcast %767 : vector<1x8x1xf32> to vector<1x8x8xf32>
    %769 = arith.mulf %764, %768 : vector<1x8x8xf32>
    %770 = vector.broadcast %756 : vector<1x1x64xf32> to vector<1x8x64xf32>
    %771 = arith.mulf %724, %770 : vector<1x8x64xf32>
    "tpu.trace_start"() <{level = 10 : i32, message = "bqk,bkd->bqd"}> : () -> ()
    %cst_240 = arith.constant dense<0.000000e+00> : vector<1x8x64xf32>
    %772 = tpu.matmul %769, %771, %cst_240 {dimension_numbers = #tpu.dot_dimension_numbers<[2], [1], [1], [2], [0, 0, 0, 1, 1, 2], [0], [0]>} : vector<1x8x8xf32>, vector<1x8x64xf32>, vector<1x8x64xf32> -> vector<1x8x64xf32>
    "tpu.trace_stop"() : () -> ()
    %773 = arith.addf %749, %772 : vector<1x8x64xf32>
    %c32_i32_241 = arith.constant 32 : i32
    %774 = vector.broadcast %c32_i32_241 : i32 to vector<1x1x64xi32>
    %775 = arith.cmpi sge, %0, %774 : vector<1x1x64xi32>
    %c48_i32_242 = arith.constant 48 : i32
    %776 = vector.broadcast %c48_i32_242 : i32 to vector<1x1x64xi32>
    %777 = arith.cmpi slt, %0, %776 : vector<1x1x64xi32>
    %778 = arith.andi %775, %777 : vector<1x1x64xi1>
    %779 = arith.extui %778 : vector<1x1x64xi1> to vector<1x1x64xi32>
    %780 = arith.sitofp %779 : vector<1x1x64xi32> to vector<1x1x64xf32>
    %781 = vector.broadcast %780 : vector<1x1x64xf32> to vector<1x8x64xf32>
    %782 = arith.mulf %720, %781 : vector<1x8x64xf32>
    "tpu.trace_start"() <{level = 10 : i32, message = "bqd,bkd->bqk"}> : () -> ()
    %cst_243 = arith.constant dense<0.000000e+00> : vector<1x8x8xf32>
    %783 = tpu.matmul %782, %722, %cst_243 {dimension_numbers = #tpu.dot_dimension_numbers<[2], [2], [1], [1], [0, 0, 0, 1, 1, 1], [0], [0]>} : vector<1x8x64xf32>, vector<1x8x64xf32>, vector<1x8x8xf32> -> vector<1x8x8xf32>
    "tpu.trace_stop"() : () -> ()
    %cst_244 = arith.constant dense<0xFF800000> : vector<1x8xf32>
    %784 = vector.multi_reduction <maximumf>, %783, %cst_244 [2] : vector<1x8x8xf32> to vector<1x8xf32>
    %785 = vector.shape_cast %784 : vector<1x8xf32> to vector<1x8x1xf32>
    %786 = vector.broadcast %785 : vector<1x8x1xf32> to vector<1x8x8xf32>
    %787 = arith.subf %783, %786 : vector<1x8x8xf32>
    %788 = math.exp %787 : vector<1x8x8xf32>
    %cst_245 = arith.constant dense<0.000000e+00> : vector<1x8xf32>
    %789 = vector.multi_reduction <add>, %788, %cst_245 [2] : vector<1x8x8xf32> to vector<1x8xf32>
    %790 = vector.shape_cast %789 : vector<1x8xf32> to vector<1x8x1xf32>
    %791 = tpu.reciprocal %790 {approx = true} : vector<1x8x1xf32> -> vector<1x8x1xf32>
    %792 = vector.broadcast %791 : vector<1x8x1xf32> to vector<1x8x8xf32>
    %793 = arith.mulf %788, %792 : vector<1x8x8xf32>
    %794 = vector.broadcast %780 : vector<1x1x64xf32> to vector<1x8x64xf32>
    %795 = arith.mulf %724, %794 : vector<1x8x64xf32>
    "tpu.trace_start"() <{level = 10 : i32, message = "bqk,bkd->bqd"}> : () -> ()
    %cst_246 = arith.constant dense<0.000000e+00> : vector<1x8x64xf32>
    %796 = tpu.matmul %793, %795, %cst_246 {dimension_numbers = #tpu.dot_dimension_numbers<[2], [1], [1], [2], [0, 0, 0, 1, 1, 2], [0], [0]>} : vector<1x8x8xf32>, vector<1x8x64xf32>, vector<1x8x64xf32> -> vector<1x8x64xf32>
    "tpu.trace_stop"() : () -> ()
    %797 = arith.addf %773, %796 : vector<1x8x64xf32>
    %c48_i32_247 = arith.constant 48 : i32
    %798 = vector.broadcast %c48_i32_247 : i32 to vector<1x1x64xi32>
    %799 = arith.cmpi sge, %0, %798 : vector<1x1x64xi32>
    %c64_i32_248 = arith.constant 64 : i32
    %800 = vector.broadcast %c64_i32_248 : i32 to vector<1x1x64xi32>
    %801 = arith.cmpi slt, %0, %800 : vector<1x1x64xi32>
    %802 = arith.andi %799, %801 : vector<1x1x64xi1>
    %803 = arith.extui %802 : vector<1x1x64xi1> to vector<1x1x64xi32>
    %804 = arith.sitofp %803 : vector<1x1x64xi32> to vector<1x1x64xf32>
    %805 = vector.broadcast %804 : vector<1x1x64xf32> to vector<1x8x64xf32>
    %806 = arith.mulf %720, %805 : vector<1x8x64xf32>
    "tpu.trace_start"() <{level = 10 : i32, message = "bqd,bkd->bqk"}> : () -> ()
    %cst_249 = arith.constant dense<0.000000e+00> : vector<1x8x8xf32>
    %807 = tpu.matmul %806, %722, %cst_249 {dimension_numbers = #tpu.dot_dimension_numbers<[2], [2], [1], [1], [0, 0, 0, 1, 1, 1], [0], [0]>} : vector<1x8x64xf32>, vector<1x8x64xf32>, vector<1x8x8xf32> -> vector<1x8x8xf32>
    "tpu.trace_stop"() : () -> ()
    %cst_250 = arith.constant dense<0xFF800000> : vector<1x8xf32>
    %808 = vector.multi_reduction <maximumf>, %807, %cst_250 [2] : vector<1x8x8xf32> to vector<1x8xf32>
    %809 = vector.shape_cast %808 : vector<1x8xf32> to vector<1x8x1xf32>
    %810 = vector.broadcast %809 : vector<1x8x1xf32> to vector<1x8x8xf32>
    %811 = arith.subf %807, %810 : vector<1x8x8xf32>
    %812 = math.exp %811 : vector<1x8x8xf32>
    %cst_251 = arith.constant dense<0.000000e+00> : vector<1x8xf32>
    %813 = vector.multi_reduction <add>, %812, %cst_251 [2] : vector<1x8x8xf32> to vector<1x8xf32>
    %814 = vector.shape_cast %813 : vector<1x8xf32> to vector<1x8x1xf32>
    %815 = tpu.reciprocal %814 {approx = true} : vector<1x8x1xf32> -> vector<1x8x1xf32>
    %816 = vector.broadcast %815 : vector<1x8x1xf32> to vector<1x8x8xf32>
    %817 = arith.mulf %812, %816 : vector<1x8x8xf32>
    %818 = vector.broadcast %804 : vector<1x1x64xf32> to vector<1x8x64xf32>
    %819 = arith.mulf %724, %818 : vector<1x8x64xf32>
    "tpu.trace_start"() <{level = 10 : i32, message = "bqk,bkd->bqd"}> : () -> ()
    %cst_252 = arith.constant dense<0.000000e+00> : vector<1x8x64xf32>
    %820 = tpu.matmul %817, %819, %cst_252 {dimension_numbers = #tpu.dot_dimension_numbers<[2], [1], [1], [2], [0, 0, 0, 1, 1, 2], [0], [0]>} : vector<1x8x8xf32>, vector<1x8x64xf32>, vector<1x8x64xf32> -> vector<1x8x64xf32>
    "tpu.trace_stop"() : () -> ()
    %821 = arith.addf %797, %820 : vector<1x8x64xf32>
    %822 = vector.shape_cast %821 : vector<1x8x64xf32> to vector<8x64xf32>
    %c720 = arith.constant 720 : index
    %c0_253 = arith.constant 0 : index
    %823 = vector.load %arg6[%c720, %c0_253] : memref<976x192xf32, #tpu.memory_space<vmem>>, vector<64x64xf32>
    %c34 = arith.constant 34 : index
    %c0_254 = arith.constant 0 : index
    %824 = vector.load %arg4[%c34, %c0_254] : memref<45x192xf32, #tpu.memory_space<vmem>>, vector<1x64xf32>
    %cst_255 = arith.constant dense<0.000000e+00> : vector<8x64xf32>
    %825 = tpu.matmul %822, %823, %cst_255 {dimension_numbers = #tpu.dot_dimension_numbers<[1], [0], [0], [1], [0, 0, 1, 1], [], []>} : vector<8x64xf32>, vector<64x64xf32>, vector<8x64xf32> -> vector<8x64xf32>
    %826 = vector.broadcast %824 : vector<1x64xf32> to vector<8x64xf32>
    %827 = arith.addf %825, %826 : vector<8x64xf32>
    %828 = arith.addf %711, %827 : vector<8x64xf32>
    %c39 = arith.constant 39 : index
    %c0_256 = arith.constant 0 : index
    %829 = vector.load %arg4[%c39, %c0_256] : memref<45x192xf32, #tpu.memory_space<vmem>>, vector<1x64xf32>
    %c40 = arith.constant 40 : index
    %c0_257 = arith.constant 0 : index
    %830 = vector.load %arg4[%c40, %c0_257] : memref<45x192xf32, #tpu.memory_space<vmem>>, vector<1x64xf32>
    %cst_258 = arith.constant dense<0.000000e+00> : vector<8xf32>
    %831 = vector.multi_reduction <add>, %828, %cst_258 [1] : vector<8x64xf32> to vector<8xf32>
    %832 = vector.shape_cast %831 : vector<8xf32> to vector<8x1xf32>
    %cst_259 = arith.constant 6.400000e+01 : f32
    %833 = vector.broadcast %cst_259 : f32 to vector<8x1xf32>
    %834 = arith.divf %832, %833 : vector<8x1xf32>
    %835 = vector.broadcast %834 : vector<8x1xf32> to vector<8x64xf32>
    %836 = arith.subf %828, %835 : vector<8x64xf32>
    %837 = arith.mulf %836, %836 : vector<8x64xf32>
    %cst_260 = arith.constant dense<0.000000e+00> : vector<8xf32>
    %838 = vector.multi_reduction <add>, %837, %cst_260 [1] : vector<8x64xf32> to vector<8xf32>
    %839 = vector.shape_cast %838 : vector<8xf32> to vector<8x1xf32>
    %cst_261 = arith.constant 6.400000e+01 : f32
    %840 = vector.broadcast %cst_261 : f32 to vector<8x1xf32>
    %841 = arith.divf %839, %840 : vector<8x1xf32>
    %cst_262 = arith.constant 9.99999974E-6 : f32
    %842 = vector.broadcast %cst_262 : f32 to vector<8x1xf32>
    %843 = arith.addf %841, %842 : vector<8x1xf32>
    %844 = math.rsqrt %843 : vector<8x1xf32>
    %845 = vector.broadcast %844 : vector<8x1xf32> to vector<8x64xf32>
    %846 = arith.mulf %836, %845 : vector<8x64xf32>
    %847 = vector.broadcast %829 : vector<1x64xf32> to vector<8x64xf32>
    %848 = arith.mulf %846, %847 : vector<8x64xf32>
    %849 = vector.broadcast %830 : vector<1x64xf32> to vector<8x64xf32>
    %850 = arith.addf %848, %849 : vector<8x64xf32>
    %c784 = arith.constant 784 : index
    %c0_263 = arith.constant 0 : index
    %851 = vector.load %arg6[%c784, %c0_263] : memref<976x192xf32, #tpu.memory_space<vmem>>, vector<64x64xf32>
    %c35 = arith.constant 35 : index
    %c0_264 = arith.constant 0 : index
    %852 = vector.load %arg4[%c35, %c0_264] : memref<45x192xf32, #tpu.memory_space<vmem>>, vector<1x64xf32>
    %cst_265 = arith.constant dense<0.000000e+00> : vector<8x64xf32>
    %853 = tpu.matmul %850, %851, %cst_265 {dimension_numbers = #tpu.dot_dimension_numbers<[1], [0], [0], [1], [0, 0, 1, 1], [], []>} : vector<8x64xf32>, vector<64x64xf32>, vector<8x64xf32> -> vector<8x64xf32>
    %854 = vector.broadcast %852 : vector<1x64xf32> to vector<8x64xf32>
    %855 = arith.addf %853, %854 : vector<8x64xf32>
    %cst_266 = arith.constant 2.500000e-01 : f32
    %856 = vector.broadcast %cst_266 : f32 to vector<8x64xf32>
    %857 = arith.mulf %855, %856 : vector<8x64xf32>
    %858 = vector.shape_cast %857 : vector<8x64xf32> to vector<1x8x64xf32>
    %c848 = arith.constant 848 : index
    %c0_267 = arith.constant 0 : index
    %859 = vector.load %arg6[%c848, %c0_267] : memref<976x192xf32, #tpu.memory_space<vmem>>, vector<64x128xf32>
    %c36 = arith.constant 36 : index
    %c0_268 = arith.constant 0 : index
    %860 = vector.load %arg4[%c36, %c0_268] : memref<45x192xf32, #tpu.memory_space<vmem>>, vector<1x128xf32>
    %cst_269 = arith.constant dense<0.000000e+00> : vector<8x128xf32>
    %861 = tpu.matmul %384, %859, %cst_269 {dimension_numbers = #tpu.dot_dimension_numbers<[1], [0], [0], [1], [0, 0, 1, 1], [], []>} : vector<8x64xf32>, vector<64x128xf32>, vector<8x128xf32> -> vector<8x128xf32>
    %862 = vector.broadcast %860 : vector<1x128xf32> to vector<8x128xf32>
    %863 = arith.addf %861, %862 : vector<8x128xf32>
    %864 = vector.extract_strided_slice %863 {offsets = [0, 0], sizes = [8, 64], strides = [1, 1]} : vector<8x128xf32> to vector<8x64xf32>
    %865 = vector.shape_cast %864 : vector<8x64xf32> to vector<1x8x64xf32>
    %866 = vector.extract_strided_slice %863 {offsets = [0, 64], sizes = [8, 64], strides = [1, 1]} : vector<8x128xf32> to vector<8x64xf32>
    %867 = vector.shape_cast %866 : vector<8x64xf32> to vector<1x8x64xf32>
    %cst_270 = arith.constant 0.000000e+00 : f32
    %868 = vector.broadcast %cst_270 : f32 to vector<1x8x64xf32>
    %c0_i32_271 = arith.constant 0 : i32
    %869 = vector.broadcast %c0_i32_271 : i32 to vector<1x1x64xi32>
    %870 = arith.cmpi sge, %0, %869 : vector<1x1x64xi32>
    %c16_i32_272 = arith.constant 16 : i32
    %871 = vector.broadcast %c16_i32_272 : i32 to vector<1x1x64xi32>
    %872 = arith.cmpi slt, %0, %871 : vector<1x1x64xi32>
    %873 = arith.andi %870, %872 : vector<1x1x64xi1>
    %874 = arith.extui %873 : vector<1x1x64xi1> to vector<1x1x64xi32>
    %875 = arith.sitofp %874 : vector<1x1x64xi32> to vector<1x1x64xf32>
    %876 = vector.broadcast %875 : vector<1x1x64xf32> to vector<1x8x64xf32>
    %877 = arith.mulf %858, %876 : vector<1x8x64xf32>
    "tpu.trace_start"() <{level = 10 : i32, message = "bqd,bkd->bqk"}> : () -> ()
    %cst_273 = arith.constant dense<0.000000e+00> : vector<1x8x8xf32>
    %878 = tpu.matmul %877, %865, %cst_273 {dimension_numbers = #tpu.dot_dimension_numbers<[2], [2], [1], [1], [0, 0, 0, 1, 1, 1], [0], [0]>} : vector<1x8x64xf32>, vector<1x8x64xf32>, vector<1x8x8xf32> -> vector<1x8x8xf32>
    "tpu.trace_stop"() : () -> ()
    %cst_274 = arith.constant dense<0xFF800000> : vector<1x8xf32>
    %879 = vector.multi_reduction <maximumf>, %878, %cst_274 [2] : vector<1x8x8xf32> to vector<1x8xf32>
    %880 = vector.shape_cast %879 : vector<1x8xf32> to vector<1x8x1xf32>
    %881 = vector.broadcast %880 : vector<1x8x1xf32> to vector<1x8x8xf32>
    %882 = arith.subf %878, %881 : vector<1x8x8xf32>
    %883 = math.exp %882 : vector<1x8x8xf32>
    %cst_275 = arith.constant dense<0.000000e+00> : vector<1x8xf32>
    %884 = vector.multi_reduction <add>, %883, %cst_275 [2] : vector<1x8x8xf32> to vector<1x8xf32>
    %885 = vector.shape_cast %884 : vector<1x8xf32> to vector<1x8x1xf32>
    %886 = tpu.reciprocal %885 {approx = true} : vector<1x8x1xf32> -> vector<1x8x1xf32>
    %887 = vector.broadcast %886 : vector<1x8x1xf32> to vector<1x8x8xf32>
    %888 = arith.mulf %883, %887 : vector<1x8x8xf32>
    %889 = vector.broadcast %875 : vector<1x1x64xf32> to vector<1x8x64xf32>
    %890 = arith.mulf %867, %889 : vector<1x8x64xf32>
    "tpu.trace_start"() <{level = 10 : i32, message = "bqk,bkd->bqd"}> : () -> ()
    %cst_276 = arith.constant dense<0.000000e+00> : vector<1x8x64xf32>
    %891 = tpu.matmul %888, %890, %cst_276 {dimension_numbers = #tpu.dot_dimension_numbers<[2], [1], [1], [2], [0, 0, 0, 1, 1, 2], [0], [0]>} : vector<1x8x8xf32>, vector<1x8x64xf32>, vector<1x8x64xf32> -> vector<1x8x64xf32>
    "tpu.trace_stop"() : () -> ()
    %892 = arith.addf %868, %891 : vector<1x8x64xf32>
    %c16_i32_277 = arith.constant 16 : i32
    %893 = vector.broadcast %c16_i32_277 : i32 to vector<1x1x64xi32>
    %894 = arith.cmpi sge, %0, %893 : vector<1x1x64xi32>
    %c32_i32_278 = arith.constant 32 : i32
    %895 = vector.broadcast %c32_i32_278 : i32 to vector<1x1x64xi32>
    %896 = arith.cmpi slt, %0, %895 : vector<1x1x64xi32>
    %897 = arith.andi %894, %896 : vector<1x1x64xi1>
    %898 = arith.extui %897 : vector<1x1x64xi1> to vector<1x1x64xi32>
    %899 = arith.sitofp %898 : vector<1x1x64xi32> to vector<1x1x64xf32>
    %900 = vector.broadcast %899 : vector<1x1x64xf32> to vector<1x8x64xf32>
    %901 = arith.mulf %858, %900 : vector<1x8x64xf32>
    "tpu.trace_start"() <{level = 10 : i32, message = "bqd,bkd->bqk"}> : () -> ()
    %cst_279 = arith.constant dense<0.000000e+00> : vector<1x8x8xf32>
    %902 = tpu.matmul %901, %865, %cst_279 {dimension_numbers = #tpu.dot_dimension_numbers<[2], [2], [1], [1], [0, 0, 0, 1, 1, 1], [0], [0]>} : vector<1x8x64xf32>, vector<1x8x64xf32>, vector<1x8x8xf32> -> vector<1x8x8xf32>
    "tpu.trace_stop"() : () -> ()
    %cst_280 = arith.constant dense<0xFF800000> : vector<1x8xf32>
    %903 = vector.multi_reduction <maximumf>, %902, %cst_280 [2] : vector<1x8x8xf32> to vector<1x8xf32>
    %904 = vector.shape_cast %903 : vector<1x8xf32> to vector<1x8x1xf32>
    %905 = vector.broadcast %904 : vector<1x8x1xf32> to vector<1x8x8xf32>
    %906 = arith.subf %902, %905 : vector<1x8x8xf32>
    %907 = math.exp %906 : vector<1x8x8xf32>
    %cst_281 = arith.constant dense<0.000000e+00> : vector<1x8xf32>
    %908 = vector.multi_reduction <add>, %907, %cst_281 [2] : vector<1x8x8xf32> to vector<1x8xf32>
    %909 = vector.shape_cast %908 : vector<1x8xf32> to vector<1x8x1xf32>
    %910 = tpu.reciprocal %909 {approx = true} : vector<1x8x1xf32> -> vector<1x8x1xf32>
    %911 = vector.broadcast %910 : vector<1x8x1xf32> to vector<1x8x8xf32>
    %912 = arith.mulf %907, %911 : vector<1x8x8xf32>
    %913 = vector.broadcast %899 : vector<1x1x64xf32> to vector<1x8x64xf32>
    %914 = arith.mulf %867, %913 : vector<1x8x64xf32>
    "tpu.trace_start"() <{level = 10 : i32, message = "bqk,bkd->bqd"}> : () -> ()
    %cst_282 = arith.constant dense<0.000000e+00> : vector<1x8x64xf32>
    %915 = tpu.matmul %912, %914, %cst_282 {dimension_numbers = #tpu.dot_dimension_numbers<[2], [1], [1], [2], [0, 0, 0, 1, 1, 2], [0], [0]>} : vector<1x8x8xf32>, vector<1x8x64xf32>, vector<1x8x64xf32> -> vector<1x8x64xf32>
    "tpu.trace_stop"() : () -> ()
    %916 = arith.addf %892, %915 : vector<1x8x64xf32>
    %c32_i32_283 = arith.constant 32 : i32
    %917 = vector.broadcast %c32_i32_283 : i32 to vector<1x1x64xi32>
    %918 = arith.cmpi sge, %0, %917 : vector<1x1x64xi32>
    %c48_i32_284 = arith.constant 48 : i32
    %919 = vector.broadcast %c48_i32_284 : i32 to vector<1x1x64xi32>
    %920 = arith.cmpi slt, %0, %919 : vector<1x1x64xi32>
    %921 = arith.andi %918, %920 : vector<1x1x64xi1>
    %922 = arith.extui %921 : vector<1x1x64xi1> to vector<1x1x64xi32>
    %923 = arith.sitofp %922 : vector<1x1x64xi32> to vector<1x1x64xf32>
    %924 = vector.broadcast %923 : vector<1x1x64xf32> to vector<1x8x64xf32>
    %925 = arith.mulf %858, %924 : vector<1x8x64xf32>
    "tpu.trace_start"() <{level = 10 : i32, message = "bqd,bkd->bqk"}> : () -> ()
    %cst_285 = arith.constant dense<0.000000e+00> : vector<1x8x8xf32>
    %926 = tpu.matmul %925, %865, %cst_285 {dimension_numbers = #tpu.dot_dimension_numbers<[2], [2], [1], [1], [0, 0, 0, 1, 1, 1], [0], [0]>} : vector<1x8x64xf32>, vector<1x8x64xf32>, vector<1x8x8xf32> -> vector<1x8x8xf32>
    "tpu.trace_stop"() : () -> ()
    %cst_286 = arith.constant dense<0xFF800000> : vector<1x8xf32>
    %927 = vector.multi_reduction <maximumf>, %926, %cst_286 [2] : vector<1x8x8xf32> to vector<1x8xf32>
    %928 = vector.shape_cast %927 : vector<1x8xf32> to vector<1x8x1xf32>
    %929 = vector.broadcast %928 : vector<1x8x1xf32> to vector<1x8x8xf32>
    %930 = arith.subf %926, %929 : vector<1x8x8xf32>
    %931 = math.exp %930 : vector<1x8x8xf32>
    %cst_287 = arith.constant dense<0.000000e+00> : vector<1x8xf32>
    %932 = vector.multi_reduction <add>, %931, %cst_287 [2] : vector<1x8x8xf32> to vector<1x8xf32>
    %933 = vector.shape_cast %932 : vector<1x8xf32> to vector<1x8x1xf32>
    %934 = tpu.reciprocal %933 {approx = true} : vector<1x8x1xf32> -> vector<1x8x1xf32>
    %935 = vector.broadcast %934 : vector<1x8x1xf32> to vector<1x8x8xf32>
    %936 = arith.mulf %931, %935 : vector<1x8x8xf32>
    %937 = vector.broadcast %923 : vector<1x1x64xf32> to vector<1x8x64xf32>
    %938 = arith.mulf %867, %937 : vector<1x8x64xf32>
    "tpu.trace_start"() <{level = 10 : i32, message = "bqk,bkd->bqd"}> : () -> ()
    %cst_288 = arith.constant dense<0.000000e+00> : vector<1x8x64xf32>
    %939 = tpu.matmul %936, %938, %cst_288 {dimension_numbers = #tpu.dot_dimension_numbers<[2], [1], [1], [2], [0, 0, 0, 1, 1, 2], [0], [0]>} : vector<1x8x8xf32>, vector<1x8x64xf32>, vector<1x8x64xf32> -> vector<1x8x64xf32>
    "tpu.trace_stop"() : () -> ()
    %940 = arith.addf %916, %939 : vector<1x8x64xf32>
    %c48_i32_289 = arith.constant 48 : i32
    %941 = vector.broadcast %c48_i32_289 : i32 to vector<1x1x64xi32>
    %942 = arith.cmpi sge, %0, %941 : vector<1x1x64xi32>
    %c64_i32_290 = arith.constant 64 : i32
    %943 = vector.broadcast %c64_i32_290 : i32 to vector<1x1x64xi32>
    %944 = arith.cmpi slt, %0, %943 : vector<1x1x64xi32>
    %945 = arith.andi %942, %944 : vector<1x1x64xi1>
    %946 = arith.extui %945 : vector<1x1x64xi1> to vector<1x1x64xi32>
    %947 = arith.sitofp %946 : vector<1x1x64xi32> to vector<1x1x64xf32>
    %948 = vector.broadcast %947 : vector<1x1x64xf32> to vector<1x8x64xf32>
    %949 = arith.mulf %858, %948 : vector<1x8x64xf32>
    "tpu.trace_start"() <{level = 10 : i32, message = "bqd,bkd->bqk"}> : () -> ()
    %cst_291 = arith.constant dense<0.000000e+00> : vector<1x8x8xf32>
    %950 = tpu.matmul %949, %865, %cst_291 {dimension_numbers = #tpu.dot_dimension_numbers<[2], [2], [1], [1], [0, 0, 0, 1, 1, 1], [0], [0]>} : vector<1x8x64xf32>, vector<1x8x64xf32>, vector<1x8x8xf32> -> vector<1x8x8xf32>
    "tpu.trace_stop"() : () -> ()
    %cst_292 = arith.constant dense<0xFF800000> : vector<1x8xf32>
    %951 = vector.multi_reduction <maximumf>, %950, %cst_292 [2] : vector<1x8x8xf32> to vector<1x8xf32>
    %952 = vector.shape_cast %951 : vector<1x8xf32> to vector<1x8x1xf32>
    %953 = vector.broadcast %952 : vector<1x8x1xf32> to vector<1x8x8xf32>
    %954 = arith.subf %950, %953 : vector<1x8x8xf32>
    %955 = math.exp %954 : vector<1x8x8xf32>
    %cst_293 = arith.constant dense<0.000000e+00> : vector<1x8xf32>
    %956 = vector.multi_reduction <add>, %955, %cst_293 [2] : vector<1x8x8xf32> to vector<1x8xf32>
    %957 = vector.shape_cast %956 : vector<1x8xf32> to vector<1x8x1xf32>
    %958 = tpu.reciprocal %957 {approx = true} : vector<1x8x1xf32> -> vector<1x8x1xf32>
    %959 = vector.broadcast %958 : vector<1x8x1xf32> to vector<1x8x8xf32>
    %960 = arith.mulf %955, %959 : vector<1x8x8xf32>
    %961 = vector.broadcast %947 : vector<1x1x64xf32> to vector<1x8x64xf32>
    %962 = arith.mulf %867, %961 : vector<1x8x64xf32>
    "tpu.trace_start"() <{level = 10 : i32, message = "bqk,bkd->bqd"}> : () -> ()
    %cst_294 = arith.constant dense<0.000000e+00> : vector<1x8x64xf32>
    %963 = tpu.matmul %960, %962, %cst_294 {dimension_numbers = #tpu.dot_dimension_numbers<[2], [1], [1], [2], [0, 0, 0, 1, 1, 2], [0], [0]>} : vector<1x8x8xf32>, vector<1x8x64xf32>, vector<1x8x64xf32> -> vector<1x8x64xf32>
    "tpu.trace_stop"() : () -> ()
    %964 = arith.addf %940, %963 : vector<1x8x64xf32>
    %965 = vector.shape_cast %964 : vector<1x8x64xf32> to vector<8x64xf32>
    %c912 = arith.constant 912 : index
    %c0_295 = arith.constant 0 : index
    %966 = vector.load %arg6[%c912, %c0_295] : memref<976x192xf32, #tpu.memory_space<vmem>>, vector<64x64xf32>
    %c37 = arith.constant 37 : index
    %c0_296 = arith.constant 0 : index
    %967 = vector.load %arg4[%c37, %c0_296] : memref<45x192xf32, #tpu.memory_space<vmem>>, vector<1x64xf32>
    %cst_297 = arith.constant dense<0.000000e+00> : vector<8x64xf32>
    %968 = tpu.matmul %965, %966, %cst_297 {dimension_numbers = #tpu.dot_dimension_numbers<[1], [0], [0], [1], [0, 0, 1, 1], [], []>} : vector<8x64xf32>, vector<64x64xf32>, vector<8x64xf32> -> vector<8x64xf32>
    %969 = vector.broadcast %967 : vector<1x64xf32> to vector<8x64xf32>
    %970 = arith.addf %968, %969 : vector<8x64xf32>
    %971 = arith.addf %850, %970 : vector<8x64xf32>
    %c41 = arith.constant 41 : index
    %c0_298 = arith.constant 0 : index
    %972 = vector.load %arg4[%c41, %c0_298] : memref<45x192xf32, #tpu.memory_space<vmem>>, vector<1x64xf32>
    %c42 = arith.constant 42 : index
    %c0_299 = arith.constant 0 : index
    %973 = vector.load %arg4[%c42, %c0_299] : memref<45x192xf32, #tpu.memory_space<vmem>>, vector<1x64xf32>
    %cst_300 = arith.constant dense<0.000000e+00> : vector<8xf32>
    %974 = vector.multi_reduction <add>, %971, %cst_300 [1] : vector<8x64xf32> to vector<8xf32>
    %975 = vector.shape_cast %974 : vector<8xf32> to vector<8x1xf32>
    %cst_301 = arith.constant 6.400000e+01 : f32
    %976 = vector.broadcast %cst_301 : f32 to vector<8x1xf32>
    %977 = arith.divf %975, %976 : vector<8x1xf32>
    %978 = vector.broadcast %977 : vector<8x1xf32> to vector<8x64xf32>
    %979 = arith.subf %971, %978 : vector<8x64xf32>
    %980 = arith.mulf %979, %979 : vector<8x64xf32>
    %cst_302 = arith.constant dense<0.000000e+00> : vector<8xf32>
    %981 = vector.multi_reduction <add>, %980, %cst_302 [1] : vector<8x64xf32> to vector<8xf32>
    %982 = vector.shape_cast %981 : vector<8xf32> to vector<8x1xf32>
    %cst_303 = arith.constant 6.400000e+01 : f32
    %983 = vector.broadcast %cst_303 : f32 to vector<8x1xf32>
    %984 = arith.divf %982, %983 : vector<8x1xf32>
    %cst_304 = arith.constant 9.99999974E-6 : f32
    %985 = vector.broadcast %cst_304 : f32 to vector<8x1xf32>
    %986 = arith.addf %984, %985 : vector<8x1xf32>
    %987 = math.rsqrt %986 : vector<8x1xf32>
    %988 = vector.broadcast %987 : vector<8x1xf32> to vector<8x64xf32>
    %989 = arith.mulf %979, %988 : vector<8x64xf32>
    %990 = vector.broadcast %972 : vector<1x64xf32> to vector<8x64xf32>
    %991 = arith.mulf %989, %990 : vector<8x64xf32>
    %992 = vector.broadcast %973 : vector<1x64xf32> to vector<8x64xf32>
    %993 = arith.addf %991, %992 : vector<8x64xf32>
    %c192 = arith.constant 192 : index
    %c0_305 = arith.constant 0 : index
    %994 = vector.load %arg7[%c192, %c0_305] : memref<256x2048xbf16, #tpu.memory_space<vmem>>, vector<64x2048xbf16>
    %c6144 = arith.constant 6144 : index
    %c0_306 = arith.constant 0 : index
    %995 = vector.load %arg8[%c6144, %c0_306] : memref<8192x64xbf16, #tpu.memory_space<vmem>>, vector<2048x64xbf16>
    %c3_307 = arith.constant 3 : index
    %c0_308 = arith.constant 0 : index
    %996 = vector.load %arg5[%c3_307, %c0_308] : memref<4x2048xf32, #tpu.memory_space<vmem>>, vector<1x2048xf32>
    %c38 = arith.constant 38 : index
    %c0_309 = arith.constant 0 : index
    %997 = vector.load %arg4[%c38, %c0_309] : memref<45x192xf32, #tpu.memory_space<vmem>>, vector<1x64xf32>
    %998 = arith.truncf %993 : vector<8x64xf32> to vector<8x64xbf16>
    %cst_310 = arith.constant dense<0.000000e+00> : vector<8x2048xf32>
    %999 = tpu.matmul %998, %994, %cst_310 {dimension_numbers = #tpu.dot_dimension_numbers<[1], [0], [0], [1], [0, 0, 1, 1], [], []>} : vector<8x64xbf16>, vector<64x2048xbf16>, vector<8x2048xf32> -> vector<8x2048xf32>
    %1000 = vector.broadcast %996 : vector<1x2048xf32> to vector<8x2048xf32>
    %1001 = arith.addf %999, %1000 : vector<8x2048xf32>
    %cst_311 = arith.constant 0.000000e+00 : f32
    %1002 = vector.broadcast %cst_311 : f32 to vector<8x2048xf32>
    %1003 = arith.maximumf %1001, %1002 : vector<8x2048xf32>
    %1004 = arith.truncf %1003 : vector<8x2048xf32> to vector<8x2048xbf16>
    %cst_312 = arith.constant dense<0.000000e+00> : vector<8x64xf32>
    %1005 = tpu.matmul %1004, %995, %cst_312 {dimension_numbers = #tpu.dot_dimension_numbers<[1], [0], [0], [1], [0, 0, 1, 1], [], []>} : vector<8x2048xbf16>, vector<2048x64xbf16>, vector<8x64xf32> -> vector<8x64xf32>
    %1006 = vector.broadcast %997 : vector<1x64xf32> to vector<8x64xf32>
    %1007 = arith.addf %1005, %1006 : vector<8x64xf32>
    %1008 = arith.addf %993, %1007 : vector<8x64xf32>
    %c43 = arith.constant 43 : index
    %c0_313 = arith.constant 0 : index
    %1009 = vector.load %arg4[%c43, %c0_313] : memref<45x192xf32, #tpu.memory_space<vmem>>, vector<1x64xf32>
    %c44 = arith.constant 44 : index
    %c0_314 = arith.constant 0 : index
    %1010 = vector.load %arg4[%c44, %c0_314] : memref<45x192xf32, #tpu.memory_space<vmem>>, vector<1x64xf32>
    %cst_315 = arith.constant dense<0.000000e+00> : vector<8xf32>
    %1011 = vector.multi_reduction <add>, %1008, %cst_315 [1] : vector<8x64xf32> to vector<8xf32>
    %1012 = vector.shape_cast %1011 : vector<8xf32> to vector<8x1xf32>
    %cst_316 = arith.constant 6.400000e+01 : f32
    %1013 = vector.broadcast %cst_316 : f32 to vector<8x1xf32>
    %1014 = arith.divf %1012, %1013 : vector<8x1xf32>
    %1015 = vector.broadcast %1014 : vector<8x1xf32> to vector<8x64xf32>
    %1016 = arith.subf %1008, %1015 : vector<8x64xf32>
    %1017 = arith.mulf %1016, %1016 : vector<8x64xf32>
    %cst_317 = arith.constant dense<0.000000e+00> : vector<8xf32>
    %1018 = vector.multi_reduction <add>, %1017, %cst_317 [1] : vector<8x64xf32> to vector<8xf32>
    %1019 = vector.shape_cast %1018 : vector<8xf32> to vector<8x1xf32>
    %cst_318 = arith.constant 6.400000e+01 : f32
    %1020 = vector.broadcast %cst_318 : f32 to vector<8x1xf32>
    %1021 = arith.divf %1019, %1020 : vector<8x1xf32>
    %cst_319 = arith.constant 9.99999974E-6 : f32
    %1022 = vector.broadcast %cst_319 : f32 to vector<8x1xf32>
    %1023 = arith.addf %1021, %1022 : vector<8x1xf32>
    %1024 = math.rsqrt %1023 : vector<8x1xf32>
    %1025 = vector.broadcast %1024 : vector<8x1xf32> to vector<8x64xf32>
    %1026 = arith.mulf %1016, %1025 : vector<8x64xf32>
    %1027 = vector.broadcast %1009 : vector<1x64xf32> to vector<8x64xf32>
    %1028 = arith.mulf %1026, %1027 : vector<8x64xf32>
    %1029 = vector.broadcast %1010 : vector<1x64xf32> to vector<8x64xf32>
    %1030 = arith.addf %1028, %1029 : vector<8x64xf32>
    %c4 = arith.constant 4 : index
    %c0_320 = arith.constant 0 : index
    %1031 = vector.load %arg4[%c4, %c0_320] : memref<45x192xf32, #tpu.memory_space<vmem>>, vector<1x64xf32>
    %c5 = arith.constant 5 : index
    %c0_321 = arith.constant 0 : index
    %1032 = vector.load %arg4[%c5, %c0_321] : memref<45x192xf32, #tpu.memory_space<vmem>>, vector<1x64xf32>
    %cst_322 = arith.constant dense<0.000000e+00> : vector<8xf32>
    %1033 = vector.multi_reduction <add>, %1030, %cst_322 [1] : vector<8x64xf32> to vector<8xf32>
    %1034 = vector.shape_cast %1033 : vector<8xf32> to vector<8x1xf32>
    %cst_323 = arith.constant 6.400000e+01 : f32
    %1035 = vector.broadcast %cst_323 : f32 to vector<8x1xf32>
    %1036 = arith.divf %1034, %1035 : vector<8x1xf32>
    %1037 = vector.broadcast %1036 : vector<8x1xf32> to vector<8x64xf32>
    %1038 = arith.subf %1030, %1037 : vector<8x64xf32>
    %1039 = arith.mulf %1038, %1038 : vector<8x64xf32>
    %cst_324 = arith.constant dense<0.000000e+00> : vector<8xf32>
    %1040 = vector.multi_reduction <add>, %1039, %cst_324 [1] : vector<8x64xf32> to vector<8xf32>
    %1041 = vector.shape_cast %1040 : vector<8xf32> to vector<8x1xf32>
    %cst_325 = arith.constant 6.400000e+01 : f32
    %1042 = vector.broadcast %cst_325 : f32 to vector<8x1xf32>
    %1043 = arith.divf %1041, %1042 : vector<8x1xf32>
    %cst_326 = arith.constant 9.99999974E-6 : f32
    %1044 = vector.broadcast %cst_326 : f32 to vector<8x1xf32>
    %1045 = arith.addf %1043, %1044 : vector<8x1xf32>
    %1046 = math.rsqrt %1045 : vector<8x1xf32>
    %1047 = vector.broadcast %1046 : vector<8x1xf32> to vector<8x64xf32>
    %1048 = arith.mulf %1038, %1047 : vector<8x64xf32>
    %1049 = vector.broadcast %1031 : vector<1x64xf32> to vector<8x64xf32>
    %1050 = arith.mulf %1048, %1049 : vector<8x64xf32>
    %1051 = vector.broadcast %1032 : vector<1x64xf32> to vector<8x64xf32>
    %1052 = arith.addf %1050, %1051 : vector<8x64xf32>
    %c16_327 = arith.constant 16 : index
    %c0_328 = arith.constant 0 : index
    %1053 = vector.load %arg6[%c16_327, %c0_328] : memref<976x192xf32, #tpu.memory_space<vmem>>, vector<64x5xf32>
    %c6 = arith.constant 6 : index
    %c0_329 = arith.constant 0 : index
    %1054 = vector.load %arg4[%c6, %c0_329] : memref<45x192xf32, #tpu.memory_space<vmem>>, vector<1x5xf32>
    %cst_330 = arith.constant dense<0.000000e+00> : vector<8x5xf32>
    %1055 = tpu.matmul %1052, %1053, %cst_330 {dimension_numbers = #tpu.dot_dimension_numbers<[1], [0], [0], [1], [0, 0, 1, 1], [], []>} : vector<8x64xf32>, vector<64x5xf32>, vector<8x5xf32> -> vector<8x5xf32>
    %1056 = vector.broadcast %1054 : vector<1x5xf32> to vector<8x5xf32>
    %1057 = arith.addf %1055, %1056 : vector<8x5xf32>
    %1058 = vector.shape_cast %1057 : vector<8x5xf32> to vector<1x8x5xf32>
    %c0_331 = arith.constant 0 : index
    %c0_332 = arith.constant 0 : index
    %c0_333 = arith.constant 0 : index
    %1059 = vector.load %arg9[%c0_331, %c0_332, %c0_333] : memref<1x8x5xf32, #tpu.memory_space<vmem>>, vector<1x8x5xf32>
    tpu.vector_store %arg9[%c0_331, %c0_332, %c0_333], %1058 {strides = array<i32>} : memref<1x8x5xf32, #tpu.memory_space<vmem>>, vector<1x8x5xf32>,
    return
  }
  func.func @transform_0(%arg0: i32) -> (i32, i32, i32) {
    %c0_i32 = arith.constant 0 : i32
    %c0_i32_0 = arith.constant 0 : i32
    %c0_i32_1 = arith.constant 0 : i32
    return %arg0, %c0_i32, %c0_i32_0 : i32, i32, i32
  }
  func.func @transform_1(%arg0: i32) -> (i32, i32, i32) {
    %c0_i32 = arith.constant 0 : i32
    %c0_i32_0 = arith.constant 0 : i32
    %c0_i32_1 = arith.constant 0 : i32
    return %arg0, %c0_i32, %c0_i32_0 : i32, i32, i32
  }
  func.func @transform_2(%arg0: i32) -> (i32, i32, i32) {
    %c0_i32 = arith.constant 0 : i32
    %c0_i32_0 = arith.constant 0 : i32
    %c0_i32_1 = arith.constant 0 : i32
    %c0_i32_2 = arith.constant 0 : i32
    return %c0_i32, %c0_i32_0, %c0_i32_1 : i32, i32, i32
  }
  func.func @transform_3(%arg0: i32) -> (i32, i32) {
    %c0_i32 = arith.constant 0 : i32
    %c0_i32_0 = arith.constant 0 : i32
    %c0_i32_1 = arith.constant 0 : i32
    return %c0_i32, %c0_i32_0 : i32, i32
  }
  func.func @transform_4(%arg0: i32) -> (i32, i32) {
    %c0_i32 = arith.constant 0 : i32
    %c0_i32_0 = arith.constant 0 : i32
    %c0_i32_1 = arith.constant 0 : i32
    return %c0_i32, %c0_i32_0 : i32, i32
  }
  func.func @transform_5(%arg0: i32) -> (i32, i32) {
    %c0_i32 = arith.constant 0 : i32
    %c0_i32_0 = arith.constant 0 : i32
    %c0_i32_1 = arith.constant 0 : i32
    return %c0_i32, %c0_i32_0 : i32, i32
  }
  func.func @transform_6(%arg0: i32) -> (i32, i32) {
    %c0_i32 = arith.constant 0 : i32
    %c0_i32_0 = arith.constant 0 : i32
    %c0_i32_1 = arith.constant 0 : i32
    return %c0_i32, %c0_i32_0 : i32, i32
  }
  func.func @transform_7(%arg0: i32) -> (i32, i32) {
    %c0_i32 = arith.constant 0 : i32
    %c0_i32_0 = arith.constant 0 : i32
    %c0_i32_1 = arith.constant 0 : i32
    return %c0_i32, %c0_i32_0 : i32, i32
  }
  func.func @transform_8(%arg0: i32) -> (i32, i32, i32) {
    %c0_i32 = arith.constant 0 : i32
    %c0_i32_0 = arith.constant 0 : i32
    %c0_i32_1 = arith.constant 0 : i32
    return %arg0, %c0_i32, %c0_i32_0 : i32, i32, i32
  }
}

</mosaic_0001>

<bundles_post_ra>
// kernel: transformer_inflow_forward.1
= control target key start
LH: loop header
LB: loop body
LE: loop exit
PB: predicated region body
PF: predicated region fallthrough
CT: control target
= control target key end

     0   :  { %s17926_s27 = smov 0   ;;  %s21808_s0 = inlined_call_operand.vmem [shape: f32[2,8,8], index: 0, kind: input, shape index: {}]   ;;  %s21809_s1 = inlined_call_operand.vmem [shape: f32[2,8,8], index: 1, kind: input, shape index: {}]   ;;  %s21810_s2 = inlined_call_operand.vmem [shape: f32[1,8,64], index: 2, kind: input, shape index: {}]   ;;  %s21811_s3 = inlined_call_operand.vmem [shape: f32[45,192], index: 3, kind: input, shape index: {}]   ;;  %s21812_s4 = inlined_call_operand.vmem [shape: f32[4,2048], index: 4, kind: input, shape index: {}]   ;;  %s21813_s5 = inlined_call_operand.vmem [shape: f32[976,192], index: 5, kind: input, shape index: {}]   ;;  %s21814_s6 = inlined_call_operand.vmem [shape: bf16[256,2048], index: 6, kind: input, shape index: {}]   ;;  %s21815_s7 = inlined_call_operand.vmem [shape: bf16[8192,64], index: 7, kind: input, shape index: {}]   ;;  %s21816_s8 = inlined_call_operand.vmem [shape: f32[2,8,5], index: 8, kind: output, shape index: {}]  }
   0x1 LB: > { %s14714_s28 = sadd.s32 4294967295, %s17874_s27   ;;  %p14718_p0 = scmp.ge.s32.totalorder %s17874_s27, 1  ;;  %s17874_s27 = sphi %s17926_s27, %s18_s27  }
   0x2   : > { %p270_p1 = scmp.lt.s32.totalorder %s17874_s27, 3 }
   0x4   : > { %p271_p2 = pnand %p14718_p0, %p270_p1 }
   0x5   : > { %v323_v0 = vld [vmem:[%s21813_s5] sm:$0xff] (!%p271_p2)  ;;  %p306_p3 = scmp.lt.s32.totalorder (!%p271_p2), %s14714_s28, 1  ;;  %v401_v1 = vld [vmem:[%s21813_s5 + $0xa8] sm:$0xff] (!%p271_p2)  ;;  %v17876_v2 = vmov (!%p271_p2), 0.0   ;;  %vm17877_vm0 = vmmov (!%p271_p2), 0   ;;  %v403_v3 = vld [vmem:[%s21813_s5 + $0xb8] sm:$0xff] (!%p271_p2)  ;;  %v319_v33 = vlaneseq (!%p271_p2) }
   0x6   : > { %274 = sbr.rel (%p271_p2) target bundleno = 13451 (0x348b), region = 52  ;;  %16531 = vmatprep.subr.mxu0 (!%p271_p2), %v17876_v2  ;;  %16533 = vmatprep.mubr.msk.f32.mxu0 (!%p271_p2), %vm17877_vm0, %v17876_v2  ;;  %v400_v4 = vld [vmem:[%s21813_s5 + $0xa0] sm:$0xff] (!%p271_p2)  ;;  %v402_v5 = vld [vmem:[%s21813_s5 + $0xb0] sm:$0xff] (!%p271_p2)  ;;  %v16990_v6 = vpack.c.bf16 (!%p271_p2), %v403_v3, %v401_v1  ;;  %v405_v8 = vld [vmem:[%s21813_s5 + $0xc8] sm:$0xff] (!%p271_p2)  ;;  %vm325_vm1 = vcmask (!%p271_p2), 64512   ;;  %vm429_vm2 = vcmask (!%p271_p2), 523264  }
   0x7   : > { %16532 = vmatpush3.msra.mxu0 (!%p271_p2), %v323_v0  ;;  %v16992_v7 = vpack.c.bf16 (!%p271_p2), %v402_v5, %v400_v4  ;;  %v407_v9 = vld [vmem:[%s21813_s5 + $0xd8] sm:$0xff] (!%p271_p2)  ;;  %v404_v10 = vld [vmem:[%s21813_s5 + $0xc0] sm:$0xff] (!%p271_p2)  ;;  %497 = vmatprep.mubr.f32.mxu1 (!%p271_p2), %v17876_v2  ;;  %v406_v12 = vld [vmem:[%s21813_s5 + $0xd0] sm:$0xff] (!%p271_p2)  ;;  %v18012_v34 = vshrl.u32 (!%p271_p2), %v319_v33, 7  ;;  %s17878_s11 = smov (!%p271_p2), 64   ;;  %v320_v41 = vand.u32 (!%p271_p2), 127, %v319_v33 }
   0x8   : > { %v16994_v11 = vpack.c.bf16 (!%p271_p2), %v407_v9, %v405_v8  ;;  %v409_v13 = vld [vmem:[%s21813_s5 + $0xe8] sm:$0xff] (!%p271_p2)  ;;  %v411_v14 = vld [vmem:[%s21813_s5 + $0xf8] sm:$0xff] (!%p271_p2)  ;;  %16536 = vmatprep.subr.mxu0 (!%p271_p2), %v17876_v2  ;;  %16991 = vmatprep.subr.bf16.mxu1 (!%p271_p2), %v16990_v6  ;;  %v408_v15 = vld [vmem:[%s21813_s5 + $0xe0] sm:$0xff] (!%p271_p2)  ;;  %v16996_v16 = vpack.c.bf16 (!%p271_p2), %v406_v12, %v404_v10  ;;  %vm14647_vm13 = vcmask (!%p271_p2), 39936  }
   0x9   : > { %16993 = vmatpush1.bf16.msra.mxu1 (!%p271_p2), %v16992_v7  ;;  %v410_v17 = vld [vmem:[%s21813_s5 + $0xf0] sm:$0xff] (!%p271_p2)  ;;  %v16998_v19 = vpack.c.bf16 (!%p271_p2), %v411_v14, %v409_v13  ;;  %v413_v21 = vld [vmem:[%s21813_s5 + $0x108] sm:$0xff] (!%p271_p2)  ;;  %v415_v22 = vld [vmem:[%s21813_s5 + $0x118] sm:$0xff] (!%p271_p2)  ;;  %v18015_v35 = vsub.s32 (!%p271_p2), 0, %v18012_v34  ;;  %vm838_vm3 = vcmp.ge.s32.totalorder (!%p271_p2), %v320_v41, 32  ;;  %vm839_vm4 = vcmp.lt.s32.totalorder (!%p271_p2), %v320_v41, 48 }
   0xa   : > { %16995 = vmatprep.subr.bf16.mxu1 (!%p271_p2), %v16994_v11  ;;  %v17000_v20 = vpack.c.bf16 (!%p271_p2), %v410_v17, %v408_v15  ;;  %v17002_v23 = vpack.c.bf16 (!%p271_p2), %v415_v22, %v413_v21  ;;  %v412_v24 = vld [vmem:[%s21813_s5 + $0x100] sm:$0xff] (!%p271_p2)  ;;  %v414_v25 = vld [vmem:[%s21813_s5 + $0x110] sm:$0xff] (!%p271_p2)  ;;  %v18023_v42 = vsub.s32 (!%p271_p2), 1, %v18012_v34  ;;  %vm506_vm5 = vcmp.lt.s32.totalorder (!%p271_p2), %v320_v41, 16  ;;  %vm840_vm8 = vmand (!%p271_p2), %vm838_vm3, %vm839_vm4 }
   0xb   : > { %v17004_v26 = vpack.c.bf16 (!%p271_p2), %v414_v25, %v412_v24  ;;  %v324_v27 = vld [vmem:[%s21811_s3] ss:$0 sm:$0xff] (!%p271_p2)  ;;  %v14723_v36 = vld [vmem:[%s21811_s3 + $0x7] ss:$8 sm:$0x3] (!%p271_p2)  ;;  %vm601_vm6 = vcmp.ge.s32.totalorder (!%p271_p2), %v320_v41, 16 }
   0xc   : > { %v321_v28 = vld [vmem:[%s21810_s2] sm:$0xff] (!%p271_p2)  ;;  %v422_v37 = vrot.slane (!%p271_p2), %v14723_v36, %v18015_v35  ;;  %vm602_vm7 = vcmp.lt.s32.totalorder (!%p271_p2), %v320_v41, 32  ;;  %vm1003_vm9 = vcmp.ge.s32.totalorder (!%p271_p2), %v320_v41, 48  ;;  %vm1004_vm10 = vcmp.lt.s32.totalorder (!%p271_p2), %v320_v41, 64 }
   0xd   : > { %s21818_s28 = smov (!%p306_p3, %s14714_s28), 1  ;;  %16997 = vmatpush1.bf16.msra.mxu1 %v16996_v16  ;;  %v18026_v44 = vsel %vm506_vm5, 1.0, %v17876_v2  ;;  %vm603_vm11 = vmand %vm601_vm6, %vm602_vm7  ;;  %v18029_v45 = vsel %vm840_vm8, 1.0, %v17876_v2  ;;  %v426_v46 = vrot.slane %v14723_v36, %v18023_v42  ;;  %v1168_v25 = vld [vmem:[%s21813_s5 + $0x120] sm:$0xff]  ;;  %v1173_v36 = vld [vmem:[%s21813_s5 + $0x170] sm:$0xff] }
   0xe   : > { %s17972_s9 = sshll.u32 %s21818_s28, 3  ;;  %16999 = vmatprep.subr.bf16.mxu1 %v16998_v19  ;;  %vm1005_vm12 = vmand %vm1003_vm9, %vm1004_vm10  ;;  %v18039_v50 = vsel %vm603_vm11, 1.0, %v17876_v2  ;;  %v1172_v33 = vld [vmem:[%s21813_s5 + $0x160] sm:$0xff] }
   0xf   : > { %s309_s14 = scalar_lea.vmem %s21808_s0, %s17972_s9  ;;  %v18042_v51 = vsel %vm1005_vm12, 1.0, %v17876_v2  ;;  %s313_s20 = scalar_lea.vmem %s21809_s1, %s17972_s9 }
  0x10   : > { %v322_v18 = vld [vmem:[%s309_s14] sm:$0xff]  ;;  %s317_s29 = scalar_lea.vmem %s21816_s8, %s17972_s9 }
  0x11   : > { %16534 = vmatmul.mubr.msk.f32.vlgmr.msra.gmra.mrb[0].mxu0 %vm325_vm1, %v322_v18  ;;  %17001 = vmatpush1.bf16.msra.mxu1 %v17000_v20 }
  0x12   : > { %16538 = vmatprep.mubr.msk.f32.mxu0 %vm17877_vm0, %v17876_v2  ;;  %17003 = vmatprep.subr.bf16.mxu1 %v17002_v23 }
  0x15   : > { %17005 = vmatpush1.bf16.msra.mxu1 %v17004_v26  ;;  %v1169_v26 = vld [vmem:[%s21813_s5 + $0x130] sm:$0xff] }
  0x16   : > { %16556 = vmatprep.subr.mxu1 %v17876_v2 }
  0xe4   : > { %v395_v29 = vpop.f32.mrb[0].mxu0 }
  0xe5   : > { %v396_v30 = vadd.f32 %v395_v29, %v324_v27  ;;  %v16535_v31 = vpop.f32.mrb[1].mxu0  ;;  %v1170_v27 = vld [vmem:[%s21813_s5 + $0x140] sm:$0xff]  ;;  %v17007_v29 = vpack.c.bf16 %v1169_v26, %v1168_v25 }
  0xe6   : > { %v1301_v26 = vld [vmem:[%s21814_s6 + $0x100] sm:$0xff] }
  0xe7   : > { %v18006_v32 = vadd.f32 %v396_v30, %v321_v28  ;;  %v17879_v28 = vmov 0.0|0.0   ;;  %v1171_v30 = vld [vmem:[%s21813_s5 + $0x150] sm:$0xff] }
  0xe8   : > { %v17010_v31 = vpack.c.bf16 %v1171_v30, %v1170_v27  ;;  %v1309_v27 = vld [vmem:[%s21814_s6 + $0x140] sm:$0xff] }
  0xe9   : > { %14724 = vmatmul.mubr.msk.f32.vlgmr.msra.gmra.mrb[0].mxu1 %vm429_vm2, %v18006_v32  ;;  %v14776_v30 = vcombine.high %v1301_v26, %v1309_v27 }
  0xea   : > { %16558 = vmatprep.mubr.msk.f32.mxu1 %vm17877_vm0, %v17876_v2 }
 0x1bc   : > { %v499_v38 = vpop.f32.mrb[0].mxu1 }
 0x1bd   : > { %v500_v39 = vadd.f32 %v499_v38, %v422_v37  ;;  %v501_v40 = vpop.f32.mrb[1].mxu1  ;;  %v17013_v37 = vpack.c.bf16 %v1173_v36, %v1172_v33  ;;  %v1174_v38 = vld [vmem:[%s21813_s5 + $0x180] sm:$0xff]  ;;  %v14775_v33 = vcombine.low %v1301_v26, %v1309_v27 }
 0x1be   : > { %v18044_v52 = vadd.f32 %v501_v40, %v426_v46 }
 0x1bf   : > { %512 = vrot.lane.b32.xlu0 %v500_v39, %s17878_s11  ;;  %v504_v43 = vmul.f32 0.25, %v500_v39  ;;  %v1175_v39 = vld [vmem:[%s21813_s5 + $0x190] sm:$0xff] }
 0x1c0   : > { %v691_v55 = vmul.f32 %v18039_v50, %v18044_v52  ;;  %v17016_v40 = vpack.c.bf16 %v1175_v39, %v1174_v38  ;;  %v1317_v38 = vld [vmem:[%s21814_s6 + $0x180] sm:$0xff] }
 0x1c1   : > { %v510_v48 = vmul.f32 %v18026_v44, %v504_v43  ;;  %v843_v49 = vmul.f32 %v18029_v45, %v504_v43  ;;  %v606_v53 = vmul.f32 %v18039_v50, %v504_v43  ;;  %v1008_v54 = vmul.f32 %v18042_v51, %v504_v43  ;;  %v1325_v39 = vld [vmem:[%s21814_s6 + $0x1c0] sm:$0xff] }
 0x231   : > { %v513_v47 = vpop.permute.xlu0 %512 }
 0x232   : > { %16537 = vmatpush3.xpose.msk.msra.mxu0 %vm429_vm2, %v513_v47  ;;  %16557 = vmatpush3.xpose.msk.msra.mxu1 %vm429_vm2, %v513_v47 }
 0x233   : > { %16541 = vmatprep.subr.mxu0 %v17876_v2  ;;  %16566 = vmatprep.subr.mxu1 %v17876_v2 }
 0x235   : > { %16539 = vmatmul.mubr.msk.f32.vlgmr.msra.gmra.mrb[2].mxu0 %vm429_vm2, %v510_v48  ;;  %16559 = vmatmul.mubr.msk.f32.vlgmr.msra.gmra.mrb[2].mxu1 %vm429_vm2, %v843_v49  ;;  %v600_v49 = vmul.f32 %v18026_v44, %v18044_v52 }
 0x236   : > { %16542 = vmatpush3.xpose.msk.msra.mxu0 %vm429_vm2, %v513_v47  ;;  %16567 = vmatpush3.xpose.msk.msra.mxu1 %vm429_vm2, %v513_v47 }
 0x237   : > { %16543 = vmatprep.mubr.msk.f32.mxu0 %vm17877_vm0, %v17876_v2  ;;  %16568 = vmatprep.mubr.msk.f32.mxu1 %vm17877_vm0, %v17876_v2 }
 0x238   : > { %16546 = vmatprep.subr.mxu0 %v17876_v2  ;;  %17006 = vmatprep.subr.bf16.mxu1 %v17879_v28 }
 0x239   : > { %16544 = vmatmul.mubr.msk.f32.vlgmr.msra.gmra.mrb[4].mxu0 %vm429_vm2, %v606_v53  ;;  %16569 = vmatmul.mubr.msk.f32.vlgmr.msra.gmra.mrb[4].mxu1 %vm429_vm2, %v1008_v54 }
 0x23a   : > { %16547 = vmatpush3.msra.mxu0 %v691_v55  ;;  %16548 = vmatprep.mubr.msk.f32.mxu0 %vm17877_vm0, %v17876_v2 }
 0x23b   : > { %16551 = vmatprep.subr.mxu0 %v17876_v2  ;;  %16592 = vmatprep.mubr.msk.f32.mxu1 %vm17877_vm0, %v17876_v2 }
 0x23c   : > { %17008 = vmatpush3.bf16.msra.mxu1 %v17007_v29  ;;  %v1302_v29 = vld [vmem:[%s21814_s6 + $0x108] sm:$0xff] }
 0x23d   : > { %17009 = vmatprep.subr.bf16.mxu1 %v17879_v28 }
 0x240   : > { %17011 = vmatpush3.bf16.msra.mxu1 %v17010_v31  ;;  %v1310_v31 = vld [vmem:[%s21814_s6 + $0x148] sm:$0xff] }
 0x241   : > { %17012 = vmatprep.subr.bf16.mxu1 %v17879_v28  ;;  %v14777_v36 = vcombine.low %v1302_v29, %v1310_v31 }
 0x244   : > { %17014 = vmatpush3.bf16.msra.mxu1 %v17013_v37  ;;  %v14778_v37 = vcombine.high %v1302_v29, %v1310_v31  ;;  %v1273_v29 = vld [vmem:[%s21814_s6 + $0x20] sm:$0xff]  ;;  %v1274_v31 = vld [vmem:[%s21814_s6 + $0x28] sm:$0xff] }
 0x245   : > { %17015 = vmatprep.subr.bf16.mxu1 %v17879_v28 }
 0x248   : > { %17017 = vmatpush3.bf16.msra.mxu1 %v17016_v40  ;;  %v1318_v40 = vld [vmem:[%s21814_s6 + $0x188] sm:$0xff] }
 0x308   : > { %v585_v56 = vpop.f32.mrb[2].mxu0  ;;  %v913_v57 = vpop.f32.mrb[2].mxu1 }
 0x309   : > { %v16540_v58 = vpop.f32.mrb[3].mxu0  ;;  %v16560_v59 = vpop.f32.mrb[3].mxu1  ;;  %v589_v60 = vsel %vm325_vm1, %v585_v56, -inf  ;;  %v917_v1 = vsel %vm325_vm1, %v913_v57, -inf }
 0x30a   : > { %590 = vmax.xlane.f32.xlu1 %v589_v60  ;;  %v1093_v59 = vmul.f32 %v18042_v51, %v18044_v52 }
 0x30c   : > { %v676_v61 = vpop.f32.mrb[4].mxu0  ;;  %v1078_v62 = vpop.f32.mrb[4].mxu1 }
 0x30d   : > { %v16545_v63 = vpop.f32.mrb[5].mxu0  ;;  %v16570_v0 = vpop.f32.mrb[5].mxu1  ;;  %v680_v3 = vsel %vm325_vm1, %v676_v61, -inf  ;;  %v1082_v4 = vsel %vm325_vm1, %v1078_v62, -inf }
 0x30e   : > { %918 = vmax.xlane.f32.xlu1 %v917_v1  ;;  %681 = vmax.xlane.f32.xlu0 %v680_v3  ;;  %v1176_v0 = vld [vmem:[%s21811_s3 + $0x10] ss:$0 sm:$0xff] }
 0x312   : > { %1083 = vmax.xlane.f32.xlu1 %v1082_v4 }
 0x397   : > { %v591_v5 = vpop.xlane.xlu1 %590 }
 0x398   : > { %v592_v6 = vsub.f32 %v585_v56, %v591_v5  ;;  %v928_v56 = vmul.f32 %v18029_v45, %v18044_v52 }
 0x39a   : > { %v593_v11 = vmul.f32 1.442695, %v592_v6 }
 0x39b   : > { %v919_v7 = vpop.xlane.xlu1 %918  ;;  %v682_v8 = vpop.xlane.xlu0 %681 }
 0x39c   : > { %v683_v9 = vsub.f32 %v676_v61, %v682_v8  ;;  %v920_v12 = vsub.f32 %v913_v57, %v919_v7 }
 0x39e   : > { %v684_v10 = vmul.f32 1.442695, %v683_v9  ;;  %v921_v14 = vmul.f32 1.442695, %v920_v12  ;;  %v1270_v12 = vld [vmem:[%s21814_s6 + $0x8] sm:$0xff] }
 0x39f   : > { %v1084_v13 = vpop.xlane.xlu1 %1083 }
 0x3a0   : > { %17747 = vpow2.f32 %v684_v10  ;;  %v1085_v15 = vsub.f32 %v1078_v62, %v1084_v13 }
 0x3a1   : > { %17749 = vpow2.f32 %v593_v11  ;;  %v1269_v11 = vld [vmem:[%s21814_s6] sm:$0xff] }
 0x3a2   : > { %17751 = vpow2.f32 %v921_v14  ;;  %v1086_v16 = vmul.f32 1.442695, %v1085_v15  ;;  %v1278_v14 = vld [vmem:[%s21814_s6 + $0x48] sm:$0xff] }
 0x3a4   : > { %17753 = vpow2.f32 %v1086_v16  ;;  %v14745_v16 = vcombine.low %v1270_v12, %v1278_v14 }
 0x3aa   : > { %v17748_v17 = vpop.eup %17747 }
 0x3ab   : > { %v686_v18 = vsel %vm325_vm1, %v17748_v17, 0.0  ;;  %v17750_v19 = vpop.eup %17749 }
 0x3ac   : > { %687 = vadd.xlane.f32.xlu1 %v686_v18  ;;  %v595_v20 = vsel %vm325_vm1, %v17750_v19, 0.0  ;;  %v17752_v21 = vpop.eup %17751  ;;  %v1285_v18 = vld [vmem:[%s21814_s6 + $0x80] sm:$0xff] }
 0x3ad   : > { %v923_v22 = vsel %vm325_vm1, %v17752_v21, 0.0 }
 0x3ae   : > { %v17754_v23 = vpop.eup %17753 }
 0x3af   : > { %v1088_v24 = vsel %vm325_vm1, %v17754_v23, 0.0 }
 0x3b0   : > { %596 = vadd.xlane.f32.xlu1 %v595_v20  ;;  %v1286_v20 = vld [vmem:[%s21814_s6 + $0x88] sm:$0xff] }
 0x3b4   : > { %924 = vadd.xlane.f32.xlu1 %v923_v22  ;;  %v1294_v22 = vld [vmem:[%s21814_s6 + $0xc8] sm:$0xff] }
 0x3b5   : > { %v14762_v25 = vcombine.high %v1286_v20, %v1294_v22 }
 0x3b8   : > { %1089 = vadd.xlane.f32.xlu1 %v1088_v24  ;;  %v14761_v24 = vcombine.low %v1286_v20, %v1294_v22  ;;  %v1319_v20 = vld [vmem:[%s21814_s6 + $0x190] sm:$0xff]  ;;  %v1320_v22 = vld [vmem:[%s21814_s6 + $0x198] sm:$0xff] }
 0x439   : > { %v688_v41 = vpop.xlane.xlu1 %687 }
 0x43a   : > { %17755 = vrcp.f32 %v688_v41  ;;  %v14792_v41 = vcombine.high %v1317_v38, %v1325_v39 }
 0x43d   : > { %v597_v43 = vpop.xlane.xlu1 %596 }
 0x43e   : > { %17757 = vrcp.f32 %v597_v43  ;;  %v1326_v43 = vld [vmem:[%s21814_s6 + $0x1c8] sm:$0xff] }
 0x441   : > { %v925_v47 = vpop.xlane.xlu1 %924 }
 0x442   : > { %17759 = vrcp.f32 %v925_v47  ;;  %v14793_v47 = vcombine.low %v1318_v40, %v1326_v43 }
 0x444   : > { %v17756_v46 = vpop.eup %17755 }
 0x445   : > { %v690_v48 = vmul.f32 %v17756_v46, %v17748_v17  ;;  %v1090_v55 = vpop.xlane.xlu1 %1089  ;;  %v14746_v17 = vcombine.high %v1270_v12, %v1278_v14  ;;  %v14791_v46 = vcombine.low %v1317_v38, %v1325_v39  ;;  %v1303_v12 = vld [vmem:[%s21814_s6 + $0x110] sm:$0xff]  ;;  %v1304_v14 = vld [vmem:[%s21814_s6 + $0x118] sm:$0xff] }
 0x446   : > { %17761 = vrcp.f32 %v1090_v55 }
 0x447   : > { %16549 = vmatmul.mubr.msk.f32.vlgmr.msra.gmra.mrb[6].mxu0 %vm325_vm1, %v690_v48  ;;  %2040 = vmatprep.subr.bf16.mxu1 %v14746_v17  ;;  %v14794_v48 = vcombine.high %v1318_v40, %v1326_v43  ;;  %v1289_v40 = vld [vmem:[%s21814_s6 + $0xa0] sm:$0xff]  ;;  %v1290_v43 = vld [vmem:[%s21814_s6 + $0xa8] sm:$0xff] }
 0x448   : > { %16552 = vmatpush3.msra.mxu0 %v600_v49  ;;  %16553 = vmatprep.mubr.msk.f32.mxu0 %vm17877_vm0, %v17876_v2  ;;  %v17758_v53 = vpop.eup %17757  ;;  %v1271_v49 = vld [vmem:[%s21814_s6 + $0x10] sm:$0xff] }
 0x449   : > { %16561 = vmatprep.subr.mxu0 %v17876_v2  ;;  %v599_v54 = vmul.f32 %v17758_v53, %v17750_v19  ;;  %v1293_v19 = vld [vmem:[%s21814_s6 + $0xc0] sm:$0xff]  ;;  %v1279_v53 = vld [vmem:[%s21814_s6 + $0x50] sm:$0xff] }
 0x44a   : > { %v14747_v55 = vcombine.low %v1271_v49, %v1279_v53 }
 0x44c   : > { %v17760_v57 = vpop.eup %17759 }
 0x44d   : > { %v927_v58 = vmul.f32 %v17760_v57, %v17752_v21  ;;  %v14760_v21 = vcombine.high %v1285_v18, %v1293_v19  ;;  %v1280_v57 = vld [vmem:[%s21814_s6 + $0x58] sm:$0xff] }
 0x44f   : > { %16554 = vmatmul.mubr.msk.f32.vlgmr.msra.gmra.mrb[6].mxu0 %vm325_vm1, %v599_v54  ;;  %v1272_v54 = vld [vmem:[%s21814_s6 + $0x18] sm:$0xff] }
 0x450   : > { %16562 = vmatpush3.msra.mxu0 %v928_v56  ;;  %16563 = vmatprep.mubr.msk.f32.mxu0 %vm17877_vm0, %v17876_v2  ;;  %v17762_v60 = vpop.eup %17761  ;;  %v14748_v56 = vcombine.high %v1271_v49, %v1279_v53 }
 0x451   : > { %16571 = vmatprep.subr.mxu0 %v17876_v2  ;;  %v1092_v61 = vmul.f32 %v17762_v60, %v17754_v23  ;;  %v14759_v23 = vcombine.low %v1285_v18, %v1293_v19  ;;  %v14750_v60 = vcombine.high %v1272_v54, %v1280_v57 }
 0x457   : > { %16564 = vmatmul.mubr.msk.f32.vlgmr.msra.gmra.mrb[6].mxu0 %vm325_vm1, %v927_v58  ;;  %v17880_v58 = vmov 0  }
 0x458   : > { %16572 = vmatpush3.msra.mxu0 %v1093_v59  ;;  %16573 = vmatprep.mubr.msk.f32.mxu0 %vm17877_vm0, %v17876_v2  ;;  %v14749_v59 = vcombine.low %v1272_v54, %v1280_v57  ;;  %v1305_v54 = vld [vmem:[%s21814_s6 + $0x120] sm:$0xff]  ;;  %v1314_v57 = vld [vmem:[%s21814_s6 + $0x168] sm:$0xff] }
 0x45f   : > { %16574 = vmatmul.mubr.msk.f32.vlgmr.msra.gmra.mrb[6].mxu0 %vm325_vm1, %v1092_v61 }
 0x460   : > { %2031 = vmatprep.mubr.bf16.mxu0 %v17880_v58 }
 0x532   : > { %v1163_v62 = vpop.f32.mrb[6].mxu0 }
 0x533   : > { %v16575_v63 = vpop.f32.mrb[7].mxu0  ;;  %16593 = vmatmul.mubr.msk.f32.vlgmr.msra.gmra.mrb[6].mxu1 %vm429_vm2, %v1163_v62 }
 0x534   : > { %2041 = vmatpush1.bf16.msra.mxu1 %v14745_v16  ;;  %2072 = vmatprep.mubr.bf16.mxu1 %v17880_v58 }
 0x535   : > { %2042 = vmatprep.subr.bf16.mxu1 %v14762_v25 }
 0x538   : > { %2043 = vmatpush1.bf16.msra.mxu1 %v14761_v24 }
 0x539   : > { %2044 = vmatprep.subr.bf16.mxu1 %v14778_v37 }
 0x53c   : > { %2045 = vmatpush1.bf16.msra.mxu1 %v14777_v36 }
 0x53d   : > { %2046 = vmatprep.subr.bf16.mxu1 %v14794_v48 }
 0x540   : > { %2047 = vmatpush1.bf16.msra.mxu1 %v14793_v47 }
 0x541   : > { %2122 = vmatprep.subr.bf16.mxu1 %v14750_v60 }
 0x606   : > { %v1246_v1 = vpop.f32.mrb[6].mxu1 }
 0x607   : > { %v1247_v52 = vadd.f32 %v1246_v1, %v1176_v0  ;;  %v16594_v3 = vpop.f32.mrb[7].mxu1  ;;  %v1251_v1 = vld [vmem:[%s21811_s3 + $0x12] ss:$0 sm:$0xff] }
 0x608   : > { %v1252_v3 = vld [vmem:[%s21811_s3 + $0x13] ss:$0 sm:$0xff] }
 0x609   : > { %v1250_v4 = vadd.f32 %v1247_v52, %v18006_v32  ;;  %v1277_v32 = vld [vmem:[%s21814_s6 + $0x40] sm:$0xff] }
 0x60a   : > { %v14744_v13 = vcombine.high %v1269_v11, %v1277_v32  ;;  %v14743_v15 = vcombine.low %v1269_v11, %v1277_v32 }
 0x60b   : > { %v1253_v5 = vsel %vm429_vm2, %v1250_v4, 0.0 }
 0x60c   : > { %1254 = vadd.xlane.f32.xlu1 %v1253_v5  ;;  %1999 = vmatprep.subr.bf16.mxu0 %v14744_v13  ;;  %v1287_v5 = vld [vmem:[%s21814_s6 + $0x90] sm:$0xff] }
 0x60d   : > { %2000 = vmatpush1.bf16.msra.mxu0 %v14743_v15  ;;  %v1311_v13 = vld [vmem:[%s21814_s6 + $0x150] sm:$0xff]  ;;  %v1312_v15 = vld [vmem:[%s21814_s6 + $0x158] sm:$0xff] }
 0x60e   : > { %2001 = vmatprep.subr.bf16.mxu0 %v14760_v21  ;;  %v14780_v18 = vcombine.high %v1303_v12, %v1311_v13  ;;  %v14782_v19 = vcombine.high %v1304_v14, %v1312_v15  ;;  %v1327_v21 = vld [vmem:[%s21814_s6 + $0x1d0] sm:$0xff]  ;;  %v14779_v24 = vcombine.low %v1303_v12, %v1311_v13  ;;  %v14781_v25 = vcombine.low %v1304_v14, %v1312_v15 }
 0x60f   : > { %v14796_v26 = vcombine.high %v1319_v20, %v1327_v21  ;;  %v14795_v36 = vcombine.low %v1319_v20, %v1327_v21 }
 0x611   : > { %2002 = vmatpush1.bf16.msra.mxu0 %v14759_v23  ;;  %v1328_v23 = vld [vmem:[%s21814_s6 + $0x1d8] sm:$0xff] }
 0x612   : > { %2003 = vmatprep.subr.bf16.mxu0 %v14776_v30  ;;  %v14798_v27 = vcombine.high %v1320_v22, %v1328_v23  ;;  %v1281_v30 = vld [vmem:[%s21814_s6 + $0x60] sm:$0xff]  ;;  %v14797_v37 = vcombine.low %v1320_v22, %v1328_v23 }
 0x613   : > { %v14752_v38 = vcombine.high %v1273_v29, %v1281_v30  ;;  %v14751_v47 = vcombine.low %v1273_v29, %v1281_v30 }
 0x615   : > { %2004 = vmatpush1.bf16.msra.mxu0 %v14775_v33  ;;  %v1282_v33 = vld [vmem:[%s21814_s6 + $0x68] sm:$0xff] }
 0x616   : > { %2005 = vmatprep.subr.bf16.mxu0 %v14792_v41  ;;  %v14754_v39 = vcombine.high %v1274_v31, %v1282_v33  ;;  %v1297_v41 = vld [vmem:[%s21814_s6 + $0xe0] sm:$0xff]  ;;  %v14753_v48 = vcombine.low %v1274_v31, %v1282_v33 }
 0x617   : > { %v14768_v49 = vcombine.high %v1289_v40, %v1297_v41 }
 0x619   : > { %2006 = vmatpush1.bf16.msra.mxu0 %v14791_v46  ;;  %v1298_v46 = vld [vmem:[%s21814_s6 + $0xe8] sm:$0xff] }
 0x61a   : > { %2081 = vmatprep.subr.bf16.mxu0 %v14748_v56  ;;  %v14770_v53 = vcombine.high %v1290_v43, %v1298_v46  ;;  %v1306_v56 = vld [vmem:[%s21814_s6 + $0x128] sm:$0xff]  ;;  %v14769_v60 = vcombine.low %v1290_v43, %v1298_v46 }
 0x699   : > { %v1255_v6 = vpop.xlane.xlu1 %1254 }
 0x69a   : > { %v1257_v7 = vmul.f32 0.015625, %v1255_v6  ;;  %v1295_v6 = vld [vmem:[%s21814_s6 + $0xd0] sm:$0xff] }
 0x69b   : > { %v14764_v11 = vcombine.high %v1287_v5, %v1295_v6  ;;  %v14763_v16 = vcombine.low %v1287_v5, %v1295_v6 }
 0x69c   : > { %v18126_v8 = vsub.f32 %v1250_v4, %v1257_v7  ;;  %v1288_v7 = vld [vmem:[%s21814_s6 + $0x98] sm:$0xff] }
 0x69e   : > { %v1259_v9 = vmul.f32 %v18126_v8, %v18126_v8 }
 0x6a0   : > { %v1260_v10 = vsel %vm429_vm2, %v1259_v9, 0.0 }
 0x6a1   : > { %1261 = vadd.xlane.f32.xlu1 %v1260_v10 }
 0x72e   : > { %v1262_v61 = vpop.xlane.xlu1 %1261 }
 0x72f   : > { %v1263_v62 = vmul.f32 0.015625, %v1262_v61 }
 0x731   : > { %v1264_v63 = vadd.f32 1e-05, %v1263_v62  ;;  %v14786_v62 = vcombine.high %v1306_v56, %v1314_v57 }
 0x733   : > { %17763 = vrsqrt.f32 %v1264_v63  ;;  %v1321_v63 = vld [vmem:[%s21814_s6 + $0x1a0] sm:$0xff] }
 0x73d   : > { %v17764_v0 = vpop.eup %17763 }
 0x73e   : > { %v1266_v52 = vmul.f32 %v17764_v0, %v18126_v8  ;;  %v1296_v8 = vld [vmem:[%s21814_s6 + $0xd8] sm:$0xff]  ;;  %v1329_v0 = vld [vmem:[%s21814_s6 + $0x1e0] sm:$0xff] }
 0x73f   : > { %v14766_v32 = vcombine.high %v1288_v7, %v1296_v8  ;;  %v14765_v17 = vcombine.low %v1288_v7, %v1296_v8  ;;  %v14800_v5 = vcombine.high %v1321_v63, %v1329_v0  ;;  %v1275_v7 = vld [vmem:[%s21814_s6 + $0x30] sm:$0xff]  ;;  %v14799_v12 = vcombine.low %v1321_v63, %v1329_v0  ;;  %v17247_v0 = vld [vmem:[%s21815_s7 + $0x58] sm:$0xff]  }
 0x740   : > { %v1267_v4 = vmul.f32 %v1266_v52, %v1251_v1  ;;  %v1322_v1 = vld [vmem:[%s21814_s6 + $0x1a8] sm:$0xff]  ;;  %v1283_v8 = vld [vmem:[%s21814_s6 + $0x70] sm:$0xff] }
 0x741   : > { %v1330_v52 = vld [vmem:[%s21814_s6 + $0x1e8] sm:$0xff]  ;;  %v14756_v14 = vcombine.high %v1275_v7, %v1283_v8  ;;  %v14755_v20 = vcombine.low %v1275_v7, %v1283_v8  ;;  %v17246_v63 = vld [vmem:[%s21815_s7 + $0x90] sm:$0xff]   ;;  %v17254_v7 = vld [vmem:[%s21815_s7 + $0xa0] sm:$0xff]  }
 0x742   : > { %v18212_v9 = vadd.f32 %v1267_v4, %v1252_v3  ;;  %v14785_v4 = vcombine.low %v1306_v56, %v1314_v57  ;;  %v14802_v6 = vcombine.high %v1322_v1, %v1330_v52  ;;  %v14801_v13 = vcombine.low %v1322_v1, %v1330_v52  ;;  %v17239_v56 = vld [vmem:[%s21815_s7 + $0x48] sm:$0xff]   ;;  %v17248_v1 = vld [vmem:[%s21815_s7 + $0xd8] sm:$0xff]  }
 0x743   : > { %v17240_v57 = vld [vmem:[%s21815_s7 + $0xc8] sm:$0xff]   ;;  %v17249_v52 = vld [vmem:[%s21815_s7 + $0x18] sm:$0xff]  }
 0x744   : > { %v18216_v10 = vpack.c.bf16 %v18212_v9, %v18212_v9  ;;  %v17255_v8 = vld [vmem:[%s21815_s7 + $0x68] sm:$0xff]  }
 0x746   : > { %14807 = vmatmul.mubr.msk.bf16.vlgmr.msra.gmra.mrb[8].mxu0 %vm429_vm2, %v18216_v10  ;;  %14808 = vmatmul.mubr.msk.bf16.vlgmr.msra.gmra.mrb[8].mxu1 %vm429_vm2, %v18216_v10 }
 0x747   : > { %2082 = vmatpush1.bf16.msra.mxu0 %v14747_v55  ;;  %2123 = vmatpush1.bf16.msra.mxu1 %v14749_v59  ;;  %v1313_v55 = vld [vmem:[%s21814_s6 + $0x160] sm:$0xff]  ;;  %v14767_v59 = vcombine.low %v1289_v40, %v1297_v41 }
 0x748   : > { %2083 = vmatprep.subr.bf16.mxu0 %v14764_v11  ;;  %2124 = vmatprep.subr.bf16.mxu1 %v14766_v32  ;;  %v14784_v61 = vcombine.high %v1305_v54, %v1313_v55  ;;  %v14783_v3 = vcombine.low %v1305_v54, %v1313_v55  ;;  %v1276_v11 = vld [vmem:[%s21814_s6 + $0x38] sm:$0xff]  ;;  %v17237_v54 = vld [vmem:[%s21815_s7] sm:$0xff]  }
 0x749   : > { %2113 = vmatprep.mubr.bf16.mxu0 %v17880_v58  ;;  %2154 = vmatprep.mubr.bf16.mxu1 %v17880_v58  ;;  %v1284_v32 = vld [vmem:[%s21814_s6 + $0x78] sm:$0xff]  ;;  %v17238_v55 = vld [vmem:[%s21815_s7 + $0x80] sm:$0xff]  }
 0x74a   : > { %v14758_v15 = vcombine.high %v1276_v11, %v1284_v32  ;;  %v14757_v21 = vcombine.low %v1276_v11, %v1284_v32  ;;  %v17256_v11 = vld [vmem:[%s21815_s7 + $0xe8] sm:$0xff]  }
 0x74b   : > { %2084 = vmatpush1.bf16.msra.mxu0 %v14763_v16  ;;  %2125 = vmatpush1.bf16.msra.mxu1 %v14765_v17  ;;  %v1291_v16 = vld [vmem:[%s21814_s6 + $0xb0] sm:$0xff]  ;;  %v17257_v32 = vld [vmem:[%s21815_s7 + $0x28] sm:$0xff]  }
 0x74c   : > { %2085 = vmatprep.subr.bf16.mxu0 %v14780_v18  ;;  %2126 = vmatprep.subr.bf16.mxu1 %v14782_v19  ;;  %v1299_v17 = vld [vmem:[%s21814_s6 + $0xf0] sm:$0xff]  ;;  %v1292_v18 = vld [vmem:[%s21814_s6 + $0xb8] sm:$0xff] }
 0x74d   : > { %v1300_v19 = vld [vmem:[%s21814_s6 + $0xf8] sm:$0xff]  ;;  %v14772_v22 = vcombine.high %v1291_v16, %v1299_v17  ;;  %v14771_v29 = vcombine.low %v1291_v16, %v1299_v17  ;;  %v17262_v16 = vld [vmem:[%s21815_s7 + $0xb0] sm:$0xff]  }
 0x74e   : > { %v14774_v23 = vcombine.high %v1292_v18, %v1300_v19  ;;  %v14773_v30 = vcombine.low %v1292_v18, %v1300_v19  ;;  %v17263_v17 = vld [vmem:[%s21815_s7 + $0x78] sm:$0xff]  }
 0x74f   : > { %2086 = vmatpush1.bf16.msra.mxu0 %v14779_v24  ;;  %2127 = vmatpush1.bf16.msra.mxu1 %v14781_v25  ;;  %v1307_v24 = vld [vmem:[%s21814_s6 + $0x130] sm:$0xff]  ;;  %v17264_v18 = vld [vmem:[%s21815_s7 + $0xf8] sm:$0xff]  }
 0x750   : > { %2087 = vmatprep.subr.bf16.mxu0 %v14796_v26  ;;  %2128 = vmatprep.subr.bf16.mxu1 %v14798_v27  ;;  %v1315_v25 = vld [vmem:[%s21814_s6 + $0x170] sm:$0xff]  ;;  %v1308_v26 = vld [vmem:[%s21814_s6 + $0x138] sm:$0xff] }
 0x751   : > { %v1316_v27 = vld [vmem:[%s21814_s6 + $0x178] sm:$0xff]  ;;  %v14788_v31 = vcombine.high %v1307_v24, %v1315_v25  ;;  %v14787_v40 = vcombine.low %v1307_v24, %v1315_v25  ;;  %v18471_v25 = vsub.s32 3, %v18012_v34 }
 0x752   : > { %v14790_v33 = vcombine.high %v1308_v26, %v1316_v27  ;;  %v14789_v41 = vcombine.low %v1308_v26, %v1316_v27  ;;  %v17265_v19 = vld [vmem:[%s21815_s7 + $0x38] sm:$0xff]  }
 0x753   : > { %2088 = vmatpush1.bf16.msra.mxu0 %v14795_v36  ;;  %2129 = vmatpush1.bf16.msra.mxu1 %v14797_v37  ;;  %v1323_v36 = vld [vmem:[%s21814_s6 + $0x1b0] sm:$0xff] }
 0x754   : > { %2163 = vmatprep.subr.bf16.mxu0 %v14752_v38  ;;  %2204 = vmatprep.subr.bf16.mxu1 %v14754_v39  ;;  %v1331_v37 = vld [vmem:[%s21814_s6 + $0x1f0] sm:$0xff]  ;;  %v1324_v38 = vld [vmem:[%s21814_s6 + $0x1b8] sm:$0xff] }
 0x755   : > { %v1332_v39 = vld [vmem:[%s21814_s6 + $0x1f8] sm:$0xff]  ;;  %v14804_v43 = vcombine.high %v1323_v36, %v1331_v37 }
 0x756   : > { %14809 = vmatmul.mubr.msk.bf16.vlgmr.msra.gmra.mrb[12].mxu0 %vm429_vm2, %v18216_v10  ;;  %14810 = vmatmul.mubr.msk.bf16.vlgmr.msra.gmra.mrb[12].mxu1 %vm429_vm2, %v18216_v10  ;;  %v14806_v46 = vcombine.high %v1324_v38, %v1332_v39  ;;  %v18468_v24 = vld [vmem:[%s21812_s4] ss:$4 sm:$0xff] }
 0x757   : > { %2164 = vmatpush1.bf16.msra.mxu0 %v14751_v47  ;;  %2205 = vmatpush1.bf16.msra.mxu1 %v14753_v48  ;;  %v14803_v47 = vcombine.low %v1323_v36, %v1331_v37  ;;  %v14805_v48 = vcombine.low %v1324_v38, %v1332_v39  ;;  %v1599_v26 = vrot.slane %v18468_v24, %v18015_v35 }
 0x758   : > { %2165 = vmatprep.subr.bf16.mxu0 %v14768_v49  ;;  %2206 = vmatprep.subr.bf16.mxu1 %v14770_v53  ;;  %v17235_v49 = vld [vmem:[%s21815_s7 + $0x40] sm:$0xff]  }
 0x759   : > { %2195 = vmatprep.mubr.bf16.mxu0 %v17880_v58  ;;  %2236 = vmatprep.mubr.bf16.mxu1 %v17880_v58  ;;  %v17236_v53 = vld [vmem:[%s21815_s7 + $0xc0] sm:$0xff]  }
 0x75b   : > { %2166 = vmatpush1.bf16.msra.mxu0 %v14767_v59  ;;  %2207 = vmatpush1.bf16.msra.mxu1 %v14769_v60  ;;  %v17241_v59 = vld [vmem:[%s21815_s7 + $0x8] sm:$0xff]  }
 0x75c   : > { %2167 = vmatprep.subr.bf16.mxu0 %v14784_v61  ;;  %2208 = vmatprep.subr.bf16.mxu1 %v14786_v62  ;;  %v17242_v60 = vld [vmem:[%s21815_s7 + $0x88] sm:$0xff]   ;;  %v17243_v61 = vld [vmem:[%s21815_s7 + $0x50] sm:$0xff]  }
 0x75d   : > { %v17245_v62 = vld [vmem:[%s21815_s7 + $0x10] sm:$0xff]  }
 0x75f   : > { %2168 = vmatpush1.bf16.msra.mxu0 %v14783_v3  ;;  %2209 = vmatpush1.bf16.msra.mxu1 %v14785_v4  ;;  %v17250_v3 = vld [vmem:[%s21815_s7 + $0x98] sm:$0xff]   ;;  %v17251_v4 = vld [vmem:[%s21815_s7 + $0x60] sm:$0xff]  }
 0x760   : > { %2169 = vmatprep.subr.bf16.mxu0 %v14800_v5  ;;  %2210 = vmatprep.subr.bf16.mxu1 %v14802_v6  ;;  %v17252_v5 = vld [vmem:[%s21815_s7 + $0xe0] sm:$0xff]  }
 0x761   : > { %v17253_v6 = vld [vmem:[%s21815_s7 + $0x20] sm:$0xff]  }
 0x763   : > { %2170 = vmatpush1.bf16.msra.mxu0 %v14799_v12  ;;  %2211 = vmatpush1.bf16.msra.mxu1 %v14801_v13  ;;  %v17258_v12 = vld [vmem:[%s21815_s7 + $0xa8] sm:$0xff]   ;;  %v17259_v13 = vld [vmem:[%s21815_s7 + $0x70] sm:$0xff]  }
 0x764   : > { %2245 = vmatprep.subr.bf16.mxu0 %v14756_v14  ;;  %2286 = vmatprep.subr.bf16.mxu1 %v14758_v15  ;;  %v17260_v14 = vld [vmem:[%s21815_s7 + $0xf0] sm:$0xff]  }
 0x765   : > { %v17261_v15 = vld [vmem:[%s21815_s7 + $0x30] sm:$0xff]  }
 0x766   : > { %14811 = vmatmul.mubr.msk.bf16.vlgmr.msra.gmra.mrb[16].mxu0 %vm429_vm2, %v18216_v10  ;;  %14812 = vmatmul.mubr.msk.bf16.vlgmr.msra.gmra.mrb[16].mxu1 %vm429_vm2, %v18216_v10 }
 0x767   : > { %2246 = vmatpush1.bf16.msra.mxu0 %v14755_v20  ;;  %2287 = vmatpush1.bf16.msra.mxu1 %v14757_v21  ;;  %v17266_v20 = vld [vmem:[%s21815_s7 + $0xb8] sm:$0xff]   ;;  %v17267_v21 = vld [vmem:[%s21815_s7 + $0x140] sm:$0xff]  }
 0x768   : > { %2247 = vmatprep.subr.bf16.mxu0 %v14772_v22  ;;  %2288 = vmatprep.subr.bf16.mxu1 %v14774_v23  ;;  %v17268_v22 = vld [vmem:[%s21815_s7 + $0x1c0] sm:$0xff]   ;;  %v18463_v23 = vsub.s32 2, %v18012_v34 }
 0x769   : > { %2277 = vmatprep.mubr.bf16.mxu0 %v17880_v58  ;;  %2318 = vmatprep.mubr.bf16.mxu1 %v17880_v58 }
 0x76a   : > { %v1607_v27 = vrot.slane %v18468_v24, %v18463_v23 }
 0x76b   : > { %2248 = vmatpush1.bf16.msra.mxu0 %v14771_v29  ;;  %2289 = vmatpush1.bf16.msra.mxu1 %v14773_v30  ;;  %v1603_v29 = vrot.slane %v18468_v24, %v18023_v42  ;;  %v1611_v30 = vrot.slane %v18468_v24, %v18471_v25 }
 0x76c   : > { %2249 = vmatprep.subr.bf16.mxu0 %v14788_v31  ;;  %2290 = vmatprep.subr.bf16.mxu1 %v14790_v33 }
 0x76f   : > { %2250 = vmatpush1.bf16.msra.mxu0 %v14787_v40  ;;  %2291 = vmatpush1.bf16.msra.mxu1 %v14789_v41 }
 0x770   : > { %2251 = vmatprep.subr.bf16.mxu0 %v14804_v43  ;;  %2292 = vmatprep.subr.bf16.mxu1 %v14806_v46 }
 0x773   : > { %2252 = vmatpush1.bf16.msra.mxu0 %v14803_v47  ;;  %2293 = vmatpush1.bf16.msra.mxu1 %v14805_v48 }
 0x774   : > { %15655 = vmatprep.subr.bf16.mxu0 %v17235_v49  ;;  %15677 = vmatprep.subr.bf16.mxu1 %v17236_v53 }
 0x776   : > { %14813 = vmatmul.mubr.msk.bf16.vlgmr.msra.gmra.mrb[20].mxu0 %vm429_vm2, %v18216_v10  ;;  %14814 = vmatmul.mubr.msk.bf16.vlgmr.msra.gmra.mrb[20].mxu1 %vm429_vm2, %v18216_v10  ;;  %v17244_v10 = vld [vmem:[%s21815_s7 + $0xd0] sm:$0xff]  }
 0x777   : > { %15656 = vmatpush3.bf16.msra.mxu0 %v17237_v54  ;;  %15678 = vmatpush3.bf16.msra.mxu1 %v17238_v55 }
 0x778   : > { %15657 = vmatprep.subr.bf16.mxu0 %v17239_v56  ;;  %15679 = vmatprep.subr.bf16.mxu1 %v17240_v57 }
 0x77b   : > { %15658 = vmatpush3.bf16.msra.mxu0 %v17241_v59  ;;  %15680 = vmatpush3.bf16.msra.mxu1 %v17242_v60  ;;  %v17269_v59 = vld [vmem:[%s21815_s7 + $0x100] sm:$0xff]  }
 0x77c   : > { %15659 = vmatprep.subr.bf16.mxu0 %v17243_v61  ;;  %15681 = vmatprep.subr.bf16.mxu1 %v17244_v10  ;;  %v17270_v60 = vld [vmem:[%s21815_s7 + $0x180] sm:$0xff]  }
 0x77f   : > { %15660 = vmatpush3.bf16.msra.mxu0 %v17245_v62  ;;  %15682 = vmatpush3.bf16.msra.mxu1 %v17246_v63  ;;  %v17271_v62 = vld [vmem:[%s21815_s7 + $0x148] sm:$0xff]  }
 0x780   : > { %15661 = vmatprep.subr.bf16.mxu0 %v17247_v0  ;;  %15683 = vmatprep.subr.bf16.mxu1 %v17248_v1  ;;  %v17272_v63 = vld [vmem:[%s21815_s7 + $0x1c8] sm:$0xff]  }
 0x781   : > { %v17273_v0 = vld [vmem:[%s21815_s7 + $0x108] sm:$0xff]  }
 0x782   : > { %v17274_v1 = vld [vmem:[%s21815_s7 + $0x188] sm:$0xff]  }
 0x783   : > { %15662 = vmatpush3.bf16.msra.mxu0 %v17249_v52  ;;  %15684 = vmatpush3.bf16.msra.mxu1 %v17250_v3  ;;  %v18500_v52 = vsub.s32 5, %v18012_v34  ;;  %v18503_v3 = vsub.s32 7, %v18012_v34 }
 0x784   : > { %15663 = vmatprep.subr.bf16.mxu0 %v17251_v4  ;;  %15685 = vmatprep.subr.bf16.mxu1 %v17252_v5  ;;  %v17275_v4 = vld [vmem:[%s21815_s7 + $0x150] sm:$0xff]  }
 0x785   : > { %v17276_v5 = vld [vmem:[%s21815_s7 + $0x1d0] sm:$0xff]  }
 0x787   : > { %15664 = vmatpush3.bf16.msra.mxu0 %v17253_v6  ;;  %15686 = vmatpush3.bf16.msra.mxu1 %v17254_v7  ;;  %v1619_v6 = vrot.slane %v18468_v24, %v18500_v52  ;;  %v1627_v7 = vrot.slane %v18468_v24, %v18503_v3 }
 0x788   : > { %15665 = vmatprep.subr.bf16.mxu0 %v17255_v8  ;;  %15687 = vmatprep.subr.bf16.mxu1 %v17256_v11  ;;  %v17277_v8 = vld [vmem:[%s21815_s7 + $0x110] sm:$0xff]  }
 0x789   : > { %v17278_v11 = vld [vmem:[%s21815_s7 + $0x190] sm:$0xff]  }
 0x78b   : > { %15666 = vmatpush3.bf16.msra.mxu0 %v17257_v32  ;;  %15688 = vmatpush3.bf16.msra.mxu1 %v17258_v12  ;;  %v17279_v32 = vld [vmem:[%s21815_s7 + $0x158] sm:$0xff]  }
 0x78c   : > { %15667 = vmatprep.subr.bf16.mxu0 %v17259_v13  ;;  %15689 = vmatprep.subr.bf16.mxu1 %v17260_v14  ;;  %v17280_v12 = vld [vmem:[%s21815_s7 + $0x1d8] sm:$0xff]  }
 0x78f   : > { %15668 = vmatpush3.bf16.msra.mxu0 %v17261_v15  ;;  %15690 = vmatpush3.bf16.msra.mxu1 %v17262_v16 }
 0x790   : > { %15669 = vmatprep.subr.bf16.mxu0 %v17263_v17  ;;  %15691 = vmatprep.subr.bf16.mxu1 %v17264_v18 }
 0x793   : > { %15670 = vmatpush3.bf16.msra.mxu0 %v17265_v19  ;;  %15692 = vmatpush3.bf16.msra.mxu1 %v17266_v20 }
 0x794   : > { %15699 = vmatprep.subr.bf16.mxu0 %v17267_v21  ;;  %15721 = vmatprep.subr.bf16.mxu1 %v17268_v22  ;;  %v17281_v21 = vld [vmem:[%s21815_s7 + $0x118] sm:$0xff]  }
 0x795   : > { %v17282_v22 = vld [vmem:[%s21815_s7 + $0x198] sm:$0xff]  }
 0x819   : > { %v2033_v31 = vpop.f32.mrb[8].mxu0  ;;  %v2074_v33 = vpop.f32.mrb[8].mxu1 }
 0x81a   : > { %v2034_v36 = vadd.f32 %v2033_v31, %v1599_v26  ;;  %v2075_v37 = vadd.f32 %v2074_v33, %v1607_v27  ;;  %v2035_v38 = vpop.f32.mrb[9].mxu0  ;;  %v2076_v39 = vpop.f32.mrb[9].mxu1 }
 0x81b   : > { %v2036_v40 = vadd.f32 %v2035_v38, %v1603_v29  ;;  %v2077_v41 = vadd.f32 %v2076_v39, %v1611_v30  ;;  %v2037_v43 = vpop.f32.mrb[10].mxu0  ;;  %v2078_v46 = vpop.f32.mrb[10].mxu1  ;;  %v17283_v29 = vld [vmem:[%s21815_s7 + $0x160] sm:$0xff]  }
 0x81c   : > { %v2327_v47 = vmax.f32 %v2034_v36, 0.0  ;;  %v2329_v48 = vmax.f32 %v2075_v37, 0.0  ;;  %v2038_v49 = vpop.f32.mrb[11].mxu0  ;;  %v2079_v53 = vpop.f32.mrb[11].mxu1  ;;  %v17284_v30 = vld [vmem:[%s21815_s7 + $0x1e0] sm:$0xff]   ;;  %v17287_v43 = vld [vmem:[%s21815_s7 + $0x168] sm:$0xff]  }
 0x81d   : > { %v2328_v54 = vmax.f32 %v2036_v40, 0.0  ;;  %v2330_v55 = vmax.f32 %v2077_v41, 0.0  ;;  %v17285_v38 = vld [vmem:[%s21815_s7 + $0x120] sm:$0xff]   ;;  %v18546_v40 = vsub.s32 4, %v18012_v34  ;;  %v18549_v41 = vsub.s32 6, %v18012_v34  ;;  %v17288_v46 = vld [vmem:[%s21815_s7 + $0x1e8] sm:$0xff]  }
 0x81e   : > { %v2343_v61 = vpack.c.bf16 %v2327_v47, %v2327_v47  ;;  %v2345_v10 = vpack.c.bf16 %v2329_v48, %v2329_v48  ;;  %v17286_v39 = vld [vmem:[%s21815_s7 + $0x1a0] sm:$0xff]   ;;  %v17289_v47 = vld [vmem:[%s21815_s7 + $0x128] sm:$0xff]  }
 0x81f   : > { %v2344_v56 = vpack.c.bf16 %v2328_v54, %v2328_v54  ;;  %v2346_v57 = vpack.c.bf16 %v2330_v55, %v2330_v55  ;;  %v17290_v34 = vld [vmem:[%s21815_s7 + $0x1a8] sm:$0xff]   ;;  %v1615_v48 = vrot.slane %v18468_v24, %v18546_v40  ;;  %v1623_v49 = vrot.slane %v18468_v24, %v18549_v41  ;;  %v17291_v54 = vld [vmem:[%s21815_s7 + $0x170] sm:$0xff]  }
 0x820   : > { %v18570_v53 = vld [vmem:[%s21812_s4 + $0x20] ss:$4 sm:$0xff] }
 0x821   : > { %3159 = vmatprep.mubr.bf16.mxu0 %v2344_v56  ;;  %3199 = vmatprep.mubr.bf16.mxu1 %v2346_v57  ;;  %v17292_v55 = vld [vmem:[%s21815_s7 + $0x1f0] sm:$0xff]   ;;  %v1635_v24 = vrot.slane %v18570_v53, %v18023_v42  ;;  %v1643_v56 = vrot.slane %v18570_v53, %v18471_v25 }
 0x822   : > { %3160 = vmatmul.mubr.bf16.vlgmr.msra.gmra.mrb[24].mxu0 %v2343_v61  ;;  %3200 = vmatmul.mubr.bf16.vlgmr.msra.gmra.mrb[24].mxu1 %v2345_v10  ;;  %v17293_v57 = vld [vmem:[%s21815_s7 + $0x130] sm:$0xff]   ;;  %v17295_v10 = vld [vmem:[%s21815_s7 + $0x178] sm:$0xff]  }
 0x823   : > { %15700 = vmatpush3.bf16.msra.mxu0 %v17269_v59  ;;  %15722 = vmatpush3.bf16.msra.mxu1 %v17270_v60  ;;  %v17294_v59 = vld [vmem:[%s21815_s7 + $0x1b0] sm:$0xff]  }
 0x824   : > { %15701 = vmatprep.subr.bf16.mxu0 %v17271_v62  ;;  %15723 = vmatprep.subr.bf16.mxu1 %v17272_v63  ;;  %v17296_v62 = vld [vmem:[%s21815_s7 + $0x1f8] sm:$0xff]  }
 0x827   : > { %15702 = vmatpush3.bf16.msra.mxu0 %v17273_v0  ;;  %15724 = vmatpush3.bf16.msra.mxu1 %v17274_v1 }
 0x828   : > { %15703 = vmatprep.subr.bf16.mxu0 %v17275_v4  ;;  %15725 = vmatprep.subr.bf16.mxu1 %v17276_v5 }
 0x829   : > { %v2115_v13 = vpop.f32.mrb[12].mxu0  ;;  %v2156_v14 = vpop.f32.mrb[12].mxu1 }
 0x82a   : > { %v2117_v15 = vpop.f32.mrb[13].mxu0  ;;  %v2158_v16 = vpop.f32.mrb[13].mxu1  ;;  %v2116_v60 = vadd.f32 %v2115_v13, %v1615_v48  ;;  %v2157_v61 = vadd.f32 %v2156_v14, %v1623_v49  ;;  %v17312_v49 = vld [vmem:[%s21815_s7 + $0x2d8] sm:$0xff]  }
 0x82b   : > { %v2118_v17 = vadd.f32 %v2117_v15, %v1619_v6  ;;  %v2159_v18 = vadd.f32 %v2158_v16, %v1627_v7  ;;  %v2119_v19 = vpop.f32.mrb[14].mxu0  ;;  %v2160_v20 = vpop.f32.mrb[14].mxu1  ;;  %15704 = vmatpush3.bf16.msra.mxu0 %v17277_v8  ;;  %15726 = vmatpush3.bf16.msra.mxu1 %v17278_v11  ;;  %v17297_v11 = vld [vmem:[%s21815_s7 + $0x138] sm:$0xff]   ;;  %v17299_v16 = vld [vmem:[%s21815_s7 + $0x240] sm:$0xff]  }
 0x82c   : > { %v2120_v26 = vpop.f32.mrb[15].mxu0  ;;  %v2161_v27 = vpop.f32.mrb[15].mxu1  ;;  %15705 = vmatprep.subr.bf16.mxu0 %v17279_v32  ;;  %15727 = vmatprep.subr.bf16.mxu1 %v17280_v12  ;;  %v17298_v32 = vld [vmem:[%s21815_s7 + $0x1b8] sm:$0xff]   ;;  %v2331_v12 = vmax.f32 %v2116_v60, 0.0  ;;  %v2333_v13 = vmax.f32 %v2157_v61, 0.0  ;;  %v17301_v20 = vld [vmem:[%s21815_s7 + $0x200] sm:$0xff]  }
 0x82d   : > { %v2332_v31 = vmax.f32 %v2118_v17, 0.0  ;;  %v2334_v33 = vmax.f32 %v2159_v18, 0.0  ;;  %v17300_v17 = vld [vmem:[%s21815_s7 + $0x2c0] sm:$0xff]  }
 0x82e   : > { %v17302_v26 = vld [vmem:[%s21815_s7 + $0x280] sm:$0xff]  }
 0x82f   : > { %v2348_v36 = vpack.c.bf16 %v2332_v31, %v2332_v31  ;;  %v2350_v37 = vpack.c.bf16 %v2334_v33, %v2334_v33  ;;  %15706 = vmatpush3.bf16.msra.mxu0 %v17281_v21  ;;  %15728 = vmatpush3.bf16.msra.mxu1 %v17282_v22  ;;  %v2347_v21 = vpack.c.bf16 %v2331_v12, %v2331_v12  ;;  %v17305_v33 = vld [vmem:[%s21815_s7 + $0x208] sm:$0xff]   ;;  %v17323_v12 = vld [vmem:[%s21815_s7 + $0x270] sm:$0xff]  }
 0x830   : > { %15707 = vmatprep.subr.bf16.mxu0 %v17283_v29  ;;  %15729 = vmatprep.subr.bf16.mxu1 %v17284_v30  ;;  %v2349_v22 = vpack.c.bf16 %v2333_v13, %v2333_v13  ;;  %v17303_v29 = vld [vmem:[%s21815_s7 + $0x248] sm:$0xff]   ;;  %v1639_v13 = vrot.slane %v18570_v53, %v18463_v23 }
 0x831   : > { %3239 = vmatprep.mubr.bf16.mxu0 %v2348_v36  ;;  %3279 = vmatprep.mubr.bf16.mxu1 %v2350_v37  ;;  %v17304_v30 = vld [vmem:[%s21815_s7 + $0x2c8] sm:$0xff]   ;;  %v17307_v37 = vld [vmem:[%s21815_s7 + $0x250] sm:$0xff]  }
 0x832   : > { %v17306_v36 = vld [vmem:[%s21815_s7 + $0x288] sm:$0xff]  }
 0x833   : > { %15708 = vmatpush3.bf16.msra.mxu0 %v17285_v38  ;;  %15730 = vmatpush3.bf16.msra.mxu1 %v17286_v39  ;;  %v17308_v38 = vld [vmem:[%s21815_s7 + $0x2d0] sm:$0xff]   ;;  %v1655_v39 = vrot.slane %v18570_v53, %v18549_v41 }
 0x834   : > { %15709 = vmatprep.subr.bf16.mxu0 %v17287_v43  ;;  %15731 = vmatprep.subr.bf16.mxu1 %v17288_v46  ;;  %v17309_v43 = vld [vmem:[%s21815_s7 + $0x210] sm:$0xff]  }
 0x835   : > { %v17310_v46 = vld [vmem:[%s21815_s7 + $0x290] sm:$0xff]  }
 0x837   : > { %15710 = vmatpush3.bf16.msra.mxu0 %v17289_v47  ;;  %15732 = vmatpush3.bf16.msra.mxu1 %v17290_v34  ;;  %v17311_v47 = vld [vmem:[%s21815_s7 + $0x258] sm:$0xff]  }
 0x838   : > { %15711 = vmatprep.subr.bf16.mxu0 %v17291_v54  ;;  %15733 = vmatprep.subr.bf16.mxu1 %v17292_v55 }
 0x839   : > { %v18594_v63 = vpop.f32.mrb[16].mxu0  ;;  %v18596_v0 = vpop.f32.mrb[16].mxu1 }
 0x83a   : > { %v2199_v1 = vpop.f32.mrb[17].mxu0  ;;  %v2240_v4 = vpop.f32.mrb[17].mxu1 }
 0x83b   : > { %v2200_v5 = vadd.f32 %v2199_v1, %v1635_v24  ;;  %v2241_v6 = vadd.f32 %v2240_v4, %v1643_v56  ;;  %v2201_v7 = vpop.f32.mrb[18].mxu0  ;;  %v2242_v8 = vpop.f32.mrb[18].mxu1  ;;  %15712 = vmatpush3.bf16.msra.mxu0 %v17293_v57  ;;  %15734 = vmatpush3.bf16.msra.mxu1 %v17294_v59  ;;  %v17313_v59 = vld [vmem:[%s21815_s7 + $0x218] sm:$0xff]   ;;  %v17316_v1 = vld [vmem:[%s21815_s7 + $0x2e0] sm:$0xff]  }
 0x83c   : > { %v2202_v14 = vpop.f32.mrb[19].mxu0  ;;  %v2243_v15 = vpop.f32.mrb[19].mxu1  ;;  %15713 = vmatprep.subr.bf16.mxu0 %v17295_v10  ;;  %15735 = vmatprep.subr.bf16.mxu1 %v17296_v62  ;;  %v17314_v10 = vld [vmem:[%s21815_s7 + $0x298] sm:$0xff]   ;;  %v17315_v62 = vld [vmem:[%s21815_s7 + $0x260] sm:$0xff]   ;;  %v17320_v7 = vld [vmem:[%s21815_s7 + $0x2e8] sm:$0xff]  }
 0x83d   : > { %v2336_v18 = vmax.f32 %v2200_v5, 0.0  ;;  %v2338_v19 = vmax.f32 %v2241_v6, 0.0  ;;  %v17317_v4 = vld [vmem:[%s21815_s7 + $0x220] sm:$0xff]   ;;  %v17319_v6 = vld [vmem:[%s21815_s7 + $0x268] sm:$0xff]   ;;  %v17324_v14 = vld [vmem:[%s21815_s7 + $0x2f0] sm:$0xff]   ;;  %v1651_v15 = vrot.slane %v18570_v53, %v18500_v52 }
 0x83e   : > { %v17318_v5 = vld [vmem:[%s21815_s7 + $0x2a0] sm:$0xff]   ;;  %v17321_v8 = vld [vmem:[%s21815_s7 + $0x228] sm:$0xff]  }
 0x83f   : > { %15714 = vmatpush3.bf16.msra.mxu0 %v17297_v11  ;;  %15736 = vmatpush3.bf16.msra.mxu1 %v17298_v32  ;;  %v2352_v27 = vpack.c.bf16 %v2336_v18, %v2336_v18  ;;  %v2354_v31 = vpack.c.bf16 %v2338_v19, %v2338_v19  ;;  %v1631_v11 = vrot.slane %v18570_v53, %v18015_v35  ;;  %v17322_v32 = vld [vmem:[%s21815_s7 + $0x2a8] sm:$0xff]   ;;  %v17326_v19 = vld [vmem:[%s21815_s7 + $0x2b0] sm:$0xff]  }
 0x840   : > { %15743 = vmatprep.subr.bf16.mxu0 %v17299_v16  ;;  %15765 = vmatprep.subr.bf16.mxu1 %v17300_v17  ;;  %v1659_v16 = vrot.slane %v18570_v53, %v18503_v3  ;;  %v17325_v17 = vld [vmem:[%s21815_s7 + $0x230] sm:$0xff]  }
 0x841   : > { %v2198_v18 = vadd.f32 %v18594_v63, %v1631_v11  ;;  %v17329_v63 = vld [vmem:[%s21815_s7 + $0x238] sm:$0xff]   ;;  %v17351_v11 = vld [vmem:[%s21815_s7 + $0x368] sm:$0xff]  }
 0x842   : > { %3240 = vmatmul.mubr.bf16.vlgmr.msra.gmra.mrb[28].mxu0 %v2347_v21  ;;  %3280 = vmatmul.mubr.bf16.vlgmr.msra.gmra.mrb[28].mxu1 %v2349_v22  ;;  %v2239_v21 = vadd.f32 %v18596_v0, %v1639_v13  ;;  %v17328_v22 = vld [vmem:[%s21815_s7 + $0x2f8] sm:$0xff]   ;;  %v17331_v0 = vld [vmem:[%s21815_s7 + $0x340] sm:$0xff]   ;;  %v1647_v13 = vrot.slane %v18570_v53, %v18546_v40  ;;  %v17357_v53 = vld [vmem:[%s21815_s7 + $0x330] sm:$0xff]  }
 0x843   : > { %15744 = vmatpush3.bf16.msra.mxu0 %v17301_v20  ;;  %3319 = vmatprep.mubr.bf16.mxu0 %v2352_v27  ;;  %v17327_v20 = vld [vmem:[%s21815_s7 + $0x278] sm:$0xff]  }
 0x844   : > { %15766 = vmatpush3.bf16.msra.mxu1 %v17302_v26  ;;  %3359 = vmatprep.mubr.bf16.mxu1 %v2354_v31  ;;  %v2337_v31 = vmax.f32 %v2239_v21, 0.0 }
 0x845   : > { %15745 = vmatprep.subr.bf16.mxu0 %v17303_v29  ;;  %15767 = vmatprep.subr.bf16.mxu1 %v17304_v30  ;;  %v2335_v29 = vmax.f32 %v2198_v18, 0.0  ;;  %v17330_v30 = vld [vmem:[%s21815_s7 + $0x2b8] sm:$0xff]   ;;  %v17358_v18 = vld [vmem:[%s21815_s7 + $0x3b0] sm:$0xff]  }
 0x847   : > { %15746 = vmatpush3.bf16.msra.mxu0 %v17305_v33  ;;  %v17332_v33 = vld [vmem:[%s21815_s7 + $0x3c0] sm:$0xff]  }
 0x848   : > { %15768 = vmatpush3.bf16.msra.mxu1 %v17306_v36  ;;  %15747 = vmatprep.subr.bf16.mxu0 %v17307_v37 }
 0x849   : > { %v18645_v34 = vpop.f32.mrb[20].mxu0  ;;  %v2320_v48 = vpop.f32.mrb[20].mxu1  ;;  %15769 = vmatprep.subr.bf16.mxu1 %v17308_v38  ;;  %v17333_v38 = vld [vmem:[%s21815_s7 + $0x300] sm:$0xff]  }
 0x84a   : > { %v18650_v54 = vadd.f32 %v2320_v48, %v1655_v39  ;;  %v2281_v55 = vpop.f32.mrb[21].mxu0  ;;  %v2322_v24 = vpop.f32.mrb[21].mxu1  ;;  %v2351_v39 = vpack.c.bf16 %v2335_v29, %v2335_v29 }
 0x84b   : > { %v2283_v56 = vpop.f32.mrb[22].mxu0  ;;  %v2324_v57 = vpop.f32.mrb[22].mxu1  ;;  %15748 = vmatpush3.bf16.msra.mxu0 %v17309_v43  ;;  %v2282_v26 = vadd.f32 %v2281_v55, %v1651_v15  ;;  %v2323_v27 = vadd.f32 %v2322_v24, %v1659_v16  ;;  %v17334_v43 = vld [vmem:[%s21815_s7 + $0x380] sm:$0xff]   ;;  %v17337_v24 = vld [vmem:[%s21815_s7 + $0x308] sm:$0xff]   ;;  %v17355_v15 = vld [vmem:[%s21815_s7 + $0x370] sm:$0xff]  }
 0x84c   : > { %15770 = vmatpush3.bf16.msra.mxu1 %v17310_v46  ;;  %v2284_v60 = vpop.f32.mrb[23].mxu0  ;;  %v2325_v61 = vpop.f32.mrb[23].mxu1  ;;  %15749 = vmatprep.subr.bf16.mxu0 %v17311_v47  ;;  %v2353_v46 = vpack.c.bf16 %v2337_v31, %v2337_v31  ;;  %v17335_v47 = vld [vmem:[%s21815_s7 + $0x348] sm:$0xff]   ;;  %v17339_v57 = vld [vmem:[%s21815_s7 + $0x350] sm:$0xff]  }
 0x84d   : > { %15771 = vmatprep.subr.bf16.mxu1 %v17312_v49  ;;  %v2340_v36 = vmax.f32 %v2282_v26, 0.0  ;;  %v2342_v37 = vmax.f32 %v2323_v27, 0.0  ;;  %v17336_v49 = vld [vmem:[%s21815_s7 + $0x3c8] sm:$0xff]   ;;  %v17341_v60 = vld [vmem:[%s21815_s7 + $0x310] sm:$0xff]   ;;  %v2341_v26 = vmax.f32 %v18650_v54, 0.0 }
 0x84e   : > { %v17338_v56 = vld [vmem:[%s21815_s7 + $0x388] sm:$0xff]   ;;  %v17342_v61 = vld [vmem:[%s21815_s7 + $0x390] sm:$0xff]  }
 0x84f   : > { %15750 = vmatpush3.bf16.msra.mxu0 %v17313_v59  ;;  %v2356_v48 = vpack.c.bf16 %v2340_v36, %v2340_v36  ;;  %v2358_v55 = vpack.c.bf16 %v2342_v37, %v2342_v37  ;;  %v17340_v59 = vld [vmem:[%s21815_s7 + $0x3d0] sm:$0xff]  }
 0x850   : > { %15772 = vmatpush3.bf16.msra.mxu1 %v17314_v10  ;;  %15751 = vmatprep.subr.bf16.mxu0 %v17315_v62  ;;  %v17343_v10 = vld [vmem:[%s21815_s7 + $0x358] sm:$0xff]   ;;  %v17356_v16 = vld [vmem:[%s21815_s7 + $0x3f0] sm:$0xff]  }
 0x851   : > { %15773 = vmatprep.subr.bf16.mxu1 %v17316_v1  ;;  %v17344_v62 = vld [vmem:[%s21815_s7 + $0x3d8] sm:$0xff]   ;;  %v1592_v54 = vld [vmem:[%s21811_s3 + $0x11] ss:$0 sm:$0xff] }
 0x852   : > { %v17345_v1 = vld [vmem:[%s21815_s7 + $0x318] sm:$0xff]  }
 0x853   : > { %15752 = vmatpush3.bf16.msra.mxu0 %v17317_v4  ;;  %v17346_v4 = vld [vmem:[%s21815_s7 + $0x398] sm:$0xff]  }
 0x854   : > { %15774 = vmatpush3.bf16.msra.mxu1 %v17318_v5  ;;  %15753 = vmatprep.subr.bf16.mxu0 %v17319_v6  ;;  %v17347_v5 = vld [vmem:[%s21815_s7 + $0x360] sm:$0xff]  }
 0x855   : > { %15775 = vmatprep.subr.bf16.mxu1 %v17320_v7  ;;  %v17348_v6 = vld [vmem:[%s21815_s7 + $0x3e0] sm:$0xff]  }
 0x856   : > { %v17349_v7 = vld [vmem:[%s21815_s7 + $0x320] sm:$0xff]  }
 0x857   : > { %15754 = vmatpush3.bf16.msra.mxu0 %v17321_v8  ;;  %v17350_v8 = vld [vmem:[%s21815_s7 + $0x3a0] sm:$0xff]  }
 0x858   : > { %15776 = vmatpush3.bf16.msra.mxu1 %v17322_v32  ;;  %15755 = vmatprep.subr.bf16.mxu0 %v17323_v12  ;;  %v17352_v32 = vld [vmem:[%s21815_s7 + $0x3e8] sm:$0xff]  }
 0x859   : > { %15777 = vmatprep.subr.bf16.mxu1 %v17324_v14  ;;  %v17353_v12 = vld [vmem:[%s21815_s7 + $0x328] sm:$0xff]  }
 0x85a   : > { %v17354_v14 = vld [vmem:[%s21815_s7 + $0x3a8] sm:$0xff]  }
 0x85b   : > { %15756 = vmatpush3.bf16.msra.mxu0 %v17325_v17  ;;  %v2280_v17 = vadd.f32 %v18645_v34, %v1647_v13  ;;  %v17361_v34 = vld [vmem:[%s21815_s7 + $0x338] sm:$0xff]  }
 0x85c   : > { %15778 = vmatpush3.bf16.msra.mxu1 %v17326_v19  ;;  %15757 = vmatprep.subr.bf16.mxu0 %v17327_v20  ;;  %v17359_v19 = vld [vmem:[%s21815_s7 + $0x378] sm:$0xff]  }
 0x85d   : > { %15779 = vmatprep.subr.bf16.mxu1 %v17328_v22  ;;  %v17360_v20 = vld [vmem:[%s21815_s7 + $0x3f8] sm:$0xff]   ;;  %v2339_v21 = vmax.f32 %v2280_v17, 0.0 }
 0x85e   : > { %v17362_v22 = vld [vmem:[%s21815_s7 + $0x3b8] sm:$0xff]  }
 0x85f   : > { %15758 = vmatpush3.bf16.msra.mxu0 %v17329_v63  ;;  %v2355_v27 = vpack.c.bf16 %v2339_v21, %v2339_v21  ;;  %v2357_v63 = vpack.c.bf16 %v2341_v26, %v2341_v26 }
 0x860   : > { %15780 = vmatpush3.bf16.msra.mxu1 %v17330_v30  ;;  %15787 = vmatprep.subr.bf16.mxu0 %v17331_v0 }
 0x861   : > { %15809 = vmatprep.subr.bf16.mxu1 %v17332_v33 }
 0x862   : > { %3320 = vmatmul.mubr.bf16.vlgmr.msra.gmra.mrb[32].mxu0 %v2351_v39 }
 0x863   : > { %3360 = vmatmul.mubr.bf16.vlgmr.msra.gmra.mrb[32].mxu1 %v2353_v46  ;;  %15788 = vmatpush3.bf16.msra.mxu0 %v17333_v38 }
 0x864   : > { %3399 = vmatprep.mubr.bf16.mxu0 %v2356_v48  ;;  %15810 = vmatpush3.bf16.msra.mxu1 %v17334_v43 }
 0x865   : > { %3439 = vmatprep.mubr.bf16.mxu1 %v2358_v55  ;;  %15789 = vmatprep.subr.bf16.mxu0 %v17335_v47 }
 0x866   : > { %15811 = vmatprep.subr.bf16.mxu1 %v17336_v49 }
 0x867   : > { %15790 = vmatpush3.bf16.msra.mxu0 %v17337_v24 }
 0x868   : > { %15812 = vmatpush3.bf16.msra.mxu1 %v17338_v56  ;;  %15791 = vmatprep.subr.bf16.mxu0 %v17339_v57 }
 0x869   : > { %15813 = vmatprep.subr.bf16.mxu1 %v17340_v59 }
 0x86b   : > { %15792 = vmatpush3.bf16.msra.mxu0 %v17341_v60 }
 0x86c   : > { %15814 = vmatpush3.bf16.msra.mxu1 %v17342_v61  ;;  %15793 = vmatprep.subr.bf16.mxu0 %v17343_v10 }
 0x86d   : > { %15815 = vmatprep.subr.bf16.mxu1 %v17344_v62 }
 0x86f   : > { %15794 = vmatpush3.bf16.msra.mxu0 %v17345_v1 }
 0x870   : > { %15816 = vmatpush3.bf16.msra.mxu1 %v17346_v4  ;;  %15795 = vmatprep.subr.bf16.mxu0 %v17347_v5 }
 0x871   : > { %15817 = vmatprep.subr.bf16.mxu1 %v17348_v6 }
 0x873   : > { %15796 = vmatpush3.bf16.msra.mxu0 %v17349_v7 }
 0x874   : > { %15818 = vmatpush3.bf16.msra.mxu1 %v17350_v8  ;;  %15797 = vmatprep.subr.bf16.mxu0 %v17351_v11 }
 0x875   : > { %15819 = vmatprep.subr.bf16.mxu1 %v17352_v32 }
 0x877   : > { %15798 = vmatpush3.bf16.msra.mxu0 %v17353_v12 }
 0x878   : > { %15820 = vmatpush3.bf16.msra.mxu1 %v17354_v14  ;;  %15799 = vmatprep.subr.bf16.mxu0 %v17355_v15 }
 0x879   : > { %15821 = vmatprep.subr.bf16.mxu1 %v17356_v16 }
 0x87b   : > { %15800 = vmatpush3.bf16.msra.mxu0 %v17357_v53 }
 0x87c   : > { %15822 = vmatpush3.bf16.msra.mxu1 %v17358_v18  ;;  %15801 = vmatprep.subr.bf16.mxu0 %v17359_v19 }
 0x87d   : > { %15823 = vmatprep.subr.bf16.mxu1 %v17360_v20 }
 0x87f   : > { %15802 = vmatpush3.bf16.msra.mxu0 %v17361_v34 }
 0x880   : > { %15824 = vmatpush3.bf16.msra.mxu1 %v17362_v22 }
 0x881   : > { %16600 = vmatprep.subr.mxu1 %v17876_v2 }
 0x882   : > { %3400 = vmatmul.mubr.bf16.vlgmr.msra.gmra.mrb[36].mxu0 %v2355_v27 }
 0x883   : > { %3440 = vmatmul.mubr.bf16.vlgmr.msra.gmra.mrb[36].mxu1 %v2357_v63  ;;  %3561 = vmatprep.mubr.f32.mxu0 %v17876_v2 }
 0x884   : > { %16602 = vmatprep.mubr.msk.f32.mxu1 %vm17877_vm0, %v17876_v2 }
 0x8f5   : > { %v15671_v29 = vpop.f32.mrb[24].mxu0  ;;  %v15693_v30 = vpop.f32.mrb[24].mxu1 }
 0x8f6   : > { %v15672_v0 = vpop.f32.mrb[25].mxu0  ;;  %v15694_v31 = vpop.f32.mrb[25].mxu1 }
 0x8f7   : > { %v15673_v33 = vadd.f32 %v15672_v0, %v15671_v29  ;;  %v15695_v36 = vadd.f32 %v15694_v31, %v15693_v30  ;;  %v15674_v37 = vpop.f32.mrb[26].mxu0  ;;  %v15696_v38 = vpop.f32.mrb[26].mxu1 }
 0x8f8   : > { %v15675_v39 = vpop.f32.mrb[27].mxu0  ;;  %v15697_v43 = vpop.f32.mrb[27].mxu1  ;;  %v3466_v38 = vld [vmem:[%s21813_s5 + $0x1a8] sm:$0xff] }
 0x8f9   : > { %v3162_v46 = vadd.f32 %v15673_v33, %v1592_v54  ;;  %v3468_v39 = vld [vmem:[%s21813_s5 + $0x1b8] sm:$0xff] }
 0x8fa   : > { %v17018_v43 = vpack.c.bf16 %v3468_v39, %v3466_v38 }
 0x8fb   : > { %v3202_v47 = vadd.f32 %v15695_v36, %v3162_v46  ;;  %v3467_v46 = vld [vmem:[%s21813_s5 + $0x1b0] sm:$0xff] }
 0x8fc   : > { %17019 = vmatprep.subr.bf16.mxu0 %v17018_v43 }
 0x915   : > { %v15715_v48 = vpop.f32.mrb[28].mxu0  ;;  %v15737_v49 = vpop.f32.mrb[28].mxu1 }
 0x916   : > { %v15716_v55 = vpop.f32.mrb[29].mxu0  ;;  %v15738_v24 = vpop.f32.mrb[29].mxu1 }
 0x917   : > { %v15717_v56 = vadd.f32 %v15716_v55, %v15715_v48  ;;  %v15739_v57 = vadd.f32 %v15738_v24, %v15737_v49  ;;  %v15718_v59 = vpop.f32.mrb[30].mxu0  ;;  %v15740_v60 = vpop.f32.mrb[30].mxu1  ;;  %v3470_v48 = vld [vmem:[%s21813_s5 + $0x1c8] sm:$0xff]  ;;  %v3472_v49 = vld [vmem:[%s21813_s5 + $0x1d8] sm:$0xff]  ;;  %v3469_v24 = vld [vmem:[%s21813_s5 + $0x1c0] sm:$0xff] }
 0x918   : > { %v15719_v61 = vpop.f32.mrb[31].mxu0  ;;  %v15741_v10 = vpop.f32.mrb[31].mxu1  ;;  %v17022_v55 = vpack.c.bf16 %v3472_v49, %v3470_v48  ;;  %v3474_v59 = vld [vmem:[%s21813_s5 + $0x1e8] sm:$0xff]  ;;  %v3476_v60 = vld [vmem:[%s21813_s5 + $0x1f8] sm:$0xff] }
 0x919   : > { %v3242_v62 = vadd.f32 %v15717_v56, %v3202_v47  ;;  %v3471_v56 = vld [vmem:[%s21813_s5 + $0x1d0] sm:$0xff]  ;;  %v17026_v61 = vpack.c.bf16 %v3476_v60, %v3474_v59  ;;  %v3473_v10 = vld [vmem:[%s21813_s5 + $0x1e0] sm:$0xff] }
 0x91b   : > { %v3282_v1 = vadd.f32 %v15739_v57, %v3242_v62  ;;  %v17024_v57 = vpack.c.bf16 %v3471_v56, %v3469_v24  ;;  %v3475_v62 = vld [vmem:[%s21813_s5 + $0x1f0] sm:$0xff] }
 0x935   : > { %v15759_v4 = vpop.f32.mrb[32].mxu0 }
 0x936   : > { %v15781_v5 = vpop.f32.mrb[32].mxu1  ;;  %v15760_v6 = vpop.f32.mrb[33].mxu0 }
 0x937   : > { %v15761_v7 = vadd.f32 %v15760_v6, %v15759_v4  ;;  %v15782_v8 = vpop.f32.mrb[33].mxu1  ;;  %v15762_v11 = vpop.f32.mrb[34].mxu0  ;;  %v3478_v4 = vld [vmem:[%s21813_s5 + $0x208] sm:$0xff]  ;;  %v3477_v6 = vld [vmem:[%s21813_s5 + $0x200] sm:$0xff] }
 0x938   : > { %v15783_v32 = vadd.f32 %v15782_v8, %v15781_v5  ;;  %v15784_v12 = vpop.f32.mrb[34].mxu1  ;;  %v15763_v13 = vpop.f32.mrb[35].mxu0  ;;  %v3480_v5 = vld [vmem:[%s21813_s5 + $0x218] sm:$0xff]  ;;  %v3479_v8 = vld [vmem:[%s21813_s5 + $0x210] sm:$0xff] }
 0x939   : > { %v3322_v14 = vadd.f32 %v15761_v7, %v3282_v1  ;;  %v15785_v15 = vpop.f32.mrb[35].mxu1  ;;  %v17028_v1 = vpack.c.bf16 %v3475_v62, %v3473_v10  ;;  %v17030_v7 = vpack.c.bf16 %v3480_v5, %v3478_v4  ;;  %v17032_v11 = vpack.c.bf16 %v3479_v8, %v3477_v6 }
 0x93a   : > { %v3448_v15 = vld [vmem:[%s21811_s3 + $0x14] ss:$0 sm:$0xff] }
 0x93b   : > { %v3362_v16 = vadd.f32 %v15783_v32, %v3322_v14 }
 0x955   : > { %v15803_v53 = vpop.f32.mrb[36].mxu0 }
 0x956   : > { %v15825_v17 = vpop.f32.mrb[36].mxu1  ;;  %v15804_v18 = vpop.f32.mrb[37].mxu0 }
 0x957   : > { %v15805_v19 = vadd.f32 %v15804_v18, %v15803_v53  ;;  %v15826_v20 = vpop.f32.mrb[37].mxu1  ;;  %v15806_v34 = vpop.f32.mrb[38].mxu0  ;;  %v3449_v53 = vld [vmem:[%s21811_s3 + $0x15] ss:$0 sm:$0xff] }
 0x958   : > { %v15827_v21 = vadd.f32 %v15826_v20, %v15825_v17  ;;  %v15828_v22 = vpop.f32.mrb[38].mxu1  ;;  %v15807_v26 = vpop.f32.mrb[39].mxu0 }
 0x959   : > { %v3402_v27 = vadd.f32 %v15805_v19, %v3362_v16  ;;  %v15829_v63 = vpop.f32.mrb[39].mxu1  ;;  %v14943_v19 = vld [vmem:[%s21811_s3 + $0x16] ss:$8 sm:$0x3] }
 0x95a   : > { %v3487_v20 = vrot.slane %v14943_v19, %v18015_v35  ;;  %v3491_v26 = vrot.slane %v14943_v19, %v18023_v42  ;;  %v4214_v19 = vld [vmem:[%s21813_s5 + $0x240] sm:$0xff] }
 0x95b   : > { %v3442_v29 = vadd.f32 %v15827_v21, %v3402_v27 }
 0x95d   : > { %v3447_v30 = vadd.f32 %v3442_v29, %v18212_v9  ;;  %v3465_v9 = vld [vmem:[%s21813_s5 + $0x1a0] sm:$0xff] }
 0x95e   : > { %v17020_v47 = vpack.c.bf16 %v3467_v46, %v3465_v9 }
 0x95f   : > { %v3450_v54 = vsel %vm429_vm2, %v3447_v30, 0.0 }
 0x960   : > { %3451 = vadd.xlane.f32.xlu0 %v3450_v54  ;;  %17021 = vmatpush1.bf16.msra.mxu0 %v17020_v47 }
 0x961   : > { %17023 = vmatprep.subr.bf16.mxu0 %v17022_v55 }
 0x964   : > { %17025 = vmatpush1.bf16.msra.mxu0 %v17024_v57 }
 0x965   : > { %17027 = vmatprep.subr.bf16.mxu0 %v17026_v61 }
 0x968   : > { %17029 = vmatpush1.bf16.msra.mxu0 %v17028_v1 }
 0x969   : > { %17031 = vmatprep.subr.bf16.mxu0 %v17030_v7 }
 0x96c   : > { %17033 = vmatpush1.bf16.msra.mxu0 %v17032_v11 }
 0x96d   : > { %16595 = vmatprep.subr.mxu0 %v17876_v2 }
 0x9ed   : > { %v3452_v0 = vpop.xlane.xlu0 %3451 }
 0x9ee   : > { %v3453_v31 = vmul.f32 0.015625, %v3452_v0 }
 0x9f0   : > { %v3454_v33 = vsub.f32 %v3447_v30, %v3453_v31 }
 0x9f2   : > { %v3455_v36 = vmul.f32 %v3454_v33, %v3454_v33 }
 0x9f4   : > { %v3456_v37 = vsel %vm429_vm2, %v3455_v36, 0.0 }
 0x9f5   : > { %3457 = vadd.xlane.f32.xlu1 %v3456_v37 }
 0xa82   : > { %v3458_v32 = vpop.xlane.xlu1 %3457 }
 0xa83   : > { %v3459_v12 = vmul.f32 0.015625, %v3458_v32 }
 0xa85   : > { %v3460_v13 = vadd.f32 1e-05, %v3459_v12 }
 0xa87   : > { %17765 = vrsqrt.f32 %v3460_v13 }
 0xa91   : > { %v17766_v14 = vpop.eup %17765 }
 0xa92   : > { %v3462_v16 = vmul.f32 %v17766_v14, %v3454_v33 }
 0xa94   : > { %v3463_v17 = vmul.f32 %v3462_v16, %v3448_v15 }
 0xa96   : > { %v18881_v18 = vadd.f32 %v3463_v17, %v3449_v53  ;;  %v4212_v53 = vld [vmem:[%s21813_s5 + $0x220] sm:$0xff]  ;;  %v4213_v17 = vld [vmem:[%s21813_s5 + $0x230] sm:$0xff] }
 0xa98   : > { %14944 = vmatmul.mubr.msk.f32.vlgmr.msra.gmra.mrb[40].mxu0 %vm429_vm2, %v18881_v18 }
 0xa99   : > { %16597 = vmatprep.mubr.msk.f32.mxu0 %vm17877_vm0, %v17876_v2 }
 0xb6b   : > { %v3563_v34 = vpop.f32.mrb[40].mxu0 }
 0xb6c   : > { %v3564_v21 = vadd.f32 %v3563_v34, %v3487_v20  ;;  %v3565_v22 = vpop.f32.mrb[41].mxu0  ;;  %v17035_v20 = vpack.c.bf16 %v4213_v17, %v4212_v53  ;;  %v4215_v34 = vld [vmem:[%s21813_s5 + $0x250] sm:$0xff]  ;;  %v4336_v53 = vld [vmem:[%s21814_s6 + $0x2c0] sm:$0xff]  ;;  %v4329_v17 = vld [vmem:[%s21814_s6 + $0x288] sm:$0xff] }
 0xb6d   : > { %v18893_v63 = vadd.f32 %v3565_v22, %v3491_v26  ;;  %v4216_v22 = vld [vmem:[%s21813_s5 + $0x260] sm:$0xff]  ;;  %v4217_v26 = vld [vmem:[%s21813_s5 + $0x270] sm:$0xff] }
 0xb6e   : > { %3571 = vrot.lane.b32.xlu0 %v3564_v21, %s17878_s11  ;;  %v3568_v27 = vmul.f32 0.25, %v3564_v21  ;;  %v17038_v21 = vpack.c.bf16 %v4215_v34, %v4214_v19 }
 0xb6f   : > { %v3745_v0 = vmul.f32 %v18039_v50, %v18893_v63 }
 0xb70   : > { %v3569_v30 = vmul.f32 %v18026_v44, %v3568_v27  ;;  %v3660_v54 = vmul.f32 %v18039_v50, %v3568_v27  ;;  %v3892_v31 = vmul.f32 %v18029_v45, %v3568_v27  ;;  %v4052_v33 = vmul.f32 %v18042_v51, %v3568_v27 }
 0xb71   : > { %v17041_v27 = vpack.c.bf16 %v4217_v26, %v4216_v22  ;;  %v4344_v26 = vld [vmem:[%s21814_s6 + $0x300] sm:$0xff] }
 0xbe0   : > { %v3572_v29 = vpop.permute.xlu0 %3571 }
 0xbe1   : > { %16596 = vmatpush3.xpose.msk.msra.mxu0 %vm429_vm2, %v3572_v29  ;;  %16601 = vmatpush3.xpose.msk.msra.mxu1 %vm429_vm2, %v3572_v29 }
 0xbe2   : > { %16605 = vmatprep.subr.mxu0 %v17876_v2  ;;  %16615 = vmatprep.subr.mxu1 %v17876_v2 }
 0xbe4   : > { %16598 = vmatmul.mubr.msk.f32.vlgmr.msra.gmra.mrb[42].mxu0 %vm429_vm2, %v3569_v30  ;;  %16603 = vmatmul.mubr.msk.f32.vlgmr.msra.gmra.mrb[40].mxu1 %vm429_vm2, %v3660_v54  ;;  %v4219_v30 = vld [vmem:[%s21813_s5 + $0x290] sm:$0xff] }
 0xbe5   : > { %16606 = vmatpush3.msra.mxu0 %v3745_v0  ;;  %16616 = vmatpush3.xpose.msk.msra.mxu1 %vm429_vm2, %v3572_v29 }
 0xbe6   : > { %16617 = vmatprep.mubr.msk.f32.mxu1 %vm17877_vm0, %v17876_v2  ;;  %16625 = vmatprep.subr.mxu1 %v17876_v2 }
 0xbe7   : > { %16607 = vmatprep.mubr.msk.f32.mxu0 %vm17877_vm0, %v17876_v2  ;;  %16610 = vmatprep.subr.mxu0 %v17876_v2 }
 0xbe8   : > { %16618 = vmatmul.mubr.msk.f32.vlgmr.msra.gmra.mrb[42].mxu1 %vm429_vm2, %v3892_v31 }
 0xbe9   : > { %16626 = vmatpush3.xpose.msk.msra.mxu1 %vm429_vm2, %v3572_v29  ;;  %16627 = vmatprep.mubr.msk.f32.mxu1 %vm17877_vm0, %v17876_v2  ;;  %v4218_v29 = vld [vmem:[%s21813_s5 + $0x280] sm:$0xff] }
 0xbea   : > { %17034 = vmatprep.subr.bf16.mxu1 %v17879_v28  ;;  %v17044_v54 = vpack.c.bf16 %v4219_v30, %v4218_v29  ;;  %v4345_v29 = vld [vmem:[%s21814_s6 + $0x308] sm:$0xff] }
 0xbec   : > { %16628 = vmatmul.mubr.msk.f32.vlgmr.msra.gmra.mrb[44].mxu1 %vm429_vm2, %v4052_v33 }
 0xbed   : > { %16651 = vmatprep.mubr.msk.f32.mxu1 %vm17877_vm0, %v17876_v2  ;;  %17036 = vmatpush3.bf16.msra.mxu1 %v17035_v20  ;;  %v4337_v20 = vld [vmem:[%s21814_s6 + $0x2c8] sm:$0xff] }
 0xbee   : > { %17037 = vmatprep.subr.bf16.mxu1 %v17879_v28  ;;  %v14979_v22 = vcombine.high %v4329_v17, %v4337_v20 }
 0xbf1   : > { %17039 = vmatpush3.bf16.msra.mxu1 %v17038_v21  ;;  %v14978_v21 = vcombine.low %v4329_v17, %v4337_v20  ;;  %v4355_v17 = vld [vmem:[%s21814_s6 + $0x358] sm:$0xff] }
 0xbf2   : > { %17040 = vmatprep.subr.bf16.mxu1 %v17879_v28 }
 0xbf5   : > { %17042 = vmatpush3.bf16.msra.mxu1 %v17041_v27  ;;  %v4352_v27 = vld [vmem:[%s21814_s6 + $0x340] sm:$0xff] }
 0xbf6   : > { %17043 = vmatprep.subr.bf16.mxu1 %v17879_v28  ;;  %v14993_v30 = vcombine.high %v4344_v26, %v4352_v27 }
 0xbf9   : > { %17045 = vmatpush3.bf16.msra.mxu1 %v17044_v54  ;;  %v4353_v54 = vld [vmem:[%s21814_s6 + $0x348] sm:$0xff] }
 0xcb7   : > { %v3644_v36 = vpop.f32.mrb[42].mxu0  ;;  %v3730_v37 = vpop.f32.mrb[40].mxu1 }
 0xcb8   : > { %v16599_v38 = vpop.f32.mrb[43].mxu0  ;;  %v16604_v39 = vpop.f32.mrb[41].mxu1  ;;  %v3734_v43 = vsel %vm325_vm1, %v3730_v37, -inf  ;;  %v3648_v47 = vsel %vm325_vm1, %v3644_v36, -inf }
 0xcb9   : > { %3735 = vmax.xlane.f32.xlu1 %v3734_v43  ;;  %v3659_v38 = vmul.f32 %v18026_v44, %v18893_v63 }
 0xcbb   : > { %v3962_v9 = vpop.f32.mrb[42].mxu1 }
 0xcbc   : > { %v16619_v46 = vpop.f32.mrb[43].mxu1  ;;  %v3966_v55 = vsel %vm325_vm1, %v3962_v9, -inf }
 0xcbd   : > { %3649 = vmax.xlane.f32.xlu1 %v3648_v47  ;;  %v3977_v46 = vmul.f32 %v18029_v45, %v18893_v63 }
 0xcbf   : > { %v4122_v48 = vpop.f32.mrb[44].mxu1 }
 0xcc0   : > { %v16629_v49 = vpop.f32.mrb[45].mxu1  ;;  %v4126_v24 = vsel %vm325_vm1, %v4122_v48, -inf }
 0xcc1   : > { %3967 = vmax.xlane.f32.xlu1 %v3966_v55  ;;  %v4137_v49 = vmul.f32 %v18042_v51, %v18893_v63  ;;  %v4220_v63 = vld [vmem:[%s21811_s3 + $0x17] ss:$0 sm:$0xff] }
 0xcc5   : > { %4127 = vmax.xlane.f32.xlu1 %v4126_v24 }
 0xd46   : > { %v3736_v56 = vpop.xlane.xlu1 %3735 }
 0xd47   : > { %v3737_v57 = vsub.f32 %v3730_v37, %v3736_v56 }
 0xd49   : > { %v3738_v59 = vmul.f32 1.442695, %v3737_v57 }
 0xd4a   : > { %v3650_v60 = vpop.xlane.xlu1 %3649 }
 0xd4b   : > { %17767 = vpow2.f32 %v3738_v59  ;;  %v3651_v61 = vsub.f32 %v3644_v36, %v3650_v60 }
 0xd4d   : > { %v3652_v10 = vmul.f32 1.442695, %v3651_v61 }
 0xd4e   : > { %v3968_v62 = vpop.xlane.xlu1 %3967 }
 0xd4f   : > { %17769 = vpow2.f32 %v3652_v10  ;;  %v3969_v1 = vsub.f32 %v3962_v9, %v3968_v62 }
 0xd51   : > { %v3970_v4 = vmul.f32 1.442695, %v3969_v1 }
 0xd52   : > { %v4128_v5 = vpop.xlane.xlu1 %4127 }
 0xd53   : > { %17771 = vpow2.f32 %v3970_v4  ;;  %v4129_v6 = vsub.f32 %v4122_v48, %v4128_v5 }
 0xd55   : > { %v17768_v7 = vpop.eup %17767  ;;  %v4130_v8 = vmul.f32 1.442695, %v4129_v6 }
 0xd56   : > { %v3740_v11 = vsel %vm325_vm1, %v17768_v7, 0.0 }
 0xd57   : > { %17773 = vpow2.f32 %v4130_v8  ;;  %3741 = vadd.xlane.f32.xlu1 %v3740_v11  ;;  %v4312_v8 = vld [vmem:[%s21814_s6 + $0x200] sm:$0xff]  ;;  %v4313_v11 = vld [vmem:[%s21814_s6 + $0x208] sm:$0xff] }
 0xd59   : > { %v17770_v32 = vpop.eup %17769 }
 0xd5a   : > { %v3654_v12 = vsel %vm325_vm1, %v17770_v32, 0.0 }
 0xd5b   : > { %3655 = vadd.xlane.f32.xlu1 %v3654_v12  ;;  %v4321_v12 = vld [vmem:[%s21814_s6 + $0x248] sm:$0xff] }
 0xd5d   : > { %v17772_v13 = vpop.eup %17771 }
 0xd5e   : > { %v3972_v14 = vsel %vm325_vm1, %v17772_v13, 0.0 }
 0xd5f   : > { %3973 = vadd.xlane.f32.xlu0 %v3972_v14  ;;  %v14962_v14 = vcombine.low %v4313_v11, %v4321_v12 }
 0xd61   : > { %v17774_v15 = vpop.eup %17773 }
 0xd62   : > { %v4132_v16 = vsel %vm325_vm1, %v17774_v15, 0.0 }
 0xd63   : > { %4133 = vadd.xlane.f32.xlu1 %v4132_v16  ;;  %v4328_v16 = vld [vmem:[%s21814_s6 + $0x280] sm:$0xff] }
 0xd64   : > { %v14977_v19 = vcombine.high %v4328_v16, %v4336_v53  ;;  %v14976_v34 = vcombine.low %v4328_v16, %v4336_v53  ;;  %v4354_v16 = vld [vmem:[%s21814_s6 + $0x350] sm:$0xff]  ;;  %v4347_v53 = vld [vmem:[%s21814_s6 + $0x318] sm:$0xff] }
 0xde4   : > { %v3742_v0 = vpop.xlane.xlu1 %3741 }
 0xde5   : > { %17775 = vrcp.f32 %v3742_v0  ;;  %v14992_v0 = vcombine.low %v4344_v26, %v4352_v27  ;;  %v4370_v26 = vld [vmem:[%s21814_s6 + $0x3d0] sm:$0xff]  ;;  %v4363_v27 = vld [vmem:[%s21814_s6 + $0x398] sm:$0xff] }
 0xde8   : > { %v3656_v31 = vpop.xlane.xlu1 %3655 }
 0xde9   : > { %17777 = vrcp.f32 %v3656_v31  ;;  %v14994_v31 = vcombine.low %v4345_v29, %v4353_v54 }
 0xdec   : > { %v3974_v37 = vpop.xlane.xlu0 %3973 }
 0xded   : > { %17779 = vrcp.f32 %v3974_v37  ;;  %v4368_v37 = vld [vmem:[%s21814_s6 + $0x3c0] sm:$0xff] }
 0xdef   : > { %v17776_v33 = vpop.eup %17775 }
 0xdf0   : > { %v3744_v36 = vmul.f32 %v17776_v33, %v17768_v7  ;;  %v4134_v9 = vpop.xlane.xlu1 %4133  ;;  %v14995_v33 = vcombine.high %v4345_v29, %v4353_v54  ;;  %v4371_v29 = vld [vmem:[%s21814_s6 + $0x3d8] sm:$0xff]  ;;  %v14998_v54 = vcombine.low %v4347_v53, %v4355_v17 }
 0xdf1   : > { %17781 = vrcp.f32 %v4134_v9 }
 0xdf2   : > { %16608 = vmatmul.mubr.msk.f32.vlgmr.msra.gmra.mrb[44].mxu0 %vm325_vm1, %v3744_v36  ;;  %v4360_v36 = vld [vmem:[%s21814_s6 + $0x380] sm:$0xff] }
 0xdf3   : > { %16611 = vmatpush3.msra.mxu0 %v3659_v38  ;;  %16612 = vmatprep.mubr.msk.f32.mxu0 %vm17877_vm0, %v17876_v2  ;;  %v17778_v39 = vpop.eup %17777  ;;  %v4361_v38 = vld [vmem:[%s21814_s6 + $0x388] sm:$0xff]  ;;  %v15008_v9 = vcombine.low %v4360_v36, %v4368_v37 }
 0xdf4   : > { %16620 = vmatprep.subr.mxu0 %v17876_v2  ;;  %v3658_v43 = vmul.f32 %v17778_v39, %v17770_v32  ;;  %v15009_v39 = vcombine.high %v4360_v36, %v4368_v37  ;;  %v4324_v36 = vld [vmem:[%s21814_s6 + $0x260] sm:$0xff]  ;;  %v4317_v37 = vld [vmem:[%s21814_s6 + $0x228] sm:$0xff] }
 0xdf7   : > { %v17780_v47 = vpop.eup %17779 }
 0xdf8   : > { %v3976_v48 = vmul.f32 %v17780_v47, %v17772_v13 }
 0xdfa   : > { %16613 = vmatmul.mubr.msk.f32.vlgmr.msra.gmra.mrb[44].mxu0 %vm325_vm1, %v3658_v43  ;;  %v4369_v43 = vld [vmem:[%s21814_s6 + $0x3c8] sm:$0xff] }
 0xdfb   : > { %16621 = vmatpush3.msra.mxu0 %v3977_v46  ;;  %16622 = vmatprep.mubr.msk.f32.mxu0 %vm17877_vm0, %v17876_v2  ;;  %v17782_v55 = vpop.eup %17781  ;;  %v15010_v46 = vcombine.low %v4361_v38, %v4369_v43  ;;  %v15011_v47 = vcombine.high %v4361_v38, %v4369_v43  ;;  %v4325_v38 = vld [vmem:[%s21814_s6 + $0x268] sm:$0xff]  ;;  %v15014_v43 = vcombine.low %v4363_v27, %v4371_v29 }
 0xdfc   : > { %16630 = vmatprep.subr.mxu0 %v17876_v2  ;;  %v4136_v24 = vmul.f32 %v17782_v55, %v17774_v15  ;;  %v14963_v15 = vcombine.high %v4313_v11, %v4321_v12  ;;  %v4315_v55 = vld [vmem:[%s21814_s6 + $0x218] sm:$0xff] }
 0xdfd   : > { %v4331_v11 = vld [vmem:[%s21814_s6 + $0x298] sm:$0xff] }
 0xdfe   : > { %5084 = vmatprep.subr.bf16.mxu1 %v14963_v15  ;;  %v4346_v15 = vld [vmem:[%s21814_s6 + $0x310] sm:$0xff] }
 0xe02   : > { %16623 = vmatmul.mubr.msk.f32.vlgmr.msra.gmra.mrb[44].mxu0 %vm325_vm1, %v3976_v48  ;;  %v4314_v48 = vld [vmem:[%s21814_s6 + $0x210] sm:$0xff] }
 0xe03   : > { %16631 = vmatpush3.msra.mxu0 %v4137_v49  ;;  %16632 = vmatprep.mubr.msk.f32.mxu0 %vm17877_vm0, %v17876_v2  ;;  %v4322_v49 = vld [vmem:[%s21814_s6 + $0x250] sm:$0xff] }
 0xe0a   : > { %16633 = vmatmul.mubr.msk.f32.vlgmr.msra.gmra.mrb[44].mxu0 %vm325_vm1, %v4136_v24  ;;  %v14964_v24 = vcombine.low %v4314_v48, %v4322_v49 }
 0xe0b   : > { %5075 = vmatprep.mubr.bf16.mxu0 %v17880_v58 }
 0xedd   : > { %v4207_v56 = vpop.f32.mrb[44].mxu0 }
 0xede   : > { %v16634_v57 = vpop.f32.mrb[45].mxu0  ;;  %16652 = vmatmul.mubr.msk.f32.vlgmr.msra.gmra.mrb[46].mxu1 %vm429_vm2, %v4207_v56  ;;  %v14965_v56 = vcombine.high %v4314_v48, %v4322_v49  ;;  %v4340_v48 = vld [vmem:[%s21814_s6 + $0x2e0] sm:$0xff]  ;;  %v4333_v49 = vld [vmem:[%s21814_s6 + $0x2a8] sm:$0xff] }
 0xedf   : > { %5116 = vmatprep.mubr.bf16.mxu1 %v17880_v58  ;;  %5085 = vmatpush1.bf16.msra.mxu1 %v14962_v14  ;;  %v4323_v57 = vld [vmem:[%s21814_s6 + $0x258] sm:$0xff] }
 0xee0   : > { %5086 = vmatprep.subr.bf16.mxu1 %v14979_v22  ;;  %v4362_v22 = vld [vmem:[%s21814_s6 + $0x390] sm:$0xff] }
 0xee3   : > { %5087 = vmatpush1.bf16.msra.mxu1 %v14978_v21  ;;  %v14999_v21 = vcombine.high %v4347_v53, %v4355_v17  ;;  %v4326_v53 = vld [vmem:[%s21814_s6 + $0x270] sm:$0xff]  ;;  %v4319_v17 = vld [vmem:[%s21814_s6 + $0x238] sm:$0xff] }
 0xee4   : > { %5088 = vmatprep.subr.bf16.mxu1 %v14995_v33  ;;  %v4316_v33 = vld [vmem:[%s21814_s6 + $0x220] sm:$0xff] }
 0xee7   : > { %5089 = vmatpush1.bf16.msra.mxu1 %v14994_v31  ;;  %v15015_v31 = vcombine.high %v4363_v27, %v4371_v29  ;;  %v4342_v27 = vld [vmem:[%s21814_s6 + $0x2f0] sm:$0xff]  ;;  %v4335_v29 = vld [vmem:[%s21814_s6 + $0x2b8] sm:$0xff] }
 0xee8   : > { %5090 = vmatprep.subr.bf16.mxu1 %v15011_v47  ;;  %v4332_v47 = vld [vmem:[%s21814_s6 + $0x2a0] sm:$0xff] }
 0xeeb   : > { %5091 = vmatpush1.bf16.msra.mxu1 %v15010_v46  ;;  %v14971_v46 = vcombine.high %v4317_v37, %v4325_v38 }
 0xfb1   : > { %v4290_v59 = vpop.f32.mrb[46].mxu1 }
 0xfb2   : > { %v4291_v60 = vadd.f32 %v4290_v59, %v4220_v63  ;;  %v16653_v61 = vpop.f32.mrb[47].mxu1  ;;  %v14966_v63 = vcombine.low %v4315_v55, %v4323_v57  ;;  %v14967_v59 = vcombine.high %v4315_v55, %v4323_v57  ;;  %v4341_v55 = vld [vmem:[%s21814_s6 + $0x2e8] sm:$0xff]  ;;  %v14985_v57 = vcombine.high %v4332_v47, %v4340_v48 }
 0xfb4   : > { %v4294_v10 = vadd.f32 %v4291_v60, %v18881_v18  ;;  %v4320_v18 = vld [vmem:[%s21814_s6 + $0x240] sm:$0xff]  ;;  %5166 = vmatprep.subr.bf16.mxu1 %v14967_v59 }
 0xfb5   : > { %v14961_v32 = vcombine.high %v4312_v8, %v4320_v18  ;;  %v14960_v13 = vcombine.low %v4312_v8, %v4320_v18  ;;  %v4330_v8 = vld [vmem:[%s21814_s6 + $0x290] sm:$0xff]  ;;  %v4348_v59 = vld [vmem:[%s21814_s6 + $0x320] sm:$0xff] }
 0xfb6   : > { %v4297_v62 = vsel %vm429_vm2, %v4294_v10, 0.0  ;;  %v4338_v18 = vld [vmem:[%s21814_s6 + $0x2d0] sm:$0xff] }
 0xfb7   : > { %4298 = vadd.xlane.f32.xlu1 %v4297_v62  ;;  %5043 = vmatprep.subr.bf16.mxu0 %v14961_v32 }
 0xfb8   : > { %5044 = vmatpush1.bf16.msra.mxu0 %v14960_v13  ;;  %v14981_v13 = vcombine.high %v4330_v8, %v4338_v18 }
 0xfb9   : > { %5045 = vmatprep.subr.bf16.mxu0 %v14977_v19  ;;  %v14980_v19 = vcombine.low %v4330_v8, %v4338_v18  ;;  %v4372_v8 = vld [vmem:[%s21814_s6 + $0x3e0] sm:$0xff]  ;;  %v4365_v18 = vld [vmem:[%s21814_s6 + $0x3a8] sm:$0xff] }
 0xfbc   : > { %5046 = vmatpush1.bf16.msra.mxu0 %v14976_v34  ;;  %v14997_v34 = vcombine.high %v4346_v15, %v4354_v16 }
 0xfbd   : > { %5047 = vmatprep.subr.bf16.mxu0 %v14993_v30  ;;  %v14996_v30 = vcombine.low %v4346_v15, %v4354_v16  ;;  %v4318_v16 = vld [vmem:[%s21814_s6 + $0x230] sm:$0xff] }
 0xfc0   : > { %5048 = vmatpush1.bf16.msra.mxu0 %v14992_v0  ;;  %v15013_v0 = vcombine.high %v4362_v22, %v4370_v26 }
 0xfc1   : > { %5049 = vmatprep.subr.bf16.mxu0 %v15009_v39  ;;  %v15012_v39 = vcombine.low %v4362_v22, %v4370_v26  ;;  %v4334_v26 = vld [vmem:[%s21814_s6 + $0x2b0] sm:$0xff] }
 0xfc4   : > { %5050 = vmatpush1.bf16.msra.mxu0 %v15008_v9  ;;  %v14969_v9 = vcombine.high %v4316_v33, %v4324_v36 }
 0xfc5   : > { %5125 = vmatprep.subr.bf16.mxu0 %v14965_v56  ;;  %v14970_v56 = vcombine.low %v4317_v37, %v4325_v38  ;;  %v4358_v37 = vld [vmem:[%s21814_s6 + $0x370] sm:$0xff]  ;;  %v4351_v38 = vld [vmem:[%s21814_s6 + $0x338] sm:$0xff] }
0x1044   : > { %v4299_v1 = vpop.xlane.xlu1 %4298 }
0x1045   : > { %v4300_v4 = vmul.f32 0.015625, %v4299_v1  ;;  %v4295_v1 = vld [vmem:[%s21811_s3 + $0x21] ss:$0 sm:$0xff] }
0x1047   : > { %v18983_v5 = vsub.f32 %v4294_v10, %v4300_v4 }
0x1049   : > { %v4302_v6 = vmul.f32 %v18983_v5, %v18983_v5 }
0x104b   : > { %v4303_v7 = vsel %vm429_vm2, %v4302_v6, 0.0  ;;  %v4296_v6 = vld [vmem:[%s21811_s3 + $0x22] ss:$0 sm:$0xff] }
0x104c   : > { %4304 = vadd.xlane.f32.xlu1 %v4303_v7 }
0x10d9   : > { %v4305_v60 = vpop.xlane.xlu1 %4304 }
0x10da   : > { %v4306_v61 = vmul.f32 0.015625, %v4305_v60  ;;  %v4356_v60 = vld [vmem:[%s21814_s6 + $0x360] sm:$0xff] }
0x10dc   : > { %v4307_v10 = vadd.f32 1e-05, %v4306_v61  ;;  %v4349_v61 = vld [vmem:[%s21814_s6 + $0x328] sm:$0xff] }
0x10de   : > { %17783 = vrsqrt.f32 %v4307_v10  ;;  %v4357_v10 = vld [vmem:[%s21814_s6 + $0x368] sm:$0xff] }
0x10e8   : > { %v17784_v62 = vpop.eup %17783 }
0x10e9   : > { %v4309_v4 = vmul.f32 %v17784_v62, %v18983_v5  ;;  %v4339_v5 = vld [vmem:[%s21814_s6 + $0x2d8] sm:$0xff]  ;;  %v14984_v62 = vcombine.low %v4332_v47, %v4340_v48  ;;  %v4366_v48 = vld [vmem:[%s21814_s6 + $0x3b0] sm:$0xff] }
0x10ea   : > { %v14983_v14 = vcombine.high %v4331_v11, %v4339_v5  ;;  %v14982_v20 = vcombine.low %v4331_v11, %v4339_v5  ;;  %v4373_v11 = vld [vmem:[%s21814_s6 + $0x3e8] sm:$0xff]  ;;  %v15000_v5 = vcombine.low %v4348_v59, %v4356_v60 }
0x10eb   : > { %v4310_v7 = vmul.f32 %v4309_v4, %v4295_v1  ;;  %v14986_v1 = vcombine.low %v4333_v49, %v4341_v55  ;;  %v15001_v4 = vcombine.high %v4348_v59, %v4356_v60  ;;  %v15019_v15 = vcombine.high %v4365_v18, %v4373_v11 }
0x10ed   : > { %v19067_v32 = vadd.f32 %v4310_v7, %v4296_v6  ;;  %v15003_v6 = vcombine.high %v4349_v61, %v4357_v10  ;;  %v4364_v7 = vld [vmem:[%s21814_s6 + $0x3a0] sm:$0xff] }
0x10ef   : > { %v19071_v12 = vpack.c.bf16 %v19067_v32, %v19067_v32 }
0x10f1   : > { %15024 = vmatmul.mubr.msk.bf16.vlgmr.msra.gmra.mrb[48].mxu0 %vm429_vm2, %v19071_v12  ;;  %15025 = vmatmul.mubr.msk.bf16.vlgmr.msra.gmra.mrb[48].mxu1 %vm429_vm2, %v19071_v12 }
0x10f2   : > { %5126 = vmatpush1.bf16.msra.mxu0 %v14964_v24  ;;  %5167 = vmatpush1.bf16.msra.mxu1 %v14966_v63  ;;  %v14968_v24 = vcombine.low %v4316_v33, %v4324_v36  ;;  %v14987_v63 = vcombine.high %v4333_v49, %v4341_v55  ;;  %v4350_v36 = vld [vmem:[%s21814_s6 + $0x330] sm:$0xff]  ;;  %v4367_v55 = vld [vmem:[%s21814_s6 + $0x3b8] sm:$0xff] }
0x10f3   : > { %5127 = vmatprep.subr.bf16.mxu0 %v14981_v13  ;;  %5168 = vmatprep.subr.bf16.mxu1 %v14983_v14  ;;  %v15002_v13 = vcombine.low %v4349_v61, %v4357_v10  ;;  %v15017_v14 = vcombine.high %v4364_v7, %v4372_v8  ;;  %v4374_v49 = vld [vmem:[%s21814_s6 + $0x3f0] sm:$0xff]  ;;  %v17363_v10 = vld [vmem:[%s21815_s7 + $0x440] sm:$0xff]  }
0x10f4   : > { %5157 = vmatprep.mubr.bf16.mxu0 %v17880_v58  ;;  %5198 = vmatprep.mubr.bf16.mxu1 %v17880_v58  ;;  %v15020_v60 = vcombine.low %v4366_v48, %v4374_v49 }
0x10f6   : > { %5128 = vmatpush1.bf16.msra.mxu0 %v14980_v19  ;;  %5169 = vmatpush1.bf16.msra.mxu1 %v14982_v20  ;;  %v4327_v19 = vld [vmem:[%s21814_s6 + $0x278] sm:$0xff]  ;;  %v15016_v20 = vcombine.low %v4364_v7, %v4372_v8  ;;  %v17368_v7 = vld [vmem:[%s21815_s7 + $0x4c8] sm:$0xff]  }
0x10f7   : > { %5129 = vmatprep.subr.bf16.mxu0 %v14997_v34  ;;  %5170 = vmatprep.subr.bf16.mxu1 %v14999_v21  ;;  %v15018_v34 = vcombine.low %v4365_v18, %v4373_v11  ;;  %v14973_v21 = vcombine.high %v4318_v16, %v4326_v53  ;;  %v14975_v22 = vcombine.high %v4319_v17, %v4327_v19  ;;  %v17369_v8 = vld [vmem:[%s21815_s7 + $0x408] sm:$0xff]   ;;  %v17371_v11 = vld [vmem:[%s21815_s7 + $0x450] sm:$0xff]  }
0x10f8   : > { %v17370_v18 = vld [vmem:[%s21815_s7 + $0x488] sm:$0xff]  }
0x10fa   : > { %5130 = vmatpush1.bf16.msra.mxu0 %v14996_v30  ;;  %5171 = vmatpush1.bf16.msra.mxu1 %v14998_v54  ;;  %v4343_v30 = vld [vmem:[%s21814_s6 + $0x2f8] sm:$0xff]  ;;  %v14972_v54 = vcombine.low %v4318_v16, %v4326_v53 }
0x10fb   : > { %5131 = vmatprep.subr.bf16.mxu0 %v15013_v0  ;;  %5172 = vmatprep.subr.bf16.mxu1 %v15015_v31  ;;  %v14974_v0 = vcombine.low %v4319_v17, %v4327_v19  ;;  %v14989_v31 = vcombine.high %v4334_v26, %v4342_v27  ;;  %v14991_v33 = vcombine.high %v4335_v29, %v4343_v30  ;;  %v17377_v16 = vld [vmem:[%s21815_s7 + $0x418] sm:$0xff]   ;;  %v17379_v17 = vld [vmem:[%s21815_s7 + $0x460] sm:$0xff]  }
0x10fc   : > { %v17378_v53 = vld [vmem:[%s21815_s7 + $0x498] sm:$0xff]   ;;  %v17380_v19 = vld [vmem:[%s21815_s7 + $0x4e0] sm:$0xff]  }
0x10fe   : > { %5132 = vmatpush1.bf16.msra.mxu0 %v15012_v39  ;;  %5173 = vmatpush1.bf16.msra.mxu1 %v15014_v43  ;;  %v4359_v39 = vld [vmem:[%s21814_s6 + $0x378] sm:$0xff]  ;;  %v14988_v43 = vcombine.low %v4334_v26, %v4342_v27  ;;  %v17385_v26 = vld [vmem:[%s21815_s7 + $0x428] sm:$0xff]  }
0x10ff   : > { %5207 = vmatprep.subr.bf16.mxu0 %v14969_v9  ;;  %5248 = vmatprep.subr.bf16.mxu1 %v14971_v46  ;;  %v14990_v9 = vcombine.low %v4335_v29, %v4343_v30  ;;  %v15005_v46 = vcombine.high %v4350_v36, %v4358_v37  ;;  %v15007_v47 = vcombine.high %v4351_v38, %v4359_v39  ;;  %v17386_v27 = vld [vmem:[%s21815_s7 + $0x4a8] sm:$0xff]   ;;  %v17387_v29 = vld [vmem:[%s21815_s7 + $0x470] sm:$0xff]  }
0x1100   : > { %v17388_v30 = vld [vmem:[%s21815_s7 + $0x4f0] sm:$0xff]  }
0x1101   : > { %15026 = vmatmul.mubr.msk.bf16.vlgmr.msra.gmra.mrb[52].mxu0 %vm429_vm2, %v19071_v12  ;;  %15027 = vmatmul.mubr.msk.bf16.vlgmr.msra.gmra.mrb[52].mxu1 %vm429_vm2, %v19071_v12 }
0x1102   : > { %5208 = vmatpush1.bf16.msra.mxu0 %v14968_v24  ;;  %5249 = vmatpush1.bf16.msra.mxu1 %v14970_v56  ;;  %v4375_v24 = vld [vmem:[%s21814_s6 + $0x3f8] sm:$0xff]  ;;  %v15004_v56 = vcombine.low %v4350_v36, %v4358_v37 }
0x1103   : > { %5209 = vmatprep.subr.bf16.mxu0 %v14985_v57  ;;  %5250 = vmatprep.subr.bf16.mxu1 %v14987_v63  ;;  %v15006_v57 = vcombine.low %v4351_v38, %v4359_v39  ;;  %v15021_v63 = vcombine.high %v4366_v48, %v4374_v49  ;;  %v15023_v59 = vcombine.high %v4367_v55, %v4375_v24  ;;  %v17393_v36 = vld [vmem:[%s21815_s7 + $0x438] sm:$0xff]   ;;  %v17395_v38 = vld [vmem:[%s21815_s7 + $0x540] sm:$0xff]  }
0x1104   : > { %5239 = vmatprep.mubr.bf16.mxu0 %v17880_v58  ;;  %5280 = vmatprep.mubr.bf16.mxu1 %v17880_v58  ;;  %v15022_v61 = vcombine.low %v4367_v55, %v4375_v24  ;;  %v17394_v37 = vld [vmem:[%s21815_s7 + $0x4b8] sm:$0xff]   ;;  %v17396_v39 = vld [vmem:[%s21815_s7 + $0x5c0] sm:$0xff]  }
0x1106   : > { %5210 = vmatpush1.bf16.msra.mxu0 %v14984_v62  ;;  %5251 = vmatpush1.bf16.msra.mxu1 %v14986_v1  ;;  %v17364_v62 = vld [vmem:[%s21815_s7 + $0x4c0] sm:$0xff]  }
0x1107   : > { %5211 = vmatprep.subr.bf16.mxu0 %v15001_v4  ;;  %5252 = vmatprep.subr.bf16.mxu1 %v15003_v6  ;;  %v17365_v1 = vld [vmem:[%s21815_s7 + $0x400] sm:$0xff]   ;;  %v17367_v6 = vld [vmem:[%s21815_s7 + $0x448] sm:$0xff]  }
0x1108   : > { %v17366_v4 = vld [vmem:[%s21815_s7 + $0x480] sm:$0xff]  }
0x110a   : > { %5212 = vmatpush1.bf16.msra.mxu0 %v15000_v5  ;;  %5253 = vmatpush1.bf16.msra.mxu1 %v15002_v13  ;;  %v17373_v5 = vld [vmem:[%s21815_s7 + $0x410] sm:$0xff]  }
0x110b   : > { %5213 = vmatprep.subr.bf16.mxu0 %v15017_v14  ;;  %5254 = vmatprep.subr.bf16.mxu1 %v15019_v15  ;;  %v17374_v13 = vld [vmem:[%s21815_s7 + $0x490] sm:$0xff]   ;;  %v17375_v14 = vld [vmem:[%s21815_s7 + $0x458] sm:$0xff]  }
0x110c   : > { %v17376_v15 = vld [vmem:[%s21815_s7 + $0x4d8] sm:$0xff]  }
0x110e   : > { %5214 = vmatpush1.bf16.msra.mxu0 %v15016_v20  ;;  %5255 = vmatpush1.bf16.msra.mxu1 %v15018_v34  ;;  %v17381_v20 = vld [vmem:[%s21815_s7 + $0x420] sm:$0xff]  }
0x110f   : > { %5289 = vmatprep.subr.bf16.mxu0 %v14973_v21  ;;  %5330 = vmatprep.subr.bf16.mxu1 %v14975_v22  ;;  %v17382_v34 = vld [vmem:[%s21815_s7 + $0x4a0] sm:$0xff]   ;;  %v17383_v21 = vld [vmem:[%s21815_s7 + $0x468] sm:$0xff]  }
0x1110   : > { %v17384_v22 = vld [vmem:[%s21815_s7 + $0x4e8] sm:$0xff]  }
0x1111   : > { %15028 = vmatmul.mubr.msk.bf16.vlgmr.msra.gmra.mrb[56].mxu0 %vm429_vm2, %v19071_v12  ;;  %15029 = vmatmul.mubr.msk.bf16.vlgmr.msra.gmra.mrb[56].mxu1 %vm429_vm2, %v19071_v12 }
0x1112   : > { %5290 = vmatpush1.bf16.msra.mxu0 %v14972_v54  ;;  %5331 = vmatpush1.bf16.msra.mxu1 %v14974_v0  ;;  %v17389_v54 = vld [vmem:[%s21815_s7 + $0x430] sm:$0xff]  }
0x1113   : > { %5291 = vmatprep.subr.bf16.mxu0 %v14989_v31  ;;  %5332 = vmatprep.subr.bf16.mxu1 %v14991_v33  ;;  %v17390_v0 = vld [vmem:[%s21815_s7 + $0x4b0] sm:$0xff]   ;;  %v17391_v31 = vld [vmem:[%s21815_s7 + $0x478] sm:$0xff]  }
0x1114   : > { %5321 = vmatprep.mubr.bf16.mxu0 %v17880_v58  ;;  %5362 = vmatprep.mubr.bf16.mxu1 %v17880_v58  ;;  %v17392_v33 = vld [vmem:[%s21815_s7 + $0x4f8] sm:$0xff]  }
0x1116   : > { %5292 = vmatpush1.bf16.msra.mxu0 %v14988_v43  ;;  %5333 = vmatpush1.bf16.msra.mxu1 %v14990_v9  ;;  %v19320_v43 = vld [vmem:[%s21812_s4 + $0x1] ss:$4 sm:$0xff] }
0x1117   : > { %5293 = vmatprep.subr.bf16.mxu0 %v15005_v46  ;;  %5334 = vmatprep.subr.bf16.mxu1 %v15007_v47  ;;  %v4643_v9 = vrot.slane %v19320_v43, %v18015_v35  ;;  %v4651_v46 = vrot.slane %v19320_v43, %v18463_v23  ;;  %v4647_v47 = vrot.slane %v19320_v43, %v18023_v42 }
0x1118   : > { %v4655_v48 = vrot.slane %v19320_v43, %v18471_v25 }
0x111a   : > { %5294 = vmatpush1.bf16.msra.mxu0 %v15004_v56  ;;  %5335 = vmatpush1.bf16.msra.mxu1 %v15006_v57 }
0x111b   : > { %5295 = vmatprep.subr.bf16.mxu0 %v15021_v63  ;;  %5336 = vmatprep.subr.bf16.mxu1 %v15023_v59 }
0x111e   : > { %5296 = vmatpush1.bf16.msra.mxu0 %v15020_v60  ;;  %5337 = vmatpush1.bf16.msra.mxu1 %v15022_v61 }
0x111f   : > { %15856 = vmatprep.subr.bf16.mxu0 %v17363_v10  ;;  %15878 = vmatprep.subr.bf16.mxu1 %v17364_v62 }
0x1121   : > { %15030 = vmatmul.mubr.msk.bf16.vlgmr.msra.gmra.mrb[60].mxu0 %vm429_vm2, %v19071_v12  ;;  %15031 = vmatmul.mubr.msk.bf16.vlgmr.msra.gmra.mrb[60].mxu1 %vm429_vm2, %v19071_v12  ;;  %v17372_v12 = vld [vmem:[%s21815_s7 + $0x4d0] sm:$0xff]  }
0x1122   : > { %15857 = vmatpush3.bf16.msra.mxu0 %v17365_v1  ;;  %15879 = vmatpush3.bf16.msra.mxu1 %v17366_v4 }
0x1123   : > { %15858 = vmatprep.subr.bf16.mxu0 %v17367_v6  ;;  %15880 = vmatprep.subr.bf16.mxu1 %v17368_v7 }
0x1126   : > { %15859 = vmatpush3.bf16.msra.mxu0 %v17369_v8  ;;  %15881 = vmatpush3.bf16.msra.mxu1 %v17370_v18 }
0x1127   : > { %15860 = vmatprep.subr.bf16.mxu0 %v17371_v11  ;;  %15882 = vmatprep.subr.bf16.mxu1 %v17372_v12  ;;  %v17397_v12 = vld [vmem:[%s21815_s7 + $0x500] sm:$0xff]  }
0x112a   : > { %15861 = vmatpush3.bf16.msra.mxu0 %v17373_v5  ;;  %15883 = vmatpush3.bf16.msra.mxu1 %v17374_v13  ;;  %v17398_v5 = vld [vmem:[%s21815_s7 + $0x580] sm:$0xff]  }
0x112b   : > { %15862 = vmatprep.subr.bf16.mxu0 %v17375_v14  ;;  %15884 = vmatprep.subr.bf16.mxu1 %v17376_v15  ;;  %v17399_v15 = vld [vmem:[%s21815_s7 + $0x548] sm:$0xff]  }
0x112e   : > { %15863 = vmatpush3.bf16.msra.mxu0 %v17377_v16  ;;  %15885 = vmatpush3.bf16.msra.mxu1 %v17378_v53  ;;  %v17400_v16 = vld [vmem:[%s21815_s7 + $0x5c8] sm:$0xff]  }
0x112f   : > { %15864 = vmatprep.subr.bf16.mxu0 %v17379_v17  ;;  %15886 = vmatprep.subr.bf16.mxu1 %v17380_v19  ;;  %v17401_v53 = vld [vmem:[%s21815_s7 + $0x508] sm:$0xff]   ;;  %v17403_v19 = vld [vmem:[%s21815_s7 + $0x550] sm:$0xff]  }
0x1130   : > { %v17402_v17 = vld [vmem:[%s21815_s7 + $0x588] sm:$0xff]  }
0x1132   : > { %15865 = vmatpush3.bf16.msra.mxu0 %v17381_v20  ;;  %15887 = vmatpush3.bf16.msra.mxu1 %v17382_v34  ;;  %v17404_v20 = vld [vmem:[%s21815_s7 + $0x5d0] sm:$0xff]   ;;  %v4663_v34 = vrot.slane %v19320_v43, %v18500_v52 }
0x1133   : > { %15866 = vmatprep.subr.bf16.mxu0 %v17383_v21  ;;  %15888 = vmatprep.subr.bf16.mxu1 %v17384_v22  ;;  %v4671_v21 = vrot.slane %v19320_v43, %v18503_v3  ;;  %v17405_v22 = vld [vmem:[%s21815_s7 + $0x510] sm:$0xff]  }
0x1136   : > { %15867 = vmatpush3.bf16.msra.mxu0 %v17385_v26  ;;  %15889 = vmatpush3.bf16.msra.mxu1 %v17386_v27  ;;  %v17406_v26 = vld [vmem:[%s21815_s7 + $0x590] sm:$0xff]   ;;  %v17407_v27 = vld [vmem:[%s21815_s7 + $0x558] sm:$0xff]  }
0x1137   : > { %15868 = vmatprep.subr.bf16.mxu0 %v17387_v29  ;;  %15890 = vmatprep.subr.bf16.mxu1 %v17388_v30  ;;  %v17408_v29 = vld [vmem:[%s21815_s7 + $0x5d8] sm:$0xff]  }
0x113a   : > { %15869 = vmatpush3.bf16.msra.mxu0 %v17389_v54  ;;  %15891 = vmatpush3.bf16.msra.mxu1 %v17390_v0 }
0x113b   : > { %15870 = vmatprep.subr.bf16.mxu0 %v17391_v31  ;;  %15892 = vmatprep.subr.bf16.mxu1 %v17392_v33 }
0x113e   : > { %15871 = vmatpush3.bf16.msra.mxu0 %v17393_v36  ;;  %15893 = vmatpush3.bf16.msra.mxu1 %v17394_v37 }
0x113f   : > { %15900 = vmatprep.subr.bf16.mxu0 %v17395_v38  ;;  %15922 = vmatprep.subr.bf16.mxu1 %v17396_v39  ;;  %v17409_v39 = vld [vmem:[%s21815_s7 + $0x518] sm:$0xff]  }
0x11c4   : > { %v5077_v49 = vpop.f32.mrb[48].mxu0  ;;  %v5118_v55 = vpop.f32.mrb[48].mxu1 }
0x11c5   : > { %v5078_v24 = vadd.f32 %v5077_v49, %v4643_v9  ;;  %v5119_v56 = vadd.f32 %v5118_v55, %v4651_v46  ;;  %v5079_v57 = vpop.f32.mrb[49].mxu0  ;;  %v5120_v63 = vpop.f32.mrb[49].mxu1  ;;  %v17410_v9 = vld [vmem:[%s21815_s7 + $0x598] sm:$0xff]   ;;  %v17412_v49 = vld [vmem:[%s21815_s7 + $0x5e0] sm:$0xff]  }
0x11c6   : > { %v5080_v59 = vadd.f32 %v5079_v57, %v4647_v47  ;;  %v5121_v60 = vadd.f32 %v5120_v63, %v4655_v48  ;;  %v5081_v61 = vpop.f32.mrb[50].mxu0  ;;  %v5122_v10 = vpop.f32.mrb[50].mxu1  ;;  %v17411_v48 = vld [vmem:[%s21815_s7 + $0x560] sm:$0xff]  }
0x11c7   : > { %v5371_v62 = vmax.f32 %v5078_v24, 0.0  ;;  %v5373_v1 = vmax.f32 %v5119_v56, 0.0  ;;  %v5082_v4 = vpop.f32.mrb[51].mxu0  ;;  %v5123_v6 = vpop.f32.mrb[51].mxu1  ;;  %v17413_v63 = vld [vmem:[%s21815_s7 + $0x520] sm:$0xff]   ;;  %v17416_v61 = vld [vmem:[%s21815_s7 + $0x5e8] sm:$0xff]  }
0x11c8   : > { %v5372_v7 = vmax.f32 %v5080_v59, 0.0  ;;  %v5374_v8 = vmax.f32 %v5121_v60, 0.0  ;;  %v17414_v59 = vld [vmem:[%s21815_s7 + $0x5a0] sm:$0xff]   ;;  %v17415_v60 = vld [vmem:[%s21815_s7 + $0x568] sm:$0xff]   ;;  %v4667_v4 = vrot.slane %v19320_v43, %v18549_v41 }
0x11c9   : > { %v5387_v13 = vpack.c.bf16 %v5371_v62, %v5371_v62  ;;  %v5389_v14 = vpack.c.bf16 %v5373_v1, %v5373_v1  ;;  %v17417_v10 = vld [vmem:[%s21815_s7 + $0x528] sm:$0xff]   ;;  %v4659_v1 = vrot.slane %v19320_v43, %v18546_v40 }
0x11ca   : > { %v5388_v18 = vpack.c.bf16 %v5372_v7, %v5372_v7  ;;  %v5390_v11 = vpack.c.bf16 %v5374_v8, %v5374_v8  ;;  %v17418_v62 = vld [vmem:[%s21815_s7 + $0x5a8] sm:$0xff]   ;;  %v17419_v7 = vld [vmem:[%s21815_s7 + $0x570] sm:$0xff]  }
0x11cb   : > { %v19407_v6 = vld [vmem:[%s21812_s4 + $0x21] ss:$4 sm:$0xff] }
0x11cc   : > { %6203 = vmatprep.mubr.bf16.mxu0 %v5388_v18  ;;  %6243 = vmatprep.mubr.bf16.mxu1 %v5390_v11  ;;  %v17420_v8 = vld [vmem:[%s21815_s7 + $0x5f0] sm:$0xff]   ;;  %v4679_v43 = vrot.slane %v19407_v6, %v18023_v42  ;;  %v4687_v18 = vrot.slane %v19407_v6, %v18471_v25 }
0x11cd   : > { %6204 = vmatmul.mubr.bf16.vlgmr.msra.gmra.mrb[64].mxu0 %v5387_v13  ;;  %6244 = vmatmul.mubr.bf16.vlgmr.msra.gmra.mrb[64].mxu1 %v5389_v14  ;;  %v17421_v11 = vld [vmem:[%s21815_s7 + $0x530] sm:$0xff]   ;;  %v17423_v14 = vld [vmem:[%s21815_s7 + $0x578] sm:$0xff]  }
0x11ce   : > { %15901 = vmatpush3.bf16.msra.mxu0 %v17397_v12  ;;  %15923 = vmatpush3.bf16.msra.mxu1 %v17398_v5  ;;  %v17422_v12 = vld [vmem:[%s21815_s7 + $0x5b0] sm:$0xff]  }
0x11cf   : > { %15902 = vmatprep.subr.bf16.mxu0 %v17399_v15  ;;  %15924 = vmatprep.subr.bf16.mxu1 %v17400_v16  ;;  %v17424_v15 = vld [vmem:[%s21815_s7 + $0x5f8] sm:$0xff]  }
0x11d2   : > { %15903 = vmatpush3.bf16.msra.mxu0 %v17401_v53  ;;  %15925 = vmatpush3.bf16.msra.mxu1 %v17402_v17 }
0x11d3   : > { %15904 = vmatprep.subr.bf16.mxu0 %v17403_v19  ;;  %15926 = vmatprep.subr.bf16.mxu1 %v17404_v20 }
0x11d4   : > { %v5159_v30 = vpop.f32.mrb[52].mxu0  ;;  %v5200_v54 = vpop.f32.mrb[52].mxu1 }
0x11d5   : > { %v5161_v0 = vpop.f32.mrb[53].mxu0  ;;  %v5202_v31 = vpop.f32.mrb[53].mxu1  ;;  %v5160_v5 = vadd.f32 %v5159_v30, %v4659_v1  ;;  %v5201_v13 = vadd.f32 %v5200_v54, %v4667_v4  ;;  %v17440_v4 = vld [vmem:[%s21815_s7 + $0x6d8] sm:$0xff]  }
0x11d6   : > { %v5162_v33 = vadd.f32 %v5161_v0, %v4663_v34  ;;  %v5203_v36 = vadd.f32 %v5202_v31, %v4671_v21  ;;  %v5163_v37 = vpop.f32.mrb[54].mxu0  ;;  %v5204_v38 = vpop.f32.mrb[54].mxu1  ;;  %15905 = vmatpush3.bf16.msra.mxu0 %v17405_v22  ;;  %15927 = vmatpush3.bf16.msra.mxu1 %v17406_v26  ;;  %v17425_v26 = vld [vmem:[%s21815_s7 + $0x538] sm:$0xff]   ;;  %v17427_v31 = vld [vmem:[%s21815_s7 + $0x640] sm:$0xff]  }
0x11d7   : > { %v5164_v46 = vpop.f32.mrb[55].mxu0  ;;  %v5205_v47 = vpop.f32.mrb[55].mxu1  ;;  %15906 = vmatprep.subr.bf16.mxu0 %v17407_v27  ;;  %15928 = vmatprep.subr.bf16.mxu1 %v17408_v29  ;;  %v17426_v27 = vld [vmem:[%s21815_s7 + $0x5b8] sm:$0xff]   ;;  %v5375_v29 = vmax.f32 %v5160_v5, 0.0  ;;  %v5377_v30 = vmax.f32 %v5201_v13, 0.0  ;;  %v17429_v38 = vld [vmem:[%s21815_s7 + $0x600] sm:$0xff]  }
0x11d8   : > { %v5376_v55 = vmax.f32 %v5162_v33, 0.0  ;;  %v5378_v24 = vmax.f32 %v5203_v36, 0.0  ;;  %v17428_v33 = vld [vmem:[%s21815_s7 + $0x6c0] sm:$0xff]  }
0x11d9   : > { %v17430_v46 = vld [vmem:[%s21815_s7 + $0x680] sm:$0xff]  }
0x11da   : > { %v5392_v56 = vpack.c.bf16 %v5376_v55, %v5376_v55  ;;  %v5394_v57 = vpack.c.bf16 %v5378_v24, %v5378_v24  ;;  %15907 = vmatpush3.bf16.msra.mxu0 %v17409_v39  ;;  %15929 = vmatpush3.bf16.msra.mxu1 %v17410_v9  ;;  %v5391_v39 = vpack.c.bf16 %v5375_v29, %v5375_v29  ;;  %v17433_v24 = vld [vmem:[%s21815_s7 + $0x608] sm:$0xff]   ;;  %v17451_v29 = vld [vmem:[%s21815_s7 + $0x670] sm:$0xff]  }
0x11db   : > { %15908 = vmatprep.subr.bf16.mxu0 %v17411_v48  ;;  %15930 = vmatprep.subr.bf16.mxu1 %v17412_v49  ;;  %v5393_v9 = vpack.c.bf16 %v5377_v30, %v5377_v30  ;;  %v17431_v48 = vld [vmem:[%s21815_s7 + $0x648] sm:$0xff]   ;;  %v4683_v30 = vrot.slane %v19407_v6, %v18463_v23 }
0x11dc   : > { %6283 = vmatprep.mubr.bf16.mxu0 %v5392_v56  ;;  %6323 = vmatprep.mubr.bf16.mxu1 %v5394_v57  ;;  %v17432_v49 = vld [vmem:[%s21815_s7 + $0x6c8] sm:$0xff]   ;;  %v17435_v57 = vld [vmem:[%s21815_s7 + $0x650] sm:$0xff]  }
0x11dd   : > { %v17434_v56 = vld [vmem:[%s21815_s7 + $0x688] sm:$0xff]  }
0x11de   : > { %15909 = vmatpush3.bf16.msra.mxu0 %v17413_v63  ;;  %15931 = vmatpush3.bf16.msra.mxu1 %v17414_v59  ;;  %v17436_v63 = vld [vmem:[%s21815_s7 + $0x6d0] sm:$0xff]   ;;  %v4699_v59 = vrot.slane %v19407_v6, %v18549_v41 }
0x11df   : > { %15910 = vmatprep.subr.bf16.mxu0 %v17415_v60  ;;  %15932 = vmatprep.subr.bf16.mxu1 %v17416_v61  ;;  %v17437_v60 = vld [vmem:[%s21815_s7 + $0x610] sm:$0xff]  }
0x11e0   : > { %v17438_v61 = vld [vmem:[%s21815_s7 + $0x690] sm:$0xff]  }
0x11e2   : > { %15911 = vmatpush3.bf16.msra.mxu0 %v17417_v10  ;;  %15933 = vmatpush3.bf16.msra.mxu1 %v17418_v62  ;;  %v17439_v10 = vld [vmem:[%s21815_s7 + $0x658] sm:$0xff]  }
0x11e3   : > { %15912 = vmatprep.subr.bf16.mxu0 %v17419_v7  ;;  %15934 = vmatprep.subr.bf16.mxu1 %v17420_v8 }
0x11e4   : > { %v19431_v16 = vpop.f32.mrb[56].mxu0  ;;  %v19433_v53 = vpop.f32.mrb[56].mxu1 }
0x11e5   : > { %v5243_v17 = vpop.f32.mrb[57].mxu0  ;;  %v5284_v19 = vpop.f32.mrb[57].mxu1 }
0x11e6   : > { %v5244_v20 = vadd.f32 %v5243_v17, %v4679_v43  ;;  %v5285_v34 = vadd.f32 %v5284_v19, %v4687_v18  ;;  %v5245_v21 = vpop.f32.mrb[58].mxu0  ;;  %v5286_v22 = vpop.f32.mrb[58].mxu1  ;;  %15913 = vmatpush3.bf16.msra.mxu0 %v17421_v11  ;;  %15935 = vmatpush3.bf16.msra.mxu1 %v17422_v12  ;;  %v17441_v12 = vld [vmem:[%s21815_s7 + $0x618] sm:$0xff]   ;;  %v17444_v17 = vld [vmem:[%s21815_s7 + $0x6e0] sm:$0xff]  }
0x11e7   : > { %v5246_v54 = vpop.f32.mrb[59].mxu0  ;;  %v5287_v0 = vpop.f32.mrb[59].mxu1  ;;  %15914 = vmatprep.subr.bf16.mxu0 %v17423_v14  ;;  %15936 = vmatprep.subr.bf16.mxu1 %v17424_v15  ;;  %v17442_v14 = vld [vmem:[%s21815_s7 + $0x698] sm:$0xff]   ;;  %v17443_v15 = vld [vmem:[%s21815_s7 + $0x660] sm:$0xff]   ;;  %v17448_v21 = vld [vmem:[%s21815_s7 + $0x6e8] sm:$0xff]  }
0x11e8   : > { %v5380_v36 = vmax.f32 %v5244_v20, 0.0  ;;  %v5382_v37 = vmax.f32 %v5285_v34, 0.0  ;;  %v17445_v19 = vld [vmem:[%s21815_s7 + $0x620] sm:$0xff]   ;;  %v17447_v34 = vld [vmem:[%s21815_s7 + $0x668] sm:$0xff]   ;;  %v17452_v54 = vld [vmem:[%s21815_s7 + $0x6f0] sm:$0xff]   ;;  %v4695_v0 = vrot.slane %v19407_v6, %v18500_v52 }
0x11e9   : > { %v17446_v20 = vld [vmem:[%s21815_s7 + $0x6a0] sm:$0xff]   ;;  %v17449_v22 = vld [vmem:[%s21815_s7 + $0x628] sm:$0xff]  }
0x11ea   : > { %15915 = vmatpush3.bf16.msra.mxu0 %v17425_v26  ;;  %15937 = vmatpush3.bf16.msra.mxu1 %v17426_v27  ;;  %v5396_v47 = vpack.c.bf16 %v5380_v36, %v5380_v36  ;;  %v5398_v55 = vpack.c.bf16 %v5382_v37, %v5382_v37  ;;  %v4675_v26 = vrot.slane %v19407_v6, %v18015_v35  ;;  %v17450_v27 = vld [vmem:[%s21815_s7 + $0x6a8] sm:$0xff]   ;;  %v17454_v37 = vld [vmem:[%s21815_s7 + $0x6b0] sm:$0xff]  }
0x11eb   : > { %15944 = vmatprep.subr.bf16.mxu0 %v17427_v31  ;;  %15966 = vmatprep.subr.bf16.mxu1 %v17428_v33  ;;  %v4703_v31 = vrot.slane %v19407_v6, %v18503_v3  ;;  %v17453_v33 = vld [vmem:[%s21815_s7 + $0x630] sm:$0xff]  }
0x11ec   : > { %v5242_v36 = vadd.f32 %v19431_v16, %v4675_v26  ;;  %v17457_v16 = vld [vmem:[%s21815_s7 + $0x638] sm:$0xff]   ;;  %v17479_v26 = vld [vmem:[%s21815_s7 + $0x768] sm:$0xff]  }
0x11ed   : > { %6284 = vmatmul.mubr.bf16.vlgmr.msra.gmra.mrb[68].mxu0 %v5391_v39  ;;  %6324 = vmatmul.mubr.bf16.vlgmr.msra.gmra.mrb[68].mxu1 %v5393_v9  ;;  %v5283_v39 = vadd.f32 %v19433_v53, %v4683_v30  ;;  %v17456_v9 = vld [vmem:[%s21815_s7 + $0x6f8] sm:$0xff]   ;;  %v17459_v53 = vld [vmem:[%s21815_s7 + $0x740] sm:$0xff]   ;;  %v4691_v30 = vrot.slane %v19407_v6, %v18546_v40  ;;  %v17485_v6 = vld [vmem:[%s21815_s7 + $0x730] sm:$0xff]  }
0x11ee   : > { %15945 = vmatpush3.bf16.msra.mxu0 %v17429_v38  ;;  %6363 = vmatprep.mubr.bf16.mxu0 %v5396_v47  ;;  %v17455_v38 = vld [vmem:[%s21815_s7 + $0x678] sm:$0xff]  }
0x11ef   : > { %15967 = vmatpush3.bf16.msra.mxu1 %v17430_v46  ;;  %6403 = vmatprep.mubr.bf16.mxu1 %v5398_v55  ;;  %v5381_v55 = vmax.f32 %v5283_v39, 0.0 }
0x11f0   : > { %15946 = vmatprep.subr.bf16.mxu0 %v17431_v48  ;;  %15968 = vmatprep.subr.bf16.mxu1 %v17432_v49  ;;  %v5379_v48 = vmax.f32 %v5242_v36, 0.0  ;;  %v17458_v49 = vld [vmem:[%s21815_s7 + $0x6b8] sm:$0xff]   ;;  %v17486_v36 = vld [vmem:[%s21815_s7 + $0x7b0] sm:$0xff]  }
0x11f2   : > { %15947 = vmatpush3.bf16.msra.mxu0 %v17433_v24  ;;  %v17460_v24 = vld [vmem:[%s21815_s7 + $0x7c0] sm:$0xff]  }
0x11f3   : > { %15969 = vmatpush3.bf16.msra.mxu1 %v17434_v56  ;;  %15948 = vmatprep.subr.bf16.mxu0 %v17435_v57 }
0x11f4   : > { %v19482_v62 = vpop.f32.mrb[60].mxu0  ;;  %v5364_v1 = vpop.f32.mrb[60].mxu1  ;;  %15970 = vmatprep.subr.bf16.mxu1 %v17436_v63  ;;  %v17461_v63 = vld [vmem:[%s21815_s7 + $0x700] sm:$0xff]  }
0x11f5   : > { %v19487_v7 = vadd.f32 %v5364_v1, %v4699_v59  ;;  %v5325_v8 = vpop.f32.mrb[61].mxu0  ;;  %v5366_v43 = vpop.f32.mrb[61].mxu1  ;;  %v5395_v59 = vpack.c.bf16 %v5379_v48, %v5379_v48 }
0x11f6   : > { %v5327_v18 = vpop.f32.mrb[62].mxu0  ;;  %v5368_v11 = vpop.f32.mrb[62].mxu1  ;;  %15949 = vmatpush3.bf16.msra.mxu0 %v17437_v60  ;;  %v5326_v46 = vadd.f32 %v5325_v8, %v4695_v0  ;;  %v5367_v47 = vadd.f32 %v5366_v43, %v4703_v31  ;;  %v17462_v60 = vld [vmem:[%s21815_s7 + $0x780] sm:$0xff]   ;;  %v17465_v43 = vld [vmem:[%s21815_s7 + $0x708] sm:$0xff]   ;;  %v17483_v0 = vld [vmem:[%s21815_s7 + $0x770] sm:$0xff]  }
0x11f7   : > { %15971 = vmatpush3.bf16.msra.mxu1 %v17438_v61  ;;  %v5328_v5 = vpop.f32.mrb[63].mxu0  ;;  %v5369_v13 = vpop.f32.mrb[63].mxu1  ;;  %15950 = vmatprep.subr.bf16.mxu0 %v17439_v10  ;;  %v5397_v61 = vpack.c.bf16 %v5381_v55, %v5381_v55  ;;  %v17463_v10 = vld [vmem:[%s21815_s7 + $0x748] sm:$0xff]   ;;  %v17467_v11 = vld [vmem:[%s21815_s7 + $0x750] sm:$0xff]   ;;  %v6603_v55 = vld [vmem:[%s21813_s5 + $0x2a0] sm:$0xff] }
0x11f8   : > { %15972 = vmatprep.subr.bf16.mxu1 %v17440_v4  ;;  %v5384_v56 = vmax.f32 %v5326_v46, 0.0  ;;  %v5386_v57 = vmax.f32 %v5367_v47, 0.0  ;;  %v17464_v4 = vld [vmem:[%s21815_s7 + $0x7c8] sm:$0xff]   ;;  %v17469_v5 = vld [vmem:[%s21815_s7 + $0x710] sm:$0xff]   ;;  %v5385_v46 = vmax.f32 %v19487_v7, 0.0  ;;  %v6526_v7 = vld [vmem:[%s313_s20] sm:$0xff] }
0x11f9   : > { %v17466_v18 = vld [vmem:[%s21815_s7 + $0x788] sm:$0xff]   ;;  %v17470_v13 = vld [vmem:[%s21815_s7 + $0x790] sm:$0xff]  }
0x11fa   : > { %15951 = vmatpush3.bf16.msra.mxu0 %v17441_v12  ;;  %v5400_v1 = vpack.c.bf16 %v5384_v56, %v5384_v56  ;;  %v5402_v8 = vpack.c.bf16 %v5386_v57, %v5386_v57  ;;  %v17468_v12 = vld [vmem:[%s21815_s7 + $0x7d0] sm:$0xff]   ;;  %v5401_v48 = vpack.c.bf16 %v5385_v46, %v5385_v46 }
0x11fb   : > { %15973 = vmatpush3.bf16.msra.mxu1 %v17442_v14  ;;  %15952 = vmatprep.subr.bf16.mxu0 %v17443_v15  ;;  %v17471_v14 = vld [vmem:[%s21815_s7 + $0x758] sm:$0xff]   ;;  %v17484_v31 = vld [vmem:[%s21815_s7 + $0x7f0] sm:$0xff]  }
0x11fc   : > { %15974 = vmatprep.subr.bf16.mxu1 %v17444_v17  ;;  %v17472_v15 = vld [vmem:[%s21815_s7 + $0x7d8] sm:$0xff]   ;;  %v6605_v56 = vld [vmem:[%s21813_s5 + $0x2b0] sm:$0xff] }
0x11fd   : > { %v17473_v17 = vld [vmem:[%s21815_s7 + $0x718] sm:$0xff]   ;;  %v17048_v57 = vpack.c.bf16 %v6605_v56, %v6603_v55 }
0x11fe   : > { %15953 = vmatpush3.bf16.msra.mxu0 %v17445_v19  ;;  %v17474_v19 = vld [vmem:[%s21815_s7 + $0x798] sm:$0xff]  }
0x11ff   : > { %15975 = vmatpush3.bf16.msra.mxu1 %v17446_v20  ;;  %15954 = vmatprep.subr.bf16.mxu0 %v17447_v34  ;;  %v17475_v20 = vld [vmem:[%s21815_s7 + $0x760] sm:$0xff]  }
0x1200   : > { %15976 = vmatprep.subr.bf16.mxu1 %v17448_v21  ;;  %v17476_v34 = vld [vmem:[%s21815_s7 + $0x7e0] sm:$0xff]  }
0x1201   : > { %v17477_v21 = vld [vmem:[%s21815_s7 + $0x720] sm:$0xff]  }
0x1202   : > { %15955 = vmatpush3.bf16.msra.mxu0 %v17449_v22  ;;  %v17478_v22 = vld [vmem:[%s21815_s7 + $0x7a0] sm:$0xff]  }
0x1203   : > { %15977 = vmatpush3.bf16.msra.mxu1 %v17450_v27  ;;  %15956 = vmatprep.subr.bf16.mxu0 %v17451_v29  ;;  %v17480_v27 = vld [vmem:[%s21815_s7 + $0x7e8] sm:$0xff]  }
0x1204   : > { %15978 = vmatprep.subr.bf16.mxu1 %v17452_v54  ;;  %v17481_v29 = vld [vmem:[%s21815_s7 + $0x728] sm:$0xff]  }
0x1205   : > { %v17482_v54 = vld [vmem:[%s21815_s7 + $0x7a8] sm:$0xff]  }
0x1206   : > { %15957 = vmatpush3.bf16.msra.mxu0 %v17453_v33  ;;  %v5324_v33 = vadd.f32 %v19482_v62, %v4691_v30  ;;  %v17489_v62 = vld [vmem:[%s21815_s7 + $0x738] sm:$0xff]  }
0x1207   : > { %15979 = vmatpush3.bf16.msra.mxu1 %v17454_v37  ;;  %15958 = vmatprep.subr.bf16.mxu0 %v17455_v38  ;;  %v17487_v37 = vld [vmem:[%s21815_s7 + $0x778] sm:$0xff]  }
0x1208   : > { %15980 = vmatprep.subr.bf16.mxu1 %v17456_v9  ;;  %v17488_v38 = vld [vmem:[%s21815_s7 + $0x7f8] sm:$0xff]   ;;  %v5383_v39 = vmax.f32 %v5324_v33, 0.0 }
0x1209   : > { %v17490_v9 = vld [vmem:[%s21815_s7 + $0x7b8] sm:$0xff]  }
0x120a   : > { %15959 = vmatpush3.bf16.msra.mxu0 %v17457_v16  ;;  %v5399_v47 = vpack.c.bf16 %v5383_v39, %v5383_v39  ;;  %v6527_v16 = vld [vmem:[%s21813_s5 + $0x10] sm:$0xff] }
0x120b   : > { %15981 = vmatpush3.bf16.msra.mxu1 %v17458_v49  ;;  %15988 = vmatprep.subr.bf16.mxu0 %v17459_v53  ;;  %v6604_v49 = vld [vmem:[%s21813_s5 + $0x2a8] sm:$0xff]  ;;  %v6606_v53 = vld [vmem:[%s21813_s5 + $0x2b8] sm:$0xff] }
0x120c   : > { %16010 = vmatprep.subr.bf16.mxu1 %v17460_v24  ;;  %v17046_v24 = vpack.c.bf16 %v6606_v53, %v6604_v49 }
0x120d   : > { %6364 = vmatmul.mubr.bf16.vlgmr.msra.gmra.mrb[72].mxu0 %v5395_v59  ;;  %v6610_v59 = vld [vmem:[%s21813_s5 + $0x2d8] sm:$0xff] }
0x120e   : > { %6404 = vmatmul.mubr.bf16.vlgmr.msra.gmra.mrb[72].mxu1 %v5397_v61  ;;  %15989 = vmatpush3.bf16.msra.mxu0 %v17461_v63  ;;  %v6608_v63 = vld [vmem:[%s21813_s5 + $0x2c8] sm:$0xff]  ;;  %v6607_v61 = vld [vmem:[%s21813_s5 + $0x2c0] sm:$0xff] }
0x120f   : > { %6443 = vmatprep.mubr.bf16.mxu0 %v5400_v1  ;;  %16011 = vmatpush3.bf16.msra.mxu1 %v17462_v60  ;;  %v17050_v60 = vpack.c.bf16 %v6610_v59, %v6608_v63 }
0x1210   : > { %6483 = vmatprep.mubr.bf16.mxu1 %v5402_v8  ;;  %15990 = vmatprep.subr.bf16.mxu0 %v17463_v10  ;;  %v6609_v10 = vld [vmem:[%s21813_s5 + $0x2d0] sm:$0xff]  ;;  %v6614_v8 = vld [vmem:[%s21813_s5 + $0x2f8] sm:$0xff] }
0x1211   : > { %16012 = vmatprep.subr.bf16.mxu1 %v17464_v4  ;;  %v17052_v1 = vpack.c.bf16 %v6609_v10, %v6607_v61  ;;  %v6612_v4 = vld [vmem:[%s21813_s5 + $0x2e8] sm:$0xff] }
0x1212   : > { %15991 = vmatpush3.bf16.msra.mxu0 %v17465_v43  ;;  %v17054_v43 = vpack.c.bf16 %v6614_v8, %v6612_v4 }
0x1213   : > { %16013 = vmatpush3.bf16.msra.mxu1 %v17466_v18  ;;  %15992 = vmatprep.subr.bf16.mxu0 %v17467_v11  ;;  %v6611_v18 = vld [vmem:[%s21813_s5 + $0x2e0] sm:$0xff]  ;;  %v6613_v11 = vld [vmem:[%s21813_s5 + $0x2f0] sm:$0xff] }
0x1214   : > { %16014 = vmatprep.subr.bf16.mxu1 %v17468_v12  ;;  %v17056_v12 = vpack.c.bf16 %v6613_v11, %v6611_v18 }
0x1216   : > { %15993 = vmatpush3.bf16.msra.mxu0 %v17469_v5  ;;  %v6616_v5 = vld [vmem:[%s21813_s5 + $0x308] sm:$0xff] }
0x1217   : > { %16015 = vmatpush3.bf16.msra.mxu1 %v17470_v13  ;;  %15994 = vmatprep.subr.bf16.mxu0 %v17471_v14  ;;  %v6618_v13 = vld [vmem:[%s21813_s5 + $0x318] sm:$0xff] }
0x1218   : > { %16016 = vmatprep.subr.bf16.mxu1 %v17472_v15  ;;  %v17058_v14 = vpack.c.bf16 %v6618_v13, %v6616_v5  ;;  %v6615_v15 = vld [vmem:[%s21813_s5 + $0x300] sm:$0xff] }
0x121a   : > { %15995 = vmatpush3.bf16.msra.mxu0 %v17473_v17  ;;  %v6617_v17 = vld [vmem:[%s21813_s5 + $0x310] sm:$0xff] }
0x121b   : > { %16017 = vmatpush3.bf16.msra.mxu1 %v17474_v19  ;;  %15996 = vmatprep.subr.bf16.mxu0 %v17475_v20  ;;  %v17060_v19 = vpack.c.bf16 %v6617_v17, %v6615_v15 }
0x121c   : > { %16018 = vmatprep.subr.bf16.mxu1 %v17476_v34 }
0x121e   : > { %15997 = vmatpush3.bf16.msra.mxu0 %v17477_v21  ;;  %v4636_v21 = vld [vmem:[%s21811_s3 + $0x20] ss:$0 sm:$0xff] }
0x121f   : > { %16019 = vmatpush3.bf16.msra.mxu1 %v17478_v22  ;;  %15998 = vmatprep.subr.bf16.mxu0 %v17479_v26 }
0x1220   : > { %16020 = vmatprep.subr.bf16.mxu1 %v17480_v27 }
0x1222   : > { %15999 = vmatpush3.bf16.msra.mxu0 %v17481_v29 }
0x1223   : > { %16021 = vmatpush3.bf16.msra.mxu1 %v17482_v54  ;;  %16000 = vmatprep.subr.bf16.mxu0 %v17483_v0 }
0x1224   : > { %16022 = vmatprep.subr.bf16.mxu1 %v17484_v31 }
0x1226   : > { %16001 = vmatpush3.bf16.msra.mxu0 %v17485_v6 }
0x1227   : > { %16023 = vmatpush3.bf16.msra.mxu1 %v17486_v36  ;;  %16002 = vmatprep.subr.bf16.mxu0 %v17487_v37 }
0x1228   : > { %16024 = vmatprep.subr.bf16.mxu1 %v17488_v38 }
0x122a   : > { %16003 = vmatpush3.bf16.msra.mxu0 %v17489_v62 }
0x122b   : > { %16025 = vmatpush3.bf16.msra.mxu1 %v17490_v9  ;;  %16654 = vmatprep.subr.mxu0 %v17876_v2 }
0x122c   : > { %16659 = vmatprep.subr.mxu1 %v17876_v2 }
0x122d   : > { %6444 = vmatmul.mubr.bf16.vlgmr.msra.gmra.mrb[76].mxu0 %v5399_v47 }
0x122e   : > { %6484 = vmatmul.mubr.bf16.vlgmr.msra.gmra.mrb[76].mxu1 %v5401_v48  ;;  %16655 = vmatpush3.msra.mxu0 %v6527_v16 }
0x122f   : > { %16656 = vmatprep.mubr.msk.f32.mxu0 %vm17877_vm0, %v17876_v2  ;;  %16661 = vmatprep.mubr.msk.f32.mxu1 %vm17877_vm0, %v17876_v2 }
0x1230   : > { %17047 = vmatprep.subr.bf16.mxu0 %v17046_v24 }
0x1235   : > { %16657 = vmatmul.mubr.msk.f32.vlgmr.msra.gmra.mrb[46].mxu0 %vm325_vm1, %v6526_v7 }
0x1236   : > { %6699 = vmatprep.mubr.f32.mxu0 %v17876_v2  ;;  %17049 = vmatpush1.bf16.msra.mxu0 %v17048_v57 }
0x1237   : > { %17051 = vmatprep.subr.bf16.mxu0 %v17050_v60 }
0x123a   : > { %17053 = vmatpush1.bf16.msra.mxu0 %v17052_v1 }
0x123b   : > { %17055 = vmatprep.subr.bf16.mxu0 %v17054_v43 }
0x123e   : > { %17057 = vmatpush1.bf16.msra.mxu0 %v17056_v12 }
0x123f   : > { %17059 = vmatprep.subr.bf16.mxu0 %v17058_v14 }
0x1242   : > { %17061 = vmatpush1.bf16.msra.mxu0 %v17060_v19 }
0x1243   : > { %16679 = vmatprep.subr.mxu0 %v17876_v2 }
0x12a0   : > { %v15872_v20 = vpop.f32.mrb[64].mxu0  ;;  %v15894_v34 = vpop.f32.mrb[64].mxu1 }
0x12a1   : > { %v15873_v22 = vpop.f32.mrb[65].mxu0  ;;  %v15895_v26 = vpop.f32.mrb[65].mxu1 }
0x12a2   : > { %v15874_v27 = vadd.f32 %v15873_v22, %v15872_v20  ;;  %v15896_v29 = vadd.f32 %v15895_v26, %v15894_v34  ;;  %v15875_v30 = vpop.f32.mrb[66].mxu0  ;;  %v15897_v54 = vpop.f32.mrb[66].mxu1  ;;  %v6528_v34 = vld [vmem:[%s21811_s3 + $0x1] ss:$0 sm:$0xff] }
0x12a3   : > { %v15876_v0 = vpop.f32.mrb[67].mxu0  ;;  %v15898_v31 = vpop.f32.mrb[67].mxu1  ;;  %v15161_v30 = vld [vmem:[%s21811_s3 + $0x25] ss:$8 sm:$0x3] }
0x12a4   : > { %v6206_v6 = vadd.f32 %v15874_v27, %v4636_v21  ;;  %v17867_v27 = vld [vmem:[%s21810_s2] sm:$0xff]  ;;  %v6625_v54 = vrot.slane %v15161_v30, %v18015_v35 }
0x12a6   : > { %v6246_v33 = vadd.f32 %v15896_v29, %v6206_v6 }
0x12c0   : > { %v15916_v36 = vpop.f32.mrb[68].mxu0  ;;  %v15938_v37 = vpop.f32.mrb[68].mxu1 }
0x12c1   : > { %v15917_v38 = vpop.f32.mrb[69].mxu0  ;;  %v15939_v62 = vpop.f32.mrb[69].mxu1 }
0x12c2   : > { %v15918_v39 = vadd.f32 %v15917_v38, %v15916_v36  ;;  %v15940_v9 = vadd.f32 %v15939_v62, %v15938_v37  ;;  %v15919_v46 = vpop.f32.mrb[70].mxu0  ;;  %v15941_v47 = vpop.f32.mrb[70].mxu1  ;;  %v6629_v36 = vrot.slane %v15161_v30, %v18023_v42 }
0x12c3   : > { %v15920_v16 = vpop.f32.mrb[71].mxu0  ;;  %v15942_v48 = vpop.f32.mrb[71].mxu1 }
0x12c4   : > { %v6286_v7 = vadd.f32 %v15918_v39, %v6246_v33 }
0x12c6   : > { %v6326_v49 = vadd.f32 %v15940_v9, %v6286_v7 }
0x12e0   : > { %v15960_v53 = vpop.f32.mrb[72].mxu0 }
0x12e1   : > { %v15982_v55 = vpop.f32.mrb[72].mxu1  ;;  %v15961_v24 = vpop.f32.mrb[73].mxu0 }
0x12e2   : > { %v15962_v56 = vadd.f32 %v15961_v24, %v15960_v53  ;;  %v15983_v57 = vpop.f32.mrb[73].mxu1  ;;  %v15963_v63 = vpop.f32.mrb[74].mxu0 }
0x12e3   : > { %v15984_v59 = vadd.f32 %v15983_v57, %v15982_v55  ;;  %v15985_v60 = vpop.f32.mrb[74].mxu1  ;;  %v15964_v61 = vpop.f32.mrb[75].mxu0 }
0x12e4   : > { %v6366_v10 = vadd.f32 %v15962_v56, %v6326_v49  ;;  %v15986_v1 = vpop.f32.mrb[75].mxu1 }
0x12e6   : > { %v6406_v4 = vadd.f32 %v15984_v59, %v6366_v10 }
0x1300   : > { %v16004_v8 = vpop.f32.mrb[76].mxu0 }
0x1301   : > { %v16026_v43 = vpop.f32.mrb[76].mxu1  ;;  %v16005_v18 = vpop.f32.mrb[77].mxu0 }
0x1302   : > { %v16006_v11 = vadd.f32 %v16005_v18, %v16004_v8  ;;  %v16027_v12 = vpop.f32.mrb[77].mxu1  ;;  %v16007_v5 = vpop.f32.mrb[78].mxu0 }
0x1303   : > { %v16028_v13 = vadd.f32 %v16027_v12, %v16026_v43  ;;  %v16029_v14 = vpop.f32.mrb[78].mxu1  ;;  %v16008_v15 = vpop.f32.mrb[79].mxu0 }
0x1304   : > { %v6446_v17 = vadd.f32 %v16006_v11, %v6406_v4  ;;  %v16030_v19 = vpop.f32.mrb[79].mxu1 }
0x1306   : > { %v19720_v20 = vadd.f32 %v16028_v13, %v6446_v17 }
0x1308   : > { %v6598_v21 = vpop.f32.mrb[46].mxu0  ;;  %v6491_v30 = vadd.f32 %v19720_v20, %v19067_v32 }
0x1309   : > { %v6599_v22 = vadd.f32 %v6598_v21, %v6528_v34  ;;  %v16658_v26 = vpop.f32.mrb[47].mxu0 }
0x130b   : > { %v19728_v29 = vadd.f32 %v17867_v27, %v6599_v22 }
0x130d   : > { %15162 = vmatmul.mubr.msk.f32.vlgmr.msra.gmra.mrb[80].mxu0 %vm429_vm2, %v19728_v29 }
0x130e   : > { %16681 = vmatprep.mubr.msk.f32.mxu0 %vm17877_vm0, %v17876_v2 }
0x13e0   : > { %v6701_v0 = vpop.f32.mrb[80].mxu0 }
0x13e1   : > { %v6702_v31 = vadd.f32 %v6701_v0, %v6625_v54  ;;  %v6703_v6 = vpop.f32.mrb[81].mxu0  ;;  %v6494_v54 = vsel %vm429_vm2, %v6491_v30, 0.0 }
0x13e2   : > { %v19746_v39 = vadd.f32 %v6703_v6, %v6629_v36 }
0x13e3   : > { %6709 = vrot.lane.b32.xlu1 %v6702_v31, %s17878_s11  ;;  %v6706_v33 = vmul.f32 0.25, %v6702_v31 }
0x13e4   : > { %v6883_v47 = vmul.f32 %v18039_v50, %v19746_v39 }
0x13e5   : > { %v6707_v38 = vmul.f32 %v18026_v44, %v6706_v33  ;;  %v7030_v62 = vmul.f32 %v18029_v45, %v6706_v33  ;;  %v6798_v9 = vmul.f32 %v18039_v50, %v6706_v33  ;;  %v7190_v46 = vmul.f32 %v18042_v51, %v6706_v33 }
0x1455   : > { %v6710_v37 = vpop.permute.xlu1 %6709 }
0x1456   : > { %16660 = vmatpush3.xpose.msk.msra.mxu1 %vm429_vm2, %v6710_v37  ;;  %16680 = vmatpush3.xpose.msk.msra.mxu0 %vm429_vm2, %v6710_v37 }
0x1457   : > { %16664 = vmatprep.subr.mxu1 %v17876_v2  ;;  %16689 = vmatprep.subr.mxu0 %v17876_v2 }
0x1459   : > { %16662 = vmatmul.mubr.msk.f32.vlgmr.msra.gmra.mrb[80].mxu1 %vm429_vm2, %v6707_v38  ;;  %16682 = vmatmul.mubr.msk.f32.vlgmr.msra.gmra.mrb[82].mxu0 %vm429_vm2, %v7030_v62  ;;  %v6797_v38 = vmul.f32 %v18026_v44, %v19746_v39 }
0x145a   : > { %16665 = vmatpush3.xpose.msk.msra.mxu1 %vm429_vm2, %v6710_v37  ;;  %16690 = vmatpush3.xpose.msk.msra.mxu0 %vm429_vm2, %v6710_v37 }
0x145b   : > { %16666 = vmatprep.mubr.msk.f32.mxu1 %vm17877_vm0, %v17876_v2  ;;  %16691 = vmatprep.mubr.msk.f32.mxu0 %vm17877_vm0, %v17876_v2 }
0x145c   : > { %16669 = vmatprep.subr.mxu1 %v17876_v2  ;;  %17062 = vmatprep.subr.bf16.mxu0 %v17879_v28 }
0x145d   : > { %16667 = vmatmul.mubr.msk.f32.vlgmr.msra.gmra.mrb[82].mxu1 %vm429_vm2, %v6798_v9  ;;  %16692 = vmatmul.mubr.msk.f32.vlgmr.msra.gmra.mrb[84].mxu0 %vm429_vm2, %v7190_v46 }
0x145e   : > { %16670 = vmatpush3.msra.mxu1 %v6883_v47  ;;  %16671 = vmatprep.mubr.msk.f32.mxu1 %vm17877_vm0, %v17876_v2  ;;  %v7115_v47 = vmul.f32 %v18029_v45, %v19746_v39 }
0x145f   : > { %16674 = vmatprep.subr.mxu1 %v17876_v2  ;;  %16715 = vmatprep.mubr.msk.f32.mxu0 %vm17877_vm0, %v17876_v2 }
0x152c   : > { %v6782_v16 = vpop.f32.mrb[80].mxu1  ;;  %v7100_v48 = vpop.f32.mrb[82].mxu0 }
0x152d   : > { %v16663_v7 = vpop.f32.mrb[81].mxu1  ;;  %v16683_v49 = vpop.f32.mrb[83].mxu0  ;;  %v6786_v53 = vsel %vm325_vm1, %v6782_v16, -inf  ;;  %v7104_v59 = vsel %vm325_vm1, %v7100_v48, -inf }
0x152e   : > { %6787 = vmax.xlane.f32.xlu1 %v6786_v53  ;;  %v7275_v53 = vmul.f32 %v18042_v51, %v19746_v39  ;;  %v7351_v39 = vld [vmem:[%s21813_s5 + $0x330] sm:$0xff] }
0x1530   : > { %v6868_v55 = vpop.f32.mrb[82].mxu1  ;;  %v7260_v24 = vpop.f32.mrb[84].mxu0 }
0x1531   : > { %v16668_v56 = vpop.f32.mrb[83].mxu1  ;;  %v16693_v57 = vpop.f32.mrb[85].mxu0  ;;  %v6872_v63 = vsel %vm325_vm1, %v6868_v55, -inf  ;;  %v7264_v60 = vsel %vm325_vm1, %v7260_v24, -inf }
0x1532   : > { %6873 = vmax.xlane.f32.xlu0 %v6872_v63  ;;  %v7350_v56 = vld [vmem:[%s21813_s5 + $0x320] sm:$0xff] }
0x1533   : > { %v7352_v57 = vld [vmem:[%s21813_s5 + $0x340] sm:$0xff]  ;;  %v17063_v63 = vpack.c.bf16 %v7351_v39, %v7350_v56 }
0x1535   : > { %17064 = vmatpush3.bf16.msra.mxu0 %v17063_v63  ;;  %v6509_v63 = vld [vmem:[%s21811_s3 + $0x2] ss:$0 sm:$0xff] }
0x1536   : > { %7105 = vmax.xlane.f32.xlu0 %v7104_v59  ;;  %v7353_v59 = vld [vmem:[%s21813_s5 + $0x350] sm:$0xff]  ;;  %17065 = vmatprep.subr.bf16.mxu0 %v17879_v28 }
0x153a   : > { %7265 = vmax.xlane.f32.xlu0 %v7264_v60  ;;  %v17066_v60 = vpack.c.bf16 %v7353_v59, %v7352_v57 }
0x153c   : > { %17067 = vmatpush3.bf16.msra.mxu0 %v17066_v60  ;;  %v6510_v60 = vld [vmem:[%s21811_s3 + $0x3] ss:$0 sm:$0xff] }
0x153d   : > { %17068 = vmatprep.subr.bf16.mxu0 %v17879_v28 }
0x15bb   : > { %v6788_v61 = vpop.xlane.xlu1 %6787 }
0x15bc   : > { %v6789_v10 = vsub.f32 %v6782_v16, %v6788_v61  ;;  %v7354_v61 = vld [vmem:[%s21813_s5 + $0x360] sm:$0xff] }
0x15be   : > { %v6790_v8 = vmul.f32 1.442695, %v6789_v10  ;;  %v7355_v10 = vld [vmem:[%s21813_s5 + $0x370] sm:$0xff] }
0x15bf   : > { %v6874_v1 = vpop.xlane.xlu0 %6873 }
0x15c0   : > { %v6875_v4 = vsub.f32 %v6868_v55, %v6874_v1  ;;  %v17069_v1 = vpack.c.bf16 %v7355_v10, %v7354_v61 }
0x15c2   : > { %v6876_v43 = vmul.f32 1.442695, %v6875_v4  ;;  %v7356_v4 = vld [vmem:[%s21813_s5 + $0x380] sm:$0xff]  ;;  %17070 = vmatpush3.bf16.msra.mxu0 %v17069_v1 }
0x15c3   : > { %v7106_v18 = vpop.xlane.xlu0 %7105  ;;  %17071 = vmatprep.subr.bf16.mxu0 %v17879_v28 }
0x15c4   : > { %17785 = vpow2.f32 %v6876_v43  ;;  %v7107_v11 = vsub.f32 %v7100_v48, %v7106_v18 }
0x15c5   : > { %17787 = vpow2.f32 %v6790_v8  ;;  %v7357_v8 = vld [vmem:[%s21813_s5 + $0x390] sm:$0xff] }
0x15c6   : > { %v7108_v12 = vmul.f32 1.442695, %v7107_v11  ;;  %v17072_v43 = vpack.c.bf16 %v7357_v8, %v7356_v4 }
0x15c7   : > { %v7266_v5 = vpop.xlane.xlu0 %7265 }
0x15c8   : > { %v7267_v13 = vsub.f32 %v7260_v24, %v7266_v5  ;;  %17789 = vpow2.f32 %v7108_v12  ;;  %17073 = vmatpush3.bf16.msra.mxu0 %v17072_v43 }
0x15c9   : > { %17086 = vmatprep.subr.bf16.mxu0 %v17879_v28 }
0x15ca   : > { %v7268_v14 = vmul.f32 1.442695, %v7267_v13  ;;  %v6492_v13 = vld [vmem:[%s21811_s3 + $0x23] ss:$0 sm:$0xff] }
0x15cc   : > { %17791 = vpow2.f32 %v7268_v14 }
0x15ce   : > { %v17786_v15 = vpop.eup %17785 }
0x15cf   : > { %v6878_v17 = vsel %vm325_vm1, %v17786_v15, 0.0  ;;  %v17788_v19 = vpop.eup %17787 }
0x15d0   : > { %6879 = vadd.xlane.f32.xlu0 %v6878_v17  ;;  %v6792_v34 = vsel %vm325_vm1, %v17788_v19, 0.0 }
0x15d2   : > { %v17790_v21 = vpop.eup %17789 }
0x15d3   : > { %v7110_v22 = vsel %vm325_vm1, %v17790_v21, 0.0 }
0x15d4   : > { %6793 = vadd.xlane.f32.xlu0 %v6792_v34 }
0x15d6   : > { %v17792_v26 = vpop.eup %17791 }
0x15d7   : > { %v7270_v27 = vsel %vm325_vm1, %v17792_v26, 0.0 }
0x15d8   : > { %7111 = vadd.xlane.f32.xlu0 %v7110_v22 }
0x15dc   : > { %7271 = vadd.xlane.f32.xlu0 %v7270_v27 }
0x15e0   : > { %6495 = vadd.xlane.f32.xlu0 %v6494_v54 }
0x165d   : > { %v6880_v0 = vpop.xlane.xlu0 %6879 }
0x165e   : > { %17793 = vrcp.f32 %v6880_v0 }
0x1661   : > { %v6794_v31 = vpop.xlane.xlu0 %6793 }
0x1662   : > { %17795 = vrcp.f32 %v6794_v31  ;;  %v7533_v31 = vld [vmem:[%s21813_s5 + $0x420] sm:$0xff] }
0x1665   : > { %v7112_v6 = vpop.xlane.xlu0 %7111 }
0x1666   : > { %17797 = vrcp.f32 %v7112_v6  ;;  %v7534_v6 = vld [vmem:[%s21813_s5 + $0x430] sm:$0xff] }
0x1668   : > { %v17794_v33 = vpop.eup %17793 }
0x1669   : > { %v6882_v36 = vmul.f32 %v17794_v33, %v17786_v15  ;;  %v7272_v37 = vpop.xlane.xlu0 %7271  ;;  %v6493_v15 = vld [vmem:[%s21811_s3 + $0x24] ss:$0 sm:$0xff]  ;;  %v17087_v33 = vpack.c.bf16 %v7534_v6, %v7533_v31 }
0x166a   : > { %17799 = vrcp.f32 %v7272_v37  ;;  %v7536_v37 = vld [vmem:[%s21813_s5 + $0x450] sm:$0xff] }
0x166b   : > { %16672 = vmatmul.mubr.msk.f32.vlgmr.msra.gmra.mrb[84].mxu1 %vm325_vm1, %v6882_v36  ;;  %v7535_v36 = vld [vmem:[%s21813_s5 + $0x440] sm:$0xff] }
0x166c   : > { %16675 = vmatpush3.msra.mxu1 %v6797_v38  ;;  %16676 = vmatprep.mubr.msk.f32.mxu1 %vm17877_vm0, %v17876_v2  ;;  %v17796_v20 = vpop.eup %17795  ;;  %v17090_v38 = vpack.c.bf16 %v7536_v37, %v7535_v36  ;;  %v7433_v36 = vld [vmem:[%s21811_s3 + $0x33] ss:$0 sm:$0xff] }
0x166d   : > { %v6496_v32 = vpop.xlane.xlu0 %6495  ;;  %16684 = vmatprep.subr.mxu1 %v17876_v2  ;;  %v6796_v46 = vmul.f32 %v17796_v20, %v17788_v19  ;;  %v7538_v20 = vld [vmem:[%s21813_s5 + $0x470] sm:$0xff] }
0x166e   : > { %v6497_v62 = vmul.f32 0.015625, %v6496_v32  ;;  %v7537_v32 = vld [vmem:[%s21813_s5 + $0x460] sm:$0xff] }
0x1670   : > { %v6498_v9 = vsub.f32 %v6491_v30, %v6497_v62  ;;  %v17798_v7 = vpop.eup %17797  ;;  %v17093_v62 = vpack.c.bf16 %v7538_v20, %v7537_v32 }
0x1671   : > { %v7114_v49 = vmul.f32 %v17798_v7, %v17790_v21 }
0x1672   : > { %v6499_v16 = vmul.f32 %v6498_v9, %v6498_v9 }
0x1673   : > { %16677 = vmatmul.mubr.msk.f32.vlgmr.msra.gmra.mrb[84].mxu1 %vm325_vm1, %v6796_v46  ;;  %v7540_v46 = vld [vmem:[%s21813_s5 + $0x490] sm:$0xff] }
0x1674   : > { %16685 = vmatpush3.msra.mxu1 %v7115_v47  ;;  %v6500_v48 = vsel %vm429_vm2, %v6499_v16, 0.0  ;;  %16686 = vmatprep.mubr.msk.f32.mxu1 %vm17877_vm0, %v17876_v2  ;;  %v17800_v55 = vpop.eup %17799  ;;  %v7358_v16 = vld [vmem:[%s21811_s3 + $0x26] ss:$0 sm:$0xff] }
0x1675   : > { %6501 = vadd.xlane.f32.xlu0 %v6500_v48  ;;  %16694 = vmatprep.subr.mxu1 %v17876_v2  ;;  %v7274_v24 = vmul.f32 %v17800_v55, %v17792_v26 }
0x167b   : > { %16687 = vmatmul.mubr.msk.f32.vlgmr.msra.gmra.mrb[84].mxu1 %vm325_vm1, %v7114_v49 }
0x167c   : > { %16695 = vmatpush3.msra.mxu1 %v7275_v53  ;;  %16696 = vmatprep.mubr.msk.f32.mxu1 %vm17877_vm0, %v17876_v2 }
0x167d   : > { %17074 = vmatprep.subr.bf16.mxu1 %v17879_v28 }
0x1683   : > { %16697 = vmatmul.mubr.msk.f32.vlgmr.msra.gmra.mrb[84].mxu1 %vm325_vm1, %v7274_v24 }
0x1684   : > { %16734 = vmatprep.mubr.msk.f32.mxu1 %vm17877_vm0, %v17876_v2 }
0x1702   : > { %v6502_v18 = vpop.xlane.xlu0 %6501 }
0x1703   : > { %v6503_v11 = vmul.f32 0.015625, %v6502_v18  ;;  %v7450_v18 = vld [vmem:[%s21813_s5 + $0x3a0] sm:$0xff] }
0x1705   : > { %v6504_v12 = vadd.f32 1e-05, %v6503_v11  ;;  %v7451_v11 = vld [vmem:[%s21813_s5 + $0x3b0] sm:$0xff] }
0x1707   : > { %17801 = vrsqrt.f32 %v6504_v12  ;;  %v17075_v12 = vpack.c.bf16 %v7451_v11, %v7450_v18 }
0x1709   : > { %17076 = vmatpush3.bf16.msra.mxu1 %v17075_v12 }
0x170a   : > { %17077 = vmatprep.subr.bf16.mxu1 %v17879_v28 }
0x1711   : > { %v17802_v5 = vpop.eup %17801 }
0x1712   : > { %v6506_v14 = vmul.f32 %v17802_v5, %v6498_v9  ;;  %v7539_v9 = vld [vmem:[%s21813_s5 + $0x480] sm:$0xff] }
0x1713   : > { %v17096_v47 = vpack.c.bf16 %v7540_v46, %v7539_v9  ;;  %v7452_v5 = vld [vmem:[%s21813_s5 + $0x3c0] sm:$0xff] }
0x1714   : > { %v6507_v17 = vmul.f32 %v6506_v14, %v6492_v13  ;;  %v7453_v13 = vld [vmem:[%s21813_s5 + $0x3d0] sm:$0xff] }
0x1715   : > { %v17078_v14 = vpack.c.bf16 %v7453_v13, %v7452_v5 }
0x1716   : > { %v6508_v19 = vadd.f32 %v6507_v17, %v6493_v15  ;;  %v7454_v15 = vld [vmem:[%s21813_s5 + $0x3e0] sm:$0xff]  ;;  %v7455_v17 = vld [vmem:[%s21813_s5 + $0x3f0] sm:$0xff] }
0x1717   : > { %17079 = vmatpush3.bf16.msra.mxu1 %v17078_v14 }
0x1718   : > { %v6511_v34 = vsel %vm429_vm2, %v6508_v19, 0.0  ;;  %17080 = vmatprep.subr.bf16.mxu1 %v17879_v28 }
0x1719   : > { %6512 = vadd.xlane.f32.xlu1 %v6511_v34  ;;  %v7456_v34 = vld [vmem:[%s21813_s5 + $0x400] sm:$0xff] }
0x1756   : > { %v7345_v21 = vpop.f32.mrb[84].mxu1 }
0x1757   : > { %v16698_v22 = vpop.f32.mrb[85].mxu1  ;;  %16716 = vmatmul.mubr.msk.f32.vlgmr.msra.gmra.mrb[86].mxu0 %vm429_vm2, %v7345_v21  ;;  %v7457_v21 = vld [vmem:[%s21813_s5 + $0x410] sm:$0xff] }
0x1758   : > { %16753 = vmatprep.mubr.msk.f32.mxu0 %vm17877_vm0, %v17876_v2  ;;  %17088 = vmatpush3.bf16.msra.mxu0 %v17087_v33  ;;  %v17084_v22 = vpack.c.bf16 %v7457_v21, %v7456_v34 }
0x1759   : > { %17089 = vmatprep.subr.bf16.mxu0 %v17879_v28 }
0x175c   : > { %17091 = vmatpush3.bf16.msra.mxu0 %v17090_v38  ;;  %v7434_v38 = vld [vmem:[%s21811_s3 + $0x34] ss:$0 sm:$0xff] }
0x175d   : > { %17092 = vmatprep.subr.bf16.mxu0 %v17879_v28 }
0x1760   : > { %17094 = vmatpush3.bf16.msra.mxu0 %v17093_v62  ;;  %v7458_v62 = vld [vmem:[%s21811_s3 + $0x27] ss:$0 sm:$0xff] }
0x1761   : > { %17095 = vmatprep.subr.bf16.mxu0 %v17879_v28 }
0x1764   : > { %17097 = vmatpush3.bf16.msra.mxu0 %v17096_v47 }
0x1765   : > { %16776 = vmatprep.subr.mxu0 %v17876_v2 }
0x17a6   : > { %v6513_v26 = vpop.xlane.xlu1 %6512 }
0x17a7   : > { %v6514_v27 = vmul.f32 0.015625, %v6513_v26  ;;  %v7541_v26 = vld [vmem:[%s21811_s3 + $0x30] ss:$0 sm:$0xff] }
0x17a9   : > { %v6515_v30 = vsub.f32 %v6508_v19, %v6514_v27  ;;  %v17081_v19 = vpack.c.bf16 %v7455_v17, %v7454_v15 }
0x17ab   : > { %v6516_v54 = vmul.f32 %v6515_v30, %v6515_v30  ;;  %17082 = vmatpush3.bf16.msra.mxu1 %v17081_v19 }
0x17ac   : > { %17083 = vmatprep.subr.bf16.mxu1 %v17879_v28 }
0x17ad   : > { %v6517_v0 = vsel %vm429_vm2, %v6516_v54, 0.0 }
0x17ae   : > { %6518 = vadd.xlane.f32.xlu1 %v6517_v0 }
0x17af   : > { %17085 = vmatpush3.bf16.msra.mxu1 %v17084_v22 }
0x17b0   : > { %16756 = vmatprep.subr.mxu1 %v17876_v2 }
0x182a   : > { %v7428_v48 = vpop.f32.mrb[86].mxu0 }
0x182b   : > { %v7429_v7 = vadd.f32 %v7428_v48, %v7358_v16  ;;  %v16717_v49 = vpop.f32.mrb[87].mxu0 }
0x182d   : > { %v7432_v53 = vadd.f32 %v7429_v7, %v19728_v29 }
0x182f   : > { %v7435_v55 = vsel %vm429_vm2, %v7432_v53, 0.0 }
0x1830   : > { %7436 = vadd.xlane.f32.xlu0 %v7435_v55 }
0x183b   : > { %v6519_v24 = vpop.xlane.xlu1 %6518 }
0x183c   : > { %v6520_v56 = vmul.f32 0.015625, %v6519_v24 }
0x183e   : > { %v6521_v39 = vadd.f32 1e-05, %v6520_v56 }
0x1840   : > { %17803 = vrsqrt.f32 %v6521_v39 }
0x184a   : > { %v17804_v57 = vpop.eup %17803 }
0x184b   : > { %v6523_v59 = vmul.f32 %v17804_v57, %v6515_v30 }
0x184d   : > { %v6524_v61 = vmul.f32 %v6523_v59, %v6509_v63 }
0x184f   : > { %v19880_v10 = vadd.f32 %v6524_v61, %v6510_v60 }
0x1851   : > { %16754 = vmatmul.mubr.msk.f32.vlgmr.msra.gmra.mrb[88].mxu0 %vm429_vm2, %v19880_v10 }
0x1852   : > { %16778 = vmatprep.mubr.msk.f32.mxu0 %vm17877_vm0, %v17876_v2 }
0x18bd   : > { %v7437_v29 = vpop.xlane.xlu0 %7436 }
0x18be   : > { %v7438_v1 = vmul.f32 0.015625, %v7437_v29 }
0x18c0   : > { %v7439_v4 = vsub.f32 %v7432_v53, %v7438_v1 }
0x18c2   : > { %v7440_v8 = vmul.f32 %v7439_v4, %v7439_v4 }
0x18c4   : > { %v7441_v43 = vsel %vm429_vm2, %v7440_v8, 0.0 }
0x18c5   : > { %7442 = vadd.xlane.f32.xlu0 %v7441_v43 }
0x1924   : > { %v7611_v27 = vpop.f32.mrb[88].mxu0 }
0x1925   : > { %v19918_v30 = vadd.f32 %v7611_v27, %v7541_v26  ;;  %v16755_v54 = vpop.f32.mrb[89].mxu0 }
0x1927   : > { %16777 = vmatpush3.xpose.msk.msra.mxu0 %vm429_vm2, %v19918_v30 }
0x1928   : > { %16786 = vmatprep.subr.mxu0 %v17876_v2 }
0x1952   : > { %v7443_v0 = vpop.xlane.xlu0 %7442 }
0x1953   : > { %v7444_v31 = vmul.f32 0.015625, %v7443_v0 }
0x1955   : > { %v7445_v6 = vadd.f32 1e-05, %v7444_v31 }
0x1957   : > { %17805 = vrsqrt.f32 %v7445_v6 }
0x1961   : > { %v17806_v33 = vpop.eup %17805 }
0x1962   : > { %v7447_v37 = vmul.f32 %v17806_v33, %v7439_v4 }
0x1964   : > { %v7448_v32 = vmul.f32 %v7447_v37, %v7433_v36 }
0x1966   : > { %v19929_v20 = vadd.f32 %v7448_v32, %v7434_v38 }
0x1968   : > { %16735 = vmatmul.mubr.msk.f32.vlgmr.msra.gmra.mrb[86].mxu1 %vm429_vm2, %v19929_v20 }
0x1969   : > { %16757 = vmatpush3.xpose.msk.msra.mxu1 %vm429_vm2, %v19918_v30  ;;  %16758 = vmatprep.mubr.msk.f32.mxu1 %vm17877_vm0, %v17876_v2 }
0x196a   : > { %16761 = vmatprep.subr.mxu1 %v17876_v2 }
0x1a3b   : > { %v7528_v9 = vpop.f32.mrb[86].mxu1 }
0x1a3c   : > { %v7529_v46 = vadd.f32 %v7528_v9, %v7458_v62  ;;  %v16736_v47 = vpop.f32.mrb[87].mxu1 }
0x1a3d   : > { %v8288_v47 = vld [vmem:[%s21813_s5 + $0x4a0] sm:$0xff] }
0x1a3e   : > { %v7532_v16 = vmul.f32 0.25, %v7529_v46 }
0x1a40   : > { %v7615_v48 = vmul.f32 %v18026_v44, %v7532_v16  ;;  %v7952_v7 = vmul.f32 %v18029_v45, %v7532_v16  ;;  %v7708_v49 = vmul.f32 %v18039_v50, %v7532_v16  ;;  %v8120_v53 = vmul.f32 %v18042_v51, %v7532_v16  ;;  %v8289_v16 = vld [vmem:[%s21813_s5 + $0x4b0] sm:$0xff] }
0x1a42   : > { %16759 = vmatmul.mubr.msk.f32.vlgmr.msra.gmra.mrb[88].mxu1 %vm429_vm2, %v7615_v48  ;;  %16779 = vmatmul.mubr.msk.f32.vlgmr.msra.gmra.mrb[90].mxu0 %vm429_vm2, %v7952_v7  ;;  %v8290_v48 = vld [vmem:[%s21813_s5 + $0x4c0] sm:$0xff]  ;;  %v17099_v7 = vpack.c.bf16 %v8289_v16, %v8288_v47  ;;  %v8397_v16 = vld [vmem:[%s21814_s6 + $0x448] sm:$0xff] }
0x1a43   : > { %16762 = vmatpush3.xpose.msk.msra.mxu1 %vm429_vm2, %v19918_v30  ;;  %16787 = vmatpush3.xpose.msk.msra.mxu0 %vm429_vm2, %v19918_v30 }
0x1a44   : > { %16763 = vmatprep.mubr.msk.f32.mxu1 %vm17877_vm0, %v17876_v2  ;;  %16788 = vmatprep.mubr.msk.f32.mxu0 %vm17877_vm0, %v17876_v2 }
0x1a45   : > { %16766 = vmatprep.subr.mxu1 %v17876_v2  ;;  %17098 = vmatprep.subr.bf16.mxu0 %v17879_v28 }
0x1a46   : > { %16764 = vmatmul.mubr.msk.f32.vlgmr.msra.gmra.mrb[90].mxu1 %vm429_vm2, %v7708_v49  ;;  %16789 = vmatmul.mubr.msk.f32.vlgmr.msra.gmra.mrb[92].mxu0 %vm429_vm2, %v8120_v53  ;;  %v8291_v49 = vld [vmem:[%s21813_s5 + $0x4d0] sm:$0xff]  ;;  %v8292_v53 = vld [vmem:[%s21813_s5 + $0x4e0] sm:$0xff] }
0x1a47   : > { %16768 = vmatprep.mubr.msk.f32.mxu1 %vm17877_vm0, %v17876_v2  ;;  %16812 = vmatprep.mubr.msk.f32.mxu0 %vm17877_vm0, %v17876_v2 }
0x1a48   : > { %17100 = vmatpush3.bf16.msra.mxu0 %v17099_v7 }
0x1a49   : > { %17101 = vmatprep.subr.bf16.mxu0 %v17879_v28 }
0x1b15   : > { %v7688_v55 = vpop.f32.mrb[88].mxu1  ;;  %v8022_v24 = vpop.f32.mrb[90].mxu0 }
0x1b16   : > { %v16760_v56 = vpop.f32.mrb[89].mxu1  ;;  %v16780_v39 = vpop.f32.mrb[91].mxu0  ;;  %v7692_v57 = vsel %vm325_vm1, %v7688_v55, -inf  ;;  %v8026_v1 = vsel %vm325_vm1, %v8022_v24, -inf }
0x1b17   : > { %7693 = vmax.xlane.f32.xlu1 %v7692_v57  ;;  %v8294_v56 = vld [vmem:[%s21813_s5 + $0x500] sm:$0xff]  ;;  %v8295_v39 = vld [vmem:[%s21813_s5 + $0x510] sm:$0xff] }
0x1b18   : > { %v17108_v57 = vpack.c.bf16 %v8295_v39, %v8294_v56  ;;  %v8413_v56 = vld [vmem:[%s21814_s6 + $0x4c8] sm:$0xff] }
0x1b19   : > { %v7778_v63 = vpop.f32.mrb[90].mxu1  ;;  %v8190_v59 = vpop.f32.mrb[92].mxu0 }
0x1b1a   : > { %v16765_v60 = vpop.f32.mrb[91].mxu1  ;;  %v16790_v61 = vpop.f32.mrb[93].mxu0  ;;  %v7782_v29 = vsel %vm325_vm1, %v7778_v63, -inf  ;;  %v8194_v4 = vsel %vm325_vm1, %v8190_v59, -inf }
0x1b1b   : > { %7783 = vmax.xlane.f32.xlu0 %v7782_v29 }
0x1b1f   : > { %8027 = vmax.xlane.f32.xlu0 %v8026_v1 }
0x1b28   : > { %7704 = vrot.lane.b32.xlu1 %v18026_v44, %s17878_s11 }
0x1b35   : > { %7794 = vrot.lane.b32.xlu0 %v18039_v50, %s17878_s11 }
0x1b39   : > { %8206 = vrot.lane.b32.xlu0 %v18042_v51, %s17878_s11 }
0x1b4c   : > { %8195 = vmax.xlane.f32.xlu1 %v8194_v4 }
0x1b5d   : > { %8038 = vrot.lane.b32.xlu1 %v18029_v45, %s17878_s11 }
0x1ba4   : > { %v7694_v8 = vpop.xlane.xlu1 %7693 }
0x1ba5   : > { %v7695_v43 = vsub.f32 %v7688_v55, %v7694_v8  ;;  %v8293_v55 = vld [vmem:[%s21813_s5 + $0x4f0] sm:$0xff] }
0x1ba7   : > { %v7696_v18 = vmul.f32 1.442695, %v7695_v43 }
0x1ba8   : > { %v7784_v11 = vpop.xlane.xlu0 %7783  ;;  %v19984_v27 = vpop.permute.xlu1 %7704 }
0x1ba9   : > { %17807 = vpow2.f32 %v7696_v18  ;;  %v7785_v12 = vsub.f32 %v7778_v63, %v7784_v11  ;;  %v7707_v54 = vmul.f32 %v19984_v27, %v19918_v30 }
0x1bab   : > { %v7786_v5 = vmul.f32 1.442695, %v7785_v12 }
0x1bac   : > { %v8028_v13 = vpop.xlane.xlu0 %8027 }
0x1bad   : > { %17809 = vpow2.f32 %v7786_v5  ;;  %v8029_v14 = vsub.f32 %v8022_v24, %v8028_v13  ;;  %v17105_v24 = vpack.c.bf16 %v8293_v55, %v8292_v53  ;;  %v8412_v53 = vld [vmem:[%s21814_s6 + $0x4c0] sm:$0xff]  ;;  %v8405_v55 = vld [vmem:[%s21814_s6 + $0x488] sm:$0xff] }
0x1baf   : > { %v8030_v15 = vmul.f32 1.442695, %v8029_v14 }
0x1bb0   : > { %v19989_v0 = vpop.permute.xlu0 %7794 }
0x1bb1   : > { %17811 = vpow2.f32 %v8030_v15  ;;  %v7797_v31 = vmul.f32 %v19989_v0, %v19918_v30 }
0x1bb3   : > { %v19975_v17 = vpop.eup %17807 }
0x1bb4   : > { %v7698_v19 = vsel %vm325_vm1, %v19975_v17, 0.0  ;;  %v19993_v6 = vpop.permute.xlu0 %8206 }
0x1bb5   : > { %7699 = vadd.xlane.f32.xlu0 %v7698_v19  ;;  %v8209_v33 = vmul.f32 %v19993_v6, %v19918_v30 }
0x1bb7   : > { %v17810_v34 = vpop.eup %17809 }
0x1bb8   : > { %v7788_v21 = vsel %vm325_vm1, %v17810_v34, 0.0 }
0x1bb9   : > { %7789 = vadd.xlane.f32.xlu1 %v7788_v21 }
0x1bbb   : > { %v19980_v22 = vpop.eup %17811 }
0x1bbc   : > { %v8032_v26 = vsel %vm325_vm1, %v19980_v22, 0.0 }
0x1bbd   : > { %8033 = vadd.xlane.f32.xlu0 %v8032_v26 }
0x1bca   : > { %7876 = vrot.lane.b32.xlu1 %v7707_v54, %s17878_s11 }
0x1bd3   : > { %7799 = vrot.lane.b32.xlu0 %v7797_v31, %s17878_s11 }
0x1bd7   : > { %8211 = vrot.lane.b32.xlu0 %v8209_v33, %s17878_s11 }
0x1bd9   : > { %v8196_v36 = vpop.xlane.xlu1 %8195 }
0x1bda   : > { %v8197_v37 = vsub.f32 %v8190_v59, %v8196_v36 }
0x1bdc   : > { %v8198_v38 = vmul.f32 1.442695, %v8197_v37 }
0x1bdd   : > { %v20000_v9 = vpop.permute.xlu1 %8038 }
0x1bde   : > { %17813 = vpow2.f32 %v8198_v38  ;;  %v8041_v46 = vmul.f32 %v20000_v9, %v19918_v30  ;;  %v17102_v30 = vpack.c.bf16 %v8291_v49, %v8290_v48 }
0x1be0   : > { %17103 = vmatpush3.bf16.msra.mxu0 %v17102_v30  ;;  %v8404_v30 = vld [vmem:[%s21814_s6 + $0x480] sm:$0xff] }
0x1be1   : > { %17104 = vmatprep.subr.bf16.mxu0 %v17879_v28  ;;  %v15209_v39 = vcombine.low %v8404_v30, %v8412_v53 }
0x1be4   : > { %17106 = vmatpush3.bf16.msra.mxu0 %v17105_v24  ;;  %v15210_v24 = vcombine.high %v8404_v30, %v8412_v53 }
0x1be5   : > { %17107 = vmatprep.subr.bf16.mxu0 %v17879_v28 }
0x1be8   : > { %v17814_v32 = vpop.eup %17813  ;;  %17109 = vmatpush3.bf16.msra.mxu0 %v17108_v57  ;;  %v15211_v57 = vcombine.low %v8405_v55, %v8413_v56 }
0x1be9   : > { %v8200_v62 = vsel %vm325_vm1, %v17814_v32, 0.0 }
0x1bee   : > { %8201 = vadd.xlane.f32.xlu1 %v8200_v62  ;;  %v8388_v62 = vld [vmem:[%s21814_s6 + $0x400] sm:$0xff] }
0x1bff   : > { %8043 = vrot.lane.b32.xlu1 %v8041_v46, %s17878_s11  ;;  %v8389_v46 = vld [vmem:[%s21814_s6 + $0x408] sm:$0xff] }
0x1c00   : > { %v15195_v7 = vcombine.low %v8389_v46, %v8397_v16  ;;  %v15196_v49 = vcombine.high %v8389_v46, %v8397_v16 }
0x1c02   : > { %9160 = vmatprep.subr.bf16.mxu0 %v15196_v49  ;;  %v8407_v49 = vld [vmem:[%s21814_s6 + $0x498] sm:$0xff] }
0x1c42   : > { %v7700_v63 = vpop.xlane.xlu0 %7699 }
0x1c46   : > { %v7790_v59 = vpop.xlane.xlu1 %7789 }
0x1c47   : > { %17815 = vrcp.f32 %v7790_v59  ;;  %v8420_v59 = vld [vmem:[%s21814_s6 + $0x500] sm:$0xff] }
0x1c48   : > { %17817 = vrcp.f32 %v7700_v63  ;;  %v15212_v63 = vcombine.high %v8405_v55, %v8413_v56  ;;  %v8422_v56 = vld [vmem:[%s21814_s6 + $0x510] sm:$0xff] }
0x1c4a   : > { %v8034_v60 = vpop.xlane.xlu0 %8033  ;;  %v7877_v4 = vpop.permute.xlu1 %7876 }
0x1c4b   : > { %17819 = vrcp.f32 %v8034_v60  ;;  %v8428_v60 = vld [vmem:[%s21814_s6 + $0x540] sm:$0xff] }
0x1c4e   : > { %v7800_v61 = vpop.permute.xlu0 %7799 }
0x1c4f   : > { %16767 = vmatpush3.msra.mxu1 %v7800_v61  ;;  %v8421_v61 = vld [vmem:[%s21814_s6 + $0x508] sm:$0xff] }
0x1c50   : > { %16771 = vmatprep.subr.mxu1 %v17876_v2 }
0x1c51   : > { %v17816_v29 = vpop.eup %17815 }
0x1c52   : > { %v7792_v1 = vmul.f32 %v17816_v29, %v17810_v34  ;;  %v17818_v8 = vpop.eup %17817  ;;  %v8212_v13 = vpop.permute.xlu0 %8211  ;;  %v8296_v34 = vld [vmem:[%s21811_s3 + $0x31] ss:$0 sm:$0xff]  ;;  %v15226_v29 = vcombine.high %v8420_v59, %v8428_v60 }
0x1c53   : > { %v7702_v43 = vmul.f32 %v17818_v8, %v19975_v17 }
0x1c54   : > { %16769 = vmatmul.mubr.msk.f32.vlgmr.msra.gmra.mrb[92].mxu1 %vm325_vm1, %v7792_v1  ;;  %v8429_v1 = vld [vmem:[%s21814_s6 + $0x548] sm:$0xff] }
0x1c55   : > { %16772 = vmatpush3.msra.mxu1 %v7877_v4  ;;  %16773 = vmatprep.mubr.msk.f32.mxu1 %vm17877_vm0, %v17876_v2  ;;  %v17820_v11 = vpop.eup %17819  ;;  %v15225_v4 = vcombine.low %v8420_v59, %v8428_v60  ;;  %v15227_v8 = vcombine.low %v8421_v61, %v8429_v1 }
0x1c56   : > { %16781 = vmatprep.subr.mxu1 %v17876_v2  ;;  %v8036_v12 = vmul.f32 %v17820_v11, %v19980_v22  ;;  %v8444_v11 = vld [vmem:[%s21814_s6 + $0x5c0] sm:$0xff] }
0x1c5c   : > { %16774 = vmatmul.mubr.msk.f32.vlgmr.msra.gmra.mrb[92].mxu1 %vm325_vm1, %v7702_v43  ;;  %v15228_v43 = vcombine.high %v8421_v61, %v8429_v1  ;;  %v8438_v1 = vld [vmem:[%s21814_s6 + $0x590] sm:$0xff] }
0x1c5d   : > { %16783 = vmatprep.mubr.msk.f32.mxu1 %vm17877_vm0, %v17876_v2 }
0x1c7b   : > { %v8202_v18 = vpop.xlane.xlu1 %8201 }
0x1c7c   : > { %17821 = vrcp.f32 %v8202_v18  ;;  %v8436_v18 = vld [vmem:[%s21814_s6 + $0x580] sm:$0xff] }
0x1c7f   : > { %v8044_v5 = vpop.permute.xlu1 %8043 }
0x1c80   : > { %16782 = vmatpush3.msra.mxu1 %v8044_v5  ;;  %v15242_v5 = vcombine.high %v8436_v18, %v8444_v11 }
0x1c81   : > { %16784 = vmatmul.mubr.msk.f32.vlgmr.msra.gmra.mrb[92].mxu1 %vm325_vm1, %v8036_v12  ;;  %16791 = vmatprep.subr.mxu1 %v17876_v2  ;;  %v8437_v12 = vld [vmem:[%s21814_s6 + $0x588] sm:$0xff] }
0x1c82   : > { %16792 = vmatpush3.msra.mxu1 %v8212_v13  ;;  %16793 = vmatprep.mubr.msk.f32.mxu1 %vm17877_vm0, %v17876_v2  ;;  %v8445_v13 = vld [vmem:[%s21814_s6 + $0x5c8] sm:$0xff] }
0x1c86   : > { %v17822_v14 = vpop.eup %17821 }
0x1c87   : > { %v8204_v15 = vmul.f32 %v17822_v14, %v17814_v32  ;;  %v15241_v14 = vcombine.low %v8436_v18, %v8444_v11 }
0x1c89   : > { %16794 = vmatmul.mubr.msk.f32.vlgmr.msra.gmra.mrb[92].mxu1 %vm325_vm1, %v8204_v15  ;;  %v15243_v15 = vcombine.low %v8437_v12, %v8445_v13 }
0x1c8a   : > { %9151 = vmatprep.mubr.bf16.mxu1 %v17880_v58 }
0x1d5c   : > { %v8283_v17 = vpop.f32.mrb[92].mxu1 }
0x1d5d   : > { %v16795_v19 = vpop.f32.mrb[93].mxu1  ;;  %16813 = vmatmul.mubr.msk.f32.vlgmr.msra.gmra.mrb[94].mxu0 %vm429_vm2, %v8283_v17  ;;  %v15244_v17 = vcombine.high %v8437_v12, %v8445_v13  ;;  %v8392_v13 = vld [vmem:[%s21814_s6 + $0x420] sm:$0xff] }
0x1d5e   : > { %9192 = vmatprep.mubr.bf16.mxu0 %v17880_v58  ;;  %9161 = vmatpush1.bf16.msra.mxu0 %v15195_v7  ;;  %v8390_v19 = vld [vmem:[%s21814_s6 + $0x410] sm:$0xff] }
0x1d5f   : > { %9162 = vmatprep.subr.bf16.mxu0 %v15212_v63  ;;  %v8414_v7 = vld [vmem:[%s21814_s6 + $0x4d0] sm:$0xff]  ;;  %v8431_v63 = vld [vmem:[%s21814_s6 + $0x558] sm:$0xff] }
0x1d62   : > { %9163 = vmatpush1.bf16.msra.mxu0 %v15211_v57  ;;  %v8423_v57 = vld [vmem:[%s21814_s6 + $0x518] sm:$0xff] }
0x1d63   : > { %9164 = vmatprep.subr.bf16.mxu0 %v15228_v43  ;;  %v8447_v43 = vld [vmem:[%s21814_s6 + $0x5d8] sm:$0xff]  ;;  %v15231_v11 = vcombine.low %v8423_v57, %v8431_v63 }
0x1d66   : > { %9165 = vmatpush1.bf16.msra.mxu0 %v15227_v8  ;;  %v8439_v8 = vld [vmem:[%s21814_s6 + $0x598] sm:$0xff] }
0x1d67   : > { %9166 = vmatprep.subr.bf16.mxu0 %v15244_v17  ;;  %v8401_v17 = vld [vmem:[%s21814_s6 + $0x468] sm:$0xff] }
0x1d6a   : > { %9167 = vmatpush1.bf16.msra.mxu0 %v15243_v15  ;;  %v8393_v15 = vld [vmem:[%s21814_s6 + $0x428] sm:$0xff] }
0x1e30   : > { %v8366_v21 = vpop.f32.mrb[94].mxu0 }
0x1e31   : > { %v8367_v22 = vadd.f32 %v8366_v21, %v8296_v34  ;;  %v16814_v26 = vpop.f32.mrb[95].mxu0  ;;  %v8398_v34 = vld [vmem:[%s21814_s6 + $0x450] sm:$0xff]  ;;  %v8391_v21 = vld [vmem:[%s21814_s6 + $0x418] sm:$0xff] }
0x1e32   : > { %v15198_v26 = vcombine.high %v8390_v19, %v8398_v34 }
0x1e33   : > { %v8370_v54 = vadd.f32 %v8367_v22, %v19929_v20  ;;  %v8396_v20 = vld [vmem:[%s21814_s6 + $0x440] sm:$0xff]  ;;  %v15197_v22 = vcombine.low %v8390_v19, %v8398_v34  ;;  %v15247_v34 = vcombine.low %v8439_v8, %v8447_v43 }
0x1e34   : > { %v15194_v47 = vcombine.high %v8388_v62, %v8396_v20  ;;  %v15193_v48 = vcombine.low %v8388_v62, %v8396_v20  ;;  %v8371_v20 = vld [vmem:[%s21811_s3 + $0x35] ss:$0 sm:$0xff] }
0x1e35   : > { %v8373_v31 = vsel %vm429_vm2, %v8370_v54, 0.0 }
0x1e36   : > { %8374 = vadd.xlane.f32.xlu1 %v8373_v31  ;;  %9119 = vmatprep.subr.bf16.mxu1 %v15194_v47  ;;  %v8372_v47 = vld [vmem:[%s21811_s3 + $0x36] ss:$0 sm:$0xff] }
0x1e37   : > { %9120 = vmatpush1.bf16.msra.mxu1 %v15193_v48  ;;  %v8406_v48 = vld [vmem:[%s21814_s6 + $0x490] sm:$0xff] }
0x1e38   : > { %9121 = vmatprep.subr.bf16.mxu1 %v15210_v24  ;;  %v15214_v55 = vcombine.high %v8406_v48, %v8414_v7  ;;  %v15213_v59 = vcombine.low %v8406_v48, %v8414_v7 }
0x1e3b   : > { %9122 = vmatpush1.bf16.msra.mxu1 %v15209_v39  ;;  %v8430_v39 = vld [vmem:[%s21814_s6 + $0x550] sm:$0xff] }
0x1e3c   : > { %9123 = vmatprep.subr.bf16.mxu1 %v15226_v29  ;;  %v15230_v61 = vcombine.high %v8422_v56, %v8430_v39  ;;  %v15232_v29 = vcombine.high %v8423_v57, %v8431_v63  ;;  %v15229_v18 = vcombine.low %v8422_v56, %v8430_v39  ;;  %v8441_v56 = vld [vmem:[%s21814_s6 + $0x5a8] sm:$0xff] }
0x1e3d   : > { %v8449_v39 = vld [vmem:[%s21814_s6 + $0x5e8] sm:$0xff] }
0x1e3f   : > { %9124 = vmatpush1.bf16.msra.mxu1 %v15225_v4  ;;  %v8446_v4 = vld [vmem:[%s21814_s6 + $0x5d0] sm:$0xff] }
0x1e40   : > { %9125 = vmatprep.subr.bf16.mxu1 %v15242_v5  ;;  %v15246_v12 = vcombine.high %v8438_v1, %v8446_v4  ;;  %v15248_v5 = vcombine.high %v8439_v8, %v8447_v43  ;;  %v15245_v19 = vcombine.low %v8438_v1, %v8446_v4  ;;  %v8395_v1 = vld [vmem:[%s21814_s6 + $0x438] sm:$0xff]  ;;  %v15251_v43 = vcombine.low %v8441_v56, %v8449_v39 }
0x1e41   : > { %v8403_v4 = vld [vmem:[%s21814_s6 + $0x478] sm:$0xff] }
0x1e43   : > { %9126 = vmatpush1.bf16.msra.mxu1 %v15241_v14  ;;  %v8400_v14 = vld [vmem:[%s21814_s6 + $0x460] sm:$0xff] }
0x1e44   : > { %9201 = vmatprep.subr.bf16.mxu1 %v15198_v26  ;;  %v8408_v26 = vld [vmem:[%s21814_s6 + $0x4a0] sm:$0xff] }
0x1ec3   : > { %v8375_v33 = vpop.xlane.xlu1 %8374 }
0x1ec4   : > { %v8376_v36 = vmul.f32 0.015625, %v8375_v33 }
0x1ec6   : > { %v20055_v37 = vsub.f32 %v8370_v54, %v8376_v36  ;;  %v8399_v54 = vld [vmem:[%s21814_s6 + $0x458] sm:$0xff] }
0x1ec7   : > { %v15199_v31 = vcombine.low %v8391_v21, %v8399_v54  ;;  %v15200_v33 = vcombine.high %v8391_v21, %v8399_v54  ;;  %v15202_v21 = vcombine.high %v8392_v13, %v8400_v14  ;;  %v8416_v54 = vld [vmem:[%s21814_s6 + $0x4e0] sm:$0xff] }
0x1ec8   : > { %v8378_v38 = vmul.f32 %v20055_v37, %v20055_v37  ;;  %v15217_v48 = vcombine.low %v8408_v26, %v8416_v54 }
0x1ec9   : > { %9242 = vmatprep.subr.bf16.mxu0 %v15200_v33  ;;  %v8417_v33 = vld [vmem:[%s21814_s6 + $0x4e8] sm:$0xff] }
0x1eca   : > { %v8379_v32 = vsel %vm429_vm2, %v8378_v38, 0.0 }
0x1ecb   : > { %8380 = vadd.xlane.f32.xlu0 %v8379_v32 }
0x1f58   : > { %v8381_v36 = vpop.xlane.xlu0 %8380 }
0x1f59   : > { %v8382_v38 = vmul.f32 0.015625, %v8381_v36  ;;  %v15201_v36 = vcombine.low %v8392_v13, %v8400_v14  ;;  %v8411_v13 = vld [vmem:[%s21814_s6 + $0x4b8] sm:$0xff] }
0x1f5a   : > { %v8419_v14 = vld [vmem:[%s21814_s6 + $0x4f8] sm:$0xff] }
0x1f5b   : > { %v8383_v32 = vadd.f32 1e-05, %v8382_v38  ;;  %v15203_v38 = vcombine.low %v8393_v15, %v8401_v17 }
0x1f5d   : > { %17823 = vrsqrt.f32 %v8383_v32  ;;  %v15218_v32 = vcombine.high %v8408_v26, %v8416_v54  ;;  %v8427_v26 = vld [vmem:[%s21814_s6 + $0x538] sm:$0xff] }
0x1f5e   : > { %v8435_v54 = vld [vmem:[%s21814_s6 + $0x578] sm:$0xff] }
0x1f67   : > { %v17824_v62 = vpop.eup %17823 }
0x1f68   : > { %v8385_v46 = vmul.f32 %v17824_v62, %v20055_v37  ;;  %v8415_v37 = vld [vmem:[%s21814_s6 + $0x4d8] sm:$0xff] }
0x1f69   : > { %v15216_v24 = vcombine.high %v8407_v49, %v8415_v37  ;;  %v15215_v60 = vcombine.low %v8407_v49, %v8415_v37 }
0x1f6a   : > { %v8386_v16 = vmul.f32 %v8385_v46, %v8371_v20  ;;  %v8424_v20 = vld [vmem:[%s21814_s6 + $0x520] sm:$0xff] }
0x1f6b   : > { %v8432_v46 = vld [vmem:[%s21814_s6 + $0x560] sm:$0xff] }
0x1f6c   : > { %v20139_v30 = vadd.f32 %v8386_v16, %v8372_v47  ;;  %v8425_v47 = vld [vmem:[%s21814_s6 + $0x528] sm:$0xff]  ;;  %v15234_v49 = vcombine.high %v8424_v20, %v8432_v46  ;;  %v15233_v57 = vcombine.low %v8424_v20, %v8432_v46  ;;  %v8443_v20 = vld [vmem:[%s21814_s6 + $0x5b8] sm:$0xff] }
0x1f6d   : > { %v8433_v16 = vld [vmem:[%s21814_s6 + $0x568] sm:$0xff]  ;;  %v8451_v46 = vld [vmem:[%s21814_s6 + $0x5f8] sm:$0xff] }
0x1f6e   : > { %v20143_v53 = vpack.c.bf16 %v20139_v30, %v20139_v30  ;;  %v15236_v37 = vcombine.high %v8425_v47, %v8433_v16  ;;  %v15235_v63 = vcombine.low %v8425_v47, %v8433_v16  ;;  %v15239_v16 = vcombine.low %v8427_v26, %v8435_v54 }
0x1f70   : > { %15257 = vmatmul.mubr.msk.bf16.vlgmr.msra.gmra.mrb[96].mxu1 %vm429_vm2, %v20143_v53  ;;  %15258 = vmatmul.mubr.msk.bf16.vlgmr.msra.gmra.mrb[96].mxu0 %vm429_vm2, %v20143_v53 }
0x1f71   : > { %9202 = vmatpush1.bf16.msra.mxu1 %v15197_v22  ;;  %9243 = vmatpush1.bf16.msra.mxu0 %v15199_v31  ;;  %v15204_v22 = vcombine.high %v8393_v15, %v8401_v17  ;;  %v8409_v31 = vld [vmem:[%s21814_s6 + $0x4a8] sm:$0xff]  ;;  %v15207_v17 = vcombine.low %v8395_v1, %v8403_v4 }
0x1f72   : > { %9203 = vmatprep.subr.bf16.mxu1 %v15214_v55  ;;  %9244 = vmatprep.subr.bf16.mxu0 %v15216_v24  ;;  %v15220_v62 = vcombine.high %v8409_v31, %v8417_v33  ;;  %v15219_v7 = vcombine.low %v8409_v31, %v8417_v33  ;;  %v8440_v55 = vld [vmem:[%s21814_s6 + $0x5a0] sm:$0xff]  ;;  %v15223_v33 = vcombine.low %v8411_v13, %v8419_v14 }
0x1f73   : > { %9233 = vmatprep.mubr.bf16.mxu1 %v17880_v58  ;;  %9274 = vmatprep.mubr.bf16.mxu0 %v17880_v58  ;;  %v8448_v24 = vld [vmem:[%s21814_s6 + $0x5e0] sm:$0xff] }
0x1f74   : > { %v15249_v8 = vcombine.low %v8440_v55, %v8448_v24 }
0x1f75   : > { %9204 = vmatpush1.bf16.msra.mxu1 %v15213_v59  ;;  %9245 = vmatpush1.bf16.msra.mxu0 %v15215_v60  ;;  %v15250_v59 = vcombine.high %v8440_v55, %v8448_v24  ;;  %v15252_v60 = vcombine.high %v8441_v56, %v8449_v39  ;;  %v17491_v55 = vld [vmem:[%s21815_s7 + $0x840] sm:$0xff]  }
0x1f76   : > { %9205 = vmatprep.subr.bf16.mxu1 %v15230_v61  ;;  %9246 = vmatprep.subr.bf16.mxu0 %v15232_v29  ;;  %v8394_v61 = vld [vmem:[%s21814_s6 + $0x430] sm:$0xff]  ;;  %v17492_v24 = vld [vmem:[%s21815_s7 + $0x8c0] sm:$0xff]  }
0x1f77   : > { %v8402_v29 = vld [vmem:[%s21814_s6 + $0x470] sm:$0xff]  ;;  %v17493_v56 = vld [vmem:[%s21815_s7 + $0x800] sm:$0xff]  }
0x1f78   : > { %v15205_v15 = vcombine.low %v8394_v61, %v8402_v29  ;;  %v17494_v39 = vld [vmem:[%s21815_s7 + $0x880] sm:$0xff]  }
0x1f79   : > { %9206 = vmatpush1.bf16.msra.mxu1 %v15229_v18  ;;  %9247 = vmatpush1.bf16.msra.mxu0 %v15231_v11  ;;  %v15206_v18 = vcombine.high %v8394_v61, %v8402_v29  ;;  %v15208_v11 = vcombine.high %v8395_v1, %v8403_v4  ;;  %v17499_v61 = vld [vmem:[%s21815_s7 + $0x850] sm:$0xff]   ;;  %v17503_v4 = vld [vmem:[%s21815_s7 + $0x858] sm:$0xff]  }
0x1f7a   : > { %9207 = vmatprep.subr.bf16.mxu1 %v15246_v12  ;;  %9248 = vmatprep.subr.bf16.mxu0 %v15248_v5  ;;  %v8410_v12 = vld [vmem:[%s21814_s6 + $0x4b0] sm:$0xff] }
0x1f7b   : > { %v8418_v5 = vld [vmem:[%s21814_s6 + $0x4f0] sm:$0xff] }
0x1f7c   : > { %v15221_v31 = vcombine.low %v8410_v12, %v8418_v5  ;;  %v17501_v29 = vld [vmem:[%s21815_s7 + $0x810] sm:$0xff]  }
0x1f7d   : > { %9208 = vmatpush1.bf16.msra.mxu1 %v15245_v19  ;;  %9249 = vmatpush1.bf16.msra.mxu0 %v15247_v34  ;;  %v15222_v19 = vcombine.high %v8410_v12, %v8418_v5  ;;  %v15224_v34 = vcombine.high %v8411_v13, %v8419_v14  ;;  %v17502_v1 = vld [vmem:[%s21815_s7 + $0x890] sm:$0xff]   ;;  %v17508_v12 = vld [vmem:[%s21815_s7 + $0x8e0] sm:$0xff]   ;;  %v17511_v14 = vld [vmem:[%s21815_s7 + $0x868] sm:$0xff]  }
0x1f7e   : > { %9283 = vmatprep.subr.bf16.mxu1 %v15202_v21  ;;  %9324 = vmatprep.subr.bf16.mxu0 %v15204_v22  ;;  %v8426_v21 = vld [vmem:[%s21814_s6 + $0x530] sm:$0xff]  ;;  %v17509_v5 = vld [vmem:[%s21815_s7 + $0x820] sm:$0xff]  }
0x1f7f   : > { %v8434_v22 = vld [vmem:[%s21814_s6 + $0x570] sm:$0xff]  ;;  %v17510_v13 = vld [vmem:[%s21815_s7 + $0x8a0] sm:$0xff]  }
0x1f80   : > { %15259 = vmatmul.mubr.msk.bf16.vlgmr.msra.gmra.mrb[100].mxu1 %vm429_vm2, %v20143_v53  ;;  %15260 = vmatmul.mubr.msk.bf16.vlgmr.msra.gmra.mrb[100].mxu0 %vm429_vm2, %v20143_v53  ;;  %v15237_v47 = vcombine.low %v8426_v21, %v8434_v22 }
0x1f81   : > { %9284 = vmatpush1.bf16.msra.mxu1 %v15201_v36  ;;  %9325 = vmatpush1.bf16.msra.mxu0 %v15203_v38  ;;  %v15238_v36 = vcombine.high %v8426_v21, %v8434_v22  ;;  %v15240_v38 = vcombine.high %v8427_v26, %v8435_v54  ;;  %v17516_v21 = vld [vmem:[%s21815_s7 + $0x8f0] sm:$0xff]   ;;  %v17519_v54 = vld [vmem:[%s21815_s7 + $0x878] sm:$0xff]  }
0x1f82   : > { %9285 = vmatprep.subr.bf16.mxu1 %v15218_v32  ;;  %9326 = vmatprep.subr.bf16.mxu0 %v15220_v62  ;;  %v8442_v32 = vld [vmem:[%s21814_s6 + $0x5b0] sm:$0xff] }
0x1f83   : > { %9315 = vmatprep.mubr.bf16.mxu1 %v17880_v58  ;;  %9356 = vmatprep.mubr.bf16.mxu0 %v17880_v58  ;;  %v8450_v62 = vld [vmem:[%s21814_s6 + $0x5f0] sm:$0xff] }
0x1f84   : > { %v17517_v22 = vld [vmem:[%s21815_s7 + $0x830] sm:$0xff]  }
0x1f85   : > { %9286 = vmatpush1.bf16.msra.mxu1 %v15217_v48  ;;  %9327 = vmatpush1.bf16.msra.mxu0 %v15219_v7  ;;  %v15254_v48 = vcombine.high %v8442_v32, %v8450_v62  ;;  %v15256_v7 = vcombine.high %v8443_v20, %v8451_v46  ;;  %v17518_v26 = vld [vmem:[%s21815_s7 + $0x8b0] sm:$0xff]  }
0x1f86   : > { %9287 = vmatprep.subr.bf16.mxu1 %v15234_v49  ;;  %9328 = vmatprep.subr.bf16.mxu0 %v15236_v37  ;;  %v15253_v49 = vcombine.low %v8442_v32, %v8450_v62  ;;  %v15255_v37 = vcombine.low %v8443_v20, %v8451_v46  ;;  %v17524_v32 = vld [vmem:[%s21815_s7 + $0x9c0] sm:$0xff]  }
0x1f87   : > { %v20392_v62 = vld [vmem:[%s21812_s4 + $0x2] ss:$4 sm:$0xff] }
0x1f88   : > { %v8719_v20 = vrot.slane %v20392_v62, %v18015_v35  ;;  %v8727_v46 = vrot.slane %v20392_v62, %v18463_v23 }
0x1f89   : > { %9288 = vmatpush1.bf16.msra.mxu1 %v15233_v57  ;;  %9329 = vmatpush1.bf16.msra.mxu0 %v15235_v63  ;;  %v17495_v57 = vld [vmem:[%s21815_s7 + $0x848] sm:$0xff]  }
0x1f8a   : > { %9289 = vmatprep.subr.bf16.mxu1 %v15250_v59  ;;  %9330 = vmatprep.subr.bf16.mxu0 %v15252_v60  ;;  %v17496_v63 = vld [vmem:[%s21815_s7 + $0x8c8] sm:$0xff]  }
0x1f8b   : > { %v17497_v59 = vld [vmem:[%s21815_s7 + $0x808] sm:$0xff]  }
0x1f8c   : > { %v17498_v60 = vld [vmem:[%s21815_s7 + $0x888] sm:$0xff]  }
0x1f8d   : > { %9290 = vmatpush1.bf16.msra.mxu1 %v15249_v8  ;;  %9331 = vmatpush1.bf16.msra.mxu0 %v15251_v43  ;;  %v17504_v8 = vld [vmem:[%s21815_s7 + $0x8d8] sm:$0xff]  }
0x1f8e   : > { %9365 = vmatprep.subr.bf16.mxu1 %v15206_v18  ;;  %9406 = vmatprep.subr.bf16.mxu0 %v15208_v11  ;;  %v17505_v43 = vld [vmem:[%s21815_s7 + $0x818] sm:$0xff]   ;;  %v17507_v11 = vld [vmem:[%s21815_s7 + $0x860] sm:$0xff]  }
0x1f8f   : > { %v17506_v18 = vld [vmem:[%s21815_s7 + $0x898] sm:$0xff]  }
0x1f90   : > { %15261 = vmatmul.mubr.msk.bf16.vlgmr.msra.gmra.mrb[104].mxu1 %vm429_vm2, %v20143_v53  ;;  %15262 = vmatmul.mubr.msk.bf16.vlgmr.msra.gmra.mrb[104].mxu0 %vm429_vm2, %v20143_v53 }
0x1f91   : > { %9366 = vmatpush1.bf16.msra.mxu1 %v15205_v15  ;;  %9407 = vmatpush1.bf16.msra.mxu0 %v15207_v17  ;;  %v17512_v15 = vld [vmem:[%s21815_s7 + $0x8e8] sm:$0xff]  }
0x1f92   : > { %9367 = vmatprep.subr.bf16.mxu1 %v15222_v19  ;;  %9408 = vmatprep.subr.bf16.mxu0 %v15224_v34  ;;  %v17513_v17 = vld [vmem:[%s21815_s7 + $0x828] sm:$0xff]   ;;  %v17515_v34 = vld [vmem:[%s21815_s7 + $0x870] sm:$0xff]  }
0x1f93   : > { %9397 = vmatprep.mubr.bf16.mxu1 %v17880_v58  ;;  %9438 = vmatprep.mubr.bf16.mxu0 %v17880_v58  ;;  %v17514_v19 = vld [vmem:[%s21815_s7 + $0x8a8] sm:$0xff]  }
0x1f95   : > { %9368 = vmatpush1.bf16.msra.mxu1 %v15221_v31  ;;  %9409 = vmatpush1.bf16.msra.mxu0 %v15223_v33  ;;  %v17520_v31 = vld [vmem:[%s21815_s7 + $0x8f8] sm:$0xff]  }
0x1f96   : > { %9369 = vmatprep.subr.bf16.mxu1 %v15238_v36  ;;  %9410 = vmatprep.subr.bf16.mxu0 %v15240_v38  ;;  %v17521_v33 = vld [vmem:[%s21815_s7 + $0x838] sm:$0xff]   ;;  %v17523_v38 = vld [vmem:[%s21815_s7 + $0x940] sm:$0xff]  }
0x1f97   : > { %v17522_v36 = vld [vmem:[%s21815_s7 + $0x8b8] sm:$0xff]  }
0x1f99   : > { %9370 = vmatpush1.bf16.msra.mxu1 %v15237_v47  ;;  %9411 = vmatpush1.bf16.msra.mxu0 %v15239_v16  ;;  %v8723_v47 = vrot.slane %v20392_v62, %v18023_v42  ;;  %v8731_v16 = vrot.slane %v20392_v62, %v18471_v25 }
0x1f9a   : > { %9371 = vmatprep.subr.bf16.mxu1 %v15254_v48  ;;  %9412 = vmatprep.subr.bf16.mxu0 %v15256_v7 }
0x1f9d   : > { %9372 = vmatpush1.bf16.msra.mxu1 %v15253_v49  ;;  %9413 = vmatpush1.bf16.msra.mxu0 %v15255_v37 }
0x1f9e   : > { %16102 = vmatprep.subr.bf16.mxu1 %v17491_v55  ;;  %16124 = vmatprep.subr.bf16.mxu0 %v17492_v24 }
0x1fa0   : > { %15263 = vmatmul.mubr.msk.bf16.vlgmr.msra.gmra.mrb[108].mxu1 %vm429_vm2, %v20143_v53  ;;  %15264 = vmatmul.mubr.msk.bf16.vlgmr.msra.gmra.mrb[108].mxu0 %vm429_vm2, %v20143_v53  ;;  %v17500_v53 = vld [vmem:[%s21815_s7 + $0x8d0] sm:$0xff]  }
0x1fa1   : > { %16103 = vmatpush3.bf16.msra.mxu1 %v17493_v56  ;;  %16125 = vmatpush3.bf16.msra.mxu0 %v17494_v39 }
0x1fa2   : > { %16104 = vmatprep.subr.bf16.mxu1 %v17495_v57  ;;  %16126 = vmatprep.subr.bf16.mxu0 %v17496_v63 }
0x1fa5   : > { %16105 = vmatpush3.bf16.msra.mxu1 %v17497_v59  ;;  %16127 = vmatpush3.bf16.msra.mxu0 %v17498_v60 }
0x1fa6   : > { %16106 = vmatprep.subr.bf16.mxu1 %v17499_v61  ;;  %16128 = vmatprep.subr.bf16.mxu0 %v17500_v53 }
0x1fa9   : > { %16107 = vmatpush3.bf16.msra.mxu1 %v17501_v29  ;;  %16129 = vmatpush3.bf16.msra.mxu0 %v17502_v1 }
0x1faa   : > { %16108 = vmatprep.subr.bf16.mxu1 %v17503_v4  ;;  %16130 = vmatprep.subr.bf16.mxu0 %v17504_v8 }
0x1fad   : > { %16109 = vmatpush3.bf16.msra.mxu1 %v17505_v43  ;;  %16131 = vmatpush3.bf16.msra.mxu0 %v17506_v18  ;;  %v17525_v43 = vld [vmem:[%s21815_s7 + $0x900] sm:$0xff]  }
0x1fae   : > { %16110 = vmatprep.subr.bf16.mxu1 %v17507_v11  ;;  %16132 = vmatprep.subr.bf16.mxu0 %v17508_v12  ;;  %v17526_v18 = vld [vmem:[%s21815_s7 + $0x980] sm:$0xff]  }
0x1fb1   : > { %16111 = vmatpush3.bf16.msra.mxu1 %v17509_v5  ;;  %16133 = vmatpush3.bf16.msra.mxu0 %v17510_v13  ;;  %v17527_v5 = vld [vmem:[%s21815_s7 + $0x948] sm:$0xff]  }
0x1fb2   : > { %16112 = vmatprep.subr.bf16.mxu1 %v17511_v14  ;;  %16134 = vmatprep.subr.bf16.mxu0 %v17512_v15  ;;  %v17528_v13 = vld [vmem:[%s21815_s7 + $0x9c8] sm:$0xff]  }
0x1fb3   : > { %v17529_v14 = vld [vmem:[%s21815_s7 + $0x908] sm:$0xff]  }
0x1fb4   : > { %v17530_v15 = vld [vmem:[%s21815_s7 + $0x988] sm:$0xff]  }
0x1fb5   : > { %16113 = vmatpush3.bf16.msra.mxu1 %v17513_v17  ;;  %16135 = vmatpush3.bf16.msra.mxu0 %v17514_v19  ;;  %v17531_v17 = vld [vmem:[%s21815_s7 + $0x950] sm:$0xff]  }
0x1fb6   : > { %16114 = vmatprep.subr.bf16.mxu1 %v17515_v34  ;;  %16136 = vmatprep.subr.bf16.mxu0 %v17516_v21  ;;  %v17532_v19 = vld [vmem:[%s21815_s7 + $0x9d0] sm:$0xff]   ;;  %v8739_v34 = vrot.slane %v20392_v62, %v18500_v52  ;;  %v8747_v21 = vrot.slane %v20392_v62, %v18503_v3 }
0x1fb9   : > { %16115 = vmatpush3.bf16.msra.mxu1 %v17517_v22  ;;  %16137 = vmatpush3.bf16.msra.mxu0 %v17518_v26  ;;  %v17533_v22 = vld [vmem:[%s21815_s7 + $0x910] sm:$0xff]  }
0x1fba   : > { %16116 = vmatprep.subr.bf16.mxu1 %v17519_v54  ;;  %16138 = vmatprep.subr.bf16.mxu0 %v17520_v31  ;;  %v17534_v26 = vld [vmem:[%s21815_s7 + $0x990] sm:$0xff]   ;;  %v17535_v54 = vld [vmem:[%s21815_s7 + $0x958] sm:$0xff]  }
0x1fbb   : > { %v17536_v31 = vld [vmem:[%s21815_s7 + $0x9d8] sm:$0xff]  }
0x1fbd   : > { %16117 = vmatpush3.bf16.msra.mxu1 %v17521_v33  ;;  %16139 = vmatpush3.bf16.msra.mxu0 %v17522_v36 }
0x1fbe   : > { %16146 = vmatprep.subr.bf16.mxu1 %v17523_v38  ;;  %16168 = vmatprep.subr.bf16.mxu0 %v17524_v32 }
0x2043   : > { %v9153_v48 = vpop.f32.mrb[96].mxu1  ;;  %v9194_v7 = vpop.f32.mrb[96].mxu0 }
0x2044   : > { %v9154_v49 = vadd.f32 %v9153_v48, %v8719_v20  ;;  %v9195_v37 = vadd.f32 %v9194_v7, %v8727_v46  ;;  %v9155_v55 = vpop.f32.mrb[97].mxu1  ;;  %v9196_v24 = vpop.f32.mrb[97].mxu0  ;;  %v17537_v48 = vld [vmem:[%s21815_s7 + $0x918] sm:$0xff]  }
0x2045   : > { %v9156_v56 = vadd.f32 %v9155_v55, %v8723_v47  ;;  %v9197_v39 = vadd.f32 %v9196_v24, %v8731_v16  ;;  %v9157_v57 = vpop.f32.mrb[98].mxu1  ;;  %v9198_v63 = vpop.f32.mrb[98].mxu0  ;;  %v17538_v7 = vld [vmem:[%s21815_s7 + $0x998] sm:$0xff]   ;;  %v17539_v55 = vld [vmem:[%s21815_s7 + $0x960] sm:$0xff]  }
0x2046   : > { %v9447_v59 = vmax.f32 %v9154_v49, 0.0  ;;  %v9449_v60 = vmax.f32 %v9195_v37, 0.0  ;;  %v9158_v61 = vpop.f32.mrb[99].mxu1  ;;  %v9199_v53 = vpop.f32.mrb[99].mxu0  ;;  %v17540_v24 = vld [vmem:[%s21815_s7 + $0x9e0] sm:$0xff]  }
0x2047   : > { %v9448_v29 = vmax.f32 %v9156_v56, 0.0  ;;  %v9450_v1 = vmax.f32 %v9197_v39, 0.0  ;;  %v17543_v61 = vld [vmem:[%s21815_s7 + $0x968] sm:$0xff]  }
0x2048   : > { %v9463_v11 = vpack.c.bf16 %v9447_v59, %v9447_v59  ;;  %v9465_v12 = vpack.c.bf16 %v9449_v60, %v9449_v60  ;;  %v17541_v59 = vld [vmem:[%s21815_s7 + $0x920] sm:$0xff]   ;;  %v17544_v53 = vld [vmem:[%s21815_s7 + $0x9e8] sm:$0xff]  }
0x2049   : > { %v9464_v4 = vpack.c.bf16 %v9448_v29, %v9448_v29  ;;  %v9466_v8 = vpack.c.bf16 %v9450_v1, %v9450_v1  ;;  %v17542_v60 = vld [vmem:[%s21815_s7 + $0x9a0] sm:$0xff]   ;;  %v17545_v29 = vld [vmem:[%s21815_s7 + $0x928] sm:$0xff]  }
0x204a   : > { %v17546_v1 = vld [vmem:[%s21815_s7 + $0x9a8] sm:$0xff]  }
0x204b   : > { %10279 = vmatprep.mubr.bf16.mxu1 %v9464_v4  ;;  %10319 = vmatprep.mubr.bf16.mxu0 %v9466_v8  ;;  %v8735_v4 = vrot.slane %v20392_v62, %v18546_v40  ;;  %v8743_v8 = vrot.slane %v20392_v62, %v18549_v41 }
0x204c   : > { %10280 = vmatmul.mubr.bf16.vlgmr.msra.gmra.mrb[112].mxu1 %v9463_v11  ;;  %10320 = vmatmul.mubr.bf16.vlgmr.msra.gmra.mrb[112].mxu0 %v9465_v12  ;;  %v17548_v11 = vld [vmem:[%s21815_s7 + $0x9f0] sm:$0xff]  }
0x204d   : > { %16147 = vmatpush3.bf16.msra.mxu1 %v17525_v43  ;;  %16169 = vmatpush3.bf16.msra.mxu0 %v17526_v18  ;;  %v20479_v43 = vld [vmem:[%s21812_s4 + $0x22] ss:$4 sm:$0xff] }
0x204e   : > { %16148 = vmatprep.subr.bf16.mxu1 %v17527_v5  ;;  %16170 = vmatprep.subr.bf16.mxu0 %v17528_v13  ;;  %v17547_v18 = vld [vmem:[%s21815_s7 + $0x970] sm:$0xff]   ;;  %v8755_v62 = vrot.slane %v20479_v43, %v18023_v42  ;;  %v8763_v12 = vrot.slane %v20479_v43, %v18471_v25 }
0x204f   : > { %v17549_v5 = vld [vmem:[%s21815_s7 + $0x930] sm:$0xff]  }
0x2050   : > { %v17550_v13 = vld [vmem:[%s21815_s7 + $0x9b0] sm:$0xff]  }
0x2051   : > { %16149 = vmatpush3.bf16.msra.mxu1 %v17529_v14  ;;  %16171 = vmatpush3.bf16.msra.mxu0 %v17530_v15 }
0x2052   : > { %16150 = vmatprep.subr.bf16.mxu1 %v17531_v17  ;;  %16172 = vmatprep.subr.bf16.mxu0 %v17532_v19  ;;  %v17551_v17 = vld [vmem:[%s21815_s7 + $0x978] sm:$0xff]  }
0x2053   : > { %v9235_v33 = vpop.f32.mrb[100].mxu1  ;;  %v9276_v36 = vpop.f32.mrb[100].mxu0  ;;  %v17552_v19 = vld [vmem:[%s21815_s7 + $0x9f8] sm:$0xff]  }
0x2054   : > { %v9237_v38 = vpop.f32.mrb[101].mxu1  ;;  %v9278_v32 = vpop.f32.mrb[101].mxu0  ;;  %v9236_v14 = vadd.f32 %v9235_v33, %v8735_v4  ;;  %v9277_v15 = vadd.f32 %v9276_v36, %v8743_v8  ;;  %v8775_v4 = vrot.slane %v20479_v43, %v18549_v41  ;;  %v17565_v8 = vld [vmem:[%s21815_s7 + $0xa10] sm:$0xff]  }
0x2055   : > { %v9238_v20 = vadd.f32 %v9237_v38, %v8739_v34  ;;  %v9279_v46 = vadd.f32 %v9278_v32, %v8747_v21  ;;  %v9239_v47 = vpop.f32.mrb[102].mxu1  ;;  %v9280_v16 = vpop.f32.mrb[102].mxu0  ;;  %16151 = vmatpush3.bf16.msra.mxu1 %v17533_v22  ;;  %16173 = vmatpush3.bf16.msra.mxu0 %v17534_v26  ;;  %v17553_v38 = vld [vmem:[%s21815_s7 + $0x938] sm:$0xff]  }
0x2056   : > { %v9240_v49 = vpop.f32.mrb[103].mxu1  ;;  %v9281_v37 = vpop.f32.mrb[103].mxu0  ;;  %16152 = vmatprep.subr.bf16.mxu1 %v17535_v54  ;;  %16174 = vmatprep.subr.bf16.mxu0 %v17536_v31  ;;  %v17554_v32 = vld [vmem:[%s21815_s7 + $0x9b8] sm:$0xff]  }
0x2057   : > { %v9452_v56 = vmax.f32 %v9238_v20, 0.0  ;;  %v9454_v39 = vmax.f32 %v9279_v46, 0.0  ;;  %v9451_v20 = vmax.f32 %v9236_v14, 0.0  ;;  %v9453_v46 = vmax.f32 %v9277_v15, 0.0 }
0x2059   : > { %v9468_v57 = vpack.c.bf16 %v9452_v56, %v9452_v56  ;;  %v9470_v63 = vpack.c.bf16 %v9454_v39, %v9454_v39  ;;  %16153 = vmatpush3.bf16.msra.mxu1 %v17537_v48  ;;  %16175 = vmatpush3.bf16.msra.mxu0 %v17538_v7  ;;  %v17555_v48 = vld [vmem:[%s21815_s7 + $0xa40] sm:$0xff]   ;;  %v9469_v56 = vpack.c.bf16 %v9453_v46, %v9453_v46  ;;  %v17576_v46 = vld [vmem:[%s21815_s7 + $0xae8] sm:$0xff]  }
0x205a   : > { %16154 = vmatprep.subr.bf16.mxu1 %v17539_v55  ;;  %16176 = vmatprep.subr.bf16.mxu0 %v17540_v24  ;;  %v17556_v7 = vld [vmem:[%s21815_s7 + $0xac0] sm:$0xff]   ;;  %v9467_v24 = vpack.c.bf16 %v9451_v20, %v9451_v20  ;;  %v17575_v20 = vld [vmem:[%s21815_s7 + $0xa68] sm:$0xff]  }
0x205b   : > { %10359 = vmatprep.mubr.bf16.mxu1 %v9468_v57  ;;  %10399 = vmatprep.mubr.bf16.mxu0 %v9470_v63  ;;  %v17557_v55 = vld [vmem:[%s21815_s7 + $0xa00] sm:$0xff]   ;;  %v17559_v63 = vld [vmem:[%s21815_s7 + $0xa48] sm:$0xff]  }
0x205c   : > { %v17558_v39 = vld [vmem:[%s21815_s7 + $0xa80] sm:$0xff]  }
0x205d   : > { %16155 = vmatpush3.bf16.msra.mxu1 %v17541_v59  ;;  %16177 = vmatpush3.bf16.msra.mxu0 %v17542_v60  ;;  %v17560_v59 = vld [vmem:[%s21815_s7 + $0xac8] sm:$0xff]  }
0x205e   : > { %16156 = vmatprep.subr.bf16.mxu1 %v17543_v61  ;;  %16178 = vmatprep.subr.bf16.mxu0 %v17544_v53  ;;  %v17561_v61 = vld [vmem:[%s21815_s7 + $0xa08] sm:$0xff]  }
0x205f   : > { %v17562_v53 = vld [vmem:[%s21815_s7 + $0xa88] sm:$0xff]  }
0x2061   : > { %16157 = vmatpush3.bf16.msra.mxu1 %v17545_v29  ;;  %16179 = vmatpush3.bf16.msra.mxu0 %v17546_v1  ;;  %v17563_v29 = vld [vmem:[%s21815_s7 + $0xa50] sm:$0xff]  }
0x2062   : > { %16158 = vmatprep.subr.bf16.mxu1 %v17547_v18  ;;  %16180 = vmatprep.subr.bf16.mxu0 %v17548_v11  ;;  %v17564_v1 = vld [vmem:[%s21815_s7 + $0xad0] sm:$0xff]   ;;  %v17567_v11 = vld [vmem:[%s21815_s7 + $0xa58] sm:$0xff]  }
0x2063   : > { %v20503_v34 = vpop.f32.mrb[104].mxu1  ;;  %v20505_v21 = vpop.f32.mrb[104].mxu0  ;;  %v17566_v18 = vld [vmem:[%s21815_s7 + $0xa90] sm:$0xff]  }
0x2064   : > { %v9319_v22 = vpop.f32.mrb[105].mxu1  ;;  %v9360_v26 = vpop.f32.mrb[105].mxu0 }
0x2065   : > { %v9320_v54 = vadd.f32 %v9319_v22, %v8755_v62  ;;  %v9361_v31 = vadd.f32 %v9360_v26, %v8763_v12  ;;  %v9321_v33 = vpop.f32.mrb[106].mxu1  ;;  %v9362_v36 = vpop.f32.mrb[106].mxu0  ;;  %16159 = vmatpush3.bf16.msra.mxu1 %v17549_v5  ;;  %16181 = vmatpush3.bf16.msra.mxu0 %v17550_v13  ;;  %v17568_v5 = vld [vmem:[%s21815_s7 + $0xad8] sm:$0xff]  }
0x2066   : > { %v9322_v47 = vpop.f32.mrb[107].mxu1  ;;  %v9363_v16 = vpop.f32.mrb[107].mxu0  ;;  %16160 = vmatprep.subr.bf16.mxu1 %v17551_v17  ;;  %16182 = vmatprep.subr.bf16.mxu0 %v17552_v19  ;;  %v17569_v22 = vld [vmem:[%s21815_s7 + $0xa18] sm:$0xff]   ;;  %v17571_v33 = vld [vmem:[%s21815_s7 + $0xa60] sm:$0xff]  }
0x2067   : > { %v9456_v49 = vmax.f32 %v9320_v54, 0.0  ;;  %v9458_v37 = vmax.f32 %v9361_v31, 0.0  ;;  %v17570_v31 = vld [vmem:[%s21815_s7 + $0xa98] sm:$0xff]   ;;  %v17572_v36 = vld [vmem:[%s21815_s7 + $0xae0] sm:$0xff]   ;;  %v17577_v47 = vld [vmem:[%s21815_s7 + $0xa28] sm:$0xff]   ;;  %v8751_v16 = vrot.slane %v20479_v43, %v18015_v35 }
0x2069   : > { %16161 = vmatpush3.bf16.msra.mxu1 %v17553_v38  ;;  %16183 = vmatpush3.bf16.msra.mxu0 %v17554_v32  ;;  %v9472_v57 = vpack.c.bf16 %v9456_v49, %v9456_v49  ;;  %v9474_v60 = vpack.c.bf16 %v9458_v37, %v9458_v37  ;;  %v17573_v38 = vld [vmem:[%s21815_s7 + $0xa20] sm:$0xff]   ;;  %v8759_v49 = vrot.slane %v20479_v43, %v18463_v23  ;;  %v17580_v37 = vld [vmem:[%s21815_s7 + $0xaf0] sm:$0xff]  }
0x206a   : > { %16190 = vmatprep.subr.bf16.mxu1 %v17555_v48  ;;  %16212 = vmatprep.subr.bf16.mxu0 %v17556_v7  ;;  %v17574_v32 = vld [vmem:[%s21815_s7 + $0xaa0] sm:$0xff]   ;;  %v17578_v48 = vld [vmem:[%s21815_s7 + $0xaa8] sm:$0xff]   ;;  %v17579_v7 = vld [vmem:[%s21815_s7 + $0xa70] sm:$0xff]  }
0x206c   : > { %10360 = vmatmul.mubr.bf16.vlgmr.msra.gmra.mrb[116].mxu1 %v9467_v24  ;;  %10400 = vmatmul.mubr.bf16.vlgmr.msra.gmra.mrb[116].mxu0 %v9469_v56  ;;  %v8779_v24 = vrot.slane %v20479_v43, %v18503_v3  ;;  %v17581_v56 = vld [vmem:[%s21815_s7 + $0xa30] sm:$0xff]  }
0x206d   : > { %16191 = vmatpush3.bf16.msra.mxu1 %v17557_v55  ;;  %10439 = vmatprep.mubr.bf16.mxu1 %v9472_v57  ;;  %v8771_v55 = vrot.slane %v20479_v43, %v18500_v52  ;;  %v17582_v57 = vld [vmem:[%s21815_s7 + $0xab0] sm:$0xff]  }
0x206e   : > { %16213 = vmatpush3.bf16.msra.mxu0 %v17558_v39  ;;  %10479 = vmatprep.mubr.bf16.mxu0 %v9474_v60  ;;  %v9318_v39 = vadd.f32 %v20503_v34, %v8751_v16  ;;  %v17584_v60 = vld [vmem:[%s21815_s7 + $0xaf8] sm:$0xff]  }
0x206f   : > { %16192 = vmatprep.subr.bf16.mxu1 %v17559_v63  ;;  %16214 = vmatprep.subr.bf16.mxu0 %v17560_v59  ;;  %v17583_v63 = vld [vmem:[%s21815_s7 + $0xa78] sm:$0xff]   ;;  %v9359_v59 = vadd.f32 %v20505_v21, %v8759_v49  ;;  %v17587_v21 = vld [vmem:[%s21815_s7 + $0xb40] sm:$0xff]  }
0x2070   : > { %v17585_v34 = vld [vmem:[%s21815_s7 + $0xa38] sm:$0xff]   ;;  %v17605_v49 = vld [vmem:[%s21815_s7 + $0xb20] sm:$0xff]  }
0x2071   : > { %16193 = vmatpush3.bf16.msra.mxu1 %v17561_v61  ;;  %v17602_v16 = vld [vmem:[%s21815_s7 + $0xb98] sm:$0xff]  }
0x2072   : > { %16215 = vmatpush3.bf16.msra.mxu0 %v17562_v53  ;;  %16194 = vmatprep.subr.bf16.mxu1 %v17563_v29  ;;  %v9455_v29 = vmax.f32 %v9318_v39, 0.0  ;;  %v8767_v39 = vrot.slane %v20479_v43, %v18546_v40  ;;  %v17613_v43 = vld [vmem:[%s21815_s7 + $0xb30] sm:$0xff]  }
0x2073   : > { %v20554_v62 = vpop.f32.mrb[108].mxu1  ;;  %v9440_v12 = vpop.f32.mrb[108].mxu0  ;;  %16216 = vmatprep.subr.bf16.mxu0 %v17564_v1  ;;  %v17586_v1 = vld [vmem:[%s21815_s7 + $0xab8] sm:$0xff]  }
0x2074   : > { %v20559_v13 = vadd.f32 %v9440_v12, %v8775_v4  ;;  %v9401_v14 = vpop.f32.mrb[109].mxu1  ;;  %v9442_v15 = vpop.f32.mrb[109].mxu0  ;;  %v9457_v4 = vmax.f32 %v9359_v59, 0.0  ;;  %v17589_v12 = vld [vmem:[%s21815_s7 + $0xb00] sm:$0xff]   ;;  %v17612_v59 = vld [vmem:[%s21815_s7 + $0xbf0] sm:$0xff]  }
0x2075   : > { %v9403_v17 = vpop.f32.mrb[110].mxu1  ;;  %v9444_v19 = vpop.f32.mrb[110].mxu0  ;;  %16195 = vmatpush3.bf16.msra.mxu1 %v17565_v8  ;;  %v9402_v61 = vadd.f32 %v9401_v14, %v8771_v55  ;;  %v9443_v53 = vadd.f32 %v9442_v15, %v8779_v24  ;;  %v17588_v8 = vld [vmem:[%s21815_s7 + $0xbc0] sm:$0xff]   ;;  %v17607_v55 = vld [vmem:[%s21815_s7 + $0xb68] sm:$0xff]  }
0x2076   : > { %16217 = vmatpush3.bf16.msra.mxu0 %v17566_v18  ;;  %v9404_v26 = vpop.f32.mrb[111].mxu1  ;;  %v9445_v54 = vpop.f32.mrb[111].mxu0  ;;  %16196 = vmatprep.subr.bf16.mxu1 %v17567_v11  ;;  %v17590_v14 = vld [vmem:[%s21815_s7 + $0xb80] sm:$0xff]   ;;  %v9473_v15 = vpack.c.bf16 %v9457_v4, %v9457_v4  ;;  %v17591_v17 = vld [vmem:[%s21815_s7 + $0xb48] sm:$0xff]  }
0x2077   : > { %16218 = vmatprep.subr.bf16.mxu0 %v17568_v5  ;;  %v9460_v18 = vmax.f32 %v9402_v61, 0.0  ;;  %v9462_v11 = vmax.f32 %v9443_v53, 0.0  ;;  %v9471_v5 = vpack.c.bf16 %v9455_v29, %v9455_v29  ;;  %v17593_v54 = vld [vmem:[%s21815_s7 + $0xb08] sm:$0xff]   ;;  %v17614_v61 = vld [vmem:[%s21815_s7 + $0xbb0] sm:$0xff]   ;;  %v17615_v53 = vld [vmem:[%s21815_s7 + $0xb78] sm:$0xff]  }
0x2078   : > { %v17608_v24 = vld [vmem:[%s21815_s7 + $0xbe8] sm:$0xff]  }
0x2079   : > { %16197 = vmatpush3.bf16.msra.mxu1 %v17569_v22  ;;  %v9476_v19 = vpack.c.bf16 %v9460_v18, %v9460_v18  ;;  %v17592_v22 = vld [vmem:[%s21815_s7 + $0xbc8] sm:$0xff]   ;;  %v9478_v26 = vpack.c.bf16 %v9462_v11, %v9462_v11 }
0x207a   : > { %16219 = vmatpush3.bf16.msra.mxu0 %v17570_v31  ;;  %16198 = vmatprep.subr.bf16.mxu1 %v17571_v33  ;;  %v17594_v31 = vld [vmem:[%s21815_s7 + $0xb88] sm:$0xff]   ;;  %v17595_v33 = vld [vmem:[%s21815_s7 + $0xb50] sm:$0xff]  }
0x207b   : > { %16220 = vmatprep.subr.bf16.mxu0 %v17572_v36  ;;  %v17596_v36 = vld [vmem:[%s21815_s7 + $0xbd0] sm:$0xff]  }
0x207d   : > { %16199 = vmatpush3.bf16.msra.mxu1 %v17573_v38  ;;  %v17597_v38 = vld [vmem:[%s21815_s7 + $0xb10] sm:$0xff]  }
0x207e   : > { %16221 = vmatpush3.bf16.msra.mxu0 %v17574_v32  ;;  %16200 = vmatprep.subr.bf16.mxu1 %v17575_v20  ;;  %v17598_v32 = vld [vmem:[%s21815_s7 + $0xb90] sm:$0xff]   ;;  %v17599_v20 = vld [vmem:[%s21815_s7 + $0xb58] sm:$0xff]  }
0x207f   : > { %16222 = vmatprep.subr.bf16.mxu0 %v17576_v46  ;;  %v17600_v46 = vld [vmem:[%s21815_s7 + $0xbd8] sm:$0xff]  }
0x2081   : > { %16201 = vmatpush3.bf16.msra.mxu1 %v17577_v47  ;;  %v17601_v47 = vld [vmem:[%s21815_s7 + $0xb18] sm:$0xff]  }
0x2082   : > { %16223 = vmatpush3.bf16.msra.mxu0 %v17578_v48  ;;  %16202 = vmatprep.subr.bf16.mxu1 %v17579_v7  ;;  %v17603_v48 = vld [vmem:[%s21815_s7 + $0xb60] sm:$0xff]  }
0x2083   : > { %16224 = vmatprep.subr.bf16.mxu0 %v17580_v37  ;;  %v17604_v7 = vld [vmem:[%s21815_s7 + $0xbe0] sm:$0xff]  }
0x2084   : > { %v17606_v37 = vld [vmem:[%s21815_s7 + $0xba0] sm:$0xff]  }
0x2085   : > { %16203 = vmatpush3.bf16.msra.mxu1 %v17581_v56  ;;  %v17609_v56 = vld [vmem:[%s21815_s7 + $0xb28] sm:$0xff]  }
0x2086   : > { %16225 = vmatpush3.bf16.msra.mxu0 %v17582_v57  ;;  %16204 = vmatprep.subr.bf16.mxu1 %v17583_v63  ;;  %v17610_v57 = vld [vmem:[%s21815_s7 + $0xba8] sm:$0xff]   ;;  %v17611_v63 = vld [vmem:[%s21815_s7 + $0xb70] sm:$0xff]  }
0x2087   : > { %16226 = vmatprep.subr.bf16.mxu0 %v17584_v60  ;;  %v9400_v60 = vadd.f32 %v20554_v62, %v8767_v39  ;;  %v17617_v62 = vld [vmem:[%s21815_s7 + $0xb38] sm:$0xff]  }
0x2089   : > { %16205 = vmatpush3.bf16.msra.mxu1 %v17585_v34  ;;  %v17616_v34 = vld [vmem:[%s21815_s7 + $0xbf8] sm:$0xff]   ;;  %v9459_v29 = vmax.f32 %v9400_v60, 0.0 }
0x208a   : > { %16227 = vmatpush3.bf16.msra.mxu0 %v17586_v1  ;;  %16234 = vmatprep.subr.bf16.mxu1 %v17587_v21  ;;  %v17618_v1 = vld [vmem:[%s21815_s7 + $0xbb8] sm:$0xff]   ;;  %v9461_v21 = vmax.f32 %v20559_v13, 0.0  ;;  %v8712_v13 = vld [vmem:[%s21811_s3 + $0x32] ss:$0 sm:$0xff] }
0x208b   : > { %16256 = vmatprep.subr.bf16.mxu0 %v17588_v8  ;;  %v9475_v4 = vpack.c.bf16 %v9459_v29, %v9459_v29 }
0x208c   : > { %10440 = vmatmul.mubr.bf16.vlgmr.msra.gmra.mrb[120].mxu1 %v9471_v5  ;;  %v9477_v8 = vpack.c.bf16 %v9461_v21, %v9461_v21 }
0x208d   : > { %10480 = vmatmul.mubr.bf16.vlgmr.msra.gmra.mrb[120].mxu0 %v9473_v15  ;;  %16235 = vmatpush3.bf16.msra.mxu1 %v17589_v12 }
0x208e   : > { %10519 = vmatprep.mubr.bf16.mxu1 %v9476_v19  ;;  %16257 = vmatpush3.bf16.msra.mxu0 %v17590_v14 }
0x208f   : > { %10559 = vmatprep.mubr.bf16.mxu0 %v9478_v26  ;;  %16236 = vmatprep.subr.bf16.mxu1 %v17591_v17 }
0x2090   : > { %16258 = vmatprep.subr.bf16.mxu0 %v17592_v22 }
0x2091   : > { %16237 = vmatpush3.bf16.msra.mxu1 %v17593_v54 }
0x2092   : > { %16259 = vmatpush3.bf16.msra.mxu0 %v17594_v31  ;;  %16238 = vmatprep.subr.bf16.mxu1 %v17595_v33 }
0x2093   : > { %16260 = vmatprep.subr.bf16.mxu0 %v17596_v36 }
0x2095   : > { %16239 = vmatpush3.bf16.msra.mxu1 %v17597_v38 }
0x2096   : > { %16261 = vmatpush3.bf16.msra.mxu0 %v17598_v32  ;;  %16240 = vmatprep.subr.bf16.mxu1 %v17599_v20 }
0x2097   : > { %16262 = vmatprep.subr.bf16.mxu0 %v17600_v46 }
0x2099   : > { %16241 = vmatpush3.bf16.msra.mxu1 %v17601_v47 }
0x209a   : > { %16263 = vmatpush3.bf16.msra.mxu0 %v17602_v16  ;;  %16242 = vmatprep.subr.bf16.mxu1 %v17603_v48 }
0x209b   : > { %16264 = vmatprep.subr.bf16.mxu0 %v17604_v7 }
0x209d   : > { %16243 = vmatpush3.bf16.msra.mxu1 %v17605_v49 }
0x209e   : > { %16265 = vmatpush3.bf16.msra.mxu0 %v17606_v37  ;;  %16244 = vmatprep.subr.bf16.mxu1 %v17607_v55 }
0x209f   : > { %16266 = vmatprep.subr.bf16.mxu0 %v17608_v24 }
0x20a1   : > { %16245 = vmatpush3.bf16.msra.mxu1 %v17609_v56 }
0x20a2   : > { %16267 = vmatpush3.bf16.msra.mxu0 %v17610_v57  ;;  %16246 = vmatprep.subr.bf16.mxu1 %v17611_v63 }
0x20a3   : > { %16268 = vmatprep.subr.bf16.mxu0 %v17612_v59 }
0x20a5   : > { %16247 = vmatpush3.bf16.msra.mxu1 %v17613_v43 }
0x20a6   : > { %16269 = vmatpush3.bf16.msra.mxu0 %v17614_v61  ;;  %16248 = vmatprep.subr.bf16.mxu1 %v17615_v53 }
0x20a7   : > { %16270 = vmatprep.subr.bf16.mxu0 %v17616_v34 }
0x20a9   : > { %16249 = vmatpush3.bf16.msra.mxu1 %v17617_v62 }
0x20aa   : > { %16271 = vmatpush3.bf16.msra.mxu0 %v17618_v1 }
0x20ab   : > { %16815 = vmatprep.subr.mxu0 %v17876_v2 }
0x20ac   : > { %10520 = vmatmul.mubr.bf16.vlgmr.msra.gmra.mrb[124].mxu1 %v9475_v4 }
0x20ad   : > { %10560 = vmatmul.mubr.bf16.vlgmr.msra.gmra.mrb[124].mxu0 %v9477_v8  ;;  %10681 = vmatprep.mubr.f32.mxu1 %v17876_v2 }
0x20ae   : > { %16817 = vmatprep.mubr.msk.f32.mxu0 %vm17877_vm0, %v17876_v2 }
0x211f   : > { %v16118_v18 = vpop.f32.mrb[112].mxu1  ;;  %v16140_v11 = vpop.f32.mrb[112].mxu0 }
0x2120   : > { %v16119_v12 = vpop.f32.mrb[113].mxu1  ;;  %v16141_v5 = vpop.f32.mrb[113].mxu0 }
0x2121   : > { %v16120_v14 = vadd.f32 %v16119_v12, %v16118_v18  ;;  %v16142_v15 = vadd.f32 %v16141_v5, %v16140_v11  ;;  %v16121_v17 = vpop.f32.mrb[114].mxu1  ;;  %v16143_v19 = vpop.f32.mrb[114].mxu0 }
0x2122   : > { %v16122_v22 = vpop.f32.mrb[115].mxu1  ;;  %v16144_v26 = vpop.f32.mrb[115].mxu0 }
0x2123   : > { %v10282_v54 = vadd.f32 %v16120_v14, %v8712_v13 }
0x2125   : > { %v10322_v31 = vadd.f32 %v16142_v15, %v10282_v54 }
0x213f   : > { %v16162_v33 = vpop.f32.mrb[116].mxu1  ;;  %v16184_v36 = vpop.f32.mrb[116].mxu0 }
0x2140   : > { %v16163_v38 = vpop.f32.mrb[117].mxu1  ;;  %v16185_v32 = vpop.f32.mrb[117].mxu0 }
0x2141   : > { %v16164_v20 = vadd.f32 %v16163_v38, %v16162_v33  ;;  %v16186_v46 = vadd.f32 %v16185_v32, %v16184_v36  ;;  %v16165_v47 = vpop.f32.mrb[118].mxu1  ;;  %v16187_v16 = vpop.f32.mrb[118].mxu0  ;;  %v10586_v33 = vld [vmem:[%s21813_s5 + $0x528] sm:$0xff]  ;;  %v10588_v36 = vld [vmem:[%s21813_s5 + $0x538] sm:$0xff]  ;;  %v10587_v32 = vld [vmem:[%s21813_s5 + $0x530] sm:$0xff] }
0x2142   : > { %v16166_v48 = vpop.f32.mrb[119].mxu1  ;;  %v16188_v7 = vpop.f32.mrb[119].mxu0  ;;  %v17110_v38 = vpack.c.bf16 %v10588_v36, %v10586_v33  ;;  %v10592_v47 = vld [vmem:[%s21813_s5 + $0x558] sm:$0xff] }
0x2143   : > { %v10362_v49 = vadd.f32 %v16164_v20, %v10322_v31  ;;  %v10589_v48 = vld [vmem:[%s21813_s5 + $0x540] sm:$0xff]  ;;  %v10591_v7 = vld [vmem:[%s21813_s5 + $0x550] sm:$0xff] }
0x2144   : > { %17111 = vmatprep.subr.bf16.mxu1 %v17110_v38 }
0x2145   : > { %v10402_v37 = vadd.f32 %v16186_v46, %v10362_v49  ;;  %v10590_v46 = vld [vmem:[%s21813_s5 + $0x548] sm:$0xff]  ;;  %v17116_v49 = vpack.c.bf16 %v10591_v7, %v10589_v48 }
0x2146   : > { %v17114_v16 = vpack.c.bf16 %v10592_v47, %v10590_v46 }
0x215f   : > { %v16206_v55 = vpop.f32.mrb[120].mxu1 }
0x2160   : > { %v16228_v24 = vpop.f32.mrb[120].mxu0  ;;  %v16207_v56 = vpop.f32.mrb[121].mxu1 }
0x2161   : > { %v16208_v39 = vadd.f32 %v16207_v56, %v16206_v55  ;;  %v16229_v57 = vpop.f32.mrb[121].mxu0  ;;  %v16209_v63 = vpop.f32.mrb[122].mxu1  ;;  %v10596_v55 = vld [vmem:[%s21813_s5 + $0x578] sm:$0xff]  ;;  %v10593_v56 = vld [vmem:[%s21813_s5 + $0x560] sm:$0xff] }
0x2162   : > { %v16230_v59 = vadd.f32 %v16229_v57, %v16228_v24  ;;  %v16231_v43 = vpop.f32.mrb[122].mxu0  ;;  %v16210_v60 = vpop.f32.mrb[123].mxu1  ;;  %v10598_v63 = vld [vmem:[%s21813_s5 + $0x588] sm:$0xff] }
0x2163   : > { %v10442_v61 = vadd.f32 %v16208_v39, %v10402_v37  ;;  %v16232_v53 = vpop.f32.mrb[123].mxu0  ;;  %v10594_v37 = vld [vmem:[%s21813_s5 + $0x568] sm:$0xff]  ;;  %v10595_v39 = vld [vmem:[%s21813_s5 + $0x570] sm:$0xff]  ;;  %v10597_v43 = vld [vmem:[%s21813_s5 + $0x580] sm:$0xff] }
0x2164   : > { %v17118_v24 = vpack.c.bf16 %v10596_v55, %v10594_v37  ;;  %v17120_v57 = vpack.c.bf16 %v10595_v39, %v10593_v56 }
0x2165   : > { %v10482_v34 = vadd.f32 %v16230_v59, %v10442_v61  ;;  %v10600_v59 = vld [vmem:[%s21813_s5 + $0x598] sm:$0xff]  ;;  %v10599_v61 = vld [vmem:[%s21813_s5 + $0x590] sm:$0xff] }
0x2166   : > { %v17122_v60 = vpack.c.bf16 %v10600_v59, %v10598_v63  ;;  %v17124_v53 = vpack.c.bf16 %v10599_v61, %v10597_v43 }
0x217f   : > { %v16250_v62 = vpop.f32.mrb[124].mxu1 }
0x2180   : > { %v16272_v29 = vpop.f32.mrb[124].mxu0  ;;  %v16251_v1 = vpop.f32.mrb[125].mxu1 }
0x2181   : > { %v16252_v21 = vadd.f32 %v16251_v1, %v16250_v62  ;;  %v16273_v4 = vpop.f32.mrb[125].mxu0  ;;  %v16253_v8 = vpop.f32.mrb[126].mxu1 }
0x2182   : > { %v16274_v18 = vadd.f32 %v16273_v4, %v16272_v29  ;;  %v16275_v11 = vpop.f32.mrb[126].mxu0  ;;  %v16254_v13 = vpop.f32.mrb[127].mxu1  ;;  %v10569_v8 = vld [vmem:[%s21811_s3 + $0x40] ss:$0 sm:$0xff] }
0x2183   : > { %v10522_v12 = vadd.f32 %v16252_v21, %v10482_v34  ;;  %v16276_v5 = vpop.f32.mrb[127].mxu0  ;;  %v10568_v21 = vld [vmem:[%s21811_s3 + $0x37] ss:$0 sm:$0xff]  ;;  %v15393_v13 = vld [vmem:[%s21811_s3 + $0x41] ss:$8 sm:$0x3] }
0x2185   : > { %v10562_v14 = vadd.f32 %v16274_v18, %v10522_v12  ;;  %v10607_v12 = vrot.slane %v15393_v13, %v18015_v35 }
0x2187   : > { %v10567_v15 = vadd.f32 %v10562_v14, %v20139_v30  ;;  %v10585_v30 = vld [vmem:[%s21813_s5 + $0x520] sm:$0xff] }
0x2188   : > { %v17112_v20 = vpack.c.bf16 %v10587_v32, %v10585_v30 }
0x2189   : > { %v10570_v17 = vsel %vm429_vm2, %v10567_v15, 0.0 }
0x218a   : > { %10571 = vadd.xlane.f32.xlu0 %v10570_v17  ;;  %17113 = vmatpush1.bf16.msra.mxu1 %v17112_v20  ;;  %v10611_v17 = vrot.slane %v15393_v13, %v18023_v42 }
0x218b   : > { %17115 = vmatprep.subr.bf16.mxu1 %v17114_v16 }
0x218e   : > { %17117 = vmatpush1.bf16.msra.mxu1 %v17116_v49 }
0x218f   : > { %17119 = vmatprep.subr.bf16.mxu1 %v17118_v24 }
0x2192   : > { %17121 = vmatpush1.bf16.msra.mxu1 %v17120_v57 }
0x2193   : > { %17123 = vmatprep.subr.bf16.mxu1 %v17122_v60 }
0x2196   : > { %17125 = vmatpush1.bf16.msra.mxu1 %v17124_v53 }
0x2197   : > { %16820 = vmatprep.subr.mxu1 %v17876_v2 }
0x2217   : > { %v10572_v19 = vpop.xlane.xlu0 %10571 }
0x2218   : > { %v10573_v22 = vmul.f32 0.015625, %v10572_v19 }
0x221a   : > { %v10574_v26 = vsub.f32 %v10567_v15, %v10573_v22 }
0x221c   : > { %v10575_v54 = vmul.f32 %v10574_v26, %v10574_v26 }
0x221e   : > { %v10576_v31 = vsel %vm429_vm2, %v10575_v54, 0.0 }
0x221f   : > { %10577 = vadd.xlane.f32.xlu1 %v10576_v31 }
0x22ac   : > { %v10578_v34 = vpop.xlane.xlu1 %10577 }
0x22ad   : > { %v10579_v62 = vmul.f32 0.015625, %v10578_v34 }
0x22af   : > { %v10580_v29 = vadd.f32 1e-05, %v10579_v62 }
0x22b1   : > { %17825 = vrsqrt.f32 %v10580_v29 }
0x22bb   : > { %v17826_v1 = vpop.eup %17825 }
0x22bc   : > { %v10582_v4 = vmul.f32 %v17826_v1, %v10574_v26 }
0x22be   : > { %v10583_v18 = vmul.f32 %v10582_v4, %v10568_v21 }
0x22c0   : > { %v20790_v11 = vadd.f32 %v10583_v18, %v10569_v8 }
0x22c2   : > { %15394 = vmatmul.mubr.msk.f32.vlgmr.msra.gmra.mrb[94].mxu1 %vm429_vm2, %v20790_v11 }
0x22c3   : > { %16822 = vmatprep.mubr.msk.f32.mxu1 %vm17877_vm0, %v17876_v2 }
0x2395   : > { %v10683_v5 = vpop.f32.mrb[94].mxu1 }
0x2396   : > { %v10684_v14 = vadd.f32 %v10683_v5, %v10607_v12  ;;  %v10685_v15 = vpop.f32.mrb[95].mxu1 }
0x2397   : > { %v20802_v22 = vadd.f32 %v10685_v15, %v10611_v17  ;;  %v11333_v15 = vld [vmem:[%s21813_s5 + $0x5b0] sm:$0xff]  ;;  %v11334_v17 = vld [vmem:[%s21813_s5 + $0x5c0] sm:$0xff] }
0x2398   : > { %10691 = vrot.lane.b32.xlu0 %v10684_v14, %s17878_s11  ;;  %v10688_v19 = vmul.f32 0.25, %v10684_v14  ;;  %v11332_v14 = vld [vmem:[%s21813_s5 + $0x5a0] sm:$0xff] }
0x2399   : > { %v10865_v33 = vmul.f32 %v18039_v50, %v20802_v22 }
0x239a   : > { %v10689_v54 = vmul.f32 %v18026_v44, %v10688_v19  ;;  %v10780_v31 = vmul.f32 %v18039_v50, %v10688_v19  ;;  %v11012_v36 = vmul.f32 %v18029_v45, %v10688_v19  ;;  %v11172_v38 = vmul.f32 %v18042_v51, %v10688_v19 }
0x239b   : > { %v17127_v19 = vpack.c.bf16 %v11333_v15, %v11332_v14 }
0x240a   : > { %v10692_v26 = vpop.permute.xlu0 %10691 }
0x240b   : > { %16816 = vmatpush3.xpose.msk.msra.mxu0 %vm429_vm2, %v10692_v26  ;;  %16821 = vmatpush3.xpose.msk.msra.mxu1 %vm429_vm2, %v10692_v26 }
0x240c   : > { %16825 = vmatprep.subr.mxu0 %v17876_v2  ;;  %16835 = vmatprep.subr.mxu1 %v17876_v2 }
0x240e   : > { %16818 = vmatmul.mubr.msk.f32.vlgmr.msra.gmra.mrb[128].mxu0 %vm429_vm2, %v10689_v54  ;;  %16823 = vmatmul.mubr.msk.f32.vlgmr.msra.gmra.mrb[128].mxu1 %vm429_vm2, %v10780_v31  ;;  %v11336_v31 = vld [vmem:[%s21813_s5 + $0x5e0] sm:$0xff] }
0x240f   : > { %16826 = vmatpush3.msra.mxu0 %v10865_v33  ;;  %16836 = vmatpush3.xpose.msk.msra.mxu1 %vm429_vm2, %v10692_v26  ;;  %v11337_v33 = vld [vmem:[%s21813_s5 + $0x5f0] sm:$0xff] }
0x2410   : > { %16837 = vmatprep.mubr.msk.f32.mxu1 %vm17877_vm0, %v17876_v2  ;;  %16845 = vmatprep.subr.mxu1 %v17876_v2 }
0x2411   : > { %16827 = vmatprep.mubr.msk.f32.mxu0 %vm17877_vm0, %v17876_v2  ;;  %16830 = vmatprep.subr.mxu0 %v17876_v2 }
0x2412   : > { %16838 = vmatmul.mubr.msk.f32.vlgmr.msra.gmra.mrb[130].mxu1 %vm429_vm2, %v11012_v36  ;;  %v17133_v36 = vpack.c.bf16 %v11337_v33, %v11336_v31 }
0x2413   : > { %16846 = vmatpush3.xpose.msk.msra.mxu1 %vm429_vm2, %v10692_v26  ;;  %16847 = vmatprep.mubr.msk.f32.mxu1 %vm17877_vm0, %v17876_v2  ;;  %v11335_v26 = vld [vmem:[%s21813_s5 + $0x5d0] sm:$0xff] }
0x2414   : > { %17126 = vmatprep.subr.bf16.mxu1 %v17879_v28  ;;  %v17130_v54 = vpack.c.bf16 %v11335_v26, %v11334_v17  ;;  %v11523_v26 = vld [vmem:[%s21811_s3 + $0x44] ss:$0 sm:$0xff] }
0x2416   : > { %16848 = vmatmul.mubr.msk.f32.vlgmr.msra.gmra.mrb[132].mxu1 %vm429_vm2, %v11172_v38  ;;  %v11338_v38 = vld [vmem:[%s21813_s5 + $0x600] sm:$0xff] }
0x2417   : > { %16871 = vmatprep.mubr.msk.f32.mxu1 %vm17877_vm0, %v17876_v2  ;;  %17128 = vmatpush3.bf16.msra.mxu1 %v17127_v19 }
0x2418   : > { %17129 = vmatprep.subr.bf16.mxu1 %v17879_v28 }
0x241b   : > { %17131 = vmatpush3.bf16.msra.mxu1 %v17130_v54 }
0x241c   : > { %17132 = vmatprep.subr.bf16.mxu1 %v17879_v28 }
0x241f   : > { %17134 = vmatpush3.bf16.msra.mxu1 %v17133_v36 }
0x2420   : > { %17135 = vmatprep.subr.bf16.mxu1 %v17879_v28 }
0x24e1   : > { %v10764_v30 = vpop.f32.mrb[128].mxu0  ;;  %v10850_v32 = vpop.f32.mrb[128].mxu1 }
0x24e2   : > { %v16819_v20 = vpop.f32.mrb[129].mxu0  ;;  %v16824_v46 = vpop.f32.mrb[129].mxu1  ;;  %v10854_v47 = vsel %vm325_vm1, %v10850_v32, -inf  ;;  %v10768_v7 = vsel %vm325_vm1, %v10764_v30, -inf }
0x24e3   : > { %10855 = vmax.xlane.f32.xlu1 %v10854_v47 }
0x24e5   : > { %v11082_v16 = vpop.f32.mrb[130].mxu1 }
0x24e6   : > { %v16839_v48 = vpop.f32.mrb[131].mxu1  ;;  %v11086_v55 = vsel %vm325_vm1, %v11082_v16, -inf }
0x24e7   : > { %10769 = vmax.xlane.f32.xlu1 %v10768_v7  ;;  %v10779_v7 = vmul.f32 %v18026_v44, %v20802_v22 }
0x24e9   : > { %v11242_v49 = vpop.f32.mrb[132].mxu1 }
0x24ea   : > { %v16849_v37 = vpop.f32.mrb[133].mxu1  ;;  %v11246_v24 = vsel %vm325_vm1, %v11242_v49, -inf }
0x24eb   : > { %11087 = vmax.xlane.f32.xlu1 %v11086_v55 }
0x24ef   : > { %11247 = vmax.xlane.f32.xlu1 %v11246_v24  ;;  %v11097_v24 = vmul.f32 %v18029_v45, %v20802_v22 }
0x2570   : > { %v10856_v56 = vpop.xlane.xlu1 %10855 }
0x2571   : > { %v10857_v39 = vsub.f32 %v10850_v32, %v10856_v56 }
0x2573   : > { %v10858_v57 = vmul.f32 1.442695, %v10857_v39 }
0x2574   : > { %v10770_v63 = vpop.xlane.xlu1 %10769 }
0x2575   : > { %17827 = vpow2.f32 %v10858_v57  ;;  %v10771_v59 = vsub.f32 %v10764_v30, %v10770_v63  ;;  %v11339_v30 = vld [vmem:[%s21813_s5 + $0x610] sm:$0xff]  ;;  %v11257_v57 = vmul.f32 %v18042_v51, %v20802_v22 }
0x2576   : > { %v17136_v32 = vpack.c.bf16 %v11339_v30, %v11338_v38  ;;  %v11516_v22 = vld [vmem:[%s21813_s5 + $0x6b0] sm:$0xff] }
0x2577   : > { %v10772_v43 = vmul.f32 1.442695, %v10771_v59 }
0x2578   : > { %v11088_v60 = vpop.xlane.xlu1 %11087  ;;  %17137 = vmatpush3.bf16.msra.mxu1 %v17136_v32  ;;  %v11432_v32 = vld [vmem:[%s21813_s5 + $0x620] sm:$0xff] }
0x2579   : > { %17829 = vpow2.f32 %v10772_v43  ;;  %v11089_v61 = vsub.f32 %v11082_v16, %v11088_v60  ;;  %17150 = vmatprep.subr.bf16.mxu1 %v17879_v28  ;;  %v11515_v43 = vld [vmem:[%s21813_s5 + $0x6a0] sm:$0xff] }
0x257a   : > { %v17151_v60 = vpack.c.bf16 %v11516_v22, %v11515_v43  ;;  %v11415_v43 = vld [vmem:[%s21811_s3 + $0x47] ss:$0 sm:$0xff] }
0x257b   : > { %v11090_v53 = vmul.f32 1.442695, %v11089_v61  ;;  %v11517_v61 = vld [vmem:[%s21813_s5 + $0x6c0] sm:$0xff] }
0x257c   : > { %v11248_v34 = vpop.xlane.xlu1 %11247 }
0x257d   : > { %17831 = vpow2.f32 %v11090_v53  ;;  %v11249_v62 = vsub.f32 %v11242_v49, %v11248_v34  ;;  %v11518_v53 = vld [vmem:[%s21813_s5 + $0x6d0] sm:$0xff] }
0x257f   : > { %v17828_v29 = vpop.eup %17827  ;;  %v11250_v1 = vmul.f32 1.442695, %v11249_v62 }
0x2580   : > { %v10860_v21 = vsel %vm325_vm1, %v17828_v29, 0.0 }
0x2581   : > { %17833 = vpow2.f32 %v11250_v1  ;;  %10861 = vadd.xlane.f32.xlu1 %v10860_v21  ;;  %v11519_v1 = vld [vmem:[%s21813_s5 + $0x6e0] sm:$0xff]  ;;  %v11520_v21 = vld [vmem:[%s21813_s5 + $0x6f0] sm:$0xff] }
0x2583   : > { %v17830_v4 = vpop.eup %17829 }
0x2584   : > { %v10774_v8 = vsel %vm325_vm1, %v17830_v4, 0.0 }
0x2585   : > { %10775 = vadd.xlane.f32.xlu1 %v10774_v8  ;;  %v11521_v8 = vld [vmem:[%s21813_s5 + $0x700] sm:$0xff] }
0x2587   : > { %v17832_v18 = vpop.eup %17831 }
0x2588   : > { %v11092_v13 = vsel %vm325_vm1, %v17832_v18, 0.0 }
0x2589   : > { %11093 = vadd.xlane.f32.xlu0 %v11092_v13 }
0x258b   : > { %v17834_v12 = vpop.eup %17833 }
0x258c   : > { %v11252_v5 = vsel %vm325_vm1, %v17834_v12, 0.0 }
0x258d   : > { %11253 = vadd.xlane.f32.xlu1 %v11252_v5 }
0x260e   : > { %v10862_v20 = vpop.xlane.xlu1 %10861 }
0x260f   : > { %17835 = vrcp.f32 %v10862_v20  ;;  %v11433_v20 = vld [vmem:[%s21813_s5 + $0x630] sm:$0xff] }
0x2612   : > { %v10776_v46 = vpop.xlane.xlu1 %10775 }
0x2613   : > { %17837 = vrcp.f32 %v10776_v46  ;;  %v17139_v46 = vpack.c.bf16 %v11433_v20, %v11432_v32 }
0x2616   : > { %v11094_v48 = vpop.xlane.xlu0 %11093 }
0x2617   : > { %17839 = vrcp.f32 %v11094_v48 }
0x2619   : > { %v17836_v47 = vpop.eup %17835 }
0x261a   : > { %v10864_v16 = vmul.f32 %v17836_v47, %v17828_v29  ;;  %v11254_v55 = vpop.xlane.xlu1 %11253  ;;  %v17154_v29 = vpack.c.bf16 %v11518_v53, %v11517_v61  ;;  %v11434_v47 = vld [vmem:[%s21813_s5 + $0x640] sm:$0xff] }
0x261b   : > { %17841 = vrcp.f32 %v11254_v55  ;;  %v11438_v55 = vld [vmem:[%s21813_s5 + $0x680] sm:$0xff] }
0x261c   : > { %16828 = vmatmul.mubr.msk.f32.vlgmr.msra.gmra.mrb[130].mxu0 %vm325_vm1, %v10864_v16  ;;  %v11435_v16 = vld [vmem:[%s21813_s5 + $0x650] sm:$0xff] }
0x261d   : > { %16831 = vmatpush3.msra.mxu0 %v10779_v7  ;;  %16832 = vmatprep.mubr.msk.f32.mxu0 %vm17877_vm0, %v17876_v2  ;;  %v17838_v49 = vpop.eup %17837  ;;  %v17142_v48 = vpack.c.bf16 %v11435_v16, %v11434_v47  ;;  %v11436_v7 = vld [vmem:[%s21813_s5 + $0x660] sm:$0xff] }
0x261e   : > { %16840 = vmatprep.subr.mxu0 %v17876_v2  ;;  %v10778_v37 = vmul.f32 %v17838_v49, %v17830_v4  ;;  %v17157_v4 = vpack.c.bf16 %v11520_v21, %v11519_v1  ;;  %v11437_v49 = vld [vmem:[%s21813_s5 + $0x670] sm:$0xff] }
0x2621   : > { %v17840_v56 = vpop.eup %17839 }
0x2622   : > { %v11096_v39 = vmul.f32 %v17840_v56, %v17832_v18  ;;  %v11522_v18 = vld [vmem:[%s21813_s5 + $0x710] sm:$0xff] }
0x2623   : > { %v17160_v13 = vpack.c.bf16 %v11522_v18, %v11521_v8 }
0x2624   : > { %16833 = vmatmul.mubr.msk.f32.vlgmr.msra.gmra.mrb[130].mxu0 %vm325_vm1, %v10778_v37  ;;  %v17145_v37 = vpack.c.bf16 %v11437_v49, %v11436_v7 }
0x2625   : > { %16841 = vmatpush3.msra.mxu0 %v11097_v24  ;;  %16842 = vmatprep.mubr.msk.f32.mxu0 %vm17877_vm0, %v17876_v2  ;;  %v17842_v63 = vpop.eup %17841  ;;  %v11439_v24 = vld [vmem:[%s21813_s5 + $0x690] sm:$0xff] }
0x2626   : > { %16850 = vmatprep.subr.mxu0 %v17876_v2  ;;  %v11256_v59 = vmul.f32 %v17842_v63, %v17834_v12  ;;  %v11340_v12 = vld [vmem:[%s21811_s3 + $0x42] ss:$0 sm:$0xff]  ;;  %v17148_v56 = vpack.c.bf16 %v11439_v24, %v11438_v55 }
0x262c   : > { %16843 = vmatmul.mubr.msk.f32.vlgmr.msra.gmra.mrb[130].mxu0 %vm325_vm1, %v11096_v39 }
0x262d   : > { %16851 = vmatpush3.msra.mxu0 %v11257_v57  ;;  %16852 = vmatprep.mubr.msk.f32.mxu0 %vm17877_vm0, %v17876_v2 }
0x262e   : > { %17138 = vmatprep.subr.bf16.mxu0 %v17879_v28 }
0x2634   : > { %16853 = vmatmul.mubr.msk.f32.vlgmr.msra.gmra.mrb[130].mxu0 %vm325_vm1, %v11256_v59 }
0x2635   : > { %16890 = vmatprep.mubr.msk.f32.mxu0 %vm17877_vm0, %v17876_v2  ;;  %17140 = vmatpush3.bf16.msra.mxu0 %v17139_v46 }
0x2636   : > { %17141 = vmatprep.subr.bf16.mxu0 %v17879_v28 }
0x2639   : > { %17143 = vmatpush3.bf16.msra.mxu0 %v17142_v48 }
0x263a   : > { %17144 = vmatprep.subr.bf16.mxu0 %v17879_v28 }
0x263d   : > { %17146 = vmatpush3.bf16.msra.mxu0 %v17145_v37 }
0x263e   : > { %17147 = vmatprep.subr.bf16.mxu0 %v17879_v28 }
0x2641   : > { %17149 = vmatpush3.bf16.msra.mxu0 %v17148_v56 }
0x2642   : > { %16912 = vmatprep.subr.mxu0 %v17876_v2 }
0x2707   : > { %v11327_v34 = vpop.f32.mrb[130].mxu0 }
0x2708   : > { %v16854_v62 = vpop.f32.mrb[131].mxu0  ;;  %16872 = vmatmul.mubr.msk.f32.vlgmr.msra.gmra.mrb[134].mxu1 %vm429_vm2, %v11327_v34  ;;  %v11440_v34 = vld [vmem:[%s21811_s3 + $0x43] ss:$0 sm:$0xff] }
0x2709   : > { %17152 = vmatpush3.bf16.msra.mxu1 %v17151_v60  ;;  %16909 = vmatprep.mubr.msk.f32.mxu1 %vm17877_vm0, %v17876_v2  ;;  %v11416_v60 = vld [vmem:[%s21811_s3 + $0x50] ss:$0 sm:$0xff] }
0x270a   : > { %17153 = vmatprep.subr.bf16.mxu1 %v17879_v28 }
0x270d   : > { %17155 = vmatpush3.bf16.msra.mxu1 %v17154_v29 }
0x270e   : > { %17156 = vmatprep.subr.bf16.mxu1 %v17879_v28 }
0x2711   : > { %17158 = vmatpush3.bf16.msra.mxu1 %v17157_v4 }
0x2712   : > { %17159 = vmatprep.subr.bf16.mxu1 %v17879_v28 }
0x2715   : > { %17161 = vmatpush3.bf16.msra.mxu1 %v17160_v13 }
0x2716   : > { %16932 = vmatprep.subr.mxu1 %v17876_v2 }
0x2718   : > { %16910 = vmatmul.mubr.msk.f32.vlgmr.msra.gmra.mrb[136].mxu1 %vm429_vm2, %v19880_v10 }
0x2719   : > { %16934 = vmatprep.mubr.msk.f32.mxu1 %vm17877_vm0, %v17876_v2 }
0x27db   : > { %v11410_v5 = vpop.f32.mrb[134].mxu1 }
0x27dc   : > { %v11411_v14 = vadd.f32 %v11410_v5, %v11340_v12  ;;  %v16873_v15 = vpop.f32.mrb[135].mxu1 }
0x27de   : > { %v11414_v17 = vadd.f32 %v11411_v14, %v20790_v11 }
0x27e0   : > { %v11417_v19 = vsel %vm429_vm2, %v11414_v17, 0.0 }
0x27e1   : > { %11418 = vadd.xlane.f32.xlu1 %v11417_v19 }
0x27eb   : > { %v11590_v10 = vpop.f32.mrb[136].mxu1 }
0x27ec   : > { %v20931_v54 = vadd.f32 %v11590_v10, %v11523_v26  ;;  %v16911_v31 = vpop.f32.mrb[137].mxu1 }
0x27ee   : > { %16933 = vmatpush3.xpose.msk.msra.mxu1 %vm429_vm2, %v20931_v54  ;;  %v11682_v55 = vmul.f32 %v20931_v54, %v19984_v27  ;;  %v12008_v24 = vmul.f32 %v20931_v54, %v20000_v9  ;;  %v11768_v56 = vmul.f32 %v20931_v54, %v19989_v0  ;;  %v12172_v27 = vmul.f32 %v20931_v54, %v19993_v6  ;;  %v12251_v9 = vld [vmem:[%s21813_s5 + $0x720] sm:$0xff]  ;;  %v12252_v0 = vld [vmem:[%s21813_s5 + $0x730] sm:$0xff] }
0x27ef   : > { %16942 = vmatprep.subr.mxu1 %v17876_v2 }
0x286e   : > { %v11419_v33 = vpop.xlane.xlu1 %11418 }
0x286f   : > { %v11420_v36 = vmul.f32 0.015625, %v11419_v33 }
0x2871   : > { %v11421_v38 = vsub.f32 %v11414_v17, %v11420_v36 }
0x2873   : > { %v11422_v11 = vmul.f32 %v11421_v38, %v11421_v38 }
0x2875   : > { %v11423_v30 = vsel %vm429_vm2, %v11422_v11, 0.0 }
0x2876   : > { %11424 = vadd.xlane.f32.xlu1 %v11423_v30 }
0x2903   : > { %v11425_v39 = vpop.xlane.xlu1 %11424 }
0x2904   : > { %v11426_v57 = vmul.f32 0.015625, %v11425_v39 }
0x2906   : > { %v11427_v63 = vadd.f32 1e-05, %v11426_v57 }
0x2908   : > { %17843 = vrsqrt.f32 %v11427_v63 }
0x2912   : > { %v17844_v59 = vpop.eup %17843 }
0x2913   : > { %v11429_v22 = vmul.f32 %v17844_v59, %v11421_v38 }
0x2915   : > { %v11430_v61 = vmul.f32 %v11429_v22, %v11415_v43  ;;  %v12253_v22 = vld [vmem:[%s21813_s5 + $0x740] sm:$0xff] }
0x2917   : > { %v20971_v53 = vadd.f32 %v11430_v61, %v11416_v60  ;;  %v17163_v60 = vpack.c.bf16 %v12252_v0, %v12251_v9  ;;  %v12254_v61 = vld [vmem:[%s21813_s5 + $0x750] sm:$0xff]  ;;  %v12376_v9 = vld [vmem:[%s21814_s6 + $0x6c8] sm:$0xff] }
0x2918   : > { %v17166_v6 = vpack.c.bf16 %v12254_v61, %v12253_v22  ;;  %v12383_v61 = vld [vmem:[%s21814_s6 + $0x700] sm:$0xff] }
0x2919   : > { %16891 = vmatmul.mubr.msk.f32.vlgmr.msra.gmra.mrb[132].mxu0 %vm429_vm2, %v20971_v53 }
0x291a   : > { %16913 = vmatpush3.xpose.msk.msra.mxu0 %vm429_vm2, %v20931_v54  ;;  %16914 = vmatprep.mubr.msk.f32.mxu0 %vm17877_vm0, %v17876_v2 }
0x291b   : > { %16917 = vmatprep.subr.mxu0 %v17876_v2 }
0x29ec   : > { %v11510_v62 = vpop.f32.mrb[132].mxu0 }
0x29ed   : > { %v11511_v29 = vadd.f32 %v11510_v62, %v11440_v34  ;;  %v16892_v1 = vpop.f32.mrb[133].mxu0  ;;  %v12256_v34 = vld [vmem:[%s21813_s5 + $0x770] sm:$0xff] }
0x29ee   : > { %v12258_v1 = vld [vmem:[%s21813_s5 + $0x790] sm:$0xff] }
0x29ef   : > { %v11514_v21 = vmul.f32 0.25, %v11511_v29  ;;  %v12257_v29 = vld [vmem:[%s21813_s5 + $0x780] sm:$0xff] }
0x29f1   : > { %v11594_v4 = vmul.f32 %v18026_v44, %v11514_v21  ;;  %v11923_v8 = vmul.f32 %v18029_v45, %v11514_v21  ;;  %v11683_v18 = vmul.f32 %v18039_v50, %v11514_v21  ;;  %v12087_v13 = vmul.f32 %v18042_v51, %v11514_v21 }
0x29f2   : > { %v17172_v21 = vpack.c.bf16 %v12258_v1, %v12257_v29 }
0x29f3   : > { %16915 = vmatmul.mubr.msk.f32.vlgmr.msra.gmra.mrb[134].mxu0 %vm429_vm2, %v11594_v4  ;;  %16935 = vmatmul.mubr.msk.f32.vlgmr.msra.gmra.mrb[138].mxu1 %vm429_vm2, %v11923_v8 }
0x29f4   : > { %16918 = vmatpush3.xpose.msk.msra.mxu0 %vm429_vm2, %v20931_v54  ;;  %16943 = vmatpush3.xpose.msk.msra.mxu1 %vm429_vm2, %v20931_v54  ;;  %v12255_v54 = vld [vmem:[%s21813_s5 + $0x760] sm:$0xff] }
0x29f5   : > { %16919 = vmatprep.mubr.msk.f32.mxu0 %vm17877_vm0, %v17876_v2  ;;  %16944 = vmatprep.mubr.msk.f32.mxu1 %vm17877_vm0, %v17876_v2  ;;  %v17169_v62 = vpack.c.bf16 %v12256_v34, %v12255_v54  ;;  %v12384_v54 = vld [vmem:[%s21814_s6 + $0x708] sm:$0xff] }
0x29f6   : > { %16922 = vmatprep.subr.mxu0 %v17876_v2  ;;  %17162 = vmatprep.subr.bf16.mxu1 %v17879_v28 }
0x29f7   : > { %16920 = vmatmul.mubr.msk.f32.vlgmr.msra.gmra.mrb[136].mxu0 %vm429_vm2, %v11683_v18  ;;  %16945 = vmatmul.mubr.msk.f32.vlgmr.msra.gmra.mrb[140].mxu1 %vm429_vm2, %v12087_v13 }
0x29f8   : > { %16924 = vmatprep.mubr.msk.f32.mxu0 %vm17877_vm0, %v17876_v2  ;;  %16968 = vmatprep.mubr.msk.f32.mxu1 %vm17877_vm0, %v17876_v2 }
0x29f9   : > { %17164 = vmatpush3.bf16.msra.mxu1 %v17163_v60 }
0x29fa   : > { %17165 = vmatprep.subr.bf16.mxu1 %v17879_v28 }
0x29fd   : > { %17167 = vmatpush3.bf16.msra.mxu1 %v17166_v6  ;;  %v12391_v6 = vld [vmem:[%s21814_s6 + $0x740] sm:$0xff] }
0x29fe   : > { %17168 = vmatprep.subr.bf16.mxu1 %v17879_v28  ;;  %v15458_v34 = vcombine.high %v12383_v61, %v12391_v6  ;;  %v15457_v29 = vcombine.low %v12383_v61, %v12391_v6 }
0x2a01   : > { %17170 = vmatpush3.bf16.msra.mxu1 %v17169_v62  ;;  %v12392_v62 = vld [vmem:[%s21814_s6 + $0x748] sm:$0xff] }
0x2a02   : > { %17171 = vmatprep.subr.bf16.mxu1 %v17879_v28  ;;  %v15459_v1 = vcombine.low %v12384_v54, %v12392_v62 }
0x2a05   : > { %17173 = vmatpush3.bf16.msra.mxu1 %v17172_v21  ;;  %v15460_v21 = vcombine.high %v12384_v54, %v12392_v62  ;;  %v12363_v62 = vld [vmem:[%s21814_s6 + $0x660] sm:$0xff] }
0x2ac6   : > { %v11667_v44 = vpop.f32.mrb[134].mxu0  ;;  %v11993_v45 = vpop.f32.mrb[138].mxu1 }
0x2ac7   : > { %v16916_v50 = vpop.f32.mrb[135].mxu0  ;;  %v16936_v51 = vpop.f32.mrb[139].mxu1  ;;  %v11671_v19 = vsel %vm325_vm1, %v11667_v44, -inf  ;;  %v11997_v26 = vsel %vm325_vm1, %v11993_v45, -inf }
0x2aca   : > { %v11753_v12 = vpop.f32.mrb[136].mxu0  ;;  %v12157_v5 = vpop.f32.mrb[140].mxu1 }
0x2acb   : > { %v16921_v14 = vpop.f32.mrb[137].mxu0  ;;  %v16946_v15 = vpop.f32.mrb[141].mxu1  ;;  %v11757_v17 = vsel %vm325_vm1, %v11753_v12, -inf  ;;  %v12161_v10 = vsel %vm325_vm1, %v12157_v5, -inf }
0x2acc   : > { %11758 = vmax.xlane.f32.xlu1 %v11757_v17 }
0x2ad0   : > { %11672 = vmax.xlane.f32.xlu1 %v11671_v19 }
0x2ad4   : > { %11998 = vmax.xlane.f32.xlu1 %v11997_v26 }
0x2ad8   : > { %12162 = vmax.xlane.f32.xlu1 %v12161_v10 }
0x2b59   : > { %v11759_v31 = vpop.xlane.xlu1 %11758 }
0x2b5a   : > { %v11760_v38 = vsub.f32 %v11753_v12, %v11759_v31 }
0x2b5c   : > { %v11761_v20 = vmul.f32 1.442695, %v11760_v38 }
0x2b5d   : > { %v11673_v33 = vpop.xlane.xlu1 %11672 }
0x2b5e   : > { %v11674_v36 = vsub.f32 %v11667_v44, %v11673_v33 }
0x2b60   : > { %v11675_v11 = vmul.f32 1.442695, %v11674_v36  ;;  %v12259_v36 = vld [vmem:[%s21811_s3 + $0x45] ss:$0 sm:$0xff] }
0x2b61   : > { %v11999_v30 = vpop.xlane.xlu1 %11998 }
0x2b62   : > { %17845 = vpow2.f32 %v11675_v11  ;;  %v12000_v32 = vsub.f32 %v11993_v45, %v11999_v30 }
0x2b64   : > { %v12001_v46 = vmul.f32 1.442695, %v12000_v32 }
0x2b65   : > { %v12163_v39 = vpop.xlane.xlu1 %12162 }
0x2b66   : > { %17847 = vpow2.f32 %v12001_v46  ;;  %v12164_v57 = vsub.f32 %v12157_v5, %v12163_v39 }
0x2b67   : > { %17849 = vpow2.f32 %v11761_v20 }
0x2b68   : > { %v12165_v63 = vmul.f32 1.442695, %v12164_v57 }
0x2b6a   : > { %17851 = vpow2.f32 %v12165_v63  ;;  %v12367_v63 = vld [vmem:[%s21814_s6 + $0x680] sm:$0xff] }
0x2b6c   : > { %v17846_v47 = vpop.eup %17845 }
0x2b6d   : > { %v11677_v16 = vsel %vm325_vm1, %v17846_v47, 0.0 }
0x2b6e   : > { %11678 = vadd.xlane.f32.xlu1 %v11677_v16 }
0x2b70   : > { %v21010_v48 = vpop.eup %17847 }
0x2b71   : > { %v12003_v7 = vsel %vm325_vm1, %v21010_v48, 0.0  ;;  %v17850_v49 = vpop.eup %17849 }
0x2b72   : > { %12004 = vadd.xlane.f32.xlu0 %v12003_v7  ;;  %v11763_v37 = vsel %vm325_vm1, %v17850_v49, 0.0 }
0x2b74   : > { %v17852_v59 = vpop.eup %17851 }
0x2b75   : > { %v12167_v43 = vsel %vm325_vm1, %v17852_v59, 0.0 }
0x2b76   : > { %11764 = vadd.xlane.f32.xlu0 %v11763_v37  ;;  %v12352_v37 = vld [vmem:[%s21814_s6 + $0x608] sm:$0xff] }
0x2b7f   : > { %11847 = vrot.lane.b32.xlu1 %v11682_v55, %s17878_s11 }
0x2b83   : > { %12010 = vrot.lane.b32.xlu1 %v12008_v24, %s17878_s11  ;;  %v12360_v24 = vld [vmem:[%s21814_s6 + $0x648] sm:$0xff] }
0x2b84   : > { %v15427_v39 = vcombine.low %v12352_v37, %v12360_v24  ;;  %v15428_v57 = vcombine.high %v12352_v37, %v12360_v24  ;;  %v12393_v24 = vld [vmem:[%s21814_s6 + $0x750] sm:$0xff] }
0x2b86   : > { %13123 = vmatprep.subr.bf16.mxu1 %v15428_v57 }
0x2b8c   : > { %11770 = vrot.lane.b32.xlu0 %v11768_v56, %s17878_s11 }
0x2ba7   : > { %12168 = vadd.xlane.f32.xlu1 %v12167_v43  ;;  %v12368_v43 = vld [vmem:[%s21814_s6 + $0x688] sm:$0xff] }
0x2ba8   : > { %v15443_v22 = vcombine.low %v12368_v43, %v12376_v9  ;;  %v15444_v60 = vcombine.high %v12368_v43, %v12376_v9  ;;  %v12409_v9 = vld [vmem:[%s21814_s6 + $0x7d0] sm:$0xff] }
0x2bb8   : > { %12174 = vrot.lane.b32.xlu1 %v12172_v27, %s17878_s11 }
0x2bfb   : > { %v11679_v18 = vpop.xlane.xlu1 %11678 }
0x2bff   : > { %v12005_v4 = vpop.xlane.xlu0 %12004  ;;  %v11848_v50 = vpop.permute.xlu1 %11847 }
0x2c03   : > { %v11765_v8 = vpop.xlane.xlu0 %11764  ;;  %v12011_v5 = vpop.permute.xlu1 %12010 }
0x2c04   : > { %17853 = vrcp.f32 %v11765_v8  ;;  %v12407_v8 = vld [vmem:[%s21814_s6 + $0x7c0] sm:$0xff] }
0x2c05   : > { %17855 = vrcp.f32 %v11679_v18  ;;  %v12400_v18 = vld [vmem:[%s21814_s6 + $0x788] sm:$0xff] }
0x2c06   : > { %17857 = vrcp.f32 %v12005_v4  ;;  %v12399_v4 = vld [vmem:[%s21814_s6 + $0x780] sm:$0xff] }
0x2c07   : > { %v11771_v13 = vpop.permute.xlu0 %11770 }
0x2c08   : > { %16923 = vmatpush3.msra.mxu0 %v11771_v13  ;;  %v15474_v13 = vcombine.high %v12399_v4, %v12407_v8 }
0x2c09   : > { %16927 = vmatprep.subr.mxu0 %v17876_v2 }
0x2c0e   : > { %v17854_v44 = vpop.eup %17853 }
0x2c0f   : > { %v11767_v45 = vmul.f32 %v17854_v44, %v17850_v49  ;;  %v17856_v51 = vpop.eup %17855  ;;  %v12351_v49 = vld [vmem:[%s21814_s6 + $0x600] sm:$0xff]  ;;  %v12408_v44 = vld [vmem:[%s21814_s6 + $0x7c8] sm:$0xff] }
0x2c10   : > { %v11681_v12 = vmul.f32 %v17856_v51, %v17846_v47  ;;  %v17858_v14 = vpop.eup %17857  ;;  %v15476_v51 = vcombine.high %v12400_v18, %v12408_v44 }
0x2c11   : > { %16925 = vmatmul.mubr.msk.f32.vlgmr.msra.gmra.mrb[138].mxu0 %vm325_vm1, %v11767_v45  ;;  %v12007_v15 = vmul.f32 %v17858_v14, %v21010_v48  ;;  %v15473_v45 = vcombine.low %v12399_v4, %v12407_v8  ;;  %v12354_v14 = vld [vmem:[%s21814_s6 + $0x618] sm:$0xff] }
0x2c12   : > { %16928 = vmatpush3.msra.mxu0 %v11848_v50  ;;  %16929 = vmatprep.mubr.msk.f32.mxu0 %vm17877_vm0, %v17876_v2  ;;  %v15475_v50 = vcombine.low %v12400_v18, %v12408_v44  ;;  %v12379_v44 = vld [vmem:[%s21814_s6 + $0x6e0] sm:$0xff] }
0x2c13   : > { %16937 = vmatprep.subr.mxu0 %v17876_v2 }
0x2c19   : > { %16930 = vmatmul.mubr.msk.f32.vlgmr.msra.gmra.mrb[138].mxu0 %vm325_vm1, %v11681_v12  ;;  %v12353_v12 = vld [vmem:[%s21814_s6 + $0x610] sm:$0xff] }
0x2c1a   : > { %16938 = vmatpush3.msra.mxu0 %v12011_v5  ;;  %16939 = vmatprep.mubr.msk.f32.mxu0 %vm17877_vm0, %v17876_v2  ;;  %v12361_v5 = vld [vmem:[%s21814_s6 + $0x650] sm:$0xff] }
0x2c1b   : > { %16947 = vmatprep.subr.mxu0 %v17876_v2 }
0x2c21   : > { %16940 = vmatmul.mubr.msk.f32.vlgmr.msra.gmra.mrb[138].mxu0 %vm325_vm1, %v12007_v15  ;;  %v15429_v15 = vcombine.low %v12353_v12, %v12361_v5 }
0x2c22   : > { %16949 = vmatprep.mubr.msk.f32.mxu0 %vm17877_vm0, %v17876_v2 }
0x2c34   : > { %v12169_v17 = vpop.xlane.xlu1 %12168 }
0x2c35   : > { %17859 = vrcp.f32 %v12169_v17  ;;  %v15430_v17 = vcombine.high %v12353_v12, %v12361_v5 }
0x2c38   : > { %v12175_v19 = vpop.permute.xlu1 %12174 }
0x2c39   : > { %16948 = vmatpush3.msra.mxu0 %v12175_v19  ;;  %v12362_v19 = vld [vmem:[%s21814_s6 + $0x658] sm:$0xff] }
0x2c3f   : > { %v17860_v26 = vpop.eup %17859 }
0x2c40   : > { %v12171_v10 = vmul.f32 %v17860_v26, %v17852_v59  ;;  %v12375_v59 = vld [vmem:[%s21814_s6 + $0x6c0] sm:$0xff]  ;;  %v15431_v26 = vcombine.low %v12354_v14, %v12362_v19 }
0x2c41   : > { %v15442_v27 = vcombine.high %v12367_v63, %v12375_v59  ;;  %v15441_v0 = vcombine.low %v12367_v63, %v12375_v59 }
0x2c42   : > { %16950 = vmatmul.mubr.msk.f32.vlgmr.msra.gmra.mrb[138].mxu0 %vm325_vm1, %v12171_v10  ;;  %v15432_v10 = vcombine.high %v12354_v14, %v12362_v19  ;;  %v12388_v19 = vld [vmem:[%s21814_s6 + $0x728] sm:$0xff] }
0x2c43   : > { %13114 = vmatprep.mubr.bf16.mxu0 %v17880_v58 }
0x2d15   : > { %v12246_v31 = vpop.f32.mrb[138].mxu0 }
0x2d16   : > { %v16951_v33 = vpop.f32.mrb[139].mxu0  ;;  %16969 = vmatmul.mubr.msk.f32.vlgmr.msra.gmra.mrb[142].mxu1 %vm429_vm2, %v12246_v31 }
0x2d17   : > { %13155 = vmatprep.mubr.bf16.mxu1 %v17880_v58  ;;  %13124 = vmatpush1.bf16.msra.mxu1 %v15427_v39  ;;  %v12394_v39 = vld [vmem:[%s21814_s6 + $0x758] sm:$0xff] }
0x2d18   : > { %13125 = vmatprep.subr.bf16.mxu1 %v15444_v60 }
0x2d1b   : > { %13126 = vmatpush1.bf16.msra.mxu1 %v15443_v22  ;;  %v12410_v22 = vld [vmem:[%s21814_s6 + $0x7d8] sm:$0xff] }
0x2d1c   : > { %13127 = vmatprep.subr.bf16.mxu1 %v15460_v21 }
0x2d1f   : > { %13128 = vmatpush1.bf16.msra.mxu1 %v15459_v1  ;;  %v12364_v1 = vld [vmem:[%s21814_s6 + $0x668] sm:$0xff] }
0x2d20   : > { %13129 = vmatprep.subr.bf16.mxu1 %v15476_v51 }
0x2d23   : > { %13130 = vmatpush1.bf16.msra.mxu1 %v15475_v50  ;;  %v12380_v50 = vld [vmem:[%s21814_s6 + $0x6e8] sm:$0xff] }
0x2d24   : > { %13205 = vmatprep.subr.bf16.mxu1 %v15432_v10 }
0x2de9   : > { %v12329_v38 = vpop.f32.mrb[142].mxu1 }
0x2dea   : > { %v12330_v11 = vadd.f32 %v12329_v38, %v12259_v36  ;;  %v16970_v30 = vpop.f32.mrb[143].mxu1 }
0x2dec   : > { %v12333_v32 = vadd.f32 %v12330_v11, %v20971_v53  ;;  %v12359_v53 = vld [vmem:[%s21814_s6 + $0x640] sm:$0xff]  ;;  %v12334_v11 = vld [vmem:[%s21811_s3 + $0x51] ss:$0 sm:$0xff] }
0x2ded   : > { %v15426_v55 = vcombine.high %v12351_v49, %v12359_v53  ;;  %v15425_v56 = vcombine.low %v12351_v49, %v12359_v53 }
0x2dee   : > { %v12336_v20 = vsel %vm429_vm2, %v12333_v32, 0.0 }
0x2def   : > { %12337 = vadd.xlane.f32.xlu0 %v12336_v20  ;;  %13082 = vmatprep.subr.bf16.mxu0 %v15426_v55  ;;  %v12385_v55 = vld [vmem:[%s21814_s6 + $0x710] sm:$0xff] }
0x2df0   : > { %13083 = vmatpush1.bf16.msra.mxu0 %v15425_v56  ;;  %v12386_v56 = vld [vmem:[%s21814_s6 + $0x718] sm:$0xff]  ;;  %v15462_v59 = vcombine.high %v12385_v55, %v12393_v24  ;;  %v15461_v60 = vcombine.low %v12385_v55, %v12393_v24 }
0x2df1   : > { %13084 = vmatprep.subr.bf16.mxu0 %v15442_v27  ;;  %v15464_v43 = vcombine.high %v12386_v56, %v12394_v39  ;;  %v12401_v27 = vld [vmem:[%s21814_s6 + $0x790] sm:$0xff]  ;;  %v15463_v61 = vcombine.low %v12386_v56, %v12394_v39  ;;  %v12366_v55 = vld [vmem:[%s21814_s6 + $0x678] sm:$0xff] }
0x2df2   : > { %v15478_v6 = vcombine.high %v12401_v27, %v12409_v9  ;;  %v15477_v21 = vcombine.low %v12401_v27, %v12409_v9  ;;  %v12382_v27 = vld [vmem:[%s21814_s6 + $0x6f8] sm:$0xff] }
0x2df4   : > { %13085 = vmatpush1.bf16.msra.mxu0 %v15441_v0  ;;  %v12402_v0 = vld [vmem:[%s21814_s6 + $0x798] sm:$0xff] }
0x2df5   : > { %13086 = vmatprep.subr.bf16.mxu0 %v15458_v34  ;;  %v15480_v54 = vcombine.high %v12402_v0, %v12410_v22  ;;  %v12355_v34 = vld [vmem:[%s21814_s6 + $0x620] sm:$0xff]  ;;  %v15479_v4 = vcombine.low %v12402_v0, %v12410_v22 }
0x2df6   : > { %v15434_v8 = vcombine.high %v12355_v34, %v12363_v62  ;;  %v15433_v51 = vcombine.low %v12355_v34, %v12363_v62  ;;  %v12398_v34 = vld [vmem:[%s21814_s6 + $0x778] sm:$0xff] }
0x2df8   : > { %13087 = vmatpush1.bf16.msra.mxu0 %v15457_v29  ;;  %v12356_v29 = vld [vmem:[%s21814_s6 + $0x628] sm:$0xff] }
0x2df9   : > { %13088 = vmatprep.subr.bf16.mxu0 %v15474_v13  ;;  %v15436_v18 = vcombine.high %v12356_v29, %v12364_v1  ;;  %v12371_v13 = vld [vmem:[%s21814_s6 + $0x6a0] sm:$0xff]  ;;  %v15435_v12 = vcombine.low %v12356_v29, %v12364_v1 }
0x2dfa   : > { %v15450_v5 = vcombine.high %v12371_v13, %v12379_v44  ;;  %v15449_v10 = vcombine.low %v12371_v13, %v12379_v44  ;;  %v12414_v13 = vld [vmem:[%s21814_s6 + $0x7f8] sm:$0xff] }
0x2dfc   : > { %13089 = vmatpush1.bf16.msra.mxu0 %v15473_v45  ;;  %v12372_v45 = vld [vmem:[%s21814_s6 + $0x6a8] sm:$0xff] }
0x2dfd   : > { %13164 = vmatprep.subr.bf16.mxu0 %v15430_v17  ;;  %v15452_v14 = vcombine.high %v12372_v45, %v12380_v50  ;;  %v12395_v17 = vld [vmem:[%s21814_s6 + $0x760] sm:$0xff] }
0x2e7c   : > { %v12338_v46 = vpop.xlane.xlu0 %12337 }
0x2e7d   : > { %v12339_v47 = vmul.f32 0.015625, %v12338_v46  ;;  %v12369_v46 = vld [vmem:[%s21814_s6 + $0x690] sm:$0xff] }
0x2e7f   : > { %v21077_v16 = vsub.f32 %v12333_v32, %v12339_v47  ;;  %v12335_v32 = vld [vmem:[%s21811_s3 + $0x52] ss:$0 sm:$0xff] }
0x2e80   : > { %v12377_v47 = vld [vmem:[%s21814_s6 + $0x6d0] sm:$0xff] }
0x2e81   : > { %v12341_v48 = vmul.f32 %v21077_v16, %v21077_v16  ;;  %v15446_v53 = vcombine.high %v12369_v46, %v12377_v47  ;;  %v15445_v57 = vcombine.low %v12369_v46, %v12377_v47 }
0x2e83   : > { %v12342_v7 = vsel %vm429_vm2, %v12341_v48, 0.0  ;;  %v12370_v48 = vld [vmem:[%s21814_s6 + $0x698] sm:$0xff] }
0x2e84   : > { %12343 = vadd.xlane.f32.xlu1 %v12342_v7 }
0x2f11   : > { %v12344_v31 = vpop.xlane.xlu1 %12343 }
0x2f12   : > { %v12345_v33 = vmul.f32 0.015625, %v12344_v31  ;;  %v15451_v31 = vcombine.low %v12372_v45, %v12380_v50 }
0x2f14   : > { %v12346_v36 = vadd.f32 1e-05, %v12345_v33 }
0x2f16   : > { %17861 = vrsqrt.f32 %v12346_v36 }
0x2f20   : > { %v17862_v38 = vpop.eup %17861 }
0x2f21   : > { %v12348_v30 = vmul.f32 %v17862_v38, %v21077_v16  ;;  %v12378_v16 = vld [vmem:[%s21814_s6 + $0x6d8] sm:$0xff]  ;;  %v12403_v38 = vld [vmem:[%s21814_s6 + $0x7a0] sm:$0xff] }
0x2f22   : > { %v15448_v37 = vcombine.high %v12370_v48, %v12378_v16  ;;  %v15447_v63 = vcombine.low %v12370_v48, %v12378_v16  ;;  %v12357_v16 = vld [vmem:[%s21814_s6 + $0x630] sm:$0xff] }
0x2f23   : > { %v12349_v20 = vmul.f32 %v12348_v30, %v12334_v11  ;;  %v12411_v11 = vld [vmem:[%s21814_s6 + $0x7e0] sm:$0xff]  ;;  %v12404_v30 = vld [vmem:[%s21814_s6 + $0x7a8] sm:$0xff] }
0x2f24   : > { %v15482_v47 = vcombine.high %v12403_v38, %v12411_v11  ;;  %v15481_v24 = vcombine.low %v12403_v38, %v12411_v11  ;;  %v17630_v38 = vld [vmem:[%s21815_s7 + $0xc90] sm:$0xff]   ;;  %v17631_v11 = vld [vmem:[%s21815_s7 + $0xc58] sm:$0xff]  }
0x2f25   : > { %v21161_v7 = vadd.f32 %v12349_v20, %v12335_v32  ;;  %v12412_v32 = vld [vmem:[%s21814_s6 + $0x7e8] sm:$0xff] }
0x2f26   : > { %v15484_v48 = vcombine.high %v12404_v30, %v12412_v32  ;;  %v15483_v56 = vcombine.low %v12404_v30, %v12412_v32  ;;  %v17632_v30 = vld [vmem:[%s21815_s7 + $0xcd8] sm:$0xff]  }
0x2f27   : > { %v21165_v49 = vpack.c.bf16 %v21161_v7, %v21161_v7  ;;  %v17633_v32 = vld [vmem:[%s21815_s7 + $0xc18] sm:$0xff]  }
0x2f29   : > { %15489 = vmatmul.mubr.msk.bf16.vlgmr.msra.gmra.mrb[140].mxu0 %vm429_vm2, %v21165_v49  ;;  %15490 = vmatmul.mubr.msk.bf16.vlgmr.msra.gmra.mrb[144].mxu1 %vm429_vm2, %v21165_v49 }
0x2f2a   : > { %13165 = vmatpush1.bf16.msra.mxu0 %v15429_v15  ;;  %13206 = vmatpush1.bf16.msra.mxu1 %v15431_v26  ;;  %v12387_v15 = vld [vmem:[%s21814_s6 + $0x720] sm:$0xff]  ;;  %v12396_v26 = vld [vmem:[%s21814_s6 + $0x768] sm:$0xff] }
0x2f2b   : > { %13166 = vmatprep.subr.bf16.mxu0 %v15446_v53  ;;  %13207 = vmatprep.subr.bf16.mxu1 %v15448_v37  ;;  %v15466_v33 = vcombine.high %v12387_v15, %v12395_v17  ;;  %v15468_v36 = vcombine.high %v12388_v19, %v12396_v26  ;;  %v15465_v20 = vcombine.low %v12387_v15, %v12395_v17  ;;  %v12365_v53 = vld [vmem:[%s21814_s6 + $0x670] sm:$0xff]  ;;  %v12358_v37 = vld [vmem:[%s21814_s6 + $0x638] sm:$0xff]  ;;  %v17621_v15 = vld [vmem:[%s21815_s7 + $0xc00] sm:$0xff]  }
0x2f2c   : > { %13196 = vmatprep.mubr.bf16.mxu0 %v17880_v58  ;;  %13237 = vmatprep.mubr.bf16.mxu1 %v17880_v58  ;;  %v15467_v46 = vcombine.low %v12388_v19, %v12396_v26  ;;  %v15438_v39 = vcombine.high %v12357_v16, %v12365_v53  ;;  %v15437_v9 = vcombine.low %v12357_v16, %v12365_v53  ;;  %v17622_v17 = vld [vmem:[%s21815_s7 + $0xc80] sm:$0xff]   ;;  %v17623_v19 = vld [vmem:[%s21815_s7 + $0xc48] sm:$0xff]  }
0x2f2d   : > { %v15439_v0 = vcombine.low %v12358_v37, %v12366_v55  ;;  %v17624_v26 = vld [vmem:[%s21815_s7 + $0xcc8] sm:$0xff]   ;;  %v17638_v16 = vld [vmem:[%s21815_s7 + $0xca0] sm:$0xff]  }
0x2f2e   : > { %13167 = vmatpush1.bf16.msra.mxu0 %v15445_v57  ;;  %13208 = vmatpush1.bf16.msra.mxu1 %v15447_v63  ;;  %v15440_v57 = vcombine.high %v12358_v37, %v12366_v55  ;;  %v12373_v63 = vld [vmem:[%s21814_s6 + $0x6b0] sm:$0xff]  ;;  %v17639_v53 = vld [vmem:[%s21815_s7 + $0xc68] sm:$0xff]  }
0x2f2f   : > { %13168 = vmatprep.subr.bf16.mxu0 %v15462_v59  ;;  %13209 = vmatprep.subr.bf16.mxu1 %v15464_v43  ;;  %v12381_v59 = vld [vmem:[%s21814_s6 + $0x6f0] sm:$0xff]  ;;  %v12374_v43 = vld [vmem:[%s21814_s6 + $0x6b8] sm:$0xff]  ;;  %v17640_v37 = vld [vmem:[%s21815_s7 + $0xce8] sm:$0xff]  }
0x2f30   : > { %v15454_v22 = vcombine.high %v12373_v63, %v12381_v59  ;;  %v15453_v62 = vcombine.low %v12373_v63, %v12381_v59  ;;  %v15455_v29 = vcombine.low %v12374_v43, %v12382_v27  ;;  %v17641_v55 = vld [vmem:[%s21815_s7 + $0xc28] sm:$0xff]   ;;  %v17646_v63 = vld [vmem:[%s21815_s7 + $0xcb0] sm:$0xff]   ;;  %v17647_v59 = vld [vmem:[%s21815_s7 + $0xc78] sm:$0xff]  }
0x2f32   : > { %13169 = vmatpush1.bf16.msra.mxu0 %v15461_v60  ;;  %13210 = vmatpush1.bf16.msra.mxu1 %v15463_v61  ;;  %v15456_v60 = vcombine.high %v12374_v43, %v12382_v27  ;;  %v12389_v61 = vld [vmem:[%s21814_s6 + $0x730] sm:$0xff]  ;;  %v17648_v43 = vld [vmem:[%s21815_s7 + $0xcf8] sm:$0xff]  }
0x2f33   : > { %13170 = vmatprep.subr.bf16.mxu0 %v15478_v6  ;;  %13211 = vmatprep.subr.bf16.mxu1 %v15480_v54  ;;  %v12397_v6 = vld [vmem:[%s21814_s6 + $0x770] sm:$0xff]  ;;  %v12390_v54 = vld [vmem:[%s21814_s6 + $0x738] sm:$0xff] }
0x2f34   : > { %v15470_v1 = vcombine.high %v12389_v61, %v12397_v6  ;;  %v15469_v44 = vcombine.low %v12389_v61, %v12397_v6  ;;  %v15471_v45 = vcombine.low %v12390_v54, %v12398_v34  ;;  %v17649_v27 = vld [vmem:[%s21815_s7 + $0xc38] sm:$0xff]  }
0x2f36   : > { %13171 = vmatpush1.bf16.msra.mxu0 %v15477_v21  ;;  %13212 = vmatpush1.bf16.msra.mxu1 %v15479_v4  ;;  %v15472_v21 = vcombine.high %v12390_v54, %v12398_v34  ;;  %v12405_v4 = vld [vmem:[%s21814_s6 + $0x7b0] sm:$0xff] }
0x2f37   : > { %13246 = vmatprep.subr.bf16.mxu0 %v15434_v8  ;;  %13287 = vmatprep.subr.bf16.mxu1 %v15436_v18  ;;  %v12413_v8 = vld [vmem:[%s21814_s6 + $0x7f0] sm:$0xff]  ;;  %v12406_v18 = vld [vmem:[%s21814_s6 + $0x7b8] sm:$0xff] }
0x2f38   : > { %v15486_v50 = vcombine.high %v12405_v4, %v12413_v8 }
0x2f39   : > { %15491 = vmatmul.mubr.msk.bf16.vlgmr.msra.gmra.mrb[144].mxu0 %vm429_vm2, %v21165_v49  ;;  %15492 = vmatmul.mubr.msk.bf16.vlgmr.msra.gmra.mrb[148].mxu1 %vm429_vm2, %v21165_v49 }
0x2f3a   : > { %13247 = vmatpush1.bf16.msra.mxu0 %v15433_v51  ;;  %13288 = vmatpush1.bf16.msra.mxu1 %v15435_v12  ;;  %v15488_v51 = vcombine.high %v12406_v18, %v12414_v13  ;;  %v15485_v12 = vcombine.low %v12405_v4, %v12413_v8 }
0x2f3b   : > { %13248 = vmatprep.subr.bf16.mxu0 %v15450_v5  ;;  %13289 = vmatprep.subr.bf16.mxu1 %v15452_v14  ;;  %v15487_v5 = vcombine.low %v12406_v18, %v12414_v13  ;;  %v17619_v14 = vld [vmem:[%s21815_s7 + $0xc40] sm:$0xff]  }
0x2f3c   : > { %13278 = vmatprep.mubr.bf16.mxu0 %v17880_v58  ;;  %13319 = vmatprep.mubr.bf16.mxu1 %v17880_v58 }
0x2f3e   : > { %13249 = vmatpush1.bf16.msra.mxu0 %v15449_v10  ;;  %13290 = vmatpush1.bf16.msra.mxu1 %v15451_v31  ;;  %v17625_v10 = vld [vmem:[%s21815_s7 + $0xc08] sm:$0xff]  }
0x2f3f   : > { %13250 = vmatprep.subr.bf16.mxu0 %v15466_v33  ;;  %13291 = vmatprep.subr.bf16.mxu1 %v15468_v36  ;;  %v17626_v31 = vld [vmem:[%s21815_s7 + $0xc88] sm:$0xff]   ;;  %v17627_v33 = vld [vmem:[%s21815_s7 + $0xc50] sm:$0xff]  }
0x2f40   : > { %v17629_v36 = vld [vmem:[%s21815_s7 + $0xc10] sm:$0xff]  }
0x2f42   : > { %13251 = vmatpush1.bf16.msra.mxu0 %v15465_v20  ;;  %13292 = vmatpush1.bf16.msra.mxu1 %v15467_v46  ;;  %v17634_v20 = vld [vmem:[%s21815_s7 + $0xc98] sm:$0xff]   ;;  %v17635_v46 = vld [vmem:[%s21815_s7 + $0xc60] sm:$0xff]  }
0x2f43   : > { %13252 = vmatprep.subr.bf16.mxu0 %v15482_v47  ;;  %13293 = vmatprep.subr.bf16.mxu1 %v15484_v48  ;;  %v17636_v47 = vld [vmem:[%s21815_s7 + $0xce0] sm:$0xff]  }
0x2f44   : > { %v17637_v48 = vld [vmem:[%s21815_s7 + $0xc20] sm:$0xff]  }
0x2f46   : > { %13253 = vmatpush1.bf16.msra.mxu0 %v15481_v24  ;;  %13294 = vmatpush1.bf16.msra.mxu1 %v15483_v56  ;;  %v17642_v24 = vld [vmem:[%s21815_s7 + $0xca8] sm:$0xff]   ;;  %v17643_v56 = vld [vmem:[%s21815_s7 + $0xc70] sm:$0xff]  }
0x2f47   : > { %13328 = vmatprep.subr.bf16.mxu0 %v15438_v39  ;;  %13369 = vmatprep.subr.bf16.mxu1 %v15440_v57  ;;  %v17644_v39 = vld [vmem:[%s21815_s7 + $0xcf0] sm:$0xff]  }
0x2f48   : > { %v17645_v57 = vld [vmem:[%s21815_s7 + $0xc30] sm:$0xff]  }
0x2f49   : > { %15493 = vmatmul.mubr.msk.bf16.vlgmr.msra.gmra.mrb[148].mxu0 %vm429_vm2, %v21165_v49  ;;  %15494 = vmatmul.mubr.msk.bf16.vlgmr.msra.gmra.mrb[152].mxu1 %vm429_vm2, %v21165_v49 }
0x2f4a   : > { %13329 = vmatpush1.bf16.msra.mxu0 %v15437_v9  ;;  %13370 = vmatpush1.bf16.msra.mxu1 %v15439_v0  ;;  %v17650_v9 = vld [vmem:[%s21815_s7 + $0xcb8] sm:$0xff]   ;;  %v17651_v0 = vld [vmem:[%s21815_s7 + $0xd40] sm:$0xff]  }
0x2f4b   : > { %13330 = vmatprep.subr.bf16.mxu0 %v15454_v22  ;;  %13371 = vmatprep.subr.bf16.mxu1 %v15456_v60  ;;  %v17652_v22 = vld [vmem:[%s21815_s7 + $0xdc0] sm:$0xff]  }
0x2f4c   : > { %13360 = vmatprep.mubr.bf16.mxu0 %v17880_v58  ;;  %13401 = vmatprep.mubr.bf16.mxu1 %v17880_v58  ;;  %v17620_v58 = vld [vmem:[%s21815_s7 + $0xcc0] sm:$0xff]  }
0x2f4d   : > { %v21414_v60 = vld [vmem:[%s21812_s4 + $0x3] ss:$4 sm:$0xff] }
0x2f4e   : > { %13331 = vmatpush1.bf16.msra.mxu0 %v15453_v62  ;;  %13372 = vmatpush1.bf16.msra.mxu1 %v15455_v29  ;;  %v12682_v61 = vrot.slane %v21414_v60, %v18015_v35  ;;  %v12690_v6 = vrot.slane %v21414_v60, %v18463_v23  ;;  %v12686_v54 = vrot.slane %v21414_v60, %v18023_v42 }
0x2f4f   : > { %13332 = vmatprep.subr.bf16.mxu0 %v15470_v1  ;;  %13373 = vmatprep.subr.bf16.mxu1 %v15472_v21  ;;  %v12694_v34 = vrot.slane %v21414_v60, %v18471_v25 }
0x2f52   : > { %13333 = vmatpush1.bf16.msra.mxu0 %v15469_v44  ;;  %13374 = vmatpush1.bf16.msra.mxu1 %v15471_v45 }
0x2f53   : > { %13334 = vmatprep.subr.bf16.mxu0 %v15486_v50  ;;  %13375 = vmatprep.subr.bf16.mxu1 %v15488_v51 }
0x2f56   : > { %13335 = vmatpush1.bf16.msra.mxu0 %v15485_v12  ;;  %13376 = vmatpush1.bf16.msra.mxu1 %v15487_v5 }
0x2f57   : > { %16346 = vmatprep.subr.bf16.mxu0 %v17619_v14  ;;  %16368 = vmatprep.subr.bf16.mxu1 %v17620_v58 }
0x2f59   : > { %15495 = vmatmul.mubr.msk.bf16.vlgmr.msra.gmra.mrb[152].mxu0 %vm429_vm2, %v21165_v49  ;;  %15496 = vmatmul.mubr.msk.bf16.vlgmr.msra.gmra.mrb[156].mxu1 %vm429_vm2, %v21165_v49  ;;  %v17628_v49 = vld [vmem:[%s21815_s7 + $0xcd0] sm:$0xff]  }
0x2f5a   : > { %16347 = vmatpush3.bf16.msra.mxu0 %v17621_v15  ;;  %16369 = vmatpush3.bf16.msra.mxu1 %v17622_v17 }
0x2f5b   : > { %16348 = vmatprep.subr.bf16.mxu0 %v17623_v19  ;;  %16370 = vmatprep.subr.bf16.mxu1 %v17624_v26  ;;  %v17653_v19 = vld [vmem:[%s21815_s7 + $0xd00] sm:$0xff]  }
0x2f5c   : > { %v17654_v26 = vld [vmem:[%s21815_s7 + $0xd80] sm:$0xff]  }
0x2f5e   : > { %16349 = vmatpush3.bf16.msra.mxu0 %v17625_v10  ;;  %16371 = vmatpush3.bf16.msra.mxu1 %v17626_v31 }
0x2f5f   : > { %16350 = vmatprep.subr.bf16.mxu0 %v17627_v33  ;;  %16372 = vmatprep.subr.bf16.mxu1 %v17628_v49  ;;  %v17655_v33 = vld [vmem:[%s21815_s7 + $0xd48] sm:$0xff]  }
0x2f60   : > { %v17656_v49 = vld [vmem:[%s21815_s7 + $0xdc8] sm:$0xff]  }
0x2f62   : > { %16351 = vmatpush3.bf16.msra.mxu0 %v17629_v36  ;;  %16373 = vmatpush3.bf16.msra.mxu1 %v17630_v38  ;;  %v17657_v36 = vld [vmem:[%s21815_s7 + $0xd08] sm:$0xff]  }
0x2f63   : > { %16352 = vmatprep.subr.bf16.mxu0 %v17631_v11  ;;  %16374 = vmatprep.subr.bf16.mxu1 %v17632_v30  ;;  %v17658_v38 = vld [vmem:[%s21815_s7 + $0xd88] sm:$0xff]   ;;  %v17659_v11 = vld [vmem:[%s21815_s7 + $0xd50] sm:$0xff]  }
0x2f64   : > { %v17660_v30 = vld [vmem:[%s21815_s7 + $0xdd0] sm:$0xff]  }
0x2f66   : > { %16353 = vmatpush3.bf16.msra.mxu0 %v17633_v32  ;;  %16375 = vmatpush3.bf16.msra.mxu1 %v17634_v20  ;;  %v12702_v32 = vrot.slane %v21414_v60, %v18500_v52  ;;  %v12710_v20 = vrot.slane %v21414_v60, %v18503_v3 }
0x2f67   : > { %16354 = vmatprep.subr.bf16.mxu0 %v17635_v46  ;;  %16376 = vmatprep.subr.bf16.mxu1 %v17636_v47  ;;  %v17661_v46 = vld [vmem:[%s21815_s7 + $0xd10] sm:$0xff]  }
0x2f68   : > { %v17662_v47 = vld [vmem:[%s21815_s7 + $0xd90] sm:$0xff]  }
0x2f6a   : > { %16355 = vmatpush3.bf16.msra.mxu0 %v17637_v48  ;;  %16377 = vmatpush3.bf16.msra.mxu1 %v17638_v16  ;;  %v17663_v48 = vld [vmem:[%s21815_s7 + $0xd58] sm:$0xff]  }
0x2f6b   : > { %16356 = vmatprep.subr.bf16.mxu0 %v17639_v53  ;;  %16378 = vmatprep.subr.bf16.mxu1 %v17640_v37  ;;  %v17664_v16 = vld [vmem:[%s21815_s7 + $0xdd8] sm:$0xff]  }
0x2f6e   : > { %16357 = vmatpush3.bf16.msra.mxu0 %v17641_v55  ;;  %16379 = vmatpush3.bf16.msra.mxu1 %v17642_v24 }
0x2f6f   : > { %16358 = vmatprep.subr.bf16.mxu0 %v17643_v56  ;;  %16380 = vmatprep.subr.bf16.mxu1 %v17644_v39 }
0x2f72   : > { %16359 = vmatpush3.bf16.msra.mxu0 %v17645_v57  ;;  %16381 = vmatpush3.bf16.msra.mxu1 %v17646_v63 }
0x2f73   : > { %16360 = vmatprep.subr.bf16.mxu0 %v17647_v59  ;;  %16382 = vmatprep.subr.bf16.mxu1 %v17648_v43  ;;  %v17665_v59 = vld [vmem:[%s21815_s7 + $0xd18] sm:$0xff]  }
0x2f74   : > { %v17666_v43 = vld [vmem:[%s21815_s7 + $0xd98] sm:$0xff]  }
0x2f76   : > { %16361 = vmatpush3.bf16.msra.mxu0 %v17649_v27  ;;  %16383 = vmatpush3.bf16.msra.mxu1 %v17650_v9 }
0x2f77   : > { %16390 = vmatprep.subr.bf16.mxu0 %v17651_v0  ;;  %16412 = vmatprep.subr.bf16.mxu1 %v17652_v22  ;;  %v17667_v0 = vld [vmem:[%s21815_s7 + $0xd60] sm:$0xff]  }
0x2f78   : > { %v17668_v22 = vld [vmem:[%s21815_s7 + $0xde0] sm:$0xff]  }
0x2ffc   : > { %v13116_v62 = vpop.f32.mrb[140].mxu0  ;;  %v13157_v29 = vpop.f32.mrb[144].mxu1 }
0x2ffd   : > { %v13117_v1 = vadd.f32 %v13116_v62, %v12682_v61  ;;  %v13158_v21 = vadd.f32 %v13157_v29, %v12690_v6  ;;  %v13118_v4 = vpop.f32.mrb[141].mxu0  ;;  %v13159_v8 = vpop.f32.mrb[145].mxu1  ;;  %v17669_v62 = vld [vmem:[%s21815_s7 + $0xd20] sm:$0xff]  }
0x2ffe   : > { %v13119_v18 = vadd.f32 %v13118_v4, %v12686_v54  ;;  %v13160_v13 = vadd.f32 %v13159_v8, %v12694_v34  ;;  %v13120_v44 = vpop.f32.mrb[142].mxu0  ;;  %v13161_v45 = vpop.f32.mrb[146].mxu1  ;;  %v17670_v29 = vld [vmem:[%s21815_s7 + $0xda0] sm:$0xff]   ;;  %v17673_v4 = vld [vmem:[%s21815_s7 + $0xd28] sm:$0xff]  }
0x2fff   : > { %v13410_v50 = vmax.f32 %v13117_v1, 0.0  ;;  %v13412_v51 = vmax.f32 %v13158_v21, 0.0  ;;  %v13121_v12 = vpop.f32.mrb[143].mxu0  ;;  %v13162_v5 = vpop.f32.mrb[147].mxu1  ;;  %v17671_v1 = vld [vmem:[%s21815_s7 + $0xd68] sm:$0xff]   ;;  %v17675_v45 = vld [vmem:[%s21815_s7 + $0xd70] sm:$0xff]  }
0x3000   : > { %v13411_v14 = vmax.f32 %v13119_v18, 0.0  ;;  %v13413_v58 = vmax.f32 %v13160_v13, 0.0  ;;  %v17672_v21 = vld [vmem:[%s21815_s7 + $0xde8] sm:$0xff]   ;;  %v12698_v18 = vrot.slane %v21414_v60, %v18546_v40  ;;  %v12706_v13 = vrot.slane %v21414_v60, %v18549_v41  ;;  %v17677_v12 = vld [vmem:[%s21815_s7 + $0xd30] sm:$0xff]  }
0x3001   : > { %v13426_v10 = vpack.c.bf16 %v13410_v50, %v13410_v50  ;;  %v13428_v31 = vpack.c.bf16 %v13412_v51, %v13412_v51  ;;  %v17674_v8 = vld [vmem:[%s21815_s7 + $0xda8] sm:$0xff]   ;;  %v17676_v50 = vld [vmem:[%s21815_s7 + $0xdf0] sm:$0xff]  }
0x3002   : > { %v13427_v15 = vpack.c.bf16 %v13411_v14, %v13411_v14  ;;  %v13429_v17 = vpack.c.bf16 %v13413_v58, %v13413_v58  ;;  %v21501_v44 = vld [vmem:[%s21812_s4 + $0x23] ss:$4 sm:$0xff] }
0x3003   : > { %v12718_v60 = vrot.slane %v21501_v44, %v18023_v42  ;;  %v12726_v51 = vrot.slane %v21501_v44, %v18471_v25  ;;  %v17678_v5 = vld [vmem:[%s21815_s7 + $0xdb0] sm:$0xff]   ;;  %v17680_v42 = vld [vmem:[%s21815_s7 + $0xdf8] sm:$0xff]  }
0x3004   : > { %14242 = vmatprep.mubr.bf16.mxu0 %v13427_v15  ;;  %14282 = vmatprep.mubr.bf16.mxu1 %v13429_v17  ;;  %v17679_v15 = vld [vmem:[%s21815_s7 + $0xd78] sm:$0xff]  }
0x3005   : > { %14243 = vmatmul.mubr.bf16.vlgmr.msra.gmra.mrb[156].mxu0 %v13426_v10  ;;  %14283 = vmatmul.mubr.bf16.vlgmr.msra.gmra.mrb[160].mxu1 %v13428_v31 }
0x3006   : > { %16391 = vmatpush3.bf16.msra.mxu0 %v17653_v19  ;;  %16413 = vmatpush3.bf16.msra.mxu1 %v17654_v26 }
0x3007   : > { %16392 = vmatprep.subr.bf16.mxu0 %v17655_v33  ;;  %16414 = vmatprep.subr.bf16.mxu1 %v17656_v49 }
0x300a   : > { %16393 = vmatpush3.bf16.msra.mxu0 %v17657_v36  ;;  %16415 = vmatpush3.bf16.msra.mxu1 %v17658_v38  ;;  %v17681_v36 = vld [vmem:[%s21815_s7 + $0xd38] sm:$0xff]  }
0x300b   : > { %16394 = vmatprep.subr.bf16.mxu0 %v17659_v11  ;;  %16416 = vmatprep.subr.bf16.mxu1 %v17660_v30  ;;  %v17682_v38 = vld [vmem:[%s21815_s7 + $0xdb8] sm:$0xff]  }
0x300c   : > { %v13198_v53 = vpop.f32.mrb[144].mxu0  ;;  %v13239_v37 = vpop.f32.mrb[148].mxu1 }
0x300d   : > { %v13200_v55 = vpop.f32.mrb[145].mxu0  ;;  %v13241_v24 = vpop.f32.mrb[149].mxu1  ;;  %v13199_v14 = vadd.f32 %v13198_v53, %v12698_v18  ;;  %v13240_v58 = vadd.f32 %v13239_v37, %v12706_v13  ;;  %v17685_v53 = vld [vmem:[%s21815_s7 + $0xe00] sm:$0xff]  }
0x300e   : > { %v13201_v56 = vadd.f32 %v13200_v55, %v12702_v32  ;;  %v13242_v39 = vadd.f32 %v13241_v24, %v12710_v20  ;;  %v13202_v57 = vpop.f32.mrb[146].mxu0  ;;  %v13243_v63 = vpop.f32.mrb[150].mxu1  ;;  %16395 = vmatpush3.bf16.msra.mxu0 %v17661_v46  ;;  %16417 = vmatpush3.bf16.msra.mxu1 %v17662_v47  ;;  %v17683_v46 = vld [vmem:[%s21815_s7 + $0xe40] sm:$0xff]  }
0x300f   : > { %v13203_v27 = vpop.f32.mrb[147].mxu0  ;;  %v13244_v9 = vpop.f32.mrb[151].mxu1  ;;  %16396 = vmatprep.subr.bf16.mxu0 %v17663_v48  ;;  %16418 = vmatprep.subr.bf16.mxu1 %v17664_v16  ;;  %v13414_v11 = vmax.f32 %v13199_v14, 0.0  ;;  %v13416_v30 = vmax.f32 %v13240_v58, 0.0  ;;  %v17684_v47 = vld [vmem:[%s21815_s7 + $0xec0] sm:$0xff]   ;;  %v17688_v57 = vld [vmem:[%s21815_s7 + $0xec8] sm:$0xff]  }
0x3010   : > { %v13415_v61 = vmax.f32 %v13201_v56, 0.0  ;;  %v13417_v6 = vmax.f32 %v13242_v39, 0.0  ;;  %v17686_v24 = vld [vmem:[%s21815_s7 + $0xe80] sm:$0xff]   ;;  %v17687_v39 = vld [vmem:[%s21815_s7 + $0xe48] sm:$0xff]   ;;  %v17691_v27 = vld [vmem:[%s21815_s7 + $0xe50] sm:$0xff]  }
0x3011   : > { %v13430_v37 = vpack.c.bf16 %v13414_v11, %v13414_v11  ;;  %v13432_v55 = vpack.c.bf16 %v13416_v30, %v13416_v30  ;;  %v17692_v9 = vld [vmem:[%s21815_s7 + $0xed0] sm:$0xff]   ;;  %v17704_v14 = vld [vmem:[%s21815_s7 + $0xee8] sm:$0xff]  }
0x3012   : > { %v13431_v54 = vpack.c.bf16 %v13415_v61, %v13415_v61  ;;  %v13433_v34 = vpack.c.bf16 %v13417_v6, %v13417_v6  ;;  %16397 = vmatpush3.bf16.msra.mxu0 %v17665_v59  ;;  %16419 = vmatpush3.bf16.msra.mxu1 %v17666_v43  ;;  %v17689_v59 = vld [vmem:[%s21815_s7 + $0xe08] sm:$0xff]   ;;  %v17694_v61 = vld [vmem:[%s21815_s7 + $0xe90] sm:$0xff]   ;;  %v17695_v6 = vld [vmem:[%s21815_s7 + $0xe58] sm:$0xff]  }
0x3013   : > { %16398 = vmatprep.subr.bf16.mxu0 %v17667_v0  ;;  %16420 = vmatprep.subr.bf16.mxu1 %v17668_v22  ;;  %v17690_v43 = vld [vmem:[%s21815_s7 + $0xe88] sm:$0xff]   ;;  %v12738_v0 = vrot.slane %v21501_v44, %v18549_v41  ;;  %v17693_v22 = vld [vmem:[%s21815_s7 + $0xe10] sm:$0xff]   ;;  %v17696_v41 = vld [vmem:[%s21815_s7 + $0xed8] sm:$0xff]  }
0x3014   : > { %14322 = vmatprep.mubr.bf16.mxu0 %v13431_v54  ;;  %14362 = vmatprep.mubr.bf16.mxu1 %v13433_v34  ;;  %v17705_v58 = vld [vmem:[%s21815_s7 + $0xe28] sm:$0xff]  }
0x3016   : > { %16399 = vmatpush3.bf16.msra.mxu0 %v17669_v62  ;;  %16421 = vmatpush3.bf16.msra.mxu1 %v17670_v29 }
0x3017   : > { %16400 = vmatprep.subr.bf16.mxu0 %v17671_v1  ;;  %16422 = vmatprep.subr.bf16.mxu1 %v17672_v21 }
0x301a   : > { %16401 = vmatpush3.bf16.msra.mxu0 %v17673_v4  ;;  %16423 = vmatpush3.bf16.msra.mxu1 %v17674_v8  ;;  %v17697_v8 = vld [vmem:[%s21815_s7 + $0xe18] sm:$0xff]  }
0x301b   : > { %16402 = vmatprep.subr.bf16.mxu0 %v17675_v45  ;;  %16424 = vmatprep.subr.bf16.mxu1 %v17676_v50  ;;  %v17698_v45 = vld [vmem:[%s21815_s7 + $0xe98] sm:$0xff]   ;;  %v17699_v50 = vld [vmem:[%s21815_s7 + $0xe60] sm:$0xff]  }
0x301c   : > { %v21525_v25 = vpop.f32.mrb[148].mxu0  ;;  %v21527_v17 = vpop.f32.mrb[152].mxu1 }
0x301d   : > { %v13282_v19 = vpop.f32.mrb[149].mxu0  ;;  %v13323_v26 = vpop.f32.mrb[153].mxu1 }
0x301e   : > { %v13283_v10 = vadd.f32 %v13282_v19, %v12718_v60  ;;  %v13324_v31 = vadd.f32 %v13323_v26, %v12726_v51  ;;  %v13284_v33 = vpop.f32.mrb[150].mxu0  ;;  %v13325_v49 = vpop.f32.mrb[154].mxu1  ;;  %16403 = vmatpush3.bf16.msra.mxu0 %v17677_v12  ;;  %16425 = vmatpush3.bf16.msra.mxu1 %v17678_v5  ;;  %v17700_v60 = vld [vmem:[%s21815_s7 + $0xee0] sm:$0xff]   ;;  %v17703_v5 = vld [vmem:[%s21815_s7 + $0xe68] sm:$0xff]   ;;  %v17707_v19 = vld [vmem:[%s21815_s7 + $0xe70] sm:$0xff]   ;;  %v12722_v26 = vrot.slane %v21501_v44, %v18463_v23 }
0x301f   : > { %v13285_v32 = vpop.f32.mrb[151].mxu0  ;;  %v13326_v20 = vpop.f32.mrb[155].mxu1  ;;  %16404 = vmatprep.subr.bf16.mxu0 %v17679_v15  ;;  %16426 = vmatprep.subr.bf16.mxu1 %v17680_v42  ;;  %v17701_v51 = vld [vmem:[%s21815_s7 + $0xe20] sm:$0xff]   ;;  %v12714_v15 = vrot.slane %v21501_v44, %v18015_v35  ;;  %v17706_v42 = vld [vmem:[%s21815_s7 + $0xea8] sm:$0xff]   ;;  %v12734_v35 = vrot.slane %v21501_v44, %v18500_v52  ;;  %v17709_v33 = vld [vmem:[%s21815_s7 + $0xe30] sm:$0xff]  }
0x3020   : > { %v13419_v48 = vmax.f32 %v13283_v10, 0.0  ;;  %v13421_v16 = vmax.f32 %v13324_v31, 0.0  ;;  %v17702_v12 = vld [vmem:[%s21815_s7 + $0xea0] sm:$0xff]   ;;  %v17708_v10 = vld [vmem:[%s21815_s7 + $0xef0] sm:$0xff]   ;;  %v12742_v31 = vrot.slane %v21501_v44, %v18503_v3  ;;  %v17711_v52 = vld [vmem:[%s21815_s7 + $0xe78] sm:$0xff]  }
0x3021   : > { %v13281_v49 = vadd.f32 %v21525_v25, %v12714_v15  ;;  %v17710_v23 = vld [vmem:[%s21815_s7 + $0xeb0] sm:$0xff]   ;;  %v17712_v3 = vld [vmem:[%s21815_s7 + $0xef8] sm:$0xff]  }
0x3022   : > { %16405 = vmatpush3.bf16.msra.mxu0 %v17681_v36  ;;  %16427 = vmatpush3.bf16.msra.mxu1 %v17682_v38  ;;  %v13435_v56 = vpack.c.bf16 %v13419_v48, %v13419_v48  ;;  %v13437_v63 = vpack.c.bf16 %v13421_v16, %v13421_v16  ;;  %v13322_v36 = vadd.f32 %v21527_v17, %v12722_v26  ;;  %v17713_v25 = vld [vmem:[%s21815_s7 + $0xe38] sm:$0xff]   ;;  %v17715_v17 = vld [vmem:[%s21815_s7 + $0xf40] sm:$0xff]  }
0x3023   : > { %16434 = vmatprep.subr.bf16.mxu0 %v17683_v46  ;;  %16456 = vmatprep.subr.bf16.mxu1 %v17684_v47  ;;  %v13418_v30 = vmax.f32 %v13281_v49, 0.0  ;;  %v17714_v32 = vld [vmem:[%s21815_s7 + $0xeb8] sm:$0xff]   ;;  %v17716_v46 = vld [vmem:[%s21815_s7 + $0xfc0] sm:$0xff]  }
0x3024   : > { %v13420_v20 = vmax.f32 %v13322_v36, 0.0  ;;  %v17717_v16 = vld [vmem:[%s21815_s7 + $0xf00] sm:$0xff]  }
0x3025   : > { %14323 = vmatmul.mubr.bf16.vlgmr.msra.gmra.mrb[160].mxu0 %v13430_v37  ;;  %14363 = vmatmul.mubr.bf16.vlgmr.msra.gmra.mrb[164].mxu1 %v13432_v55  ;;  %v17718_v37 = vld [vmem:[%s21815_s7 + $0xf80] sm:$0xff]  }
0x3026   : > { %16435 = vmatpush3.bf16.msra.mxu0 %v17685_v53  ;;  %14402 = vmatprep.mubr.bf16.mxu0 %v13435_v56  ;;  %v13434_v53 = vpack.c.bf16 %v13418_v30, %v13418_v30  ;;  %v13436_v55 = vpack.c.bf16 %v13420_v20, %v13420_v20 }
0x3027   : > { %16457 = vmatpush3.bf16.msra.mxu1 %v17686_v24  ;;  %14442 = vmatprep.mubr.bf16.mxu1 %v13437_v63  ;;  %v17719_v24 = vld [vmem:[%s21815_s7 + $0xf48] sm:$0xff]  }
0x3028   : > { %16436 = vmatprep.subr.bf16.mxu0 %v17687_v39  ;;  %16458 = vmatprep.subr.bf16.mxu1 %v17688_v57  ;;  %v17720_v39 = vld [vmem:[%s21815_s7 + $0xfc8] sm:$0xff]  }
0x3029   : > { %v17721_v63 = vld [vmem:[%s21815_s7 + $0xf08] sm:$0xff]  }
0x302a   : > { %16437 = vmatpush3.bf16.msra.mxu0 %v17689_v59  ;;  %v17722_v59 = vld [vmem:[%s21815_s7 + $0xf88] sm:$0xff]  }
0x302b   : > { %16459 = vmatpush3.bf16.msra.mxu1 %v17690_v43  ;;  %16438 = vmatprep.subr.bf16.mxu0 %v17691_v27  ;;  %v17723_v43 = vld [vmem:[%s21815_s7 + $0xf50] sm:$0xff]  }
0x302c   : > { %v21576_v54 = vpop.f32.mrb[152].mxu0  ;;  %v13403_v34 = vpop.f32.mrb[156].mxu1  ;;  %16460 = vmatprep.subr.bf16.mxu1 %v17692_v9  ;;  %v17724_v27 = vld [vmem:[%s21815_s7 + $0xfd0] sm:$0xff]  }
0x302d   : > { %v21581_v62 = vadd.f32 %v13403_v34, %v12738_v0  ;;  %v13364_v29 = vpop.f32.mrb[153].mxu0  ;;  %v13405_v1 = vpop.f32.mrb[157].mxu1  ;;  %v17725_v9 = vld [vmem:[%s21815_s7 + $0xf10] sm:$0xff]   ;;  %v17730_v34 = vld [vmem:[%s21815_s7 + $0xf98] sm:$0xff]  }
0x302e   : > { %v13366_v21 = vpop.f32.mrb[154].mxu0  ;;  %v13407_v4 = vpop.f32.mrb[158].mxu1  ;;  %16439 = vmatpush3.bf16.msra.mxu0 %v17693_v22  ;;  %v13365_v38 = vadd.f32 %v13364_v29, %v12734_v35  ;;  %v13406_v11 = vadd.f32 %v13405_v1, %v12742_v31  ;;  %v17726_v0 = vld [vmem:[%s21815_s7 + $0xf90] sm:$0xff]   ;;  %v17727_v22 = vld [vmem:[%s21815_s7 + $0xf58] sm:$0xff]   ;;  %v17732_v29 = vld [vmem:[%s21815_s7 + $0xfe0] sm:$0xff]  }
0x302f   : > { %16461 = vmatpush3.bf16.msra.mxu1 %v17694_v61  ;;  %v13367_v18 = vpop.f32.mrb[155].mxu0  ;;  %v13408_v13 = vpop.f32.mrb[159].mxu1  ;;  %16440 = vmatprep.subr.bf16.mxu0 %v17695_v6  ;;  %v17728_v61 = vld [vmem:[%s21815_s7 + $0xfd8] sm:$0xff]   ;;  %v17733_v1 = vld [vmem:[%s21815_s7 + $0xf20] sm:$0xff]   ;;  %v17735_v4 = vld [vmem:[%s21815_s7 + $0xf68] sm:$0xff]   ;;  %v13424_v15 = vmax.f32 %v21581_v62, 0.0 }
0x3030   : > { %16462 = vmatprep.subr.bf16.mxu1 %v17696_v41  ;;  %v13423_v47 = vmax.f32 %v13365_v38, 0.0  ;;  %v13425_v48 = vmax.f32 %v13406_v11, 0.0  ;;  %v17729_v6 = vld [vmem:[%s21815_s7 + $0xf18] sm:$0xff]   ;;  %v17731_v41 = vld [vmem:[%s21815_s7 + $0xf60] sm:$0xff]   ;;  %v17737_v18 = vld [vmem:[%s21815_s7 + $0xf28] sm:$0xff]   ;;  %v12730_v13 = vrot.slane %v21501_v44, %v18546_v40 }
0x3031   : > { %v17734_v21 = vld [vmem:[%s21815_s7 + $0xfa0] sm:$0xff]   ;;  %v17741_v40 = vld [vmem:[%s21815_s7 + $0xf30] sm:$0xff]  }
0x3032   : > { %16441 = vmatpush3.bf16.msra.mxu0 %v17697_v8  ;;  %v13439_v56 = vpack.c.bf16 %v13423_v47, %v13423_v47  ;;  %v13441_v57 = vpack.c.bf16 %v13425_v48, %v13425_v48  ;;  %v17736_v8 = vld [vmem:[%s21815_s7 + $0xfe8] sm:$0xff]   ;;  %v13363_v44 = vadd.f32 %v21576_v54, %v12730_v13  ;;  %v17745_v54 = vld [vmem:[%s21815_s7 + $0xf38] sm:$0xff]   ;;  %v12675_v35 = vld [vmem:[%s21811_s3 + $0x46] ss:$0 sm:$0xff] }
0x3033   : > { %16463 = vmatpush3.bf16.msra.mxu1 %v17698_v45  ;;  %16442 = vmatprep.subr.bf16.mxu0 %v17699_v50  ;;  %v17738_v45 = vld [vmem:[%s21815_s7 + $0xfa8] sm:$0xff]   ;;  %v17739_v50 = vld [vmem:[%s21815_s7 + $0xf70] sm:$0xff]  }
0x3034   : > { %16464 = vmatprep.subr.bf16.mxu1 %v17700_v60  ;;  %v17740_v60 = vld [vmem:[%s21815_s7 + $0xff0] sm:$0xff]  }
0x3036   : > { %16443 = vmatpush3.bf16.msra.mxu0 %v17701_v51  ;;  %v17742_v51 = vld [vmem:[%s21815_s7 + $0xfb0] sm:$0xff]  }
0x3037   : > { %16465 = vmatpush3.bf16.msra.mxu1 %v17702_v12  ;;  %16444 = vmatprep.subr.bf16.mxu0 %v17703_v5  ;;  %v17743_v12 = vld [vmem:[%s21815_s7 + $0xf78] sm:$0xff]  }
0x3038   : > { %16466 = vmatprep.subr.bf16.mxu1 %v17704_v14  ;;  %v17744_v5 = vld [vmem:[%s21815_s7 + $0xff8] sm:$0xff]   ;;  %v13422_v14 = vmax.f32 %v13363_v44, 0.0 }
0x303a   : > { %16445 = vmatpush3.bf16.msra.mxu0 %v17705_v58  ;;  %v17746_v58 = vld [vmem:[%s21815_s7 + $0xfb8] sm:$0xff]  }
0x303b   : > { %16467 = vmatpush3.bf16.msra.mxu1 %v17706_v42  ;;  %16446 = vmatprep.subr.bf16.mxu0 %v17707_v19  ;;  %v13438_v42 = vpack.c.bf16 %v13422_v14, %v13422_v14  ;;  %v13440_v19 = vpack.c.bf16 %v13424_v15, %v13424_v15 }
0x303c   : > { %16468 = vmatprep.subr.bf16.mxu1 %v17708_v10 }
0x303e   : > { %16447 = vmatpush3.bf16.msra.mxu0 %v17709_v33 }
0x303f   : > { %16469 = vmatpush3.bf16.msra.mxu1 %v17710_v23  ;;  %16448 = vmatprep.subr.bf16.mxu0 %v17711_v52 }
0x3040   : > { %16470 = vmatprep.subr.bf16.mxu1 %v17712_v3 }
0x3042   : > { %16449 = vmatpush3.bf16.msra.mxu0 %v17713_v25 }
0x3043   : > { %16471 = vmatpush3.bf16.msra.mxu1 %v17714_v32  ;;  %16478 = vmatprep.subr.bf16.mxu0 %v17715_v17 }
0x3044   : > { %16500 = vmatprep.subr.bf16.mxu1 %v17716_v46 }
0x3045   : > { %14403 = vmatmul.mubr.bf16.vlgmr.msra.gmra.mrb[164].mxu0 %v13434_v53 }
0x3046   : > { %14443 = vmatmul.mubr.bf16.vlgmr.msra.gmra.mrb[168].mxu1 %v13436_v55  ;;  %16479 = vmatpush3.bf16.msra.mxu0 %v17717_v16 }
0x3047   : > { %14482 = vmatprep.mubr.bf16.mxu0 %v13439_v56  ;;  %16501 = vmatpush3.bf16.msra.mxu1 %v17718_v37 }
0x3048   : > { %14522 = vmatprep.mubr.bf16.mxu1 %v13441_v57  ;;  %16480 = vmatprep.subr.bf16.mxu0 %v17719_v24 }
0x3049   : > { %16502 = vmatprep.subr.bf16.mxu1 %v17720_v39 }
0x304a   : > { %16481 = vmatpush3.bf16.msra.mxu0 %v17721_v63 }
0x304b   : > { %16503 = vmatpush3.bf16.msra.mxu1 %v17722_v59  ;;  %16482 = vmatprep.subr.bf16.mxu0 %v17723_v43 }
0x304c   : > { %16504 = vmatprep.subr.bf16.mxu1 %v17724_v27 }
0x304e   : > { %16483 = vmatpush3.bf16.msra.mxu0 %v17725_v9 }
0x304f   : > { %16505 = vmatpush3.bf16.msra.mxu1 %v17726_v0  ;;  %16484 = vmatprep.subr.bf16.mxu0 %v17727_v22 }
0x3050   : > { %16506 = vmatprep.subr.bf16.mxu1 %v17728_v61 }
0x3052   : > { %16485 = vmatpush3.bf16.msra.mxu0 %v17729_v6 }
0x3053   : > { %16507 = vmatpush3.bf16.msra.mxu1 %v17730_v34  ;;  %16486 = vmatprep.subr.bf16.mxu0 %v17731_v41 }
0x3054   : > { %16508 = vmatprep.subr.bf16.mxu1 %v17732_v29 }
0x3056   : > { %16487 = vmatpush3.bf16.msra.mxu0 %v17733_v1 }
0x3057   : > { %16509 = vmatpush3.bf16.msra.mxu1 %v17734_v21  ;;  %16488 = vmatprep.subr.bf16.mxu0 %v17735_v4 }
0x3058   : > { %16510 = vmatprep.subr.bf16.mxu1 %v17736_v8 }
0x305a   : > { %16489 = vmatpush3.bf16.msra.mxu0 %v17737_v18 }
0x305b   : > { %16511 = vmatpush3.bf16.msra.mxu1 %v17738_v45  ;;  %16490 = vmatprep.subr.bf16.mxu0 %v17739_v50 }
0x305c   : > { %16512 = vmatprep.subr.bf16.mxu1 %v17740_v60 }
0x305e   : > { %16491 = vmatpush3.bf16.msra.mxu0 %v17741_v40 }
0x305f   : > { %16513 = vmatpush3.bf16.msra.mxu1 %v17742_v51  ;;  %16492 = vmatprep.subr.bf16.mxu0 %v17743_v12 }
0x3060   : > { %16514 = vmatprep.subr.bf16.mxu1 %v17744_v5 }
0x3062   : > { %16493 = vmatpush3.bf16.msra.mxu0 %v17745_v54 }
0x3063   : > { %16515 = vmatpush3.bf16.msra.mxu1 %v17746_v58  ;;  %17174 = vmatprep.subr.bf16.mxu0 %v17879_v28 }
0x3065   : > { %14483 = vmatmul.mubr.bf16.vlgmr.msra.gmra.mrb[168].mxu0 %v13438_v42  ;;  %v14531_v42 = vld [vmem:[%s21811_s3 + $0x53] ss:$0 sm:$0xff] }
0x3066   : > { %14523 = vmatmul.mubr.bf16.vlgmr.msra.gmra.mrb[172].mxu1 %v13440_v19  ;;  %16987 = vmatprep.mubr.msk.f32.mxu0 %vm17877_vm0, %v17876_v2  ;;  %v14532_v19 = vld [vmem:[%s21811_s3 + $0x54] ss:$0 sm:$0xff] }
0x30d8   : > { %v16362_v26 = vpop.f32.mrb[156].mxu0  ;;  %v16384_v10 = vpop.f32.mrb[160].mxu1 }
0x30d9   : > { %v16363_v31 = vpop.f32.mrb[157].mxu0  ;;  %v16385_v62 = vpop.f32.mrb[161].mxu1 }
0x30da   : > { %v16364_v33 = vadd.f32 %v16363_v31, %v16362_v26  ;;  %v16386_v49 = vadd.f32 %v16385_v62, %v16384_v10  ;;  %v16365_v23 = vpop.f32.mrb[158].mxu0  ;;  %v16387_v52 = vpop.f32.mrb[162].mxu1 }
0x30db   : > { %v16366_v36 = vpop.f32.mrb[159].mxu0  ;;  %v16388_v3 = vpop.f32.mrb[163].mxu1  ;;  %v14565_v52 = vld [vmem:[%s21813_s5 + $0x20] sm:$0xff] }
0x30dc   : > { %v14245_v38 = vadd.f32 %v16364_v33, %v12675_v35  ;;  %v14566_v36 = vld [vmem:[%s21813_s5 + $0x30] sm:$0xff] }
0x30dd   : > { %v17175_v3 = vpack.c.bf16 %v14566_v36, %v14565_v52 }
0x30de   : > { %v14285_v11 = vadd.f32 %v16386_v49, %v14245_v38  ;;  %v14567_v38 = vld [vmem:[%s21813_s5 + $0x40] sm:$0xff] }
0x30df   : > { %17176 = vmatpush3.bf16.msra.mxu0 %v17175_v3 }
0x30e0   : > { %17177 = vmatprep.subr.bf16.mxu0 %v17879_v28 }
0x30f8   : > { %v16406_v25 = vpop.f32.mrb[160].mxu0  ;;  %v16428_v30 = vpop.f32.mrb[164].mxu1 }
0x30f9   : > { %v16407_v32 = vpop.f32.mrb[161].mxu0  ;;  %v16429_v2 = vpop.f32.mrb[165].mxu1 }
0x30fa   : > { %v16408_v17 = vadd.f32 %v16407_v32, %v16406_v25  ;;  %v16430_v20 = vadd.f32 %v16429_v2, %v16428_v30  ;;  %v16409_v46 = vpop.f32.mrb[162].mxu0  ;;  %v16431_v47 = vpop.f32.mrb[166].mxu1  ;;  %v14569_v30 = vld [vmem:[%s21813_s5 + $0x60] sm:$0xff]  ;;  %v14570_v32 = vld [vmem:[%s21813_s5 + $0x70] sm:$0xff] }
0x30fb   : > { %v16410_v48 = vpop.f32.mrb[163].mxu0  ;;  %v16432_v16 = vpop.f32.mrb[167].mxu1  ;;  %v17181_v2 = vpack.c.bf16 %v14570_v32, %v14569_v30 }
0x30fc   : > { %v14325_v53 = vadd.f32 %v16408_v17, %v14285_v11  ;;  %v14568_v11 = vld [vmem:[%s21813_s5 + $0x50] sm:$0xff]  ;;  %v14571_v17 = vld [vmem:[%s21813_s5 + $0x80] sm:$0xff] }
0x30fd   : > { %v17178_v25 = vpack.c.bf16 %v14568_v11, %v14567_v38 }
0x30fe   : > { %v14365_v37 = vadd.f32 %v16430_v20, %v14325_v53  ;;  %v14572_v20 = vld [vmem:[%s21813_s5 + $0x90] sm:$0xff] }
0x30ff   : > { %17179 = vmatpush3.bf16.msra.mxu0 %v17178_v25  ;;  %v17184_v46 = vpack.c.bf16 %v14572_v20, %v14571_v17 }
0x3100   : > { %17180 = vmatprep.subr.bf16.mxu0 %v17879_v28 }
0x3103   : > { %17182 = vmatpush3.bf16.msra.mxu0 %v17181_v2 }
0x3104   : > { %17183 = vmatprep.subr.bf16.mxu0 %v17879_v28  ;;  %v14548_v28 = vld [vmem:[%s21811_s3 + $0x4] ss:$0 sm:$0xff] }
0x3107   : > { %17185 = vmatpush3.bf16.msra.mxu0 %v17184_v46 }
0x3118   : > { %v16450_v55 = vpop.f32.mrb[164].mxu0 }
0x3119   : > { %v16472_v24 = vpop.f32.mrb[168].mxu1  ;;  %v16451_v56 = vpop.f32.mrb[165].mxu0 }
0x311a   : > { %v16452_v39 = vadd.f32 %v16451_v56, %v16450_v55  ;;  %v16473_v57 = vpop.f32.mrb[169].mxu1  ;;  %v16453_v63 = vpop.f32.mrb[166].mxu0  ;;  %v14549_v55 = vld [vmem:[%s21811_s3 + $0x5] ss:$0 sm:$0xff] }
0x311b   : > { %v16474_v59 = vadd.f32 %v16473_v57, %v16472_v24  ;;  %v16475_v43 = vpop.f32.mrb[170].mxu1  ;;  %v16454_v27 = vpop.f32.mrb[167].mxu0 }
0x311c   : > { %v14405_v9 = vadd.f32 %v16452_v39, %v14365_v37  ;;  %v16476_v0 = vpop.f32.mrb[171].mxu1  ;;  %v14573_v39 = vld [vmem:[%s21811_s3 + $0x6] ss:$0 sm:$0xff] }
0x311e   : > { %v14445_v22 = vadd.f32 %v16474_v59, %v14405_v9 }
0x3138   : > { %v16494_v61 = vpop.f32.mrb[168].mxu0 }
0x3139   : > { %v16516_v6 = vpop.f32.mrb[172].mxu1  ;;  %v16495_v34 = vpop.f32.mrb[169].mxu0 }
0x313a   : > { %v16496_v41 = vadd.f32 %v16495_v34, %v16494_v61  ;;  %v16517_v29 = vpop.f32.mrb[173].mxu1  ;;  %v16497_v1 = vpop.f32.mrb[170].mxu0 }
0x313b   : > { %v16518_v21 = vadd.f32 %v16517_v29, %v16516_v6  ;;  %v16519_v4 = vpop.f32.mrb[174].mxu1  ;;  %v16498_v8 = vpop.f32.mrb[171].mxu0 }
0x313c   : > { %v14485_v18 = vadd.f32 %v16496_v41, %v14445_v22  ;;  %v16520_v13 = vpop.f32.mrb[175].mxu1 }
0x313e   : > { %v14525_v45 = vadd.f32 %v16518_v21, %v14485_v18 }
0x3140   : > { %v14530_v50 = vadd.f32 %v14525_v45, %v21161_v7 }
0x3142   : > { %v14533_v60 = vsel %vm429_vm2, %v14530_v50, 0.0 }
0x3143   : > { %14534 = vadd.xlane.f32.xlu0 %v14533_v60 }
0x31d0   : > { %v14535_v40 = vpop.xlane.xlu0 %14534 }
0x31d1   : > { %v14536_v44 = vmul.f32 0.015625, %v14535_v40 }
0x31d3   : > { %v14537_v51 = vsub.f32 %v14530_v50, %v14536_v44 }
0x31d5   : > { %v14538_v12 = vmul.f32 %v14537_v51, %v14537_v51 }
0x31d7   : > { %v14539_v5 = vsel %vm429_vm2, %v14538_v12, 0.0 }
0x31d8   : > { %14540 = vadd.xlane.f32.xlu0 %v14539_v5 }
0x3265   : > { %v14541_v54 = vpop.xlane.xlu0 %14540 }
0x3266   : > { %v14542_v14 = vmul.f32 0.015625, %v14541_v54 }
0x3268   : > { %v14543_v58 = vadd.f32 1e-05, %v14542_v14 }
0x326a   : > { %17863 = vrsqrt.f32 %v14543_v58 }
0x3274   : > { %v17864_v15 = vpop.eup %17863 }
0x3275   : > { %v14545_v7 = vmul.f32 %v17864_v15, %v14537_v51 }
0x3277   : > { %v14546_v26 = vmul.f32 %v14545_v7, %v14531_v42 }
0x3279   : > { %v14547_v10 = vadd.f32 %v14546_v26, %v14532_v19 }
0x327b   : > { %v14550_v35 = vsel %vm429_vm2, %v14547_v10, 0.0 }
0x327c   : > { %14551 = vadd.xlane.f32.xlu0 %v14550_v35 }
0x3309   : > { %v14552_v31 = vpop.xlane.xlu0 %14551 }
0x330a   : > { %v14553_v62 = vmul.f32 0.015625, %v14552_v31 }
0x330c   : > { %v14554_v33 = vsub.f32 %v14547_v10, %v14553_v62 }
0x330e   : > { %v14555_v49 = vmul.f32 %v14554_v33, %v14554_v33 }
0x3310   : > { %v14556_v23 = vsel %vm429_vm2, %v14555_v49, 0.0 }
0x3311   : > { %14557 = vadd.xlane.f32.xlu1 %v14556_v23 }
0x339e   : > { %v14558_v47 = vpop.xlane.xlu1 %14557 }
0x339f   : > { %v14559_v48 = vmul.f32 0.015625, %v14558_v47 }
0x33a1   : > { %v14560_v16 = vadd.f32 1e-05, %v14559_v48 }
0x33a3   : > { %17865 = vrsqrt.f32 %v14560_v16 }
0x33ad   : > { %v17866_v53 = vpop.eup %17865 }
0x33ae   : > { %v14562_v37 = vmul.f32 %v17866_v53, %v14554_v33 }
0x33b0   : > { %v14563_v24 = vmul.f32 %v14562_v37, %v14548_v28 }
0x33b2   : > { %v14564_v56 = vadd.f32 %v14563_v24, %v14549_v55 }
0x33b4   : > { %16988 = vmatmul.mubr.msk.f32.vlgmr.msra.gmra.mrb[172].mxu0 %vm429_vm2, %v14564_v56 }
0x3487   : > { %v14643_v57 = vpop.f32.mrb[172].mxu0 }
0x3488   : > { %v14644_v63 = vadd.f32 %v14643_v57, %v14573_v39  ;;  %v16989_v59 = vpop.f32.mrb[173].mxu0 }
0x348a   : > { %14648 = vst.msk [vmem:[%s317_s29] sm:$0xff] %vm14647_vm13, %v14644_v63 }
0x348b PF: > { %s18_s27 = sadd.s32 1, %s17874_s27  }
0x348c   : > { %p15_p4 = scmp.ge.s32.totalorder %s18_s27, 4  }
0x348e   :  { %17 = sbr.rel (!%p15_p4) target bundleno = 1 (0x1), region = 96 }

</bundles_post_ra>
